<compile_context>
chip_gen: v7x
topology: tpu7x:2x2x1
jax: 0.10.0
libtpu: 0.0.40
codegen_flags: <defaults>
</compile_context>

<pallas_src>
import functools
import math

import jax
import jax.numpy as jnp
from jax.experimental import pallas as pl
from jax.experimental.pallas import tpu as pltpu

LEAK_MEM = 0.95
THRESHOLD = 1.0          # conv/fc "threshold" attribute set in __init__
VMEM_LIMIT = 64 * 1024 * 1024


# ----------------------------- Pallas kernels -----------------------------

def conv_lif_kernel(x_ref, w_ref, spk_ref, mem_ref, *, leak, W, M):
    """Fused 3x3 conv (pad=1) + leaky-integrate-and-fire for one (batch, timestep).

    x_ref  : (P_pad, Cin)  bf16  -- zero-padded activation, spatial flattened row-major
                                    as (H+2, W+2); P_pad >= (H+2)*(W+2)+2.
    w_ref  : (9, Cin, Cout) bf16 -- tap index = kh*3 + kw (resident, DMA'd once).
    spk_ref: (M, Cout)     bf16  -- output spikes in "work layout", M = H*(W+2)
                                    (rows with w >= W are junk and discarded outside).
    mem_ref: (M, Cout)     f32 VMEM scratch -- membrane, persists across the time axis.
    """
    t = pl.program_id(1)

    @pl.when(t == 0)
    def _():
        mem_ref[...] = jnp.zeros_like(mem_ref)

    mem = leak * mem_ref[...]
    for kh in range(3):
        for kw in range(3):
            lhs = x_ref[pl.ds(kh * (W + 2) + kw, M), :]        # (M, Cin) bf16
            mem = mem + jnp.dot(lhs, w_ref[kh * 3 + kw],
                                preferred_element_type=jnp.float32)

    spk = (mem > THRESHOLD).astype(jnp.float32)                 # mem/thr - 1 > 0
    mem_ref[...] = mem - THRESHOLD * spk                        # soft reset
    spk_ref[...] = spk.astype(spk_ref.dtype)


def fc_lif_kernel(feat_ref, w1_ref, w2_ref, out_ref, mem1_ref, mem2_ref,
                  *, leak, n_steps):
    """fc1 + LIF fused with the fc2 accumulation; membranes resident across time.

    feat_ref: (B, F)  bf16 for one timestep.   w1_ref: (F, 1024) bf16 (resident).
    w2_ref:  (1024, num_cls) bf16 (resident).  out_ref: (B, num_cls) f32 accumulator block.
    mem1/mem2: VMEM scratch, persist across the time grid axis.
    """
    t = pl.program_id(0)

    @pl.when(t == 0)
    def _():
        mem1_ref[...] = jnp.zeros_like(mem1_ref)
        mem2_ref[...] = jnp.zeros_like(mem2_ref)

    psp = jnp.dot(feat_ref[...], w1_ref[...], preferred_element_type=jnp.float32)
    mem1 = leak * mem1_ref[...] + psp
    spk = (mem1 > THRESHOLD).astype(jnp.float32)
    mem1_ref[...] = mem1 - THRESHOLD * spk
    mem2_ref[...] = mem2_ref[...] + jnp.dot(spk.astype(jnp.bfloat16), w2_ref[...],
                                            preferred_element_type=jnp.float32)
    # final HBM value after the last grid step is mem_fc2 / num_steps
    out_ref[...] = mem2_ref[...] / float(n_steps)


# ----------------------------- Pallas wrappers -----------------------------

def conv_lif_layer(x_bthwc, w_taps, leak):
    """x_bthwc: (B, T, H, W, Cin) bf16 spikes -> (B, T, H, W, Cout) bf16 spikes."""
    B, T, H, W, C = x_bthwc.shape
    Cout = w_taps.shape[-1]

    # Zero-pad spatially (conv pad=1), flatten spatial, pad rows so every tap slice
    # of length M = H*(W+2) stays in bounds.
    P = (H + 2) * (W + 2)
    P_pad = ((P + 2 + 7) // 8) * 8
    xp = jnp.pad(x_bthwc, ((0, 0), (0, 0), (1, 1), (1, 1), (0, 0)))
    xp = xp.reshape(B, T, P, C)
    xp = jnp.pad(xp, ((0, 0), (0, 0), (0, P_pad - P), (0, 0)))
    M = H * (W + 2)

    kern = functools.partial(conv_lif_kernel, leak=leak, W=W, M=M)
    spk = pl.pallas_call(
        kern,
        out_shape=jax.ShapeDtypeStruct((B, T, M, Cout), jnp.bfloat16),
        grid=(B, T),
        in_specs=[
            pl.BlockSpec((None, None, P_pad, C), lambda b, t: (b, t, 0, 0)),
            pl.BlockSpec((9, C, Cout), lambda b, t: (0, 0, 0)),       # resident weights
        ],
        out_specs=pl.BlockSpec((None, None, M, Cout), lambda b, t: (b, t, 0, 0)),
        scratch_shapes=[pltpu.VMEM((M, Cout), jnp.float32)],          # membrane
        compiler_params=pltpu.CompilerParams(
            dimension_semantics=("parallel", "arbitrary"),
            vmem_limit_bytes=VMEM_LIMIT),
    )(xp, w_taps)

    # strip the junk columns of the work layout -> (B, T, H, W, Cout)
    return spk.reshape(B, T, H, W + 2, Cout)[:, :, :, :W, :]


def fc_head(feat_tbf, w1, w2, leak, n_steps):
    """feat_tbf: (T, B, F) bf16 -> (B, num_cls) f32 output voltage (mem_fc2 / T)."""
    T, B, F = feat_tbf.shape
    H1 = w1.shape[1]
    NC = w2.shape[1]
    kern = functools.partial(fc_lif_kernel, leak=leak, n_steps=n_steps)
    return pl.pallas_call(
        kern,
        out_shape=jax.ShapeDtypeStruct((B, NC), jnp.float32),
        grid=(T,),
        in_specs=[
            pl.BlockSpec((None, B, F), lambda t: (t, 0, 0)),
            pl.BlockSpec((F, H1), lambda t: (0, 0)),                  # resident
            pl.BlockSpec((H1, NC), lambda t: (0, 0)),                 # resident
        ],
        out_specs=pl.BlockSpec((B, NC), lambda t: (0, 0)),            # resident accumulator
        scratch_shapes=[pltpu.VMEM((B, H1), jnp.float32),             # mem_fc1
                        pltpu.VMEM((B, NC), jnp.float32)],            # mem_fc2
        compiler_params=pltpu.CompilerParams(
            dimension_semantics=("arbitrary",),
            vmem_limit_bytes=VMEM_LIMIT),
    )(feat_tbf, w1, w2)


# ----------------------------- glue (layout / params / rng) -----------------------------

def avg_pool_2x2(x):
    """AvgPool2d(kernel_size=2) on (B, T, H, W, C) channels-last spikes (exact in bf16)."""
    B, T, H, W, C = x.shape
    x = x.astype(jnp.float32).reshape(B, T, H // 2, 2, W // 2, 2, C)
    return x.mean(axis=(3, 5)).astype(jnp.bfloat16)


def xavier_uniform(key, shape, gain):
    """torch.nn.init.xavier_uniform_ with PyTorch fan conventions."""
    if len(shape) == 2:
        fan_out, fan_in = shape
    else:
        receptive = int(math.prod(shape[2:]))
        fan_out = shape[0] * receptive
        fan_in = shape[1] * receptive
    bound = gain * math.sqrt(6.0 / (fan_in + fan_out))
    return jax.random.uniform(key, shape, jnp.float32, -bound, bound)


def init_params(key, img_size, num_cls):
    ks = jax.random.split(key, 5)
    w_c1 = xavier_uniform(ks[0], (64, 3, 3, 3), gain=2.0)       # conv1
    w_c2 = xavier_uniform(ks[1], (128, 64, 3, 3), gain=2.0)     # conv2
    w_c3 = xavier_uniform(ks[2], (128, 128, 3, 3), gain=2.0)    # conv3
    feat = (img_size // 4) * (img_size // 4) * 128
    w_f1 = xavier_uniform(ks[3], (1024, feat), gain=2.0)        # fc1
    w_f2 = xavier_uniform(ks[4], (num_cls, 1024), gain=2.0)     # fc2

    def conv_to_taps(w, cin_pad=None):
        # (Cout, Cin, 3, 3) -> (9, Cin, Cout) bf16, tap index = kh*3 + kw
        t = jnp.transpose(w, (2, 3, 1, 0)).reshape(9, w.shape[1], w.shape[0])
        if cin_pad is not None and cin_pad > w.shape[1]:
            t = jnp.pad(t, ((0, 0), (0, cin_pad - w.shape[1]), (0, 0)))
        return t.astype(jnp.bfloat16)

    return {
        "conv1": conv_to_taps(w_c1, cin_pad=8),                 # Cin padded 3 -> 8
        "conv2": conv_to_taps(w_c2),
        "conv3": conv_to_taps(w_c3),
        "fc1": w_f1.T.astype(jnp.bfloat16),                     # (feat, 1024): y = x @ W^T
        "fc2": w_f2.T.astype(jnp.bfloat16),                     # (1024, num_cls)
    }


# ----------------------------- forward pass -----------------------------

def snn_vgg5_forward(inp_nchw, params, key, *, num_steps, leak):
    # TODO(synk): addDeviceVariation_SA only perturbs weights for dev_param != 0
    #             (host-side numpy RNG); here dev_param = 0.0 so it is a no-op.
    B, Cin, H, W = inp_nchw.shape
    T = num_steps

    # NCHW -> NHWC once; Poisson spikes for all timesteps at once (values in {-1,0,1}).
    x_nhwc = jnp.transpose(inp_nchw, (0, 2, 3, 1))                       # (B,H,W,3)
    r = jax.random.uniform(key, (B, T, H, W, Cin), jnp.float32)
    spikes = ((r * 2.0 <= jnp.abs(x_nhwc)[:, None]).astype(jnp.float32)
              * jnp.sign(x_nhwc)[:, None])
    spikes = jnp.pad(spikes, ((0, 0), (0, 0), (0, 0), (0, 0), (0, 8 - Cin))
                     ).astype(jnp.bfloat16)                              # Cin 3 -> 8

    # conv1 + LIF, pool1
    s1 = conv_lif_layer(spikes, params["conv1"], leak)                   # (B,T,H,W,64)
    s1 = avg_pool_2x2(s1)                                                # (B,T,H/2,W/2,64)
    # conv2 + LIF (no pool)
    s2 = conv_lif_layer(s1, params["conv2"], leak)                       # (B,T,H/2,W/2,128)
    # conv3 + LIF, pool2
    s3 = conv_lif_layer(s2, params["conv3"], leak)
    s3 = avg_pool_2x2(s3)                                                # (B,T,H/4,W/4,128)

    # flatten in PyTorch NCHW order: (T, B, C*Hq*Wq)
    feat = jnp.transpose(s3, (1, 0, 4, 2, 3)).reshape(T, B, -1)

    # fc1 + LIF + fc2 accumulation across all timesteps, membranes in VMEM
    return fc_head(feat, params["fc1"], params["fc2"], leak, T)


# ----------------------------- main -----------------------------

if __name__ == "__main__":
    B = 2
    IMG = 16          # small img_size (divisible by 4); module default is 28
    NUM_CLS = 10
    NUM_STEPS = 4

    key = jax.random.PRNGKey(0)
    k_inp, k_par, k_poisson = jax.random.split(key, 3)

    inp = jax.random.normal(k_inp, (B, 3, IMG, IMG), jnp.float32)   # PyTorch NCHW input
    params = init_params(k_par, IMG, NUM_CLS)

    fwd = jax.jit(functools.partial(snn_vgg5_forward,
                                    num_steps=NUM_STEPS, leak=LEAK_MEM))
    out_voltage = fwd(inp, params, k_poisson)
    out_voltage = jax.block_until_ready(out_voltage)

    assert out_voltage.shape == (B, NUM_CLS)
    assert bool(jnp.all(jnp.isfinite(out_voltage)))
    print("KERNEL_OK")
</pallas_src>

<mosaic_0001>
module attributes {stable_mosaic.version = 11 : i64} {
  func.func @conv_lif_kernel(%arg0: i32, %arg1: i32, %arg2: memref<1x1x328x8xbf16, #tpu.memory_space<vmem>>, %arg3: memref<9x8x64xbf16, #tpu.memory_space<vmem>>, %arg4: memref<1x1x288x64xbf16, #tpu.memory_space<vmem>>, %arg5: memref<288x64xf32, #tpu.memory_space<vmem>>) attributes {dimension_semantics = [#tpu.dimension_semantics<parallel>, #tpu.dimension_semantics<arbitrary>], iteration_bounds = array<i64: 2, 4>, scalar_prefetch = 0 : i64, scratch_operands = 1 : i64, tpu.core_type = #tpu.core_type<tc>, window_params = [{transform_indices = @transform_0, window_bounds = array<i64: 1, 1, 328, 8>}, {pipeline_mode = #tpu.pipeline_mode<synchronous>, transform_indices = @transform_1, window_bounds = array<i64: 9, 8, 64>}, {transform_indices = @transform_2, window_bounds = array<i64: 1, 1, 288, 64>}]} {
    %c0_i32 = arith.constant 0 : i32
    %0 = arith.cmpi eq, %arg1, %c0_i32 : i32
    %1 = arith.extui %0 : i1 to i32
    %c0_i32_0 = arith.constant 0 : i32
    %2 = arith.cmpi ne, %1, %c0_i32_0 : i32
    scf.if %2 {
      %cst_68 = arith.constant 0.000000e+00 : f32
      %72 = vector.broadcast %cst_68 : f32 to vector<288x64xf32>
      %c0_69 = arith.constant 0 : index
      %c0_70 = arith.constant 0 : index
      %73 = vector.load %arg5[%c0_69, %c0_70] : memref<288x64xf32, #tpu.memory_space<vmem>>, vector<288x64xf32>
      tpu.vector_store %arg5[%c0_69, %c0_70], %72 {strides = array<i32>} : memref<288x64xf32, #tpu.memory_space<vmem>>, vector<288x64xf32>,
    } else {
    }
    %c0 = arith.constant 0 : index
    %c0_1 = arith.constant 0 : index
    %3 = vector.load %arg5[%c0, %c0_1] : memref<288x64xf32, #tpu.memory_space<vmem>>, vector<288x64xf32>
    %cst = arith.constant 0.949999988 : f32
    %4 = vector.broadcast %cst : f32 to vector<288x64xf32>
    %5 = arith.mulf %4, %3 : vector<288x64xf32>
    %c0_2 = arith.constant 0 : index
    %c0_3 = arith.constant 0 : index
    %c0_4 = arith.constant 0 : index
    %c0_5 = arith.constant 0 : index
    %6 = vector.load %arg2[%c0_2, %c0_3, %c0_4, %c0_5] : memref<1x1x328x8xbf16, #tpu.memory_space<vmem>>, vector<1x1x288x8xbf16>
    %7 = vector.shape_cast %6 : vector<1x1x288x8xbf16> to vector<288x8xbf16>
    %c0_6 = arith.constant 0 : index
    %c0_7 = arith.constant 0 : index
    %c0_8 = arith.constant 0 : index
    %8 = vector.load %arg3[%c0_6, %c0_7, %c0_8] : memref<9x8x64xbf16, #tpu.memory_space<vmem>>, vector<1x8x64xbf16>
    %9 = vector.shape_cast %8 : vector<1x8x64xbf16> to vector<8x64xbf16>
    %cst_9 = arith.constant dense<0.000000e+00> : vector<288x64xf32>
    %10 = tpu.matmul %7, %9, %cst_9 {dimension_numbers = #tpu.dot_dimension_numbers<[1], [0], [0], [1], [0, 0, 1, 1], [], []>} : vector<288x8xbf16>, vector<8x64xbf16>, vector<288x64xf32> -> vector<288x64xf32>
    %11 = arith.addf %5, %10 : vector<288x64xf32>
    %c0_10 = arith.constant 0 : index
    %c0_11 = arith.constant 0 : index
    %c1 = arith.constant 1 : index
    %c0_12 = arith.constant 0 : index
    %12 = vector.load %arg2[%c0_10, %c0_11, %c1, %c0_12] : memref<1x1x328x8xbf16, #tpu.memory_space<vmem>>, vector<1x1x288x8xbf16>
    %13 = vector.shape_cast %12 : vector<1x1x288x8xbf16> to vector<288x8xbf16>
    %c1_13 = arith.constant 1 : index
    %c0_14 = arith.constant 0 : index
    %c0_15 = arith.constant 0 : index
    %14 = vector.load %arg3[%c1_13, %c0_14, %c0_15] : memref<9x8x64xbf16, #tpu.memory_space<vmem>>, vector<1x8x64xbf16>
    %15 = vector.shape_cast %14 : vector<1x8x64xbf16> to vector<8x64xbf16>
    %cst_16 = arith.constant dense<0.000000e+00> : vector<288x64xf32>
    %16 = tpu.matmul %13, %15, %cst_16 {dimension_numbers = #tpu.dot_dimension_numbers<[1], [0], [0], [1], [0, 0, 1, 1], [], []>} : vector<288x8xbf16>, vector<8x64xbf16>, vector<288x64xf32> -> vector<288x64xf32>
    %17 = arith.addf %11, %16 : vector<288x64xf32>
    %c0_17 = arith.constant 0 : index
    %c0_18 = arith.constant 0 : index
    %c2 = arith.constant 2 : index
    %c0_19 = arith.constant 0 : index
    %18 = vector.load %arg2[%c0_17, %c0_18, %c2, %c0_19] : memref<1x1x328x8xbf16, #tpu.memory_space<vmem>>, vector<1x1x288x8xbf16>
    %19 = vector.shape_cast %18 : vector<1x1x288x8xbf16> to vector<288x8xbf16>
    %c2_20 = arith.constant 2 : index
    %c0_21 = arith.constant 0 : index
    %c0_22 = arith.constant 0 : index
    %20 = vector.load %arg3[%c2_20, %c0_21, %c0_22] : memref<9x8x64xbf16, #tpu.memory_space<vmem>>, vector<1x8x64xbf16>
    %21 = vector.shape_cast %20 : vector<1x8x64xbf16> to vector<8x64xbf16>
    %cst_23 = arith.constant dense<0.000000e+00> : vector<288x64xf32>
    %22 = tpu.matmul %19, %21, %cst_23 {dimension_numbers = #tpu.dot_dimension_numbers<[1], [0], [0], [1], [0, 0, 1, 1], [], []>} : vector<288x8xbf16>, vector<8x64xbf16>, vector<288x64xf32> -> vector<288x64xf32>
    %23 = arith.addf %17, %22 : vector<288x64xf32>
    %c0_24 = arith.constant 0 : index
    %c0_25 = arith.constant 0 : index
    %c18 = arith.constant 18 : index
    %c0_26 = arith.constant 0 : index
    %24 = vector.load %arg2[%c0_24, %c0_25, %c18, %c0_26] : memref<1x1x328x8xbf16, #tpu.memory_space<vmem>>, vector<1x1x288x8xbf16>
    %25 = vector.shape_cast %24 : vector<1x1x288x8xbf16> to vector<288x8xbf16>
    %c3 = arith.constant 3 : index
    %c0_27 = arith.constant 0 : index
    %c0_28 = arith.constant 0 : index
    %26 = vector.load %arg3[%c3, %c0_27, %c0_28] : memref<9x8x64xbf16, #tpu.memory_space<vmem>>, vector<1x8x64xbf16>
    %27 = vector.shape_cast %26 : vector<1x8x64xbf16> to vector<8x64xbf16>
    %cst_29 = arith.constant dense<0.000000e+00> : vector<288x64xf32>
    %28 = tpu.matmul %25, %27, %cst_29 {dimension_numbers = #tpu.dot_dimension_numbers<[1], [0], [0], [1], [0, 0, 1, 1], [], []>} : vector<288x8xbf16>, vector<8x64xbf16>, vector<288x64xf32> -> vector<288x64xf32>
    %29 = arith.addf %23, %28 : vector<288x64xf32>
    %c0_30 = arith.constant 0 : index
    %c0_31 = arith.constant 0 : index
    %c19 = arith.constant 19 : index
    %c0_32 = arith.constant 0 : index
    %30 = vector.load %arg2[%c0_30, %c0_31, %c19, %c0_32] : memref<1x1x328x8xbf16, #tpu.memory_space<vmem>>, vector<1x1x288x8xbf16>
    %31 = vector.shape_cast %30 : vector<1x1x288x8xbf16> to vector<288x8xbf16>
    %c4 = arith.constant 4 : index
    %c0_33 = arith.constant 0 : index
    %c0_34 = arith.constant 0 : index
    %32 = vector.load %arg3[%c4, %c0_33, %c0_34] : memref<9x8x64xbf16, #tpu.memory_space<vmem>>, vector<1x8x64xbf16>
    %33 = vector.shape_cast %32 : vector<1x8x64xbf16> to vector<8x64xbf16>
    %cst_35 = arith.constant dense<0.000000e+00> : vector<288x64xf32>
    %34 = tpu.matmul %31, %33, %cst_35 {dimension_numbers = #tpu.dot_dimension_numbers<[1], [0], [0], [1], [0, 0, 1, 1], [], []>} : vector<288x8xbf16>, vector<8x64xbf16>, vector<288x64xf32> -> vector<288x64xf32>
    %35 = arith.addf %29, %34 : vector<288x64xf32>
    %c0_36 = arith.constant 0 : index
    %c0_37 = arith.constant 0 : index
    %c20 = arith.constant 20 : index
    %c0_38 = arith.constant 0 : index
    %36 = vector.load %arg2[%c0_36, %c0_37, %c20, %c0_38] : memref<1x1x328x8xbf16, #tpu.memory_space<vmem>>, vector<1x1x288x8xbf16>
    %37 = vector.shape_cast %36 : vector<1x1x288x8xbf16> to vector<288x8xbf16>
    %c5 = arith.constant 5 : index
    %c0_39 = arith.constant 0 : index
    %c0_40 = arith.constant 0 : index
    %38 = vector.load %arg3[%c5, %c0_39, %c0_40] : memref<9x8x64xbf16, #tpu.memory_space<vmem>>, vector<1x8x64xbf16>
    %39 = vector.shape_cast %38 : vector<1x8x64xbf16> to vector<8x64xbf16>
    %cst_41 = arith.constant dense<0.000000e+00> : vector<288x64xf32>
    %40 = tpu.matmul %37, %39, %cst_41 {dimension_numbers = #tpu.dot_dimension_numbers<[1], [0], [0], [1], [0, 0, 1, 1], [], []>} : vector<288x8xbf16>, vector<8x64xbf16>, vector<288x64xf32> -> vector<288x64xf32>
    %41 = arith.addf %35, %40 : vector<288x64xf32>
    %c0_42 = arith.constant 0 : index
    %c0_43 = arith.constant 0 : index
    %c36 = arith.constant 36 : index
    %c0_44 = arith.constant 0 : index
    %42 = vector.load %arg2[%c0_42, %c0_43, %c36, %c0_44] : memref<1x1x328x8xbf16, #tpu.memory_space<vmem>>, vector<1x1x288x8xbf16>
    %43 = vector.shape_cast %42 : vector<1x1x288x8xbf16> to vector<288x8xbf16>
    %c6 = arith.constant 6 : index
    %c0_45 = arith.constant 0 : index
    %c0_46 = arith.constant 0 : index
    %44 = vector.load %arg3[%c6, %c0_45, %c0_46] : memref<9x8x64xbf16, #tpu.memory_space<vmem>>, vector<1x8x64xbf16>
    %45 = vector.shape_cast %44 : vector<1x8x64xbf16> to vector<8x64xbf16>
    %cst_47 = arith.constant dense<0.000000e+00> : vector<288x64xf32>
    %46 = tpu.matmul %43, %45, %cst_47 {dimension_numbers = #tpu.dot_dimension_numbers<[1], [0], [0], [1], [0, 0, 1, 1], [], []>} : vector<288x8xbf16>, vector<8x64xbf16>, vector<288x64xf32> -> vector<288x64xf32>
    %47 = arith.addf %41, %46 : vector<288x64xf32>
    %c0_48 = arith.constant 0 : index
    %c0_49 = arith.constant 0 : index
    %c37 = arith.constant 37 : index
    %c0_50 = arith.constant 0 : index
    %48 = vector.load %arg2[%c0_48, %c0_49, %c37, %c0_50] : memref<1x1x328x8xbf16, #tpu.memory_space<vmem>>, vector<1x1x288x8xbf16>
    %49 = vector.shape_cast %48 : vector<1x1x288x8xbf16> to vector<288x8xbf16>
    %c7 = arith.constant 7 : index
    %c0_51 = arith.constant 0 : index
    %c0_52 = arith.constant 0 : index
    %50 = vector.load %arg3[%c7, %c0_51, %c0_52] : memref<9x8x64xbf16, #tpu.memory_space<vmem>>, vector<1x8x64xbf16>
    %51 = vector.shape_cast %50 : vector<1x8x64xbf16> to vector<8x64xbf16>
    %cst_53 = arith.constant dense<0.000000e+00> : vector<288x64xf32>
    %52 = tpu.matmul %49, %51, %cst_53 {dimension_numbers = #tpu.dot_dimension_numbers<[1], [0], [0], [1], [0, 0, 1, 1], [], []>} : vector<288x8xbf16>, vector<8x64xbf16>, vector<288x64xf32> -> vector<288x64xf32>
    %53 = arith.addf %47, %52 : vector<288x64xf32>
    %c0_54 = arith.constant 0 : index
    %c0_55 = arith.constant 0 : index
    %c38 = arith.constant 38 : index
    %c0_56 = arith.constant 0 : index
    %54 = vector.load %arg2[%c0_54, %c0_55, %c38, %c0_56] : memref<1x1x328x8xbf16, #tpu.memory_space<vmem>>, vector<1x1x288x8xbf16>
    %55 = vector.shape_cast %54 : vector<1x1x288x8xbf16> to vector<288x8xbf16>
    %c8 = arith.constant 8 : index
    %c0_57 = arith.constant 0 : index
    %c0_58 = arith.constant 0 : index
    %56 = vector.load %arg3[%c8, %c0_57, %c0_58] : memref<9x8x64xbf16, #tpu.memory_space<vmem>>, vector<1x8x64xbf16>
    %57 = vector.shape_cast %56 : vector<1x8x64xbf16> to vector<8x64xbf16>
    %cst_59 = arith.constant dense<0.000000e+00> : vector<288x64xf32>
    %58 = tpu.matmul %55, %57, %cst_59 {dimension_numbers = #tpu.dot_dimension_numbers<[1], [0], [0], [1], [0, 0, 1, 1], [], []>} : vector<288x8xbf16>, vector<8x64xbf16>, vector<288x64xf32> -> vector<288x64xf32>
    %59 = arith.addf %53, %58 : vector<288x64xf32>
    %cst_60 = arith.constant 1.000000e+00 : f32
    %60 = vector.broadcast %cst_60 : f32 to vector<288x64xf32>
    %61 = arith.cmpf ogt, %59, %60 : vector<288x64xf32>
    %62 = arith.extui %61 : vector<288x64xi1> to vector<288x64xi32>
    %63 = arith.sitofp %62 : vector<288x64xi32> to vector<288x64xf32>
    %cst_61 = arith.constant 1.000000e+00 : f32
    %64 = vector.broadcast %cst_61 : f32 to vector<288x64xf32>
    %65 = arith.mulf %64, %63 : vector<288x64xf32>
    %66 = arith.subf %59, %65 : vector<288x64xf32>
    %c0_62 = arith.constant 0 : index
    %c0_63 = arith.constant 0 : index
    %67 = vector.load %arg5[%c0_62, %c0_63] : memref<288x64xf32, #tpu.memory_space<vmem>>, vector<288x64xf32>
    tpu.vector_store %arg5[%c0_62, %c0_63], %66 {strides = array<i32>} : memref<288x64xf32, #tpu.memory_space<vmem>>, vector<288x64xf32>,
    %68 = arith.truncf %63 : vector<288x64xf32> to vector<288x64xbf16>
    %c0_64 = arith.constant 0 : index
    %c0_65 = arith.constant 0 : index
    %c0_66 = arith.constant 0 : index
    %c0_67 = arith.constant 0 : index
    %69 = vector.load %arg4[%c0_64, %c0_65, %c0_66, %c0_67] : memref<1x1x288x64xbf16, #tpu.memory_space<vmem>>, vector<1x1x288x64xbf16>
    %70 = vector.shape_cast %69 : vector<1x1x288x64xbf16> to vector<288x64xbf16>
    %71 = vector.shape_cast %68 : vector<288x64xbf16> to vector<1x1x288x64xbf16>
    tpu.vector_store %arg4[%c0_64, %c0_65, %c0_66, %c0_67], %71 {strides = array<i32>} : memref<1x1x288x64xbf16, #tpu.memory_space<vmem>>, vector<1x1x288x64xbf16>,
    return
  }
  func.func @transform_0(%arg0: i32, %arg1: i32) -> (i32, i32, i32, i32) {
    %c0_i32 = arith.constant 0 : i32
    %c0_i32_0 = arith.constant 0 : i32
    %c0_i32_1 = arith.constant 0 : i32
    return %arg0, %arg1, %c0_i32, %c0_i32_0 : i32, i32, i32, i32
  }
  func.func @transform_1(%arg0: i32, %arg1: i32) -> (i32, i32, i32) {
    %c0_i32 = arith.constant 0 : i32
    %c0_i32_0 = arith.constant 0 : i32
    %c0_i32_1 = arith.constant 0 : i32
    %c0_i32_2 = arith.constant 0 : i32
    return %c0_i32, %c0_i32_0, %c0_i32_1 : i32, i32, i32
  }
  func.func @transform_2(%arg0: i32, %arg1: i32) -> (i32, i32, i32, i32) {
    %c0_i32 = arith.constant 0 : i32
    %c0_i32_0 = arith.constant 0 : i32
    %c0_i32_1 = arith.constant 0 : i32
    return %arg0, %arg1, %c0_i32, %c0_i32_0 : i32, i32, i32, i32
  }
}

module attributes {stable_mosaic.version = 11 : i64} {
  func.func @conv_lif_kernel(%arg0: i32, %arg1: i32, %arg2: memref<1x1x104x64xbf16, #tpu.memory_space<vmem>>, %arg3: memref<9x64x128xbf16, #tpu.memory_space<vmem>>, %arg4: memref<1x1x80x128xbf16, #tpu.memory_space<vmem>>, %arg5: memref<80x128xf32, #tpu.memory_space<vmem>>) attributes {dimension_semantics = [#tpu.dimension_semantics<parallel>, #tpu.dimension_semantics<arbitrary>], iteration_bounds = array<i64: 2, 4>, scalar_prefetch = 0 : i64, scratch_operands = 1 : i64, tpu.core_type = #tpu.core_type<tc>, window_params = [{transform_indices = @transform_0, window_bounds = array<i64: 1, 1, 104, 64>}, {pipeline_mode = #tpu.pipeline_mode<synchronous>, transform_indices = @transform_1, window_bounds = array<i64: 9, 64, 128>}, {transform_indices = @transform_2, window_bounds = array<i64: 1, 1, 80, 128>}]} {
    %c0_i32 = arith.constant 0 : i32
    %0 = arith.cmpi eq, %arg1, %c0_i32 : i32
    %1 = arith.extui %0 : i1 to i32
    %c0_i32_0 = arith.constant 0 : i32
    %2 = arith.cmpi ne, %1, %c0_i32_0 : i32
    scf.if %2 {
      %cst_68 = arith.constant 0.000000e+00 : f32
      %72 = vector.broadcast %cst_68 : f32 to vector<80x128xf32>
      %c0_69 = arith.constant 0 : index
      %c0_70 = arith.constant 0 : index
      %73 = vector.load %arg5[%c0_69, %c0_70] : memref<80x128xf32, #tpu.memory_space<vmem>>, vector<80x128xf32>
      tpu.vector_store %arg5[%c0_69, %c0_70], %72 {strides = array<i32>} : memref<80x128xf32, #tpu.memory_space<vmem>>, vector<80x128xf32>,
    } else {
    }
    %c0 = arith.constant 0 : index
    %c0_1 = arith.constant 0 : index
    %3 = vector.load %arg5[%c0, %c0_1] : memref<80x128xf32, #tpu.memory_space<vmem>>, vector<80x128xf32>
    %cst = arith.constant 0.949999988 : f32
    %4 = vector.broadcast %cst : f32 to vector<80x128xf32>
    %5 = arith.mulf %4, %3 : vector<80x128xf32>
    %c0_2 = arith.constant 0 : index
    %c0_3 = arith.constant 0 : index
    %c0_4 = arith.constant 0 : index
    %c0_5 = arith.constant 0 : index
    %6 = vector.load %arg2[%c0_2, %c0_3, %c0_4, %c0_5] : memref<1x1x104x64xbf16, #tpu.memory_space<vmem>>, vector<1x1x80x64xbf16>
    %7 = vector.shape_cast %6 : vector<1x1x80x64xbf16> to vector<80x64xbf16>
    %c0_6 = arith.constant 0 : index
    %c0_7 = arith.constant 0 : index
    %c0_8 = arith.constant 0 : index
    %8 = vector.load %arg3[%c0_6, %c0_7, %c0_8] : memref<9x64x128xbf16, #tpu.memory_space<vmem>>, vector<1x64x128xbf16>
    %9 = vector.shape_cast %8 : vector<1x64x128xbf16> to vector<64x128xbf16>
    %cst_9 = arith.constant dense<0.000000e+00> : vector<80x128xf32>
    %10 = tpu.matmul %7, %9, %cst_9 {dimension_numbers = #tpu.dot_dimension_numbers<[1], [0], [0], [1], [0, 0, 1, 1], [], []>} : vector<80x64xbf16>, vector<64x128xbf16>, vector<80x128xf32> -> vector<80x128xf32>
    %11 = arith.addf %5, %10 : vector<80x128xf32>
    %c0_10 = arith.constant 0 : index
    %c0_11 = arith.constant 0 : index
    %c1 = arith.constant 1 : index
    %c0_12 = arith.constant 0 : index
    %12 = vector.load %arg2[%c0_10, %c0_11, %c1, %c0_12] : memref<1x1x104x64xbf16, #tpu.memory_space<vmem>>, vector<1x1x80x64xbf16>
    %13 = vector.shape_cast %12 : vector<1x1x80x64xbf16> to vector<80x64xbf16>
    %c1_13 = arith.constant 1 : index
    %c0_14 = arith.constant 0 : index
    %c0_15 = arith.constant 0 : index
    %14 = vector.load %arg3[%c1_13, %c0_14, %c0_15] : memref<9x64x128xbf16, #tpu.memory_space<vmem>>, vector<1x64x128xbf16>
    %15 = vector.shape_cast %14 : vector<1x64x128xbf16> to vector<64x128xbf16>
    %cst_16 = arith.constant dense<0.000000e+00> : vector<80x128xf32>
    %16 = tpu.matmul %13, %15, %cst_16 {dimension_numbers = #tpu.dot_dimension_numbers<[1], [0], [0], [1], [0, 0, 1, 1], [], []>} : vector<80x64xbf16>, vector<64x128xbf16>, vector<80x128xf32> -> vector<80x128xf32>
    %17 = arith.addf %11, %16 : vector<80x128xf32>
    %c0_17 = arith.constant 0 : index
    %c0_18 = arith.constant 0 : index
    %c2 = arith.constant 2 : index
    %c0_19 = arith.constant 0 : index
    %18 = vector.load %arg2[%c0_17, %c0_18, %c2, %c0_19] : memref<1x1x104x64xbf16, #tpu.memory_space<vmem>>, vector<1x1x80x64xbf16>
    %19 = vector.shape_cast %18 : vector<1x1x80x64xbf16> to vector<80x64xbf16>
    %c2_20 = arith.constant 2 : index
    %c0_21 = arith.constant 0 : index
    %c0_22 = arith.constant 0 : index
    %20 = vector.load %arg3[%c2_20, %c0_21, %c0_22] : memref<9x64x128xbf16, #tpu.memory_space<vmem>>, vector<1x64x128xbf16>
    %21 = vector.shape_cast %20 : vector<1x64x128xbf16> to vector<64x128xbf16>
    %cst_23 = arith.constant dense<0.000000e+00> : vector<80x128xf32>
    %22 = tpu.matmul %19, %21, %cst_23 {dimension_numbers = #tpu.dot_dimension_numbers<[1], [0], [0], [1], [0, 0, 1, 1], [], []>} : vector<80x64xbf16>, vector<64x128xbf16>, vector<80x128xf32> -> vector<80x128xf32>
    %23 = arith.addf %17, %22 : vector<80x128xf32>
    %c0_24 = arith.constant 0 : index
    %c0_25 = arith.constant 0 : index
    %c10 = arith.constant 10 : index
    %c0_26 = arith.constant 0 : index
    %24 = vector.load %arg2[%c0_24, %c0_25, %c10, %c0_26] : memref<1x1x104x64xbf16, #tpu.memory_space<vmem>>, vector<1x1x80x64xbf16>
    %25 = vector.shape_cast %24 : vector<1x1x80x64xbf16> to vector<80x64xbf16>
    %c3 = arith.constant 3 : index
    %c0_27 = arith.constant 0 : index
    %c0_28 = arith.constant 0 : index
    %26 = vector.load %arg3[%c3, %c0_27, %c0_28] : memref<9x64x128xbf16, #tpu.memory_space<vmem>>, vector<1x64x128xbf16>
    %27 = vector.shape_cast %26 : vector<1x64x128xbf16> to vector<64x128xbf16>
    %cst_29 = arith.constant dense<0.000000e+00> : vector<80x128xf32>
    %28 = tpu.matmul %25, %27, %cst_29 {dimension_numbers = #tpu.dot_dimension_numbers<[1], [0], [0], [1], [0, 0, 1, 1], [], []>} : vector<80x64xbf16>, vector<64x128xbf16>, vector<80x128xf32> -> vector<80x128xf32>
    %29 = arith.addf %23, %28 : vector<80x128xf32>
    %c0_30 = arith.constant 0 : index
    %c0_31 = arith.constant 0 : index
    %c11 = arith.constant 11 : index
    %c0_32 = arith.constant 0 : index
    %30 = vector.load %arg2[%c0_30, %c0_31, %c11, %c0_32] : memref<1x1x104x64xbf16, #tpu.memory_space<vmem>>, vector<1x1x80x64xbf16>
    %31 = vector.shape_cast %30 : vector<1x1x80x64xbf16> to vector<80x64xbf16>
    %c4 = arith.constant 4 : index
    %c0_33 = arith.constant 0 : index
    %c0_34 = arith.constant 0 : index
    %32 = vector.load %arg3[%c4, %c0_33, %c0_34] : memref<9x64x128xbf16, #tpu.memory_space<vmem>>, vector<1x64x128xbf16>
    %33 = vector.shape_cast %32 : vector<1x64x128xbf16> to vector<64x128xbf16>
    %cst_35 = arith.constant dense<0.000000e+00> : vector<80x128xf32>
    %34 = tpu.matmul %31, %33, %cst_35 {dimension_numbers = #tpu.dot_dimension_numbers<[1], [0], [0], [1], [0, 0, 1, 1], [], []>} : vector<80x64xbf16>, vector<64x128xbf16>, vector<80x128xf32> -> vector<80x128xf32>
    %35 = arith.addf %29, %34 : vector<80x128xf32>
    %c0_36 = arith.constant 0 : index
    %c0_37 = arith.constant 0 : index
    %c12 = arith.constant 12 : index
    %c0_38 = arith.constant 0 : index
    %36 = vector.load %arg2[%c0_36, %c0_37, %c12, %c0_38] : memref<1x1x104x64xbf16, #tpu.memory_space<vmem>>, vector<1x1x80x64xbf16>
    %37 = vector.shape_cast %36 : vector<1x1x80x64xbf16> to vector<80x64xbf16>
    %c5 = arith.constant 5 : index
    %c0_39 = arith.constant 0 : index
    %c0_40 = arith.constant 0 : index
    %38 = vector.load %arg3[%c5, %c0_39, %c0_40] : memref<9x64x128xbf16, #tpu.memory_space<vmem>>, vector<1x64x128xbf16>
    %39 = vector.shape_cast %38 : vector<1x64x128xbf16> to vector<64x128xbf16>
    %cst_41 = arith.constant dense<0.000000e+00> : vector<80x128xf32>
    %40 = tpu.matmul %37, %39, %cst_41 {dimension_numbers = #tpu.dot_dimension_numbers<[1], [0], [0], [1], [0, 0, 1, 1], [], []>} : vector<80x64xbf16>, vector<64x128xbf16>, vector<80x128xf32> -> vector<80x128xf32>
    %41 = arith.addf %35, %40 : vector<80x128xf32>
    %c0_42 = arith.constant 0 : index
    %c0_43 = arith.constant 0 : index
    %c20 = arith.constant 20 : index
    %c0_44 = arith.constant 0 : index
    %42 = vector.load %arg2[%c0_42, %c0_43, %c20, %c0_44] : memref<1x1x104x64xbf16, #tpu.memory_space<vmem>>, vector<1x1x80x64xbf16>
    %43 = vector.shape_cast %42 : vector<1x1x80x64xbf16> to vector<80x64xbf16>
    %c6 = arith.constant 6 : index
    %c0_45 = arith.constant 0 : index
    %c0_46 = arith.constant 0 : index
    %44 = vector.load %arg3[%c6, %c0_45, %c0_46] : memref<9x64x128xbf16, #tpu.memory_space<vmem>>, vector<1x64x128xbf16>
    %45 = vector.shape_cast %44 : vector<1x64x128xbf16> to vector<64x128xbf16>
    %cst_47 = arith.constant dense<0.000000e+00> : vector<80x128xf32>
    %46 = tpu.matmul %43, %45, %cst_47 {dimension_numbers = #tpu.dot_dimension_numbers<[1], [0], [0], [1], [0, 0, 1, 1], [], []>} : vector<80x64xbf16>, vector<64x128xbf16>, vector<80x128xf32> -> vector<80x128xf32>
    %47 = arith.addf %41, %46 : vector<80x128xf32>
    %c0_48 = arith.constant 0 : index
    %c0_49 = arith.constant 0 : index
    %c21 = arith.constant 21 : index
    %c0_50 = arith.constant 0 : index
    %48 = vector.load %arg2[%c0_48, %c0_49, %c21, %c0_50] : memref<1x1x104x64xbf16, #tpu.memory_space<vmem>>, vector<1x1x80x64xbf16>
    %49 = vector.shape_cast %48 : vector<1x1x80x64xbf16> to vector<80x64xbf16>
    %c7 = arith.constant 7 : index
    %c0_51 = arith.constant 0 : index
    %c0_52 = arith.constant 0 : index
    %50 = vector.load %arg3[%c7, %c0_51, %c0_52] : memref<9x64x128xbf16, #tpu.memory_space<vmem>>, vector<1x64x128xbf16>
    %51 = vector.shape_cast %50 : vector<1x64x128xbf16> to vector<64x128xbf16>
    %cst_53 = arith.constant dense<0.000000e+00> : vector<80x128xf32>
    %52 = tpu.matmul %49, %51, %cst_53 {dimension_numbers = #tpu.dot_dimension_numbers<[1], [0], [0], [1], [0, 0, 1, 1], [], []>} : vector<80x64xbf16>, vector<64x128xbf16>, vector<80x128xf32> -> vector<80x128xf32>
    %53 = arith.addf %47, %52 : vector<80x128xf32>
    %c0_54 = arith.constant 0 : index
    %c0_55 = arith.constant 0 : index
    %c22 = arith.constant 22 : index
    %c0_56 = arith.constant 0 : index
    %54 = vector.load %arg2[%c0_54, %c0_55, %c22, %c0_56] : memref<1x1x104x64xbf16, #tpu.memory_space<vmem>>, vector<1x1x80x64xbf16>
    %55 = vector.shape_cast %54 : vector<1x1x80x64xbf16> to vector<80x64xbf16>
    %c8 = arith.constant 8 : index
    %c0_57 = arith.constant 0 : index
    %c0_58 = arith.constant 0 : index
    %56 = vector.load %arg3[%c8, %c0_57, %c0_58] : memref<9x64x128xbf16, #tpu.memory_space<vmem>>, vector<1x64x128xbf16>
    %57 = vector.shape_cast %56 : vector<1x64x128xbf16> to vector<64x128xbf16>
    %cst_59 = arith.constant dense<0.000000e+00> : vector<80x128xf32>
    %58 = tpu.matmul %55, %57, %cst_59 {dimension_numbers = #tpu.dot_dimension_numbers<[1], [0], [0], [1], [0, 0, 1, 1], [], []>} : vector<80x64xbf16>, vector<64x128xbf16>, vector<80x128xf32> -> vector<80x128xf32>
    %59 = arith.addf %53, %58 : vector<80x128xf32>
    %cst_60 = arith.constant 1.000000e+00 : f32
    %60 = vector.broadcast %cst_60 : f32 to vector<80x128xf32>
    %61 = arith.cmpf ogt, %59, %60 : vector<80x128xf32>
    %62 = arith.extui %61 : vector<80x128xi1> to vector<80x128xi32>
    %63 = arith.sitofp %62 : vector<80x128xi32> to vector<80x128xf32>
    %cst_61 = arith.constant 1.000000e+00 : f32
    %64 = vector.broadcast %cst_61 : f32 to vector<80x128xf32>
    %65 = arith.mulf %64, %63 : vector<80x128xf32>
    %66 = arith.subf %59, %65 : vector<80x128xf32>
    %c0_62 = arith.constant 0 : index
    %c0_63 = arith.constant 0 : index
    %67 = vector.load %arg5[%c0_62, %c0_63] : memref<80x128xf32, #tpu.memory_space<vmem>>, vector<80x128xf32>
    tpu.vector_store %arg5[%c0_62, %c0_63], %66 {strides = array<i32>} : memref<80x128xf32, #tpu.memory_space<vmem>>, vector<80x128xf32>,
    %68 = arith.truncf %63 : vector<80x128xf32> to vector<80x128xbf16>
    %c0_64 = arith.constant 0 : index
    %c0_65 = arith.constant 0 : index
    %c0_66 = arith.constant 0 : index
    %c0_67 = arith.constant 0 : index
    %69 = vector.load %arg4[%c0_64, %c0_65, %c0_66, %c0_67] : memref<1x1x80x128xbf16, #tpu.memory_space<vmem>>, vector<1x1x80x128xbf16>
    %70 = vector.shape_cast %69 : vector<1x1x80x128xbf16> to vector<80x128xbf16>
    %71 = vector.shape_cast %68 : vector<80x128xbf16> to vector<1x1x80x128xbf16>
    tpu.vector_store %arg4[%c0_64, %c0_65, %c0_66, %c0_67], %71 {strides = array<i32>} : memref<1x1x80x128xbf16, #tpu.memory_space<vmem>>, vector<1x1x80x128xbf16>,
    return
  }
  func.func @transform_0(%arg0: i32, %arg1: i32) -> (i32, i32, i32, i32) {
    %c0_i32 = arith.constant 0 : i32
    %c0_i32_0 = arith.constant 0 : i32
    %c0_i32_1 = arith.constant 0 : i32
    return %arg0, %arg1, %c0_i32, %c0_i32_0 : i32, i32, i32, i32
  }
  func.func @transform_1(%arg0: i32, %arg1: i32) -> (i32, i32, i32) {
    %c0_i32 = arith.constant 0 : i32
    %c0_i32_0 = arith.constant 0 : i32
    %c0_i32_1 = arith.constant 0 : i32
    %c0_i32_2 = arith.constant 0 : i32
    return %c0_i32, %c0_i32_0, %c0_i32_1 : i32, i32, i32
  }
  func.func @transform_2(%arg0: i32, %arg1: i32) -> (i32, i32, i32, i32) {
    %c0_i32 = arith.constant 0 : i32
    %c0_i32_0 = arith.constant 0 : i32
    %c0_i32_1 = arith.constant 0 : i32
    return %arg0, %arg1, %c0_i32, %c0_i32_0 : i32, i32, i32, i32
  }
}

module attributes {stable_mosaic.version = 11 : i64} {
  func.func @conv_lif_kernel(%arg0: i32, %arg1: i32, %arg2: memref<1x1x104x128xbf16, #tpu.memory_space<vmem>>, %arg3: memref<9x128x128xbf16, #tpu.memory_space<vmem>>, %arg4: memref<1x1x80x128xbf16, #tpu.memory_space<vmem>>, %arg5: memref<80x128xf32, #tpu.memory_space<vmem>>) attributes {dimension_semantics = [#tpu.dimension_semantics<parallel>, #tpu.dimension_semantics<arbitrary>], iteration_bounds = array<i64: 2, 4>, scalar_prefetch = 0 : i64, scratch_operands = 1 : i64, tpu.core_type = #tpu.core_type<tc>, window_params = [{transform_indices = @transform_0, window_bounds = array<i64: 1, 1, 104, 128>}, {pipeline_mode = #tpu.pipeline_mode<synchronous>, transform_indices = @transform_1, window_bounds = array<i64: 9, 128, 128>}, {transform_indices = @transform_2, window_bounds = array<i64: 1, 1, 80, 128>}]} {
    %c0_i32 = arith.constant 0 : i32
    %0 = arith.cmpi eq, %arg1, %c0_i32 : i32
    %1 = arith.extui %0 : i1 to i32
    %c0_i32_0 = arith.constant 0 : i32
    %2 = arith.cmpi ne, %1, %c0_i32_0 : i32
    scf.if %2 {
      %cst_68 = arith.constant 0.000000e+00 : f32
      %72 = vector.broadcast %cst_68 : f32 to vector<80x128xf32>
      %c0_69 = arith.constant 0 : index
      %c0_70 = arith.constant 0 : index
      %73 = vector.load %arg5[%c0_69, %c0_70] : memref<80x128xf32, #tpu.memory_space<vmem>>, vector<80x128xf32>
      tpu.vector_store %arg5[%c0_69, %c0_70], %72 {strides = array<i32>} : memref<80x128xf32, #tpu.memory_space<vmem>>, vector<80x128xf32>,
    } else {
    }
    %c0 = arith.constant 0 : index
    %c0_1 = arith.constant 0 : index
    %3 = vector.load %arg5[%c0, %c0_1] : memref<80x128xf32, #tpu.memory_space<vmem>>, vector<80x128xf32>
    %cst = arith.constant 0.949999988 : f32
    %4 = vector.broadcast %cst : f32 to vector<80x128xf32>
    %5 = arith.mulf %4, %3 : vector<80x128xf32>
    %c0_2 = arith.constant 0 : index
    %c0_3 = arith.constant 0 : index
    %c0_4 = arith.constant 0 : index
    %c0_5 = arith.constant 0 : index
    %6 = vector.load %arg2[%c0_2, %c0_3, %c0_4, %c0_5] : memref<1x1x104x128xbf16, #tpu.memory_space<vmem>>, vector<1x1x80x128xbf16>
    %7 = vector.shape_cast %6 : vector<1x1x80x128xbf16> to vector<80x128xbf16>
    %c0_6 = arith.constant 0 : index
    %c0_7 = arith.constant 0 : index
    %c0_8 = arith.constant 0 : index
    %8 = vector.load %arg3[%c0_6, %c0_7, %c0_8] : memref<9x128x128xbf16, #tpu.memory_space<vmem>>, vector<1x128x128xbf16>
    %9 = vector.shape_cast %8 : vector<1x128x128xbf16> to vector<128x128xbf16>
    %cst_9 = arith.constant dense<0.000000e+00> : vector<80x128xf32>
    %10 = tpu.matmul %7, %9, %cst_9 {dimension_numbers = #tpu.dot_dimension_numbers<[1], [0], [0], [1], [0, 0, 1, 1], [], []>} : vector<80x128xbf16>, vector<128x128xbf16>, vector<80x128xf32> -> vector<80x128xf32>
    %11 = arith.addf %5, %10 : vector<80x128xf32>
    %c0_10 = arith.constant 0 : index
    %c0_11 = arith.constant 0 : index
    %c1 = arith.constant 1 : index
    %c0_12 = arith.constant 0 : index
    %12 = vector.load %arg2[%c0_10, %c0_11, %c1, %c0_12] : memref<1x1x104x128xbf16, #tpu.memory_space<vmem>>, vector<1x1x80x128xbf16>
    %13 = vector.shape_cast %12 : vector<1x1x80x128xbf16> to vector<80x128xbf16>
    %c1_13 = arith.constant 1 : index
    %c0_14 = arith.constant 0 : index
    %c0_15 = arith.constant 0 : index
    %14 = vector.load %arg3[%c1_13, %c0_14, %c0_15] : memref<9x128x128xbf16, #tpu.memory_space<vmem>>, vector<1x128x128xbf16>
    %15 = vector.shape_cast %14 : vector<1x128x128xbf16> to vector<128x128xbf16>
    %cst_16 = arith.constant dense<0.000000e+00> : vector<80x128xf32>
    %16 = tpu.matmul %13, %15, %cst_16 {dimension_numbers = #tpu.dot_dimension_numbers<[1], [0], [0], [1], [0, 0, 1, 1], [], []>} : vector<80x128xbf16>, vector<128x128xbf16>, vector<80x128xf32> -> vector<80x128xf32>
    %17 = arith.addf %11, %16 : vector<80x128xf32>
    %c0_17 = arith.constant 0 : index
    %c0_18 = arith.constant 0 : index
    %c2 = arith.constant 2 : index
    %c0_19 = arith.constant 0 : index
    %18 = vector.load %arg2[%c0_17, %c0_18, %c2, %c0_19] : memref<1x1x104x128xbf16, #tpu.memory_space<vmem>>, vector<1x1x80x128xbf16>
    %19 = vector.shape_cast %18 : vector<1x1x80x128xbf16> to vector<80x128xbf16>
    %c2_20 = arith.constant 2 : index
    %c0_21 = arith.constant 0 : index
    %c0_22 = arith.constant 0 : index
    %20 = vector.load %arg3[%c2_20, %c0_21, %c0_22] : memref<9x128x128xbf16, #tpu.memory_space<vmem>>, vector<1x128x128xbf16>
    %21 = vector.shape_cast %20 : vector<1x128x128xbf16> to vector<128x128xbf16>
    %cst_23 = arith.constant dense<0.000000e+00> : vector<80x128xf32>
    %22 = tpu.matmul %19, %21, %cst_23 {dimension_numbers = #tpu.dot_dimension_numbers<[1], [0], [0], [1], [0, 0, 1, 1], [], []>} : vector<80x128xbf16>, vector<128x128xbf16>, vector<80x128xf32> -> vector<80x128xf32>
    %23 = arith.addf %17, %22 : vector<80x128xf32>
    %c0_24 = arith.constant 0 : index
    %c0_25 = arith.constant 0 : index
    %c10 = arith.constant 10 : index
    %c0_26 = arith.constant 0 : index
    %24 = vector.load %arg2[%c0_24, %c0_25, %c10, %c0_26] : memref<1x1x104x128xbf16, #tpu.memory_space<vmem>>, vector<1x1x80x128xbf16>
    %25 = vector.shape_cast %24 : vector<1x1x80x128xbf16> to vector<80x128xbf16>
    %c3 = arith.constant 3 : index
    %c0_27 = arith.constant 0 : index
    %c0_28 = arith.constant 0 : index
    %26 = vector.load %arg3[%c3, %c0_27, %c0_28] : memref<9x128x128xbf16, #tpu.memory_space<vmem>>, vector<1x128x128xbf16>
    %27 = vector.shape_cast %26 : vector<1x128x128xbf16> to vector<128x128xbf16>
    %cst_29 = arith.constant dense<0.000000e+00> : vector<80x128xf32>
    %28 = tpu.matmul %25, %27, %cst_29 {dimension_numbers = #tpu.dot_dimension_numbers<[1], [0], [0], [1], [0, 0, 1, 1], [], []>} : vector<80x128xbf16>, vector<128x128xbf16>, vector<80x128xf32> -> vector<80x128xf32>
    %29 = arith.addf %23, %28 : vector<80x128xf32>
    %c0_30 = arith.constant 0 : index
    %c0_31 = arith.constant 0 : index
    %c11 = arith.constant 11 : index
    %c0_32 = arith.constant 0 : index
    %30 = vector.load %arg2[%c0_30, %c0_31, %c11, %c0_32] : memref<1x1x104x128xbf16, #tpu.memory_space<vmem>>, vector<1x1x80x128xbf16>
    %31 = vector.shape_cast %30 : vector<1x1x80x128xbf16> to vector<80x128xbf16>
    %c4 = arith.constant 4 : index
    %c0_33 = arith.constant 0 : index
    %c0_34 = arith.constant 0 : index
    %32 = vector.load %arg3[%c4, %c0_33, %c0_34] : memref<9x128x128xbf16, #tpu.memory_space<vmem>>, vector<1x128x128xbf16>
    %33 = vector.shape_cast %32 : vector<1x128x128xbf16> to vector<128x128xbf16>
    %cst_35 = arith.constant dense<0.000000e+00> : vector<80x128xf32>
    %34 = tpu.matmul %31, %33, %cst_35 {dimension_numbers = #tpu.dot_dimension_numbers<[1], [0], [0], [1], [0, 0, 1, 1], [], []>} : vector<80x128xbf16>, vector<128x128xbf16>, vector<80x128xf32> -> vector<80x128xf32>
    %35 = arith.addf %29, %34 : vector<80x128xf32>
    %c0_36 = arith.constant 0 : index
    %c0_37 = arith.constant 0 : index
    %c12 = arith.constant 12 : index
    %c0_38 = arith.constant 0 : index
    %36 = vector.load %arg2[%c0_36, %c0_37, %c12, %c0_38] : memref<1x1x104x128xbf16, #tpu.memory_space<vmem>>, vector<1x1x80x128xbf16>
    %37 = vector.shape_cast %36 : vector<1x1x80x128xbf16> to vector<80x128xbf16>
    %c5 = arith.constant 5 : index
    %c0_39 = arith.constant 0 : index
    %c0_40 = arith.constant 0 : index
    %38 = vector.load %arg3[%c5, %c0_39, %c0_40] : memref<9x128x128xbf16, #tpu.memory_space<vmem>>, vector<1x128x128xbf16>
    %39 = vector.shape_cast %38 : vector<1x128x128xbf16> to vector<128x128xbf16>
    %cst_41 = arith.constant dense<0.000000e+00> : vector<80x128xf32>
    %40 = tpu.matmul %37, %39, %cst_41 {dimension_numbers = #tpu.dot_dimension_numbers<[1], [0], [0], [1], [0, 0, 1, 1], [], []>} : vector<80x128xbf16>, vector<128x128xbf16>, vector<80x128xf32> -> vector<80x128xf32>
    %41 = arith.addf %35, %40 : vector<80x128xf32>
    %c0_42 = arith.constant 0 : index
    %c0_43 = arith.constant 0 : index
    %c20 = arith.constant 20 : index
    %c0_44 = arith.constant 0 : index
    %42 = vector.load %arg2[%c0_42, %c0_43, %c20, %c0_44] : memref<1x1x104x128xbf16, #tpu.memory_space<vmem>>, vector<1x1x80x128xbf16>
    %43 = vector.shape_cast %42 : vector<1x1x80x128xbf16> to vector<80x128xbf16>
    %c6 = arith.constant 6 : index
    %c0_45 = arith.constant 0 : index
    %c0_46 = arith.constant 0 : index
    %44 = vector.load %arg3[%c6, %c0_45, %c0_46] : memref<9x128x128xbf16, #tpu.memory_space<vmem>>, vector<1x128x128xbf16>
    %45 = vector.shape_cast %44 : vector<1x128x128xbf16> to vector<128x128xbf16>
    %cst_47 = arith.constant dense<0.000000e+00> : vector<80x128xf32>
    %46 = tpu.matmul %43, %45, %cst_47 {dimension_numbers = #tpu.dot_dimension_numbers<[1], [0], [0], [1], [0, 0, 1, 1], [], []>} : vector<80x128xbf16>, vector<128x128xbf16>, vector<80x128xf32> -> vector<80x128xf32>
    %47 = arith.addf %41, %46 : vector<80x128xf32>
    %c0_48 = arith.constant 0 : index
    %c0_49 = arith.constant 0 : index
    %c21 = arith.constant 21 : index
    %c0_50 = arith.constant 0 : index
    %48 = vector.load %arg2[%c0_48, %c0_49, %c21, %c0_50] : memref<1x1x104x128xbf16, #tpu.memory_space<vmem>>, vector<1x1x80x128xbf16>
    %49 = vector.shape_cast %48 : vector<1x1x80x128xbf16> to vector<80x128xbf16>
    %c7 = arith.constant 7 : index
    %c0_51 = arith.constant 0 : index
    %c0_52 = arith.constant 0 : index
    %50 = vector.load %arg3[%c7, %c0_51, %c0_52] : memref<9x128x128xbf16, #tpu.memory_space<vmem>>, vector<1x128x128xbf16>
    %51 = vector.shape_cast %50 : vector<1x128x128xbf16> to vector<128x128xbf16>
    %cst_53 = arith.constant dense<0.000000e+00> : vector<80x128xf32>
    %52 = tpu.matmul %49, %51, %cst_53 {dimension_numbers = #tpu.dot_dimension_numbers<[1], [0], [0], [1], [0, 0, 1, 1], [], []>} : vector<80x128xbf16>, vector<128x128xbf16>, vector<80x128xf32> -> vector<80x128xf32>
    %53 = arith.addf %47, %52 : vector<80x128xf32>
    %c0_54 = arith.constant 0 : index
    %c0_55 = arith.constant 0 : index
    %c22 = arith.constant 22 : index
    %c0_56 = arith.constant 0 : index
    %54 = vector.load %arg2[%c0_54, %c0_55, %c22, %c0_56] : memref<1x1x104x128xbf16, #tpu.memory_space<vmem>>, vector<1x1x80x128xbf16>
    %55 = vector.shape_cast %54 : vector<1x1x80x128xbf16> to vector<80x128xbf16>
    %c8 = arith.constant 8 : index
    %c0_57 = arith.constant 0 : index
    %c0_58 = arith.constant 0 : index
    %56 = vector.load %arg3[%c8, %c0_57, %c0_58] : memref<9x128x128xbf16, #tpu.memory_space<vmem>>, vector<1x128x128xbf16>
    %57 = vector.shape_cast %56 : vector<1x128x128xbf16> to vector<128x128xbf16>
    %cst_59 = arith.constant dense<0.000000e+00> : vector<80x128xf32>
    %58 = tpu.matmul %55, %57, %cst_59 {dimension_numbers = #tpu.dot_dimension_numbers<[1], [0], [0], [1], [0, 0, 1, 1], [], []>} : vector<80x128xbf16>, vector<128x128xbf16>, vector<80x128xf32> -> vector<80x128xf32>
    %59 = arith.addf %53, %58 : vector<80x128xf32>
    %cst_60 = arith.constant 1.000000e+00 : f32
    %60 = vector.broadcast %cst_60 : f32 to vector<80x128xf32>
    %61 = arith.cmpf ogt, %59, %60 : vector<80x128xf32>
    %62 = arith.extui %61 : vector<80x128xi1> to vector<80x128xi32>
    %63 = arith.sitofp %62 : vector<80x128xi32> to vector<80x128xf32>
    %cst_61 = arith.constant 1.000000e+00 : f32
    %64 = vector.broadcast %cst_61 : f32 to vector<80x128xf32>
    %65 = arith.mulf %64, %63 : vector<80x128xf32>
    %66 = arith.subf %59, %65 : vector<80x128xf32>
    %c0_62 = arith.constant 0 : index
    %c0_63 = arith.constant 0 : index
    %67 = vector.load %arg5[%c0_62, %c0_63] : memref<80x128xf32, #tpu.memory_space<vmem>>, vector<80x128xf32>
    tpu.vector_store %arg5[%c0_62, %c0_63], %66 {strides = array<i32>} : memref<80x128xf32, #tpu.memory_space<vmem>>, vector<80x128xf32>,
    %68 = arith.truncf %63 : vector<80x128xf32> to vector<80x128xbf16>
    %c0_64 = arith.constant 0 : index
    %c0_65 = arith.constant 0 : index
    %c0_66 = arith.constant 0 : index
    %c0_67 = arith.constant 0 : index
    %69 = vector.load %arg4[%c0_64, %c0_65, %c0_66, %c0_67] : memref<1x1x80x128xbf16, #tpu.memory_space<vmem>>, vector<1x1x80x128xbf16>
    %70 = vector.shape_cast %69 : vector<1x1x80x128xbf16> to vector<80x128xbf16>
    %71 = vector.shape_cast %68 : vector<80x128xbf16> to vector<1x1x80x128xbf16>
    tpu.vector_store %arg4[%c0_64, %c0_65, %c0_66, %c0_67], %71 {strides = array<i32>} : memref<1x1x80x128xbf16, #tpu.memory_space<vmem>>, vector<1x1x80x128xbf16>,
    return
  }
  func.func @transform_0(%arg0: i32, %arg1: i32) -> (i32, i32, i32, i32) {
    %c0_i32 = arith.constant 0 : i32
    %c0_i32_0 = arith.constant 0 : i32
    %c0_i32_1 = arith.constant 0 : i32
    return %arg0, %arg1, %c0_i32, %c0_i32_0 : i32, i32, i32, i32
  }
  func.func @transform_1(%arg0: i32, %arg1: i32) -> (i32, i32, i32) {
    %c0_i32 = arith.constant 0 : i32
    %c0_i32_0 = arith.constant 0 : i32
    %c0_i32_1 = arith.constant 0 : i32
    %c0_i32_2 = arith.constant 0 : i32
    return %c0_i32, %c0_i32_0, %c0_i32_1 : i32, i32, i32
  }
  func.func @transform_2(%arg0: i32, %arg1: i32) -> (i32, i32, i32, i32) {
    %c0_i32 = arith.constant 0 : i32
    %c0_i32_0 = arith.constant 0 : i32
    %c0_i32_1 = arith.constant 0 : i32
    return %arg0, %arg1, %c0_i32, %c0_i32_0 : i32, i32, i32, i32
  }
}

module attributes {stable_mosaic.version = 11 : i64} {
  func.func @fc_lif_kernel(%arg0: i32, %arg1: memref<1x2x2048xbf16, #tpu.memory_space<vmem>>, %arg2: memref<2048x1024xbf16, #tpu.memory_space<vmem>>, %arg3: memref<1024x10xbf16, #tpu.memory_space<vmem>>, %arg4: memref<2x10xf32, #tpu.memory_space<vmem>>, %arg5: memref<2x1024xf32, #tpu.memory_space<vmem>>, %arg6: memref<2x10xf32, #tpu.memory_space<vmem>>) attributes {dimension_semantics = [#tpu.dimension_semantics<arbitrary>], iteration_bounds = array<i64: 4>, scalar_prefetch = 0 : i64, scratch_operands = 2 : i64, tpu.core_type = #tpu.core_type<tc>, window_params = [{transform_indices = @transform_0, window_bounds = array<i64: 1, 2, 2048>}, {pipeline_mode = #tpu.pipeline_mode<synchronous>, transform_indices = @transform_1, window_bounds = array<i64: 2048, 1024>}, {pipeline_mode = #tpu.pipeline_mode<synchronous>, transform_indices = @transform_2, window_bounds = array<i64: 1024, 10>}, {pipeline_mode = #tpu.pipeline_mode<synchronous>, transform_indices = @transform_3, window_bounds = array<i64: 2, 10>}]} {
    %c0_i32 = arith.constant 0 : i32
    %0 = arith.cmpi eq, %arg0, %c0_i32 : i32
    %1 = arith.extui %0 : i1 to i32
    %c0_i32_0 = arith.constant 0 : i32
    %2 = arith.cmpi ne, %1, %c0_i32_0 : i32
    scf.if %2 {
      %cst_24 = arith.constant 0.000000e+00 : f32
      %29 = vector.broadcast %cst_24 : f32 to vector<2x1024xf32>
      %c0_25 = arith.constant 0 : index
      %c0_26 = arith.constant 0 : index
      %30 = vector.load %arg5[%c0_25, %c0_26] : memref<2x1024xf32, #tpu.memory_space<vmem>>, vector<2x1024xf32>
      tpu.vector_store %arg5[%c0_25, %c0_26], %29 {strides = array<i32>} : memref<2x1024xf32, #tpu.memory_space<vmem>>, vector<2x1024xf32>,
      %cst_27 = arith.constant 0.000000e+00 : f32
      %31 = vector.broadcast %cst_27 : f32 to vector<2x10xf32>
      %c0_28 = arith.constant 0 : index
      %c0_29 = arith.constant 0 : index
      %32 = vector.load %arg6[%c0_28, %c0_29] : memref<2x10xf32, #tpu.memory_space<vmem>>, vector<2x10xf32>
      tpu.vector_store %arg6[%c0_28, %c0_29], %31 {strides = array<i32>} : memref<2x10xf32, #tpu.memory_space<vmem>>, vector<2x10xf32>,
    } else {
    }
    %c0 = arith.constant 0 : index
    %c0_1 = arith.constant 0 : index
    %c0_2 = arith.constant 0 : index
    %3 = vector.load %arg1[%c0, %c0_1, %c0_2] : memref<1x2x2048xbf16, #tpu.memory_space<vmem>>, vector<1x2x2048xbf16>
    %4 = vector.shape_cast %3 : vector<1x2x2048xbf16> to vector<2x2048xbf16>
    %c0_3 = arith.constant 0 : index
    %c0_4 = arith.constant 0 : index
    %5 = vector.load %arg2[%c0_3, %c0_4] : memref<2048x1024xbf16, #tpu.memory_space<vmem>>, vector<2048x1024xbf16>
    %cst = arith.constant dense<0.000000e+00> : vector<2x1024xf32>
    %6 = tpu.matmul %4, %5, %cst {dimension_numbers = #tpu.dot_dimension_numbers<[1], [0], [0], [1], [0, 0, 1, 1], [], []>} : vector<2x2048xbf16>, vector<2048x1024xbf16>, vector<2x1024xf32> -> vector<2x1024xf32>
    %c0_5 = arith.constant 0 : index
    %c0_6 = arith.constant 0 : index
    %7 = vector.load %arg5[%c0_5, %c0_6] : memref<2x1024xf32, #tpu.memory_space<vmem>>, vector<2x1024xf32>
    %cst_7 = arith.constant 0.949999988 : f32
    %8 = vector.broadcast %cst_7 : f32 to vector<2x1024xf32>
    %9 = arith.mulf %8, %7 : vector<2x1024xf32>
    %10 = arith.addf %9, %6 : vector<2x1024xf32>
    %cst_8 = arith.constant 1.000000e+00 : f32
    %11 = vector.broadcast %cst_8 : f32 to vector<2x1024xf32>
    %12 = arith.cmpf ogt, %10, %11 : vector<2x1024xf32>
    %13 = arith.extui %12 : vector<2x1024xi1> to vector<2x1024xi32>
    %14 = arith.sitofp %13 : vector<2x1024xi32> to vector<2x1024xf32>
    %cst_9 = arith.constant 1.000000e+00 : f32
    %15 = vector.broadcast %cst_9 : f32 to vector<2x1024xf32>
    %16 = arith.mulf %15, %14 : vector<2x1024xf32>
    %17 = arith.subf %10, %16 : vector<2x1024xf32>
    %c0_10 = arith.constant 0 : index
    %c0_11 = arith.constant 0 : index
    %18 = vector.load %arg5[%c0_10, %c0_11] : memref<2x1024xf32, #tpu.memory_space<vmem>>, vector<2x1024xf32>
    tpu.vector_store %arg5[%c0_10, %c0_11], %17 {strides = array<i32>} : memref<2x1024xf32, #tpu.memory_space<vmem>>, vector<2x1024xf32>,
    %c0_12 = arith.constant 0 : index
    %c0_13 = arith.constant 0 : index
    %19 = vector.load %arg6[%c0_12, %c0_13] : memref<2x10xf32, #tpu.memory_space<vmem>>, vector<2x10xf32>
    %20 = arith.truncf %14 : vector<2x1024xf32> to vector<2x1024xbf16>
    %c0_14 = arith.constant 0 : index
    %c0_15 = arith.constant 0 : index
    %21 = vector.load %arg3[%c0_14, %c0_15] : memref<1024x10xbf16, #tpu.memory_space<vmem>>, vector<1024x10xbf16>
    %cst_16 = arith.constant dense<0.000000e+00> : vector<2x10xf32>
    %22 = tpu.matmul %20, %21, %cst_16 {dimension_numbers = #tpu.dot_dimension_numbers<[1], [0], [0], [1], [0, 0, 1, 1], [], []>} : vector<2x1024xbf16>, vector<1024x10xbf16>, vector<2x10xf32> -> vector<2x10xf32>
    %23 = arith.addf %19, %22 : vector<2x10xf32>
    %c0_17 = arith.constant 0 : index
    %c0_18 = arith.constant 0 : index
    %24 = vector.load %arg6[%c0_17, %c0_18] : memref<2x10xf32, #tpu.memory_space<vmem>>, vector<2x10xf32>
    tpu.vector_store %arg6[%c0_17, %c0_18], %23 {strides = array<i32>} : memref<2x10xf32, #tpu.memory_space<vmem>>, vector<2x10xf32>,
    %c0_19 = arith.constant 0 : index
    %c0_20 = arith.constant 0 : index
    %25 = vector.load %arg6[%c0_19, %c0_20] : memref<2x10xf32, #tpu.memory_space<vmem>>, vector<2x10xf32>
    %cst_21 = arith.constant 4.000000e+00 : f32
    %26 = vector.broadcast %cst_21 : f32 to vector<2x10xf32>
    %27 = arith.divf %25, %26 : vector<2x10xf32>
    %c0_22 = arith.constant 0 : index
    %c0_23 = arith.constant 0 : index
    %28 = vector.load %arg4[%c0_22, %c0_23] : memref<2x10xf32, #tpu.memory_space<vmem>>, vector<2x10xf32>
    tpu.vector_store %arg4[%c0_22, %c0_23], %27 {strides = array<i32>} : memref<2x10xf32, #tpu.memory_space<vmem>>, vector<2x10xf32>,
    return
  }
  func.func @transform_0(%arg0: i32) -> (i32, i32, i32) {
    %c0_i32 = arith.constant 0 : i32
    %c0_i32_0 = arith.constant 0 : i32
    %c0_i32_1 = arith.constant 0 : i32
    return %arg0, %c0_i32, %c0_i32_0 : i32, i32, i32
  }
  func.func @transform_1(%arg0: i32) -> (i32, i32) {
    %c0_i32 = arith.constant 0 : i32
    %c0_i32_0 = arith.constant 0 : i32
    %c0_i32_1 = arith.constant 0 : i32
    return %c0_i32, %c0_i32_0 : i32, i32
  }
  func.func @transform_2(%arg0: i32) -> (i32, i32) {
    %c0_i32 = arith.constant 0 : i32
    %c0_i32_0 = arith.constant 0 : i32
    %c0_i32_1 = arith.constant 0 : i32
    return %c0_i32, %c0_i32_0 : i32, i32
  }
  func.func @transform_3(%arg0: i32) -> (i32, i32) {
    %c0_i32 = arith.constant 0 : i32
    %c0_i32_0 = arith.constant 0 : i32
    %c0_i32_1 = arith.constant 0 : i32
    return %c0_i32, %c0_i32_0 : i32, i32
  }
}

</mosaic_0001>

<bundles_post_ra>
// kernel: snn_vgg5_forward.4
= control target key start
LH: loop header
LB: loop body
LE: loop exit
PB: predicated region body
PF: predicated region fallthrough
CT: control target
= control target key end

     0   :  { %s7362_s0 = inlined_call_operand.hbm [shape: bf16[2,4,328,8], index: 0, kind: input, shape index: {}]   ;;  %s7363_s1 = inlined_call_operand.hbm [shape: bf16[9,8,64], index: 1, kind: input, shape index: {}]   ;;  %s7364_s2 = inlined_call_operand.hbm [shape: bf16[2,4,288,64], index: 2, kind: output, shape index: {}]  }
   0x1   :  { %7373 = sst [smem:[#allocation14_spill]] %s7363_s1 }
   0x2   :  { %7 = vsyncpa [#allocation4], 0 }
   0x3   :  { %9 = vsyncpa [#allocation4 + $0x1], 0 }
   0x4   :  { %10 = vsyncpa [#allocation7], 0 }
   0x5   :  { %11 = vsyncpa [#allocation5], 0 }
   0x6   :  { %13 = vsyncpa [#allocation5 + $0x1], 0  ;;  %s6043_s9 = smov 0   ;;  %s6045_s10 = smov 0  }
   0x7   :  { %s6047_s11 = smov 0   ;;  %s6049_s12 = smov 0  }
   0x8   :  { %s6051_s13 = smov 0   ;;  %s6053_s14 = smov 0  }
   0x9   :  { %s6055_s15 = smov 0   ;;  %s6057_s16 = smov 0  }
   0xa LB: > { %s4451_s17 = sadd.s32 4294967295, %s6017_s16   ;;  %s4452_s18 = sadd.s32 4294967294, %s6017_s16   ;;  %s6017_s16 = sphi %s6057_s16, %s19_s16   ;;  %s6013_s15 = sphi %s6055_s15, %s7400_s15   ;;  %s6009_s14 = sphi %s6053_s14, %s7399_s14   ;;  %s6005_s13 = sphi %s6051_s13, %s7398_s13   ;;  %s6001_s12 = sphi %s6049_s12, %s7397_s12   ;;  %s5997_s11 = sphi %s6047_s11, %s7396_s11   ;;  %s5993_s10 = sphi %s6045_s10, %s7395_s10   ;;  %s5989_s9 = sphi %s6043_s9, %s7394_s9  }
   0xb   : > { %p53_p0 = scmp.ne.s32.totalorder %s5993_s10, %s5989_s9  ;;  %p6087_p1 = scmp.eq.s32.totalorder %s4451_s17, 0 }
   0xc   : > { %p6091_p2 = scmp.eq.s32.totalorder %s4451_s17, 7  ;;  %p106_p3 = scmp.eq.s32.totalorder %s4452_s18, 7 }
   0xd   : > { %s7374_s19 = scalar_select %p6087_p1, 1, 0 }
   0xe   : > { %s7375_s20 = scalar_select %p6091_p2, 1, 0 }
   0xf   : > { %p6097_p4 = por %p6087_p1, %p53_p0  ;;  %p4453_p5 = scmp.ge.s32.totalorder %s6017_s16, 1 }
  0x10   : > { %p6102_p6 = por %p106_p3, %p53_p0  ;;  %p113_p7 = scmp.lt.s32.totalorder %s6017_s16, 9 }
  0x11   : > { %s7376_s21 = scalar_select %p6097_p4, 1, 0 }
  0x12   : > { %s7377_s22 = scalar_select %p6102_p6, 1, 0 }
  0x13   : > { %p6107_p8 = pnand %p4453_p5, %p113_p7  ;;  %s6019_s24 = smov [#allocation6]  }
  0x14   : > { %s125_s25 = sshll.u32 %s6019_s24, 4  ;;  %s7380_s1 = sld [smem:[#allocation14_spill]]  ;;  %s126_s25 = int_to_ptr.vmem [resolvable:$true] %s125_s25 }
  0x15   : > { %s7378_s23 = scalar_select %p6107_p8, 1, 0 }
  0x16   : > { %p5677_p9 = pneg %p6107_p8 }
  0x18   : > { %p6115_p10 = pnand %p5677_p9, %p6087_p1 }
  0x1a   : > { %s5857_s29 = scalar_lea.hbm %s7380_s1, 576  ;;  %p5859_p12 = pneg %p6115_p10 }
  0x1b   : > { %p5858_p11 = scmp.ne.s32.totalorder %s7380_s1, %s5857_s29  ;;  %p5864_p3 = scmp.lt.u32.totalorder %s5857_s29, %s7380_s1 }
  0x1d   : > { %p5860_p13 = pnand %p5859_p12, %p5858_p11 }
  0x1f   : > { %p5861_p0 = pneg %p5860_p13 }
  0x21   : > { %p5866_p5 = pnand %p5864_p3, %p5861_p0 }
  0x23   : > { %5869 = shalt.err (!%p5866_p5)
}
  0x24   : > { %s5870_s6 = scalar_lea.vmem %s126_s25, 576  ;;  %p5878_p1 = scmp.lt.s32.totalorder %s126_s25, %s126_s25 }
  0x25   : > { %p5871_p7 = scmp.ne.s32.totalorder %s126_s25, %s5870_s6  ;;  %p5879_p4 = scmp.lt.s32.totalorder %s5870_s6, %s5870_s6 }
  0x27   : > { %p5873_p9 = pnand %p5871_p7, %p5859_p12  ;;  %p5880_p8 = por %p5879_p4, %p5878_p1 }
  0x29   : > { %p5874_p6 = pneg %p5873_p9 }
  0x2b   : > { %p5881_p2 = pnand %p5880_p8, %p5874_p6 }
  0x2d   : > { %5884 = shalt.err (!%p5881_p2)
}
  0x2e   : > { %s7369_s7 = smov 64   ;;  %s7370_s8 = smov 4  }
  0x2f   : > { %5680 = dma.hbm_to_vmem [thread:$0]  (!%p6115_p10), %s7380_s1, 576, %s126_s25, [#allocation7], %s7369_s7, %s7369_s7, %s7370_s8  }
  0x30   : > { %s28_s24 = sadd.s32 1, %s6009_s14  ;;  %s31_s27 = sadd.s32 1, %s6013_s15 }
  0x31   : > { %p29_p1 = scmp.ge.s32.totalorder %s28_s24, 4  ;;  %s40_s28 = sadd.s32 1, %s5997_s11 }
  0x32   : > { %p47_p2 = scmp.ne.s32.totalorder %s5997_s11, %s5993_s10  ;;  %p48_p4 = scmp.eq.s32.totalorder %s6017_s16, 0 }
  0x33   : > { %s7402_s24 = smov (%p29_p1, %s28_s24), 0  ;;  %s7404_s27 = smov (!%p29_p1, %s31_s27), %s6013_s15 }
  0x34   : > { %7381 = sst [smem:[#allocation12_spill]] %s7402_s24  ;;  %s36_s26 = ssub.s32 %s6009_s14, %s7402_s24 }
  0x35   : > { %p33_p6 = scmp.ge.s32.totalorder %s7404_s27, 2  ;;  %p7382_p8 = scmp.ne.s32.totalorder %s7375_s20, 0 }
  0x36   : > { %p49_p10 = por %p48_p4, %p47_p2  ;;  %p5690_p12 = scmp.lt.s32.totalorder %s6017_s16, 8 }
  0x37   : > { %p6151_p11 = por %p7382_p8, %p47_p2  ;;  %s7406_s27 = smov (%p33_p6, %s7404_s27), 0 }
  0x38   : > { %7384 = sst [smem:[#allocation13_spill]] %s7406_s27  ;;  %s139_s25 = sand.u32 1, %s5997_s11  }
  0x39   : > { %s5663_s30 = smul.u32 41, %s6009_s14  ;;  %s35_s3 = ssub.s32 %s6013_s15, %s7406_s27 }
  0x3a   : > { %s37_s4 = sor.u32 %s36_s26, %s35_s3  ;;  %s5662_s5 = smul.u32 164, %s139_s25 }
  0x3b   : > { %p38_p13 = scmp.eq.s32.totalorder %s37_s4, 0  ;;  %s5664_s6 = smul.u32 164, %s6013_s15 }
  0x3c   : > { %p6163_p0 = pnand %p5690_p12, %p49_p10  ;;  %s143_s7 = scalar_lea.vmem [#allocation3], %s5662_s5 }
  0x3d   : > { %s6168_s20 = scalar_select %p38_p13, %s5997_s11, %s40_s28  }
  0x3e   : > { %s149_s18 = sadd.s32 %s5664_s6, %s5663_s30  ;;  %s152_s8 = sshll.u32 %s143_s7, 4  ;;  %s6170_s8 = int_to_ptr.vmem [resolvable:$true] %s152_s8 }
  0x3f   : > { %s4456_s1 = sshll.u32 %s149_s18, 6  ;;  %s6177_s3 = scalar_lea.sflag [#allocation4], %s139_s25 }
  0x40   : > { %s6175_s26 = scalar_lea.hbm %s7362_s0, %s4456_s1  ;;  %p5887_p5 = pneg %p6163_p0 }
  0x41   : > { %s5885_s4 = scalar_lea.hbm %s6175_s26, 2624  ;;  %s5890_s24 = scalar_lea.hbm %s7362_s0, 20992 }
  0x42   : > { %p5886_p3 = scmp.ne.s32.totalorder %s6175_s26, %s5885_s4  ;;  %p5891_p1 = scmp.lt.u32.totalorder %s6175_s26, %s7362_s0 }
  0x43   : > { %p5892_p2 = scmp.lt.u32.totalorder %s5890_s24, %s5885_s4  ;;  %p5894_p6 = scmp.lt.u32.totalorder %s5885_s4, %s6175_s26 }
  0x44   : > { %p5888_p7 = pnand %p5887_p5, %p5886_p3 }
  0x45   : > { %p5893_p4 = por %p5892_p2, %p5891_p1 }
  0x46   : > { %p5889_p9 = pneg %p5888_p7 }
  0x47   : > { %p5895_p8 = por %p5894_p6, %p5893_p4 }
  0x49   : > { %p5896_p10 = pnand %p5895_p8, %p5889_p9 }
  0x4b   : > { %5899 = shalt.err (!%p5896_p10)
}
  0x4c   : > { %s5900_s25 = scalar_lea.vmem %s6170_s8, 2624  ;;  %s6022_s30 = smov [#allocation3]  }
  0x4d   : > { %p5901_p12 = scmp.ne.s32.totalorder %s6170_s8, %s5900_s25  ;;  %s5905_s5 = sshll.u32 %s6022_s30, 4  ;;  %s5906_s5 = int_to_ptr.vmem [resolvable:$false] %s5905_s5 }
  0x4e   : > { %s5907_s6 = scalar_lea.vmem %s5906_s5, 5248  ;;  %p5908_p7 = scmp.lt.s32.totalorder %s6170_s8, %s5906_s5 }
  0x4f   : > { %p5903_p13 = pnand %p5901_p12, %p5887_p5  ;;  %p5909_p1 = scmp.lt.s32.totalorder %s5907_s6, %s5900_s25 }
  0x51   : > { %p5904_p3 = pneg %p5903_p13  ;;  %p5910_p2 = por %p5909_p1, %p5908_p7 }
  0x53   : > { %p5911_p4 = pnand %p5910_p2, %p5904_p3 }
  0x55   : > { %5914 = shalt.err (!%p5911_p4)
}
  0x56   : > { %s7386_s18 = smov 4   ;;  %s7387_s4 = smov 64  }
  0x57   : > { %5684 = dma.hbm_to_vmem [thread:$0]  (!%p6163_p0), %s6175_s26, 2624, %s6170_s8, %s6177_s3, %s7387_s4, %s7387_s4, %s7386_s18  }
  0x58   : > { %p7388_p5 = scmp.ne.s32.totalorder %s7378_s23, 0 }
  0x59   : > { %s6211_s7 = sand.u32 (!%p7388_p5), 1, %s5993_s10   ;;  %p7389_p9 = scmp.ne.s32.totalorder (!%p7388_p5), %s7376_s21, 0 }
  0x5a   : > { %164 = sbr.rel (%p7388_p5) target bundleno = 691 (0x2b3), region = 28  ;;  %s167_s24 = scalar_lea.sflag (!%p7388_p5), [#allocation4], %s6211_s7 }
  0x5b   : > { %s5665_s28 = smul.u32 (!%p7388_p5), 164, %s6211_s7 }
  0x5d   : > { %s6215_s1 = scalar_lea.vmem (!%p7388_p5), [#allocation3], %s5665_s28 }
  0x61   : > { %5976 = dma.done.wait (%p7389_p9), %s167_s24, 2624  }
  0x62   : > { %5978 = vsyncadd (%p7389_p9), %s167_s24, 4294964672  ;;  %p7390_p0 = scmp.ne.s32.totalorder %s7374_s19, 0 }
  0x64   : > { %5980 = dma.done.wait (%p7390_p0), [#allocation7], 576  }
  0x65   : > { %5982 = vsyncadd (%p7390_p0), [#allocation7], 4294966720  ;;  %s5666_s23 = smul.u32 144, %s6211_s7  ;;  %p4459_p6 = scmp.ne.s32.totalorder %s6001_s12, 0 }
  0x66   : > { %vm200_vm0 = vcmask (!%p4459_p6), 523264   ;;  %v6023_v0 = vmov (!%p4459_p6), 0.0  }
  0x67   : > { %s6226_s8 = scalar_lea.vmem [#allocation8], %s5666_s23  ;;  %199 = sbr.rel (%p4459_p6) target bundleno = 121 (0x79), region = 40  ;;  %201 = vst.msk [vmem:[#allocation2] sm:$0xff] (!%p4459_p6), %vm200_vm0, %v6023_v0  ;;  %202 = vst.msk [vmem:[#allocation2 + $0x8] sm:$0xff] (!%p4459_p6), %vm200_vm0, %v6023_v0 }
  0x68   : > { %203 = vst.msk [vmem:[#allocation2 + $0x10] sm:$0xff] (!%p4459_p6), %vm200_vm0, %v6023_v0  ;;  %204 = vst.msk [vmem:[#allocation2 + $0x18] sm:$0xff] (!%p4459_p6), %vm200_vm0, %v6023_v0 }
  0x69   : > { %205 = vst.msk [vmem:[#allocation2 + $0x20] sm:$0xff] (!%p4459_p6), %vm200_vm0, %v6023_v0  ;;  %206 = vst.msk [vmem:[#allocation2 + $0x28] sm:$0xff] (!%p4459_p6), %vm200_vm0, %v6023_v0 }
  0x6a   : > { %207 = vst.msk [vmem:[#allocation2 + $0x30] sm:$0xff] (!%p4459_p6), %vm200_vm0, %v6023_v0  ;;  %208 = vst.msk [vmem:[#allocation2 + $0x38] sm:$0xff] (!%p4459_p6), %vm200_vm0, %v6023_v0 }
  0x6b   : > { %209 = vst.msk [vmem:[#allocation2 + $0x40] sm:$0xff] (!%p4459_p6), %vm200_vm0, %v6023_v0  ;;  %210 = vst.msk [vmem:[#allocation2 + $0x48] sm:$0xff] (!%p4459_p6), %vm200_vm0, %v6023_v0 }
  0x6c   : > { %211 = vst.msk [vmem:[#allocation2 + $0x50] sm:$0xff] (!%p4459_p6), %vm200_vm0, %v6023_v0  ;;  %212 = vst.msk [vmem:[#allocation2 + $0x58] sm:$0xff] (!%p4459_p6), %vm200_vm0, %v6023_v0 }
  0x6d   : > { %213 = vst.msk [vmem:[#allocation2 + $0x60] sm:$0xff] (!%p4459_p6), %vm200_vm0, %v6023_v0  ;;  %214 = vst.msk [vmem:[#allocation2 + $0x68] sm:$0xff] (!%p4459_p6), %vm200_vm0, %v6023_v0 }
  0x6e   : > { %215 = vst.msk [vmem:[#allocation2 + $0x70] sm:$0xff] %vm200_vm0, %v6023_v0  ;;  %216 = vst.msk [vmem:[#allocation2 + $0x78] sm:$0xff] %vm200_vm0, %v6023_v0 }
  0x6f   : > { %217 = vst.msk [vmem:[#allocation2 + $0x80] sm:$0xff] %vm200_vm0, %v6023_v0  ;;  %218 = vst.msk [vmem:[#allocation2 + $0x88] sm:$0xff] %vm200_vm0, %v6023_v0 }
  0x70   : > { %219 = vst.msk [vmem:[#allocation2 + $0x90] sm:$0xff] %vm200_vm0, %v6023_v0  ;;  %220 = vst.msk [vmem:[#allocation2 + $0x98] sm:$0xff] %vm200_vm0, %v6023_v0 }
  0x71   : > { %221 = vst.msk [vmem:[#allocation2 + $0xa0] sm:$0xff] %vm200_vm0, %v6023_v0  ;;  %222 = vst.msk [vmem:[#allocation2 + $0xa8] sm:$0xff] %vm200_vm0, %v6023_v0 }
  0x72   : > { %223 = vst.msk [vmem:[#allocation2 + $0xb0] sm:$0xff] %vm200_vm0, %v6023_v0  ;;  %224 = vst.msk [vmem:[#allocation2 + $0xb8] sm:$0xff] %vm200_vm0, %v6023_v0 }
  0x73   : > { %225 = vst.msk [vmem:[#allocation2 + $0xc0] sm:$0xff] %vm200_vm0, %v6023_v0  ;;  %226 = vst.msk [vmem:[#allocation2 + $0xc8] sm:$0xff] %vm200_vm0, %v6023_v0 }
  0x74   : > { %227 = vst.msk [vmem:[#allocation2 + $0xd0] sm:$0xff] %vm200_vm0, %v6023_v0  ;;  %228 = vst.msk [vmem:[#allocation2 + $0xd8] sm:$0xff] %vm200_vm0, %v6023_v0 }
  0x75   : > { %229 = vst.msk [vmem:[#allocation2 + $0xe0] sm:$0xff] %vm200_vm0, %v6023_v0  ;;  %230 = vst.msk [vmem:[#allocation2 + $0xe8] sm:$0xff] %vm200_vm0, %v6023_v0 }
  0x76   : > { %231 = vst.msk [vmem:[#allocation2 + $0xf0] sm:$0xff] %vm200_vm0, %v6023_v0  ;;  %232 = vst.msk [vmem:[#allocation2 + $0xf8] sm:$0xff] %vm200_vm0, %v6023_v0 }
  0x77   : > { %233 = vst.msk [vmem:[#allocation2 + $0x100] sm:$0xff] %vm200_vm0, %v6023_v0  ;;  %234 = vst.msk [vmem:[#allocation2 + $0x108] sm:$0xff] %vm200_vm0, %v6023_v0 }
  0x78   : > { %235 = vst.msk [vmem:[#allocation2 + $0x110] sm:$0xff] %vm200_vm0, %v6023_v0  ;;  %236 = vst.msk [vmem:[#allocation2 + $0x118] sm:$0xff] %vm200_vm0, %v6023_v0 }
  0x79 PF: > { %v345_v1 = vld [vmem:[#allocation6] sm:$0xf]  ;;  %vm491_vm1 = vcmask 1043456   ;;  %vm436_vm2 = vcmask 64512   ;;  %v2014_v5 = vld [vmem:[#allocation6 + $0x10] sm:$0xf] }
  0x7a   : > { %v5764_v2 = vld [vmem:[%s6215_s1] sm:$0xff]   ;;  %5652 = vmatprep.subr.msk.bf16.mxu1 %vm491_vm1, %v345_v1  ;;  %v493_v3 = vsel %vm491_vm1, %v345_v1, 0  ;;  %v5765_v4 = vld [vmem:[%s6215_s1 + $0x8] sm:$0xff]   ;;  %5656 = vmatprep.subr.msk.bf16.mxu0 %vm491_vm1, %v2014_v5  ;;  %v6272_v6 = vsel %vm491_vm1, %v2014_v5, 0  ;;  %v6279_v9 = vld [vmem:[%s6215_s1 + $0x10] sm:$0xff]   ;;  %vm2465_vm4 = vcmask 1045504  }
  0x7b   : > { %4985 = vmatpush3.bf16.msra.mxu1 %v493_v3  ;;  %4986 = vmatprep.mubr.msk.bf16.mxu1 %vm436_vm2, %v5764_v2  ;;  %v1573_v7 = vld [vmem:[%s6215_s1 + $0x8] sm:$0xe]  ;;  %v6276_v8 = vld [vmem:[%s6215_s1 + $0xc] sm:$0xf]  ;;  %vm2018_vm3 = vsmask.f32 6400 }
  0x7c   : > { %5137 = vmatpush3.bf16.msra.mxu0 %v6272_v6  ;;  %v6283_v10 = vcombine.low %v1573_v7, %v6276_v8  ;;  %v2028_v11 = vshrl.u32 %v6279_v9, 16  ;;  %v2031_v12 = vshll.u32 %v6279_v9, 16  ;;  %v2461_v13 = vld [vmem:[#allocation6 + $0x14] sm:$0xf]  ;;  %v5769_v24 = vld [vmem:[%s6215_s1 + $0x10] sm:$0xff]   ;;  %v6303_v32 = vld [vmem:[%s6215_s1 + $0x20] sm:$0xff]  }
  0x7d   : > { %5658 = vmatprep.subr.msk.bf16.mxu0 %vm491_vm1, %v2461_v13  ;;  %v6292_v16 = vld [vmem:[%s6215_s1 + $0x18] sm:$0xff]   ;;  %v2558_v17 = vsel %vm491_vm1, %v2461_v13, 0  ;;  %v746_v27 = vld [vmem:[#allocation6 + $0x4] sm:$0xf]  ;;  %v2046_v35 = vshrl.u32 %v6303_v32, 16  ;;  %v2049_v36 = vshll.u32 %v6303_v32, 16 }
  0x7e   : > { %4987 = vmatmul.mubr.msk.bf16.vlgmr.msra.gmra.mrb[0].mxu1 %vm436_vm2, %v5765_v4  ;;  %v2020_v14 = vshrl.u32 %v6283_v10, 16  ;;  %v2023_v15 = vshll.u32 %v6283_v10, 16  ;;  %v2030_v18 = vrot.slane %v2028_v11, 1  ;;  %v2033_v19 = vrot.slane %v2031_v12, 2  ;;  %v5770_v25 = vld [vmem:[%s6215_s1 + $0x18] sm:$0xff]   ;;  %5653 = vmatprep.subr.msk.bf16.mxu1 %vm491_vm1, %v746_v27  ;;  %v6309_v37 = vld [vmem:[%s6215_s1 + $0x28] sm:$0xff]  }
  0x7f   : > { %v2037_v22 = vshrl.u32 %v6292_v16, 16  ;;  %v2040_v23 = vshll.u32 %v6292_v16, 16  ;;  %4990 = vmatprep.mubr.msk.bf16.mxu1 %vm436_vm2, %v5769_v24  ;;  %v1044_v31 = vsel %vm491_vm1, %v746_v27, 0  ;;  %v5773_v38 = vld [vmem:[%s6215_s1 + $0x20] sm:$0xff]   ;;  %v2048_v40 = vrot.slane %v2046_v35, 1  ;;  %v5774_v44 = vld [vmem:[%s6215_s1 + $0x28] sm:$0xff]  }
  0x80   : > { %v2022_v20 = vrot.slane %v2020_v14, 1  ;;  %v2025_v21 = vrot.slane %v2023_v15, 2  ;;  %v2034_v26 = vor.u32 %v2033_v19, %v2030_v18  ;;  %5023 = vmatpush3.bf16.msra.mxu1 %v1044_v31  ;;  %v2051_v41 = vrot.slane %v2049_v36, 2  ;;  %v6321_v45 = vld [vmem:[%s6215_s1 + $0x30] sm:$0xff]   ;;  %v6324_v48 = vld [vmem:[%s6215_s1 + $0x38] sm:$0xff]   ;;  %v6334_v59 = vld [vmem:[%s6215_s1 + $0x40] sm:$0xff]  }
  0x81   : > { %v2039_v29 = vrot.slane %v2037_v22, 1  ;;  %v2042_v30 = vrot.slane %v2040_v23, 2  ;;  %v2055_v42 = vshrl.u32 %v6309_v37, 16  ;;  %v2058_v43 = vshll.u32 %v6309_v37, 16  ;;  %v5777_v52 = vld [vmem:[%s6215_s1 + $0x30] sm:$0xff]   ;;  %v6341_v2 = vld [vmem:[%s6215_s1 + $0x48] sm:$0xff]  }
  0x82   : > { %v2026_v28 = vor.u32 %v2025_v21, %v2022_v20  ;;  %v2052_v46 = vor.u32 %v2051_v41, %v2048_v40  ;;  %v2064_v50 = vshrl.u32 %v6321_v45, 16  ;;  %v2067_v51 = vshll.u32 %v6321_v45, 16  ;;  %v6350_v13 = vld [vmem:[%s6215_s1 + $0x50] sm:$0xff]   ;;  %v5778_v14 = vld [vmem:[%s6215_s1 + $0x38] sm:$0xff]   ;;  %v5782_v31 = vld [vmem:[%s6215_s1 + $0x48] sm:$0xff]   ;;  %s5667_s19 = smul.u32 36, %s6001_s12 }
  0x83   : > { %v2043_v34 = vor.u32 %v2042_v30, %v2039_v29  ;;  %v2057_v47 = vrot.slane %v2055_v42, 1  ;;  %v2060_v49 = vrot.slane %v2058_v43, 2  ;;  %v2073_v54 = vshrl.u32 %v6324_v48, 16  ;;  %v6358_v23 = vld [vmem:[%s6215_s1 + $0x58] sm:$0xff]   ;;  %v2459_v35 = vld [vmem:[%s6215_s1 + $0x8] sm:$0xc] }
  0x84   : > { %v2035_v33 = vsel %vm2018_vm3, %v2026_v28, %v2034_v26  ;;  %v2076_v55 = vshll.u32 %v6324_v48, 16  ;;  %v2066_v57 = vrot.slane %v2064_v50, 1  ;;  %v2069_v58 = vrot.slane %v2067_v51, 2  ;;  %v2811_v27 = vld [vmem:[#allocation6 + $0x18] sm:$0xf]  ;;  %s5668_s21 = smul.u32 144, %s6005_s13 }
  0x85   : > { %5138 = vmatprep.mubr.msk.bf16.mxu0 %vm436_vm2, %v2035_v33  ;;  %v2044_v39 = vsel %vm2018_vm3, %v2034_v26, %v2043_v34  ;;  %v2053_v53 = vsel %vm2018_vm3, %v2043_v34, %v2052_v46  ;;  %v2061_v56 = vor.u32 %v2060_v49, %v2057_v47  ;;  %v2075_v60 = vrot.slane %v2073_v54, 1  ;;  %v5785_v34 = vld [vmem:[%s6215_s1 + $0x50] sm:$0xff]   ;;  %v5786_v43 = vld [vmem:[%s6215_s1 + $0x58] sm:$0xff]   ;;  %v5788_v47 = vld [vmem:[%s6215_s1 + $0x60] sm:$0xff]   ;;  %s4351_s17 = sshll.u32 %s6226_s8, 4  ;;  %s4336_s25 = scalar_lea.sflag [#allocation5], %s6211_s7  ;;  %s7299_s17 = int_to_ptr.vmem [resolvable:$true] %s4351_s17 }
  0x86   : > { %4991 = vmatmul.mubr.msk.bf16.gmra.mrb[4].mxu1 %vm436_vm2, %v5770_v25  ;;  %5139 = vmatmul.mubr.msk.bf16.vlgmr.msra.gmra.mrb[0].mxu0 %vm436_vm2, %v2044_v39  ;;  %v2078_v61 = vrot.slane %v2076_v55, 2  ;;  %v2070_v63 = vor.u32 %v2069_v58, %v2066_v57  ;;  %v2082_v0 = vshrl.u32 %v6334_v59, 16  ;;  %v2085_v1 = vshll.u32 %v6334_v59, 16  ;;  %v6383_v49 = vld [vmem:[#allocation6 + $0x8] sm:$0xf]  ;;  %s4348_s12 = sadd.s32 %s5668_s21, %s5667_s19  ;;  %s5915_s30 = scalar_lea.vmem %s7299_s17, 2304 }
  0x87   : > { %4994 = vmatprep.mubr.msk.bf16.mxu1 %vm436_vm2, %v5773_v38  ;;  %5175 = vmatpush3.bf16.msra.mxu0 %v2558_v17  ;;  %v2062_v62 = vsel %vm2018_vm3, %v2052_v46, %v2061_v56  ;;  %v2091_v7 = vshrl.u32 %v6341_v2, 16  ;;  %v2094_v12 = vshll.u32 %v6341_v2, 16  ;;  %v5781_v17 = vld [vmem:[%s6215_s1 + $0x40] sm:$0xff]   ;;  %v2100_v18 = vshrl.u32 %v6350_v13, 16  ;;  %v5790_v55 = vld [vmem:[%s6215_s1 + $0x70] sm:$0xff]   ;;  %s4774_s13 = sshll.u32 %s4348_s12, 6  ;;  %p5916_p8 = scmp.ne.s32.totalorder %s7299_s17, %s5915_s30 }
  0x88   : > { %5142 = vmatprep.mubr.msk.bf16.mxu0 %vm436_vm2, %v2053_v53  ;;  %v2071_v3 = vsel %vm2018_vm3, %v2061_v56, %v2070_v63  ;;  %v2084_v4 = vrot.slane %v2082_v0, 1  ;;  %v2087_v5 = vrot.slane %v2085_v1, 2  ;;  %v2079_v11 = vor.u32 %v2078_v61, %v2075_v60  ;;  %5659 = vmatprep.subr.msk.bf16.mxu0 %vm491_vm1, %v2811_v27  ;;  %v5789_v53 = vld [vmem:[%s6215_s1 + $0x68] sm:$0xff]   ;;  %v5792_v0 = vld [vmem:[%s6215_s1 + $0x80] sm:$0xff]   ;;  %s7297_s27 = scalar_lea.hbm %s7364_s2, %s4774_s13  ;;  %s6025_s5 = smov [#allocation8]  }
  0x89   : > { %v2103_v19 = vshll.u32 %v6350_v13, 16  ;;  %v2093_v21 = vrot.slane %v2091_v7, 1  ;;  %v2096_v22 = vrot.slane %v2094_v12, 2  ;;  %v2102_v25 = vrot.slane %v2100_v18, 1  ;;  %5654 = vmatprep.subr.msk.bf16.mxu1 %vm491_vm1, %v6383_v49  ;;  %v6410_v60 = vld [vmem:[%s6215_s1 + $0x8] sm:$0xff]   ;;  %p5917_p10 = pnand %p5916_p8, %p6151_p11  ;;  %s5919_s6 = sshll.u32 %s6025_s5, 4  ;;  %s5920_s6 = int_to_ptr.vmem [resolvable:$false] %s5919_s6 }
  0x8a   : > { %v2088_v15 = vor.u32 %v2087_v5, %v2084_v4  ;;  %v2080_v20 = vsel %vm2018_vm3, %v2070_v63, %v2079_v11  ;;  %v2109_v29 = vshrl.u32 %v6358_v23, 16  ;;  %v2112_v30 = vshll.u32 %v6358_v23, 16  ;;  %s5921_s18 = scalar_lea.vmem %s5920_s6, 4608  ;;  %p5922_p13 = scmp.lt.s32.totalorder %s7299_s17, %s5920_s6 }
  0x8b   : > { %v2105_v26 = vrot.slane %v2103_v19, 2  ;;  %v2097_v28 = vor.u32 %v2096_v22, %v2093_v21  ;;  %v4608_v41 = vcombine.low %v2459_v35, %v6276_v8  ;;  %v2467_v46 = vrot.slane %v6279_v9, 2  ;;  %v708_v9 = vld [vmem:[%s6215_s1] sm:$0xf]  ;;  %p5918_p12 = pneg %p5917_p10  ;;  %p5923_p3 = scmp.lt.s32.totalorder %s5921_s18, %s5915_s30 }
  0x8c   : > { %v2089_v24 = vsel %vm2018_vm3, %v2079_v11, %v2088_v15  ;;  %v2111_v38 = vrot.slane %v2109_v29, 1  ;;  %v2114_v39 = vrot.slane %v2112_v30, 2  ;;  %v2469_v51 = vrot.slane %v6292_v16, 2  ;;  %v6422_v11 = vld [vmem:[%s6215_s1 + $0x10] sm:$0xff]   ;;  %v6451_v30 = vld [vmem:[%s6215_s1 + $0x28] sm:$0xff]  }
  0x8d   : > { %v2106_v33 = vor.u32 %v2105_v26, %v2102_v25  ;;  %v2098_v36 = vsel %vm2018_vm3, %v2088_v15, %v2097_v28  ;;  %v2471_v54 = vrot.slane %v6303_v32, 2  ;;  %v2997_v57 = vsel %vm491_vm1, %v2811_v27, 0  ;;  %v6431_v15 = vld [vmem:[#allocation6 + $0x1c] sm:$0xf]  ;;  %p5924_p7 = por %p5923_p3, %p5922_p13 }
  0x8e   : > { %4995 = vmatmul.mubr.msk.bf16.gmra.mrb[8].mxu1 %vm436_vm2, %v5774_v44  ;;  %5143 = vmatmul.mubr.msk.bf16.gmra.mrb[4].mxu0 %vm436_vm2, %v2062_v62  ;;  %v6378_v42 = vor.u32 %v2114_v39, %v2111_v38  ;;  %v2466_v44 = vrot.slane %v4608_v41, 2  ;;  %v2470_v16 = vsel %vm2465_vm4, %v2467_v46, %v2469_v51  ;;  %v2473_v61 = vrot.slane %v6309_v37, 2  ;;  %v5791_v62 = vld [vmem:[%s6215_s1 + $0x78] sm:$0xff]   ;;  %v6446_v26 = vld [vmem:[%s6215_s1 + $0x20] sm:$0xff]  }
  0x8f   : > { %4998 = vmatprep.mubr.msk.bf16.mxu1 %vm436_vm2, %v5777_v52  ;;  %5146 = vmatprep.mubr.msk.bf16.mxu0 %vm436_vm2, %v2071_v3  ;;  %v2107_v40 = vsel %vm2018_vm3, %v2097_v28, %v2106_v33  ;;  %v6397_v52 = vld [vmem:[%s6215_s1 + $0x4] sm:$0xf]  ;;  %v2472_v58 = vsel %vm2465_vm4, %v2469_v51, %v2471_v54  ;;  %v2475_v63 = vrot.slane %v6321_v45, 2  ;;  %v849_v4 = vshll.u32 %v6410_v60, 16  ;;  %v6478_v51 = vld [vmem:[%s6215_s1 + $0x38] sm:$0xff]   ;;  %p5925_p1 = pnand %p5924_p7, %p5918_p12 }
  0x90   : > { %v2116_v8 = vsel %vm2018_vm3, %v2106_v33, %v6378_v42  ;;  %v2468_v50 = vsel %vm2465_vm4, %v2466_v44, %v2467_v46  ;;  %v4496_v56 = vcombine.low %v708_v9, %v6397_v52  ;;  %v2474_v5 = vsel %vm2465_vm4, %v2471_v54, %v2473_v61  ;;  %v6462_v39 = vld [vmem:[%s6215_s1 + $0x60] sm:$0xff]  }
  0x91   : > { %v2476_v7 = vsel %vm2465_vm4, %v2473_v61, %v2475_v63  ;;  %v2477_v37 = vrot.slane %v6324_v48, 2  ;;  %v851_v12 = vrot.slane %v849_v4, 1  ;;  %vm840_vm5 = vsmask.f32 7424  ;;  %v1259_v54 = vld [vmem:[%s6215_s1] sm:$0xe] }
  0x92   : > { %v844_v32 = vshll.u32 %v4496_v56, 16  ;;  %v842_v1 = vshrl.u32 %v4496_v56, 16  ;;  %v2479_v18 = vrot.slane %v6334_v59, 2  ;;  %v857_v19 = vshll.u32 %v6422_v11, 16 }
  0x93   : > { %v853_v48 = vshrl.u32 %v6410_v60, 16  ;;  %v861_v21 = vshrl.u32 %v6422_v11, 16  ;;  %v2483_v33 = vrot.slane %v6350_v13, 2  ;;  %v873_v35 = vshll.u32 %v6446_v26, 16 }
  0x94   : > { %v846_v3 = vrot.slane %v844_v32, 1  ;;  %v2480_v59 = vsel %vm2465_vm4, %v2477_v37, %v2479_v18  ;;  %v859_v25 = vrot.slane %v857_v19, 1  ;;  %v1358_v38 = vsel %vm491_vm1, %v6383_v49, 0 }
  0x95   : > { %v855_v27 = vor.u32 %v853_v48, %v851_v12  ;;  %v881_v13 = vshll.u32 %v6451_v30, 16  ;;  %v2485_v44 = vrot.slane %v6358_v23, 2  ;;  %v875_v49 = vrot.slane %v873_v35, 1  ;;  %v6520_v48 = vld [vmem:[%s6215_s1 + $0x48] sm:$0xff]   ;;  %v6539_v35 = vld [vmem:[%s6215_s1 + $0x60] sm:$0xff]  }
  0x96   : > { %4999 = vmatmul.mubr.msk.bf16.gmra.mrb[12].mxu1 %vm436_vm2, %v5778_v14  ;;  %5147 = vmatmul.mubr.msk.bf16.gmra.mrb[8].mxu0 %vm436_vm2, %v2080_v20  ;;  %v847_v45 = vor.u32 %v846_v3, %v842_v1  ;;  %v6428_v14 = vld [vmem:[%s6215_s1 + $0x18] sm:$0xff]   ;;  %v863_v28 = vor.u32 %v861_v21, %v859_v25  ;;  %v885_v56 = vshrl.u32 %v6451_v30, 16  ;;  %vm1265_vm6 = vcmask 1046528  }
  0x97   : > { %5002 = vmatprep.mubr.msk.bf16.mxu1 %vm436_vm2, %v5781_v17  ;;  %5150 = vmatprep.mubr.msk.bf16.mxu0 %vm436_vm2, %v2089_v24  ;;  %v5793_v17 = vld [vmem:[%s6215_s1 + $0x88] sm:$0xff]   ;;  %v865_v22 = vshll.u32 %v6428_v14, 16  ;;  %v2478_v24 = vsel %vm2465_vm4, %v2475_v63, %v2477_v37  ;;  %v1267_v61 = vrot.slane %v6410_v60, 1  ;;  %v897_v63 = vshll.u32 %v6478_v51, 16 }
  0x98   : > { %v852_v20 = vsel %vm840_vm5, %v847_v45, %v851_v12  ;;  %v1269_v1 = vrot.slane %v6422_v11, 1  ;;  %v5806_v45 = vld [vmem:[%s6215_s1 + $0x40] sm:$0xff]   ;;  %v1275_v19 = vrot.slane %v6451_v30, 1  ;;  %vm3218_vm7 = vsmask.f32 5376 }
  0x99   : > { %v867_v29 = vrot.slane %v865_v22, 1  ;;  %v899_v22 = vrot.slane %v897_v63, 1  ;;  %vm3665_vm8 = vcmask 1044480   ;;  %vm4117_vm10 = vcmask 523264  }
  0x9a   : > { %v6506_v11 = vsel %vm1265_vm6, %v1267_v61, %v1269_v1  ;;  %vm4298_vm11 = vcmask 519168  }
  0x9b   : > { %v868_v41 = vsel %vm840_vm5, %v863_v28, %v867_v29  ;;  %v1279_v28 = vrot.slane %v6478_v51, 1 }
  0x9e   : > { %5003 = vmatmul.mubr.msk.bf16.gmra.mrb[16].mxu1 %vm436_vm2, %v5782_v31  ;;  %5151 = vmatmul.mubr.msk.bf16.gmra.mrb[12].mxu0 %vm436_vm2, %v2098_v36  ;;  %v2481_v31 = vrot.slane %v6341_v2, 2  ;;  %v860_v36 = vsel %vm840_vm5, %v855_v27, %v859_v25  ;;  %v877_v2 = vshrl.u32 %v6446_v26, 16  ;;  %v905_v25 = vshll.u32 %v5806_v45, 16 }
  0x9f   : > { %5006 = vmatprep.mubr.msk.bf16.mxu1 %vm436_vm2, %v5785_v34  ;;  %5154 = vmatprep.mubr.msk.bf16.mxu0 %vm436_vm2, %v2107_v40  ;;  %v869_v34 = vshrl.u32 %v6428_v14, 16  ;;  %v6465_v40 = vld [vmem:[%s6215_s1 + $0x68] sm:$0xff]  }
  0xa0   : > { %v2484_v46 = vsel %vm2465_vm4, %v2481_v31, %v2483_v33  ;;  %v2489_v9 = vrot.slane %v6465_v40, 2  ;;  %v879_v23 = vor.u32 %v877_v2, %v875_v49  ;;  %v1283_v2 = vrot.slane %v6520_v48, 1 }
  0xa6   : > { %5007 = vmatmul.mubr.msk.bf16.gmra.mrb[20].mxu1 %vm436_vm2, %v5786_v43  ;;  %5155 = vmatmul.mubr.msk.bf16.gmra.mrb[16].mxu0 %vm436_vm2, %v2116_v8  ;;  %v2482_v43 = vsel %vm2465_vm4, %v2479_v18, %v2481_v31  ;;  %v5802_v8 = vld [vmem:[%s6215_s1 + $0x30] sm:$0xff]   ;;  %v909_v31 = vshrl.u32 %v5806_v45, 16 }
  0xa7   : > { %5010 = vmatprep.mubr.msk.bf16.mxu1 %vm436_vm2, %v5788_v47  ;;  %5176 = vmatprep.mubr.msk.bf16.mxu0 %vm436_vm2, %v2468_v50  ;;  %v871_v47 = vor.u32 %v869_v34, %v867_v29  ;;  %v2487_v50 = vrot.slane %v6462_v39, 2  ;;  %v889_v32 = vshll.u32 %v5802_v8, 16  ;;  %v1281_v29 = vrot.slane %v5806_v45, 1  ;;  %v6536_v34 = vld [vmem:[%s6215_s1 + $0x58] sm:$0xff]   ;;  %v6595_v45 = vld [vmem:[%s6215_s1 + $0x88] sm:$0xff]  }
  0xa9   : > { %v2488_v3 = vsel %vm2465_vm4, %v2485_v44, %v2487_v50 }
  0xae   : > { %5011 = vmatmul.mubr.msk.bf16.gmra.mrb[24].mxu1 %vm436_vm2, %v5789_v53  ;;  %5177 = vmatmul.mubr.msk.bf16.vlgmr.msra.gmra.mrb[0].mxu0 %vm436_vm2, %v2470_v16  ;;  %v883_v53 = vrot.slane %v881_v13, 1  ;;  %v6487_v16 = vld [vmem:[%s6215_s1 + $0x70] sm:$0xff]  }
  0xaf   : > { %5014 = vmatprep.mubr.msk.bf16.mxu1 %vm436_vm2, %v5790_v55  ;;  %5213 = vmatpush3.bf16.msra.mxu0 %v2997_v57  ;;  %v2486_v55 = vsel %vm2465_vm4, %v2483_v33, %v2485_v44  ;;  %v4533_v57 = vcombine.low %v1259_v54, %v6397_v52  ;;  %v1271_v52 = vrot.slane %v6428_v14, 1  ;;  %v2491_v60 = vrot.slane %v6487_v16, 2 }
  0xb0   : > { %5180 = vmatprep.mubr.msk.bf16.mxu0 %vm436_vm2, %v2472_v58  ;;  %5660 = vmatprep.subr.msk.bf16.mxu0 %vm491_vm1, %v6431_v15  ;;  %v876_v58 = vsel %vm840_vm5, %v871_v47, %v875_v49  ;;  %v884_v4 = vsel %vm840_vm5, %v879_v23, %v883_v53  ;;  %v887_v37 = vor.u32 %v885_v56, %v883_v53  ;;  %v891_v14 = vrot.slane %v889_v32, 1  ;;  %v6558_v49 = vld [vmem:[%s6215_s1 + $0x80] sm:$0xff]  }
  0xb1   : > { %v913_v33 = vshll.u32 %v6520_v48, 16  ;;  %v2492_v44 = vsel %vm2465_vm4, %v2489_v9, %v2491_v60  ;;  %v907_v47 = vrot.slane %v905_v25, 1  ;;  %v1289_v23 = vrot.slane %v6539_v35, 1 }
  0xb2   : > { %v892_v30 = vsel %vm840_vm5, %v887_v37, %v891_v14  ;;  %v2495_v32 = vrot.slane %v6558_v49, 2 }
  0xb3   : > { %v911_v53 = vor.u32 %v909_v31, %v907_v47  ;;  %v915_v54 = vrot.slane %v913_v33, 1  ;;  %v6621_v31 = vld [vmem:[%s6215_s1 + $0x88] sm:$0xff]  }
  0xb6   : > { %5015 = vmatmul.mubr.msk.bf16.gmra.mrb[28].mxu1 %vm436_vm2, %v5791_v62  ;;  %5181 = vmatmul.mubr.msk.bf16.gmra.mrb[4].mxu0 %vm436_vm2, %v2474_v5  ;;  %v893_v62 = vshrl.u32 %v5802_v8, 16  ;;  %v1273_v5 = vrot.slane %v6446_v26, 1  ;;  %v5810_v26 = vld [vmem:[%s6215_s1 + $0x50] sm:$0xff]  }
  0xb7   : > { %5018 = vmatprep.mubr.msk.bf16.mxu1 %vm436_vm2, %v5792_v0  ;;  %5184 = vmatprep.mubr.msk.bf16.mxu0 %vm436_vm2, %v2476_v7  ;;  %v1266_v0 = vrot.slane %v4533_v57, 1  ;;  %v6498_v7 = vld [vmem:[#allocation6 + $0xc] sm:$0xf]  ;;  %v1285_v13 = vrot.slane %v5810_v26, 1 }
  0xb8   : > { %v6515_v18 = vsel %vm1265_vm6, %v1271_v52, %v1273_v5  ;;  %v895_v21 = vor.u32 %v893_v62, %v891_v14  ;;  %v6583_v62 = vld [vmem:[%s6215_s1 + $0x70] sm:$0xff]   ;;  %v6598_v14 = vld [vmem:[%s6215_s1 + $0x78] sm:$0xff]  }
  0xb9   : > { %v6503_v12 = vsel %vm1265_vm6, %v1266_v0, %v1267_v61  ;;  %v921_v61 = vshll.u32 %v5810_v26, 16  ;;  %v917_v0 = vshrl.u32 %v6520_v48, 16  ;;  %v1295_v25 = vrot.slane %v6598_v14, 1 }
  0xbe   : > { %5019 = vmatmul.mubr.msk.bf16.gmra.mrb[32].mxu1 %vm436_vm2, %v5793_v17  ;;  %5185 = vmatmul.mubr.msk.bf16.gmra.mrb[8].mxu0 %vm436_vm2, %v2478_v24  ;;  %v6512_v17 = vsel %vm1265_vm6, %v1269_v1, %v1271_v52  ;;  %v901_v24 = vshrl.u32 %v6478_v51, 16  ;;  %v6564_v51 = vsel %vm1265_vm6, %v1283_v2, %v1285_v13  ;;  %v929_v52 = vshll.u32 %v6536_v34, 16 }
  0xbf   : > { %5024 = vmatprep.mubr.msk.bf16.mxu1 %vm436_vm2, %v852_v20  ;;  %5188 = vmatprep.mubr.msk.bf16.mxu0 %vm436_vm2, %v2480_v59  ;;  %v1277_v20 = vrot.slane %v5802_v8, 1  ;;  %v6525_v59 = vsel %vm1265_vm6, %v1273_v5, %v1275_v19  ;;  %v6561_v8 = vsel %vm1265_vm6, %v1281_v29, %v1283_v2  ;;  %v1293_v5 = vrot.slane %v6583_v62, 1 }
  0xc0   : > { %v937_v2 = vshll.u32 %v6539_v35, 16 }
  0xc1   : > { %v6530_v27 = vsel %vm1265_vm6, %v1275_v19, %v1277_v20  ;;  %v6624_v33 = vsel %vm1265_vm6, %v1293_v5, %v1295_v25 }
  0xc6   : > { %5025 = vmatmul.mubr.msk.bf16.vlgmr.msra.gmra.mrb[0].mxu1 %vm436_vm2, %v860_v36  ;;  %5189 = vmatmul.mubr.msk.bf16.gmra.mrb[12].mxu0 %vm436_vm2, %v2482_v43  ;;  %v6542_v36 = vsel %vm1265_vm6, %v1277_v20, %v1279_v28  ;;  %v2490_v43 = vsel %vm2465_vm4, %v2487_v50, %v2489_v9  ;;  %v1287_v50 = vrot.slane %v6536_v34, 1  ;;  %v903_v9 = vor.u32 %v901_v24, %v899_v22 }
  0xc7   : > { %5028 = vmatprep.mubr.msk.bf16.mxu1 %vm436_vm2, %v868_v41  ;;  %5061 = vmatpush3.bf16.msra.mxu1 %v1358_v38  ;;  %v6545_v38 = vsel %vm1265_vm6, %v1279_v28, %v1281_v29  ;;  %v900_v41 = vsel %vm840_vm5, %v895_v21, %v899_v22  ;;  %v923_v20 = vrot.slane %v921_v61, 1  ;;  %v6606_v21 = vld [vmem:[%s6215_s1 + $0x90] sm:$0xff]   ;;  %v6609_v22 = vld [vmem:[%s6215_s1 + $0x80] sm:$0xff]   ;;  %v919_v24 = vor.u32 %v917_v0, %v915_v54  ;;  %v6647_v0 = vld [vmem:[%s6215_s1 + $0x98] ss:$0 sps:$4 sm:$0x33]  }
  0xc8   : > { %5192 = vmatprep.mubr.msk.bf16.mxu0 %vm436_vm2, %v2484_v46  ;;  %5655 = vmatprep.subr.msk.bf16.mxu1 %vm491_vm1, %v6498_v7  ;;  %v6554_v46 = vld [vmem:[%s6215_s1 + $0x78] sm:$0xff]   ;;  %v6574_v56 = vsel %vm1265_vm6, %v1287_v50, %v1289_v23  ;;  %v908_v63 = vsel %vm840_vm5, %v903_v9, %v907_v47  ;;  %v931_v28 = vrot.slane %v929_v52, 1  ;;  %v1297_v29 = vrot.slane %v6609_v22, 1 }
  0xc9   : > { %v2493_v57 = vrot.slane %v6554_v46, 2  ;;  %v933_v47 = vshrl.u32 %v6536_v34, 16  ;;  %v1299_v9 = vrot.slane %v6621_v31, 1 }
  0xcb   : > { %v2494_v37 = vsel %vm2465_vm4, %v2491_v60, %v2493_v57  ;;  %v2496_v48 = vsel %vm2465_vm4, %v2493_v57, %v2495_v32 }
  0xce   : > { %5029 = vmatmul.mubr.msk.bf16.gmra.mrb[4].mxu1 %vm436_vm2, %v876_v58  ;;  %5193 = vmatmul.mubr.msk.bf16.gmra.mrb[16].mxu0 %vm436_vm2, %v2486_v55  ;;  %v6571_v55 = vsel %vm1265_vm6, %v1285_v13, %v1287_v50  ;;  %v6579_v58 = vld [vmem:[%s6215_s1 + $0x68] sm:$0xff]   ;;  %v6629_v13 = vld [vmem:[%s6215_s1 + $0x90] ss:$0 sps:$4 sm:$0x11]   ;;  %v2773_v50 = vld [vmem:[%s6215_s1 + $0x10] sm:$0xc] }
  0xcf   : > { %5032 = vmatprep.mubr.msk.bf16.mxu1 %vm436_vm2, %v884_v4  ;;  %5196 = vmatprep.mubr.msk.bf16.mxu0 %vm436_vm2, %v2488_v3  ;;  %v1291_v1 = vrot.slane %v6579_v58, 1  ;;  %v916_v3 = vsel %vm840_vm5, %v911_v53, %v915_v54  ;;  %v925_v4 = vshrl.u32 %v5810_v26, 16  ;;  %v941_v54 = vshrl.u32 %v6539_v35, 16  ;;  %v6658_v35 = vld [vmem:[%s6215_s1 + $0x18] sm:$0xff]  }
  0xd0   : > { %v945_v57 = vshll.u32 %v6579_v58, 16  ;;  %v1301_v61 = vrot.slane %v6629_v13, 1 }
  0xd1   : > { %v6601_v19 = vsel %vm1265_vm6, %v1289_v23, %v1291_v1  ;;  %v6612_v60 = vsel %vm1265_vm6, %v1291_v1, %v1293_v5  ;;  %v927_v26 = vor.u32 %v925_v4, %v923_v20  ;;  %v6638_v23 = vld [vmem:[%s6215_s1 + $0x14] sm:$0xf]  ;;  %v6650_v1 = vsel %vm1265_vm6, %v1297_v29, %v1299_v9 }
  0xd2   : > { %v6655_v4 = vcombine.low %v2773_v50, %v6638_v23  ;;  %v6661_v52 = vsel %vm1265_vm6, %v1299_v9, %v1301_v61  ;;  %v969_v61 = vshll.u32 %v6609_v22, 16 }
  0xd3   : > { %v932_v53 = vsel %vm840_vm5, %v927_v26, %v931_v28 }
  0xd6   : > { %5033 = vmatmul.mubr.msk.bf16.gmra.mrb[8].mxu1 %vm436_vm2, %v892_v30  ;;  %5197 = vmatmul.mubr.msk.bf16.gmra.mrb[20].mxu0 %vm436_vm2, %v2490_v43  ;;  %v2497_v30 = vrot.slane %v6595_v45, 2  ;;  %v6632_v43 = vsel %vm1265_vm6, %v1295_v25, %v1297_v29  ;;  %v953_v25 = vshll.u32 %v6583_v62, 16  ;;  %v949_v29 = vshrl.u32 %v6579_v58, 16 }
  0xd7   : > { %5036 = vmatprep.mubr.msk.bf16.mxu1 %vm436_vm2, %v900_v41  ;;  %5200 = vmatprep.mubr.msk.bf16.mxu0 %vm436_vm2, %v2492_v44  ;;  %v2499_v41 = vrot.slane %v6606_v21, 2  ;;  %v924_v44 = vsel %vm840_vm5, %v919_v24, %v923_v20  ;;  %v2905_v20 = vrot.slane %v6655_v4, 2  ;;  %v2906_v24 = vrot.slane %v6658_v35, 2 }
  0xd8   : > { %v955_v9 = vrot.slane %v953_v25, 1 }
  0xd9   : > { %v2500_v34 = vsel %vm2465_vm4, %v2497_v30, %v2499_v41  ;;  %v2907_v50 = vsel %vm2465_vm4, %v2905_v20, %v2906_v24  ;;  %v3444_v20 = vsel %vm491_vm1, %v6431_v15, 0 }
  0xde   : > { %5037 = vmatmul.mubr.msk.bf16.gmra.mrb[12].mxu1 %vm436_vm2, %v908_v63  ;;  %5201 = vmatmul.mubr.msk.bf16.gmra.mrb[24].mxu0 %vm436_vm2, %v2494_v37  ;;  %v2498_v63 = vsel %vm2465_vm4, %v2495_v32, %v2497_v30  ;;  %v935_v32 = vor.u32 %v933_v47, %v931_v28  ;;  %v947_v37 = vrot.slane %v945_v57, 1  ;;  %v957_v30 = vshrl.u32 %v6583_v62, 16  ;;  %v6677_v47 = vld [vmem:[%s6215_s1 + $0x20] sm:$0xff]  }
  0xdf   : > { %5040 = vmatprep.mubr.msk.bf16.mxu1 %vm436_vm2, %v916_v3  ;;  %5204 = vmatprep.mubr.msk.bf16.mxu0 %vm436_vm2, %v2496_v48  ;;  %v939_v3 = vrot.slane %v937_v2, 1  ;;  %v2501_v48 = vrot.slane %v6647_v0, 2  ;;  %v961_v2 = vshll.u32 %v6598_v14, 16 }
  0xe0   : > { %v951_v58 = vor.u32 %v949_v29, %v947_v37  ;;  %v959_v62 = vor.u32 %v957_v30, %v955_v9  ;;  %v6704_v29 = vld [vmem:[%s6215_s1 + $0x38] sm:$0xff]  }
  0xe1   : > { %v943_v5 = vor.u32 %v941_v54, %v939_v3  ;;  %v940_v26 = vsel %vm840_vm5, %v935_v32, %v939_v3  ;;  %v963_v54 = vrot.slane %v961_v2, 1  ;;  %v973_v32 = vshrl.u32 %v6609_v22, 16  ;;  %v6707_v22 = vld [vmem:[#allocation6 + $0x20] sm:$0xf] }
  0xe2   : > { %v2914_v30 = vrot.slane %v6704_v29, 2 }
  0xe3   : > { %v948_v28 = vsel %vm840_vm5, %v943_v5, %v947_v37  ;;  %v964_v3 = vsel %vm840_vm5, %v959_v62, %v963_v54  ;;  %v977_v5 = vshll.u32 %v6621_v31, 16  ;;  %v6721_v62 = vld [vmem:[%s6215_s1 + $0x40] sm:$0xff]  }
  0xe6   : > { %5041 = vmatmul.mubr.msk.bf16.gmra.mrb[16].mxu1 %vm436_vm2, %v924_v44  ;;  %5205 = vmatmul.mubr.msk.bf16.gmra.mrb[28].mxu0 %vm436_vm2, %v2498_v63  ;;  %v2502_v44 = vsel %vm2465_vm4, %v2499_v41, %v2501_v48  ;;  %v2908_v41 = vrot.slane %v6677_v47, 2  ;;  %v956_v63 = vsel %vm840_vm5, %v951_v58, %v955_v9  ;;  %v6697_v48 = vld [vmem:[%s6215_s1 + $0x30] sm:$0xff]  }
  0xe7   : > { %5044 = vmatprep.mubr.msk.bf16.mxu1 %vm436_vm2, %v932_v53  ;;  %5208 = vmatprep.mubr.msk.bf16.mxu0 %vm436_vm2, %v2500_v34  ;;  %v6682_v53 = vld [vmem:[%s6215_s1 + $0x28] sm:$0xff]   ;;  %v965_v34 = vshrl.u32 %v6598_v14, 16  ;;  %v2912_v15 = vrot.slane %v6697_v48, 2 }
  0xe8   : > { %v2910_v57 = vrot.slane %v6682_v53, 2  ;;  %v2909_v37 = vsel %vm2465_vm4, %v2906_v24, %v2908_v41 }
  0xe9   : > { %v967_v14 = vor.u32 %v965_v34, %v963_v54  ;;  %v2915_v54 = vsel %vm2465_vm4, %v2912_v15, %v2914_v30 }
  0xea   : > { %v2911_v25 = vsel %vm2465_vm4, %v2908_v41, %v2910_v57  ;;  %v2913_v58 = vsel %vm2465_vm4, %v2910_v57, %v2912_v15  ;;  %v6726_v41 = vld [vmem:[%s6215_s1 + $0x48] sm:$0xff]  }
  0xeb   : > { %v2918_v57 = vrot.slane %v6726_v41, 2 }
  0xee   : > { %5045 = vmatmul.mubr.msk.bf16.gmra.mrb[20].mxu1 %vm436_vm2, %v940_v26  ;;  %5209 = vmatmul.mubr.msk.bf16.gmra.mrb[32].mxu0 %vm436_vm2, %v2502_v44  ;;  %v971_v26 = vrot.slane %v969_v61, 1  ;;  %v981_v44 = vshrl.u32 %v6621_v31, 16 }
  0xef   : > { %5048 = vmatprep.mubr.msk.bf16.mxu1 %vm436_vm2, %v948_v28  ;;  %5214 = vmatprep.mubr.msk.bf16.mxu0 %vm436_vm2, %v2907_v50  ;;  %v979_v28 = vrot.slane %v977_v5, 1  ;;  %v985_v50 = vshll.u32 %v6629_v13, 16  ;;  %v2916_v13 = vrot.slane %v6721_v62, 2  ;;  %v6741_v5 = vld [vmem:[%s6215_s1 + $0x58] sm:$0xff]  }
  0xf0   : > { %v975_v24 = vor.u32 %v973_v32, %v971_v26  ;;  %v972_v2 = vsel %vm840_vm5, %v967_v14, %v971_v26  ;;  %v6753_v14 = vld [vmem:[%s6215_s1 + $0x60] sm:$0xff]  }
  0xf1   : > { %v983_v61 = vor.u32 %v981_v44, %v979_v28  ;;  %v987_v31 = vrot.slane %v985_v50, 1  ;;  %v2917_v34 = vsel %vm2465_vm4, %v2914_v30, %v2916_v13  ;;  %v2919_v32 = vsel %vm2465_vm4, %v2916_v13, %v2918_v57  ;;  %v6770_v30 = vld [vmem:[%s6215_s1 + $0x70] sm:$0xff]  }
  0xf2   : > { %v980_v9 = vsel %vm840_vm5, %v975_v24, %v979_v28  ;;  %v6759_v24 = vld [vmem:[%s6215_s1 + $0x68] sm:$0xff]   ;;  %v5844_v28 = vld [vmem:[#allocation6 + $0x10] sm:$0xf]  ;;  %v2928_v44 = vrot.slane %v6770_v30, 2 }
  0xf3   : > { %v6802_v13 = vld [vmem:[%s6215_s1 + $0x90] sm:$0xff]  }
  0xf6   : > { %5049 = vmatmul.mubr.msk.bf16.gmra.mrb[24].mxu1 %vm436_vm2, %v956_v63  ;;  %5215 = vmatmul.mubr.msk.bf16.vlgmr.msra.gmra.mrb[0].mxu0 %vm436_vm2, %v2909_v37  ;;  %v988_v63 = vsel %vm840_vm5, %v983_v61, %v987_v31 }
  0xf7   : > { %5052 = vmatprep.mubr.msk.bf16.mxu1 %vm436_vm2, %v964_v3  ;;  %5251 = vmatpush3.bf16.msra.mxu0 %v3444_v20  ;;  %v6736_v3 = vld [vmem:[%s6215_s1 + $0x50] sm:$0xff]   ;;  %v2922_v20 = vrot.slane %v6741_v5, 2 }
  0xf8   : > { %5218 = vmatprep.mubr.msk.bf16.mxu0 %vm436_vm2, %v2911_v25  ;;  %5661 = vmatprep.subr.msk.bf16.mxu0 %vm491_vm1, %v6707_v22  ;;  %v2920_v37 = vrot.slane %v6736_v3, 2  ;;  %v1797_v25 = vsel %vm491_vm1, %v6498_v7, 0  ;;  %v2924_v7 = vrot.slane %v6753_v14, 2 }
  0xfa   : > { %v2921_v26 = vsel %vm2465_vm4, %v2918_v57, %v2920_v37  ;;  %v2925_v15 = vsel %vm2465_vm4, %v2922_v20, %v2924_v7  ;;  %v2936_v57 = vrot.slane %v6802_v13, 2 }
  0xfe   : > { %5053 = vmatmul.mubr.msk.bf16.gmra.mrb[28].mxu1 %vm436_vm2, %v972_v2  ;;  %5219 = vmatmul.mubr.msk.bf16.gmra.mrb[4].mxu0 %vm436_vm2, %v2913_v58  ;;  %v6776_v2 = vld [vmem:[%s6215_s1 + $0x78] sm:$0xff]  }
  0xff   : > { %5056 = vmatprep.mubr.msk.bf16.mxu1 %vm436_vm2, %v980_v9  ;;  %5222 = vmatprep.mubr.msk.bf16.mxu0 %vm436_vm2, %v2915_v54  ;;  %v2930_v50 = vrot.slane %v6776_v2, 2 }
 0x101   : > { %v2931_v58 = vsel %vm2465_vm4, %v2928_v44, %v2930_v50 }
 0x106   : > { %5057 = vmatmul.mubr.msk.bf16.gmra.mrb[32].mxu1 %vm436_vm2, %v988_v63  ;;  %5223 = vmatmul.mubr.msk.bf16.gmra.mrb[8].mxu0 %vm436_vm2, %v2917_v34  ;;  %v3220_v34 = vshrl.u32 %v6655_v4, 16 }
 0x107   : > { %5062 = vmatprep.mubr.msk.bf16.mxu1 %vm436_vm2, %v6503_v12  ;;  %5226 = vmatprep.mubr.msk.bf16.mxu0 %vm436_vm2, %v2919_v32  ;;  %v2923_v12 = vsel %vm2465_vm4, %v2920_v37, %v2922_v20  ;;  %v3223_v32 = vshll.u32 %v6655_v4, 16  ;;  %v3228_v37 = vshrl.u32 %v6658_v35, 16 }
 0x10e   : > { %5063 = vmatmul.mubr.msk.bf16.vlgmr.msra.gmra.mrb[0].mxu1 %vm436_vm2, %v6506_v11  ;;  %5227 = vmatmul.mubr.msk.bf16.gmra.mrb[12].mxu0 %vm436_vm2, %v2921_v26  ;;  %v2926_v11 = vrot.slane %v6759_v24, 2  ;;  %v3222_v26 = vrot.slane %v3220_v34, 2 }
 0x10f   : > { %5066 = vmatprep.mubr.msk.bf16.mxu1 %vm436_vm2, %v6512_v17  ;;  %5099 = vmatpush3.bf16.msra.mxu1 %v1797_v25  ;;  %v5840_v25 = vld [vmem:[%s6215_s1 + $0xa0] ss:$0 sps:$4 sm:$0x33]  }
 0x110   : > { %5657 = vmatprep.subr.msk.bf16.mxu1 %vm491_vm1, %v5844_v28  ;;  %5230 = vmatprep.mubr.msk.bf16.mxu0 %vm436_vm2, %v2923_v12  ;;  %v2927_v17 = vsel %vm2465_vm4, %v2924_v7, %v2926_v11  ;;  %v2929_v9 = vsel %vm2465_vm4, %v2926_v11, %v2928_v44  ;;  %v3225_v12 = vrot.slane %v3223_v32, 3  ;;  %v3230_v28 = vrot.slane %v3228_v37, 2 }
 0x111   : > { %v2940_v4 = vrot.slane %v5840_v25, 2  ;;  %v3237_v11 = vshrl.u32 %v6677_v47, 16  ;;  %v3264_v32 = vshrl.u32 %v6704_v29, 16 }
 0x113   : > { %v3266_v25 = vrot.slane %v3264_v32, 2 }
 0x116   : > { %5067 = vmatmul.mubr.msk.bf16.gmra.mrb[4].mxu1 %vm436_vm2, %v6515_v18  ;;  %5231 = vmatmul.mubr.msk.bf16.gmra.mrb[16].mxu0 %vm436_vm2, %v2925_v15  ;;  %v6786_v18 = vld [vmem:[%s6215_s1 + $0x80] sm:$0xff]   ;;  %v3240_v15 = vshll.u32 %v6677_v47, 16 }
 0x117   : > { %5070 = vmatprep.mubr.msk.bf16.mxu1 %vm436_vm2, %v6525_v59  ;;  %5234 = vmatprep.mubr.msk.bf16.mxu0 %vm436_vm2, %v2927_v17  ;;  %v6792_v59 = vld [vmem:[%s6215_s1 + $0x88] sm:$0xff]   ;;  %v2932_v54 = vrot.slane %v6786_v18, 2  ;;  %v3226_v17 = vor.u32 %v3225_v12, %v3222_v26 }
 0x118   : > { %v2934_v61 = vrot.slane %v6792_v59, 2 }
 0x119   : > { %v2933_v31 = vsel %vm2465_vm4, %v2930_v50, %v2932_v54  ;;  %v3249_v50 = vshll.u32 %v6682_v53, 16 }
 0x11a   : > { %v2937_v20 = vsel %vm2465_vm4, %v2934_v61, %v2936_v57 }
 0x11e   : > { %5071 = vmatmul.mubr.msk.bf16.gmra.mrb[8].mxu1 %vm436_vm2, %v6530_v27  ;;  %5235 = vmatmul.mubr.msk.bf16.gmra.mrb[20].mxu0 %vm436_vm2, %v2929_v9  ;;  %v6805_v27 = vld [vmem:[%s6215_s1 + $0x98] sm:$0xff]  }
 0x11f   : > { %5074 = vmatprep.mubr.msk.bf16.mxu1 %vm436_vm2, %v6542_v36  ;;  %5238 = vmatprep.mubr.msk.bf16.mxu0 %vm436_vm2, %v2931_v58  ;;  %v2935_v36 = vsel %vm2465_vm4, %v2932_v54, %v2934_v61  ;;  %v2938_v63 = vrot.slane %v6805_v27, 2  ;;  %v3239_v58 = vrot.slane %v3237_v11, 2 }
 0x121   : > { %v2941_v9 = vsel %vm2465_vm4, %v2938_v63, %v2940_v4  ;;  %v3285_v4 = vshll.u32 %v6726_v41, 16 }
 0x126   : > { %5075 = vmatmul.mubr.msk.bf16.gmra.mrb[12].mxu1 %vm436_vm2, %v6545_v38  ;;  %5239 = vmatmul.mubr.msk.bf16.gmra.mrb[24].mxu0 %vm436_vm2, %v2933_v31  ;;  %v3231_v38 = vshll.u32 %v6658_v35, 16  ;;  %v3251_v31 = vrot.slane %v3249_v50, 3  ;;  %v1705_v50 = vrot.slane %v6283_v10, 1 }
 0x127   : > { %5078 = vmatprep.mubr.msk.bf16.mxu1 %vm436_vm2, %v6561_v8  ;;  %5242 = vmatprep.mubr.msk.bf16.mxu0 %vm436_vm2, %v2935_v36  ;;  %v2939_v8 = vsel %vm2465_vm4, %v2936_v57, %v2938_v63  ;;  %v3255_v57 = vshrl.u32 %v6697_v48, 16  ;;  %v3258_v63 = vshll.u32 %v6697_v48, 16 }
 0x128   : > { %v3233_v7 = vrot.slane %v3231_v38, 3 }
 0x129   : > { %v3257_v38 = vrot.slane %v3255_v57, 2 }
 0x12a   : > { %v3234_v44 = vor.u32 %v3233_v7, %v3230_v28  ;;  %v3273_v28 = vshrl.u32 %v6721_v62, 16 }
 0x12c   : > { %v3235_v54 = vsel %vm3218_vm7, %v3226_v17, %v3234_v44 }
 0x12e   : > { %5079 = vmatmul.mubr.msk.bf16.gmra.mrb[16].mxu1 %vm436_vm2, %v6564_v51  ;;  %5243 = vmatmul.mubr.msk.bf16.gmra.mrb[28].mxu0 %vm436_vm2, %v2937_v20  ;;  %v3246_v51 = vshrl.u32 %v6682_v53, 16  ;;  %v3260_v20 = vrot.slane %v3258_v63, 3 }
 0x12f   : > { %5082 = vmatprep.mubr.msk.bf16.mxu1 %vm436_vm2, %v6571_v55  ;;  %5246 = vmatprep.mubr.msk.bf16.mxu0 %vm436_vm2, %v2939_v8  ;;  %v3242_v55 = vrot.slane %v3240_v15, 3  ;;  %v3275_v15 = vrot.slane %v3273_v28, 2  ;;  %v3321_v28 = vshll.u32 %v6759_v24, 16 }
 0x130   : > { %v3248_v61 = vrot.slane %v3246_v51, 2  ;;  %v3261_v12 = vor.u32 %v3260_v20, %v3257_v38  ;;  %v3287_v51 = vrot.slane %v3285_v4, 3  ;;  %v5847_v20 = vld [vmem:[%s6215_s1 + $0x20] sm:$0xff]  }
 0x131   : > { %v3243_v36 = vor.u32 %v3242_v55, %v3239_v58 }
 0x132   : > { %v3252_v34 = vor.u32 %v3251_v31, %v3248_v61  ;;  %v3300_v31 = vshrl.u32 %v6741_v5, 16 }
 0x133   : > { %v3244_v37 = vsel %vm3218_vm7, %v3234_v44, %v3243_v36 }
 0x134   : > { %v3253_v8 = vsel %vm3218_vm7, %v3243_v36, %v3252_v34  ;;  %v3262_v11 = vsel %vm3218_vm7, %v3252_v34, %v3261_v12  ;;  %v3302_v32 = vrot.slane %v3300_v31, 2  ;;  %v3339_v31 = vshll.u32 %v6776_v2, 16 }
 0x136   : > { %5083 = vmatmul.mubr.msk.bf16.gmra.mrb[20].mxu1 %vm436_vm2, %v6574_v56  ;;  %5247 = vmatmul.mubr.msk.bf16.gmra.mrb[32].mxu0 %vm436_vm2, %v2941_v9  ;;  %v3267_v56 = vshll.u32 %v6704_v29, 16  ;;  %v5845_v9 = vld [vmem:[%s6215_s1 + $0x10] sm:$0xff]  }
 0x137   : > { %5086 = vmatprep.mubr.msk.bf16.mxu1 %vm436_vm2, %v6601_v19  ;;  %5252 = vmatprep.mubr.msk.bf16.mxu0 %vm436_vm2, %v3235_v54  ;;  %v3758_v19 = vsel %vm491_vm1, %v6707_v22, 0  ;;  %v3276_v22 = vshll.u32 %v6721_v62, 16  ;;  %v1706_v58 = vrot.slane %v5845_v9, 1  ;;  %v3291_v54 = vshrl.u32 %v6736_v3, 16 }
 0x138   : > { %v3269_v26 = vrot.slane %v3267_v56, 3 }
 0x139   : > { %v1707_v36 = vsel %vm1265_vm6, %v1705_v50, %v1706_v58  ;;  %v3293_v57 = vrot.slane %v3291_v54, 2  ;;  %v5849_v50 = vld [vmem:[%s6215_s1 + $0x30] sm:$0xff]   ;;  %v3330_v54 = vshll.u32 %v6770_v30, 16 }
 0x13a   : > { %v3270_v7 = vor.u32 %v3269_v26, %v3266_v25  ;;  %v3309_v25 = vshrl.u32 %v6753_v14, 16  ;;  %v1714_v9 = vrot.slane %v5849_v50, 1 }
 0x13c   : > { %v3271_v17 = vsel %vm3218_vm7, %v3261_v12, %v3270_v7  ;;  %v3318_v12 = vshrl.u32 %v6759_v24, 16  ;;  %v3311_v4 = vrot.slane %v3309_v25, 2  ;;  %v3348_v25 = vshll.u32 %v6786_v18, 16 }
 0x13e   : > { %5087 = vmatmul.mubr.msk.bf16.gmra.mrb[24].mxu1 %vm436_vm2, %v6612_v60  ;;  %5253 = vmatmul.mubr.msk.bf16.vlgmr.msra.gmra.mrb[0].mxu0 %vm436_vm2, %v3244_v37  ;;  %v3282_v60 = vshrl.u32 %v6726_v41, 16  ;;  %v5846_v37 = vld [vmem:[%s6215_s1 + $0x18] sm:$0xff]  }
 0x13f   : > { %5090 = vmatprep.mubr.msk.bf16.mxu1 %vm436_vm2, %v6624_v33  ;;  %5289 = vmatpush3.bf16.msra.mxu0 %v3758_v19  ;;  %v3278_v33 = vrot.slane %v3276_v22, 3  ;;  %v1708_v38 = vrot.slane %v5846_v37, 1  ;;  %v1710_v19 = vrot.slane %v5847_v20, 1 }
 0x140   : > { %5256 = vmatprep.mubr.msk.bf16.mxu0 %vm436_vm2, %v3253_v8  ;;  %v3284_v44 = vrot.slane %v3282_v60, 2 }
 0x141   : > { %v3279_v55 = vor.u32 %v3278_v33, %v3275_v15  ;;  %v1709_v22 = vsel %vm1265_vm6, %v1706_v58, %v1708_v38  ;;  %v3320_v33 = vrot.slane %v3318_v12, 2  ;;  %v3357_v12 = vshll.u32 %v6792_v59, 16 }
 0x142   : > { %v3288_v61 = vor.u32 %v3287_v51, %v3284_v44  ;;  %v5848_v44 = vld [vmem:[%s6215_s1 + $0x28] sm:$0xff]  }
 0x143   : > { %v3280_v10 = vsel %vm3218_vm7, %v3270_v7, %v3279_v55  ;;  %v1711_v7 = vsel %vm1265_vm6, %v1708_v38, %v1710_v19  ;;  %v1712_v51 = vrot.slane %v5848_v44, 1  ;;  %v5851_v38 = vld [vmem:[%s6215_s1 + $0x40] sm:$0xff]  }
 0x144   : > { %v3289_v34 = vsel %vm3218_vm7, %v3279_v55, %v3288_v61  ;;  %v3327_v55 = vshrl.u32 %v6770_v30, 16  ;;  %v1718_v20 = vrot.slane %v5851_v38, 1  ;;  %v1726_v38 = vrot.slane %v6462_v39, 1 }
 0x146   : > { %5091 = vmatmul.mubr.msk.bf16.gmra.mrb[28].mxu1 %vm436_vm2, %v6632_v43  ;;  %5257 = vmatmul.mubr.msk.bf16.gmra.mrb[4].mxu0 %vm436_vm2, %v3262_v11  ;;  %v3294_v43 = vshll.u32 %v6736_v3, 16 }
 0x147   : > { %5094 = vmatprep.mubr.msk.bf16.mxu1 %vm436_vm2, %v6650_v1  ;;  %5260 = vmatprep.mubr.msk.bf16.mxu0 %vm436_vm2, %v3271_v17  ;;  %v3303_v1 = vshll.u32 %v6741_v5, 16  ;;  %v3323_v17 = vrot.slane %v3321_v28, 3 }
 0x148   : > { %v3296_v63 = vrot.slane %v3294_v43, 3 }
 0x149   : > { %v3305_v56 = vrot.slane %v3303_v1, 3  ;;  %v3324_v43 = vor.u32 %v3323_v17, %v3320_v33  ;;  %v1715_v1 = vsel %vm1265_vm6, %v1712_v51, %v1714_v9  ;;  %v3359_v33 = vrot.slane %v3357_v12, 3  ;;  %v5852_v17 = vld [vmem:[%s6215_s1 + $0x48] sm:$0xff]  }
 0x14a   : > { %v3297_v8 = vor.u32 %v3296_v63, %v3293_v57  ;;  %v3332_v57 = vrot.slane %v3330_v54, 3  ;;  %v1720_v44 = vrot.slane %v5852_v17, 1  ;;  %v3667_v17 = vrot.slane %v6658_v35, 3 }
 0x14b   : > { %v3306_v26 = vor.u32 %v3305_v56, %v3302_v32  ;;  %v3341_v32 = vrot.slane %v3339_v31, 3  ;;  %v5850_v56 = vld [vmem:[%s6215_s1 + $0x38] sm:$0xff]   ;;  %v1734_v35 = vrot.slane %v6558_v49, 1 }
 0x14c   : > { %v3298_v60 = vsel %vm3218_vm7, %v3288_v61, %v3297_v8  ;;  %v3336_v61 = vshrl.u32 %v6776_v2, 16  ;;  %v1716_v37 = vrot.slane %v5850_v56, 1  ;;  %v1721_v31 = vsel %vm1265_vm6, %v1718_v20, %v1720_v44  ;;  %v5854_v56 = vld [vmem:[%s6215_s1 + $0x58] sm:$0xff]  }
 0x14d   : > { %v3307_v15 = vsel %vm3218_vm7, %v3297_v8, %v3306_v26  ;;  %v3345_v8 = vshrl.u32 %v6786_v18, 16 }
 0x14e   : > { %5095 = vmatmul.mubr.msk.bf16.gmra.mrb[32].mxu1 %vm436_vm2, %v6661_v52  ;;  %5261 = vmatmul.mubr.msk.bf16.gmra.mrb[8].mxu0 %vm436_vm2, %v3280_v10  ;;  %v3312_v52 = vshll.u32 %v6753_v14, 16  ;;  %v3329_v10 = vrot.slane %v3327_v55, 2  ;;  %v1717_v28 = vsel %vm1265_vm6, %v1714_v9, %v1716_v37  ;;  %v3366_v55 = vshll.u32 %v6802_v13, 16 }
 0x14f   : > { %5100 = vmatprep.mubr.msk.bf16.mxu1 %vm436_vm2, %v1707_v36  ;;  %5264 = vmatprep.mubr.msk.bf16.mxu0 %vm436_vm2, %v3289_v34  ;;  %v3338_v34 = vrot.slane %v3336_v61, 2  ;;  %v3375_v61 = vshll.u32 %v6805_v27, 16 }
 0x150   : > { %v3314_v11 = vrot.slane %v3312_v52, 3 }
 0x151   : > { %v3342_v52 = vor.u32 %v3341_v32, %v3338_v34  ;;  %v3377_v32 = vrot.slane %v3375_v61, 3 }
 0x152   : > { %v3315_v58 = vor.u32 %v3314_v11, %v3311_v4  ;;  %v3350_v4 = vrot.slane %v3348_v25, 3 }
 0x154   : > { %v3316_v36 = vsel %vm3218_vm7, %v3306_v26, %v3315_v58  ;;  %v3325_v63 = vsel %vm3218_vm7, %v3315_v58, %v3324_v43  ;;  %v3354_v26 = vshrl.u32 %v6792_v59, 16  ;;  %v3363_v58 = vshrl.u32 %v6802_v13, 16 }
 0x156   : > { %5101 = vmatmul.mubr.msk.bf16.vlgmr.msra.gmra.mrb[0].mxu1 %vm436_vm2, %v1709_v22  ;;  %5265 = vmatmul.mubr.msk.bf16.gmra.mrb[12].mxu0 %vm436_vm2, %v3298_v60  ;;  %v1719_v22 = vsel %vm1265_vm6, %v1716_v37, %v1718_v20  ;;  %v3347_v60 = vrot.slane %v3345_v8, 2  ;;  %v1724_v37 = vrot.slane %v5854_v56, 1 }
 0x157   : > { %5104 = vmatprep.mubr.msk.bf16.mxu1 %vm436_vm2, %v1711_v7  ;;  %5327 = vmatpush3.bf16.msra.mxu1 %v6272_v6  ;;  %v1713_v6 = vsel %vm1265_vm6, %v1710_v19, %v1712_v51  ;;  %v3333_v19 = vor.u32 %v3332_v57, %v3329_v10  ;;  %v5853_v51 = vld [vmem:[%s6215_s1 + $0x50] sm:$0xff]   ;;  %v3368_v10 = vrot.slane %v3366_v55, 3  ;;  %v6934_v57 = vld [vmem:[%s6215_s1 + $0xa0] ss:$0 sps:$4 sm:$0x77]  }
 0x158   : > { %5268 = vmatprep.mubr.msk.bf16.mxu0 %vm436_vm2, %v3307_v15  ;;  %v3356_v15 = vrot.slane %v3354_v26, 2  ;;  %v1722_v50 = vrot.slane %v5853_v51, 1  ;;  %v3351_v9 = vor.u32 %v3350_v4, %v3347_v60  ;;  %v3384_v8 = vshll.u32 %v6934_v57, 16  ;;  %v3659_v26 = vld [vmem:[%s6215_s1 + $0x10] sm:$0x8] }
 0x159   : > { %v3334_v7 = vsel %vm3218_vm7, %v3324_v43, %v3333_v19  ;;  %v3343_v11 = vsel %vm3218_vm7, %v3333_v19, %v3342_v52  ;;  %v3372_v43 = vshrl.u32 %v6805_v27, 16  ;;  %v3381_v19 = vshrl.u32 %v6934_v57, 16 }
 0x15a   : > { %v3360_v54 = vor.u32 %v3359_v33, %v3356_v15  ;;  %v1727_v12 = vsel %vm1265_vm6, %v1724_v37, %v1726_v38  ;;  %v4683_v60 = vcombine.low %v3659_v26, %v6638_v23  ;;  %v1728_v4 = vrot.slane %v6465_v40, 1 }
 0x15b   : > { %v3374_v34 = vrot.slane %v3372_v43, 2  ;;  %v2139_v26 = vshll.u32 %v6487_v16, 16 }
 0x15c   : > { %v3666_v33 = vrot.slane %v4683_v60, 3 }
 0x15d   : > { %v3378_v25 = vor.u32 %v3377_v32, %v3374_v34  ;;  %v5843_v34 = vld [vmem:[%s6215_s1 + $0x98] ss:$0 sps:$4 sm:$0x11]  }
 0x15e   : > { %5105 = vmatmul.mubr.msk.bf16.gmra.mrb[4].mxu1 %vm436_vm2, %v1713_v6  ;;  %5269 = vmatmul.mubr.msk.bf16.gmra.mrb[16].mxu0 %vm436_vm2, %v3316_v36  ;;  %v1723_v6 = vsel %vm1265_vm6, %v1720_v44, %v1722_v50  ;;  %v3365_v36 = vrot.slane %v3363_v58, 2  ;;  %v1729_v44 = vsel %vm1265_vm6, %v1726_v38, %v1728_v4  ;;  %v3668_v40 = vsel %vm3665_vm8, %v3666_v33, %v3667_v17 }
 0x15f   : > { %5108 = vmatprep.mubr.msk.bf16.mxu1 %vm436_vm2, %v1715_v1  ;;  %5272 = vmatprep.mubr.msk.bf16.mxu0 %vm436_vm2, %v3325_v63  ;;  %v3352_v1 = vsel %vm3218_vm7, %v3342_v52, %v3351_v9  ;;  %v3361_v63 = vsel %vm3218_vm7, %v3351_v9, %v3360_v54  ;;  %v1725_v52 = vsel %vm1265_vm6, %v1722_v50, %v1724_v37  ;;  %v1732_v50 = vrot.slane %v6554_v46, 1 }
 0x160   : > { %v3369_v20 = vor.u32 %v3368_v10, %v3365_v36  ;;  %v3669_v9 = vrot.slane %v6677_v47, 3  ;;  %v3671_v58 = vrot.slane %v6682_v53, 3  ;;  %v1738_v47 = vrot.slane %v6606_v21, 1  ;;  %v5855_v53 = vld [vmem:[%s6215_s1 + $0x60] sm:$0xff]  }
 0x161   : > { %v3673_v36 = vrot.slane %v6697_v48, 3  ;;  %v3675_v10 = vrot.slane %v6704_v29, 3  ;;  %v2148_v33 = vshll.u32 %v6554_v46, 16 }
 0x162   : > { %v3379_v39 = vsel %vm3218_vm7, %v3369_v20, %v3378_v25  ;;  %v3670_v43 = vsel %vm3665_vm8, %v3667_v17, %v3669_v9  ;;  %v3672_v61 = vsel %vm3665_vm8, %v3669_v9, %v3671_v58 }
 0x163   : > { %v3674_v38 = vsel %vm3665_vm8, %v3671_v58, %v3673_v36 }
 0x166   : > { %5109 = vmatmul.mubr.msk.bf16.gmra.mrb[8].mxu1 %vm436_vm2, %v1717_v28  ;;  %5273 = vmatmul.mubr.msk.bf16.gmra.mrb[20].mxu0 %vm436_vm2, %v3334_v7  ;;  %v3370_v28 = vsel %vm3218_vm7, %v3360_v54, %v3369_v20  ;;  %v3386_v7 = vrot.slane %v3384_v8, 3  ;;  %v1735_v54 = vsel %vm1265_vm6, %v1732_v50, %v1734_v35  ;;  %v3676_v20 = vsel %vm3665_vm8, %v3673_v36, %v3675_v10  ;;  %v5856_v8 = vld [vmem:[%s6215_s1 + $0x68] sm:$0xff]  }
 0x167   : > { %5112 = vmatprep.mubr.msk.bf16.mxu1 %vm436_vm2, %v1719_v22  ;;  %5276 = vmatprep.mubr.msk.bf16.mxu0 %vm436_vm2, %v3343_v11  ;;  %v3383_v22 = vrot.slane %v3381_v19, 2  ;;  %v1730_v11 = vrot.slane %v6487_v16, 1  ;;  %v1740_v19 = vrot.slane %v5843_v34, 1  ;;  %v2127_v48 = vshrl.u32 %v5856_v8, 16 }
 0x169   : > { %v3387_v15 = vor.u32 %v3386_v7, %v3383_v22  ;;  %v1731_v51 = vsel %vm1265_vm6, %v1728_v4, %v1730_v11  ;;  %v1733_v55 = vsel %vm1265_vm6, %v1730_v11, %v1732_v50  ;;  %v1741_v22 = vsel %vm1265_vm6, %v1738_v47, %v1740_v19 }
 0x16a   : > { %v2129_v7 = vrot.slane %v2127_v48, 1  ;;  %v2141_v11 = vrot.slane %v2139_v26, 2 }
 0x16b   : > { %v3388_v23 = vsel %vm3218_vm7, %v3378_v25, %v3387_v15  ;;  %v2130_v25 = vshll.u32 %v5856_v8, 16 }
 0x16e   : > { %5113 = vmatmul.mubr.msk.bf16.gmra.mrb[12].mxu1 %vm436_vm2, %v1721_v31  ;;  %5277 = vmatmul.mubr.msk.bf16.gmra.mrb[24].mxu0 %vm436_vm2, %v3352_v1  ;;  %v1736_v31 = vrot.slane %v6595_v45, 1  ;;  %v2121_v1 = vshll.u32 %v5855_v53, 16 }
 0x16f   : > { %5116 = vmatprep.mubr.msk.bf16.mxu1 %vm436_vm2, %v1723_v6  ;;  %5280 = vmatprep.mubr.msk.bf16.mxu0 %vm436_vm2, %v3361_v63  ;;  %v2118_v6 = vshrl.u32 %v5855_v53, 16  ;;  %v3687_v53 = vrot.slane %v6759_v24, 3  ;;  %v2184_v24 = vshll.u32 %v6647_v0, 16 }
 0x170   : > { %v1737_v63 = vsel %vm1265_vm6, %v1734_v35, %v1736_v31  ;;  %v1739_v32 = vsel %vm1265_vm6, %v1736_v31, %v1738_v47  ;;  %v2123_v37 = vrot.slane %v2121_v1, 2  ;;  %v2150_v35 = vrot.slane %v2148_v33, 2 }
 0x171   : > { %v2120_v56 = vrot.slane %v2118_v6, 1  ;;  %v2175_v31 = vshll.u32 %v6606_v21, 16  ;;  %v3685_v47 = vrot.slane %v6753_v14, 3  ;;  %v2181_v14 = vshrl.u32 %v6647_v0, 16 }
 0x172   : > { %v2186_v8 = vrot.slane %v2184_v24, 2 }
 0x173   : > { %v2124_v29 = vor.u32 %v2123_v37, %v2120_v56  ;;  %v3689_v37 = vrot.slane %v6770_v30, 3  ;;  %v2183_v19 = vrot.slane %v2181_v14, 1  ;;  %v3693_v30 = vrot.slane %v6786_v18, 3 }
 0x175   : > { %v2125_v60 = vsel %vm2018_vm3, %v6378_v42, %v2124_v29  ;;  %v2154_v42 = vshrl.u32 %v6558_v49, 16 }
 0x176   : > { %5117 = vmatmul.mubr.msk.bf16.gmra.mrb[16].mxu1 %vm436_vm2, %v1725_v52  ;;  %5281 = vmatmul.mubr.msk.bf16.gmra.mrb[28].mxu0 %vm436_vm2, %v3370_v28  ;;  %v2136_v52 = vshrl.u32 %v6487_v16, 16  ;;  %v3679_v28 = vrot.slane %v6726_v41, 3  ;;  %v2145_v41 = vshrl.u32 %v6554_v46, 16 }
 0x177   : > { %5120 = vmatprep.mubr.msk.bf16.mxu1 %vm436_vm2, %v1727_v12  ;;  %5284 = vmatprep.mubr.msk.bf16.mxu0 %vm436_vm2, %v3379_v39  ;;  %v3677_v12 = vrot.slane %v6721_v62, 3  ;;  %v2132_v39 = vrot.slane %v2130_v25, 2  ;;  %v2156_v46 = vrot.slane %v2154_v42, 1  ;;  %v3690_v25 = vsel %vm3665_vm8, %v3687_v53, %v3689_v37 }
 0x178   : > { %v2138_v4 = vrot.slane %v2136_v52, 1  ;;  %v2147_v50 = vrot.slane %v2145_v41, 1 }
 0x179   : > { %v3678_v15 = vsel %vm3665_vm8, %v3675_v10, %v3677_v12  ;;  %v3680_v16 = vsel %vm3665_vm8, %v3677_v12, %v3679_v28  ;;  %v2133_v62 = vor.u32 %v2132_v39, %v2129_v7  ;;  %v3701_v7 = vrot.slane %v6934_v57, 3 }
 0x17a   : > { %v2142_v17 = vor.u32 %v2141_v11, %v2138_v4 }
 0x17c   : > { %v2143_v9 = vsel %vm2018_vm3, %v2133_v62, %v2142_v17 }
 0x17e   : > { %5121 = vmatmul.mubr.msk.bf16.gmra.mrb[20].mxu1 %vm436_vm2, %v1729_v44  ;;  %5285 = vmatmul.mubr.msk.bf16.gmra.mrb[32].mxu0 %vm436_vm2, %v3388_v23  ;;  %v2157_v44 = vshll.u32 %v6558_v49, 16  ;;  %v3683_v23 = vrot.slane %v6741_v5, 3  ;;  %v2166_v5 = vshll.u32 %v6595_v45, 16 }
 0x17f   : > { %5124 = vmatprep.mubr.msk.bf16.mxu1 %vm436_vm2, %v1731_v51  ;;  %5290 = vmatprep.mubr.msk.bf16.mxu0 %vm436_vm2, %v3668_v40  ;;  %v3681_v51 = vrot.slane %v6736_v3, 3  ;;  %v2134_v40 = vsel %vm2018_vm3, %v2124_v29, %v2133_v62  ;;  %v2163_v3 = vshrl.u32 %v6595_v45, 16  ;;  %v2187_v29 = vor.u32 %v2186_v8, %v2183_v19 }
 0x180   : > { %v2159_v58 = vrot.slane %v2157_v44, 2  ;;  %v2168_v36 = vrot.slane %v2166_v5, 2  ;;  %v3686_v34 = vsel %vm3665_vm8, %v3683_v23, %v3685_v47  ;;  %v6024_v19 = vmov 0.0  }
 0x181   : > { %v3684_v49 = vsel %vm3665_vm8, %v3681_v51, %v3683_v23  ;;  %v2165_v1 = vrot.slane %v2163_v3, 1 }
 0x186   : > { %5125 = vmatmul.mubr.msk.bf16.gmra.mrb[24].mxu1 %vm436_vm2, %v1733_v55  ;;  %5291 = vmatmul.mubr.msk.bf16.vlgmr.msra.gmra.mrb[0].mxu0 %vm436_vm2, %v3670_v43  ;;  %v3682_v55 = vsel %vm3665_vm8, %v3679_v28, %v3681_v51  ;;  %v2160_v43 = vor.u32 %v2159_v58, %v2156_v46  ;;  %v3697_v28 = vrot.slane %v6802_v13, 3  ;;  %v239_v46 = vld [vmem:[#allocation2 + $0x10] sm:$0xff]  ;;  %v237_v58 = vld [vmem:[#allocation2] sm:$0xff] }
 0x187   : > { %5128 = vmatprep.mubr.msk.bf16.mxu1 %vm436_vm2, %v1735_v54  ;;  %5294 = vmatprep.mubr.msk.bf16.mxu0 %vm436_vm2, %v3672_v61  ;;  %v2151_v54 = vor.u32 %v2150_v35, %v2147_v50  ;;  %v2172_v61 = vshrl.u32 %v6606_v21, 16  ;;  %v3688_v21 = vsel %vm3665_vm8, %v3685_v47, %v3687_v53  ;;  %v273_v3 = vmul.f32 0.95, %v237_v58  ;;  %v241_v47 = vld [vmem:[#allocation2 + $0x20] sm:$0xff]  ;;  %v244_v53 = vld [vmem:[#allocation2 + $0x38] sm:$0xff] }
 0x188   : > { %v280_v14 = vmul.f32 0.95, %v244_v53 }
 0x189   : > { %v2152_v6 = vsel %vm2018_vm3, %v2142_v17, %v2151_v54  ;;  %v2161_v10 = vsel %vm2018_vm3, %v2151_v54, %v2160_v43  ;;  %v2174_v45 = vrot.slane %v2172_v61, 1  ;;  %v238_v54 = vld [vmem:[#allocation2 + $0x8] sm:$0xff]  ;;  %v243_v61 = vld [vmem:[#allocation2 + $0x30] sm:$0xff] }
 0x18e   : > { %5129 = vmatmul.mubr.msk.bf16.gmra.mrb[28].mxu1 %vm436_vm2, %v1737_v63  ;;  %5295 = vmatmul.mubr.msk.bf16.gmra.mrb[4].mxu0 %vm436_vm2, %v3674_v38  ;;  %v2177_v63 = vrot.slane %v2175_v31, 2  ;;  %v3691_v38 = vrot.slane %v6776_v2, 3  ;;  %v3695_v2 = vrot.slane %v6792_v59, 3 }
 0x18f   : > { %5132 = vmatprep.mubr.msk.bf16.mxu1 %vm436_vm2, %v1739_v32  ;;  %5298 = vmatprep.mubr.msk.bf16.mxu0 %vm436_vm2, %v3676_v20  ;;  %v2169_v32 = vor.u32 %v2168_v36, %v2165_v1  ;;  %v242_v1 = vld [vmem:[#allocation2 + $0x28] sm:$0xff] }
 0x190   : > { %v2178_v56 = vor.u32 %v2177_v63, %v2174_v45  ;;  %v3692_v0 = vsel %vm3665_vm8, %v3689_v37, %v3691_v38  ;;  %v3694_v26 = vsel %vm3665_vm8, %v3691_v38, %v3693_v30  ;;  %v3696_v12 = vsel %vm3665_vm8, %v3693_v30, %v3695_v2 }
 0x191   : > { %v2170_v20 = vsel %vm2018_vm3, %v2160_v43, %v2169_v32  ;;  %v3698_v18 = vsel %vm3665_vm8, %v3695_v2, %v3697_v28  ;;  %v274_v43 = vmul.f32 0.95, %v238_v54  ;;  %v279_v45 = vmul.f32 0.95, %v243_v61 }
 0x192   : > { %v2179_v48 = vsel %vm2018_vm3, %v2169_v32, %v2178_v56  ;;  %v2188_v52 = vsel %vm2018_vm3, %v2178_v56, %v2187_v29  ;;  %v277_v32 = vmul.f32 0.95, %v241_v47  ;;  %v278_v37 = vmul.f32 0.95, %v242_v1 }
 0x196   : > { %5133 = vmatmul.mubr.msk.bf16.gmra.mrb[32].mxu1 %vm436_vm2, %v1741_v22  ;;  %5299 = vmatmul.mubr.msk.bf16.gmra.mrb[8].mxu0 %vm436_vm2, %v3678_v15  ;;  %v3699_v22 = vrot.slane %v6805_v27, 3 }
 0x197   : > { %5158 = vmatprep.mubr.msk.bf16.mxu1 %vm436_vm2, %v2125_v60  ;;  %5302 = vmatprep.mubr.msk.bf16.mxu0 %vm436_vm2, %v3680_v16 }
 0x198   : > { %v3700_v59 = vsel %vm3665_vm8, %v3697_v28, %v3699_v22  ;;  %v3702_v39 = vsel %vm3665_vm8, %v3699_v22, %v3701_v7  ;;  %v245_v7 = vld [vmem:[#allocation2 + $0x40] sm:$0xff] }
 0x19e   : > { %5159 = vmatmul.mubr.msk.bf16.vlgmr.msra.gmra.mrb[20].mxu1 %vm436_vm2, %v2134_v40  ;;  %5303 = vmatmul.mubr.msk.bf16.gmra.mrb[12].mxu0 %vm436_vm2, %v3682_v55  ;;  %v240_v55 = vld [vmem:[#allocation2 + $0x18] sm:$0xff] }
 0x19f   : > { %5162 = vmatprep.mubr.msk.bf16.mxu1 %vm436_vm2, %v2143_v9  ;;  %5306 = vmatprep.mubr.msk.bf16.mxu0 %vm436_vm2, %v3684_v49  ;;  %v275_v49 = vmul.f32 0.95, %v239_v46  ;;  %v276_v5 = vmul.f32 0.95, %v240_v55 }
 0x1a6   : > { %5163 = vmatmul.mubr.msk.bf16.gmra.mrb[24].mxu1 %vm436_vm2, %v2152_v6  ;;  %5307 = vmatmul.mubr.msk.bf16.gmra.mrb[16].mxu0 %vm436_vm2, %v3686_v34 }
 0x1a7   : > { %5166 = vmatprep.mubr.msk.bf16.mxu1 %vm436_vm2, %v2161_v10  ;;  %5310 = vmatprep.mubr.msk.bf16.mxu0 %vm436_vm2, %v3688_v21 }
 0x1ae   : > { %5167 = vmatmul.mubr.msk.bf16.gmra.mrb[28].mxu1 %vm436_vm2, %v2170_v20  ;;  %5311 = vmatmul.mubr.msk.bf16.gmra.mrb[20].mxu0 %vm436_vm2, %v3690_v25 }
 0x1af   : > { %5170 = vmatprep.mubr.msk.bf16.mxu1 %vm436_vm2, %v2179_v48  ;;  %5314 = vmatprep.mubr.msk.bf16.mxu0 %vm436_vm2, %v3692_v0 }
 0x1b6   : > { %5171 = vmatmul.mubr.msk.bf16.gmra.mrb[32].mxu1 %vm436_vm2, %v2188_v52  ;;  %5315 = vmatmul.mubr.msk.bf16.gmra.mrb[24].mxu0 %vm436_vm2, %v3694_v26 }
 0x1b7   : > { %5318 = vmatprep.mubr.msk.bf16.mxu0 %vm436_vm2, %v3696_v12  ;;  %v247_v12 = vld [vmem:[#allocation2 + $0x50] sm:$0xff] }
 0x1b8   : > { %v283_v55 = vmul.f32 0.95, %v247_v12 }
 0x1be   : > { %5319 = vmatmul.mubr.msk.bf16.gmra.mrb[28].mxu0 %vm436_vm2, %v3698_v18 }
 0x1bf   : > { %5322 = vmatprep.mubr.msk.bf16.mxu0 %vm436_vm2, %v3700_v59 }
 0x1c6   : > { %5323 = vmatmul.mubr.msk.bf16.gmra.mrb[32].mxu0 %vm436_vm2, %v3702_v39  ;;  %v248_v39 = vld [vmem:[#allocation2 + $0x58] sm:$0xff] }
 0x229   : > { %v5102_v60 = vpop.f32.mrb[0].mxu1 }
 0x22a   : > { %v1833_v4 = vpop.f32.mrb[1].mxu1  ;;  %v5328_v31 = vadd.f32 %v5102_v60, %v275_v49 }
 0x22b   : > { %v5103_v11 = vpop.f32.mrb[2].mxu1  ;;  %v5330_v6 = vadd.f32 %v1833_v4, %v273_v3  ;;  %v281_v3 = vmul.f32 0.95, %v245_v7 }
 0x22c   : > { %v1836_v13 = vpop.f32.mrb[3].mxu1  ;;  %v5332_v10 = vadd.f32 %v5103_v11, %v276_v5  ;;  %v284_v5 = vmul.f32 0.95, %v248_v39 }
 0x22d   : > { %v5334_v21 = vadd.f32 %v1836_v13, %v274_v43 }
 0x231   : > { %v5106_v15 = vpop.f32.mrb[4].mxu1 }
 0x232   : > { %v7063_v27 = vpop.f32.mrb[5].mxu1  ;;  %v5336_v26 = vadd.f32 %v5106_v15, %v279_v45  ;;  %v246_v15 = vld [vmem:[#allocation2 + $0x48] sm:$0xff] }
 0x233   : > { %v7065_v16 = vpop.f32.mrb[6].mxu1  ;;  %v5338_v59 = vadd.f32 %v7063_v27, %v277_v32  ;;  %v282_v61 = vmul.f32 0.95, %v246_v15 }
 0x234   : > { %v7067_v62 = vpop.f32.mrb[7].mxu1  ;;  %v5340_v13 = vadd.f32 %v7065_v16, %v280_v14 }
 0x235   : > { %v5342_v27 = vadd.f32 %v7067_v62, %v278_v37 }
 0x239   : > { %v7069_v41 = vpop.f32.mrb[8].mxu1 }
 0x23a   : > { %v7071_v33 = vpop.f32.mrb[9].mxu1  ;;  %v5344_v45 = vadd.f32 %v7069_v41, %v283_v55 }
 0x23b   : > { %v7073_v57 = vpop.f32.mrb[10].mxu1  ;;  %v5346_v14 = vadd.f32 %v7071_v33, %v281_v3 }
 0x23c   : > { %v7075_v17 = vpop.f32.mrb[11].mxu1 }
 0x23d   : > { %v5350_v33 = vadd.f32 %v7075_v17, %v282_v61  ;;  %v254_v61 = vld [vmem:[#allocation2 + $0x88] sm:$0xff] }
 0x241   : > { %v7077_v42 = vpop.f32.mrb[12].mxu1 }
 0x242   : > { %v7079_v44 = vpop.f32.mrb[13].mxu1 }
 0x243   : > { %v7081_v51 = vpop.f32.mrb[14].mxu1 }
 0x244   : > { %v7083_v23 = vpop.f32.mrb[15].mxu1 }
 0x249   : > { %v7085_v40 = vpop.f32.mrb[16].mxu1 }
 0x24a   : > { %v7087_v50 = vpop.f32.mrb[17].mxu1 }
 0x24b   : > { %v7089_v35 = vpop.f32.mrb[18].mxu1 }
 0x24c   : > { %v7091_v9 = vpop.f32.mrb[19].mxu1 }
 0x259   : > { %v5292_v36 = vpop.f32.mrb[0].mxu0 }
 0x25a   : > { %v5329_v63 = vadd.f32 %v5328_v31, %v5292_v36  ;;  %v3794_v34 = vpop.f32.mrb[1].mxu0 }
 0x25b   : > { %v5331_v24 = vadd.f32 %v5330_v6, %v3794_v34  ;;  %v5293_v56 = vpop.f32.mrb[2].mxu0 }
 0x25c   : > { %vm3975_vm9 = vcmp.gt.f32.partialorder %v5329_v63, 1.0  ;;  %v5333_v38 = vadd.f32 %v5332_v10, %v5293_v56  ;;  %v3797_v20 = vpop.f32.mrb[3].mxu0  ;;  %v252_v56 = vld [vmem:[#allocation2 + $0x78] sm:$0xff] }
 0x25d   : > { %v4704_v8 = vsel %vm3975_vm9, 1.0, %v6024_v19  ;;  %vm3973_vm12 = vcmp.gt.f32.partialorder %v5331_v24, 1.0  ;;  %v5335_v48 = vadd.f32 %v5334_v21, %v3797_v20  ;;  %v5348_v20 = vadd.f32 %v7073_v57, %v284_v5 }
 0x25e   : > { %v4083_v25 = vsub.f32 %v5329_v63, %v4704_v8  ;;  %v4779_v0 = vpack.c.bf16 %v4704_v8, %v4704_v8  ;;  %v4702_v29 = vsel %vm3973_vm12, 1.0, %v6024_v19  ;;  %vm3976_vm13 = vcmp.gt.f32.partialorder %v5333_v38, 1.0  ;;  %v251_v63 = vld [vmem:[#allocation2 + $0x70] sm:$0xff]  ;;  %v250_v8 = vld [vmem:[#allocation2 + $0x68] sm:$0xff] }
 0x25f   : > { %v4081_v30 = vsub.f32 %v5331_v24, %v4702_v29  ;;  %v4777_v2 = vpack.c.bf16 %v4702_v29, %v4702_v29  ;;  %v4705_v52 = vsel %vm3976_vm13, 1.0, %v6024_v19  ;;  %vm3974_vm14 = vcmp.gt.f32.partialorder %v5335_v48, 1.0  ;;  %v249_v24 = vld [vmem:[#allocation2 + $0x60] sm:$0xff] }
 0x260   : > { %4120 = vst.msk [vmem:[#allocation2 + $0x10] sm:$0xff] %vm4117_vm10, %v4083_v25  ;;  %v4084_v28 = vsub.f32 %v5333_v38, %v4705_v52  ;;  %v4780_v22 = vpack.c.bf16 %v4705_v52, %v4705_v52  ;;  %v4703_v18 = vsel %vm3974_vm14, 1.0, %v6024_v19  ;;  %v288_v52 = vmul.f32 0.95, %v252_v56 }
 0x261   : > { %4301 = vst.msk [vmem:[%s6226_s8 + $0x8] sm:$0xf] %vm4298_vm11, %v4779_v0  ;;  %4299 = vst.msk [vmem:[%s6226_s8] sm:$0xf] %vm4298_vm11, %v4777_v2  ;;  %v4082_v60 = vsub.f32 %v5335_v48, %v4703_v18  ;;  %v4778_v4 = vpack.c.bf16 %v4703_v18, %v4703_v18  ;;  %v5296_v11 = vpop.f32.mrb[4].mxu0 }
 0x262   : > { %4118 = vst.msk [vmem:[#allocation2] sm:$0xff] %vm4117_vm10, %v4081_v30  ;;  %4121 = vst.msk [vmem:[#allocation2 + $0x18] sm:$0xff] %vm4117_vm10, %v4084_v28  ;;  %v5337_v46 = vadd.f32 %v5336_v26, %v5296_v11  ;;  %v3810_v58 = vpop.f32.mrb[5].mxu0  ;;  %v287_v0 = vmul.f32 0.95, %v251_v63 }
 0x263   : > { %4302 = vst.msk [vmem:[%s6226_s8 + $0xc] sm:$0xf] %vm4298_vm11, %v4780_v22  ;;  %4300 = vst.msk [vmem:[%s6226_s8 + $0x4] sm:$0xf] %vm4298_vm11, %v4778_v4  ;;  %v5339_v49 = vadd.f32 %v5338_v59, %v3810_v58  ;;  %v5297_v54 = vpop.f32.mrb[6].mxu0 }
 0x264   : > { %4119 = vst.msk [vmem:[#allocation2 + $0x8] sm:$0xff] %vm4117_vm10, %v4082_v60  ;;  %vm3979_vm15 = vcmp.gt.f32.partialorder %v5337_v46, 1.0  ;;  %v5341_v16 = vadd.f32 %v5340_v13, %v5297_v54  ;;  %v3813_v43 = vpop.f32.mrb[7].mxu0  ;;  %v285_v2 = vmul.f32 0.95, %v249_v24  ;;  %v5352_v11 = vadd.f32 %v7077_v42, %v287_v0  ;;  %v255_v13 = vld [vmem:[#allocation2 + $0x90] sm:$0xff] }
 0x265   : > { %v4708_v31 = vsel %vm3979_vm15, 1.0, %v6024_v19  ;;  %vm3977_vm0 = vcmp.gt.f32.partialorder %v5339_v49, 1.0  ;;  %v5343_v47 = vadd.f32 %v5342_v27, %v3813_v43  ;;  %v286_v12 = vmul.f32 0.95, %v250_v8  ;;  %v256_v54 = vld [vmem:[#allocation2 + $0x98] sm:$0xff] }
 0x266   : > { %v4087_v53 = vsub.f32 %v5337_v46, %v4708_v31  ;;  %v4783_v62 = vpack.c.bf16 %v4708_v31, %v4708_v31  ;;  %v4706_v6 = vsel %vm3977_vm0, 1.0, %v6024_v19  ;;  %vm3980_vm1 = vcmp.gt.f32.partialorder %v5341_v16, 1.0 }
 0x267   : > { %v4085_v1 = vsub.f32 %v5339_v49, %v4706_v6  ;;  %v4781_v36 = vpack.c.bf16 %v4706_v6, %v4706_v6  ;;  %v4709_v10 = vsel %vm3980_vm1, 1.0, %v6024_v19  ;;  %vm3978_vm2 = vcmp.gt.f32.partialorder %v5343_v47, 1.0  ;;  %v253_v49 = vld [vmem:[#allocation2 + $0x80] sm:$0xff] }
 0x268   : > { %4124 = vst.msk [vmem:[#allocation2 + $0x30] sm:$0xff] %vm4117_vm10, %v4087_v53  ;;  %v4088_v34 = vsub.f32 %v5341_v16, %v4709_v10  ;;  %v4784_v21 = vpack.c.bf16 %v4709_v10, %v4709_v10  ;;  %v4707_v32 = vsel %vm3978_vm2, 1.0, %v6024_v19  ;;  %v5354_v55 = vadd.f32 %v7079_v44, %v285_v2  ;;  %v260_v2 = vld [vmem:[#allocation2 + $0xb8] sm:$0xff] }
 0x269   : > { %4305 = vst.msk [vmem:[%s6226_s8 + $0x18] sm:$0xf] %vm4298_vm11, %v4783_v62  ;;  %4303 = vst.msk [vmem:[%s6226_s8 + $0x10] sm:$0xf] %vm4298_vm11, %v4781_v36  ;;  %v4086_v41 = vsub.f32 %v5343_v47, %v4707_v32  ;;  %v4782_v37 = vpack.c.bf16 %v4707_v32, %v4707_v32  ;;  %v5300_v38 = vpop.f32.mrb[8].mxu0  ;;  %v5356_v43 = vadd.f32 %v7081_v51, %v288_v52 }
 0x26a   : > { %4122 = vst.msk [vmem:[#allocation2 + $0x20] sm:$0xff] %vm4117_vm10, %v4085_v1  ;;  %4125 = vst.msk [vmem:[#allocation2 + $0x38] sm:$0xff] %vm4117_vm10, %v4088_v34  ;;  %v5345_v48 = vadd.f32 %v5344_v45, %v5300_v38  ;;  %v3826_v25 = vpop.f32.mrb[9].mxu0  ;;  %v5358_v53 = vadd.f32 %v7083_v23, %v286_v12  ;;  %v291_v62 = vmul.f32 0.95, %v255_v13  ;;  %v258_v12 = vld [vmem:[#allocation2 + $0xa8] sm:$0xff] }
 0x26b   : > { %4306 = vst.msk [vmem:[%s6226_s8 + $0x1c] sm:$0xf] %vm4298_vm11, %v4784_v21  ;;  %4304 = vst.msk [vmem:[%s6226_s8 + $0x14] sm:$0xf] %vm4298_vm11, %v4782_v37  ;;  %v5347_v29 = vadd.f32 %v5346_v14, %v3826_v25  ;;  %v5301_v30 = vpop.f32.mrb[10].mxu0 }
 0x26c   : > { %4123 = vst.msk [vmem:[#allocation2 + $0x28] sm:$0xff] %vm4117_vm10, %v4086_v41  ;;  %vm3983_vm3 = vcmp.gt.f32.partialorder %v5345_v48, 1.0  ;;  %v5349_v57 = vadd.f32 %v5348_v20, %v5301_v30  ;;  %v3829_v26 = vpop.f32.mrb[11].mxu0  ;;  %v289_v36 = vmul.f32 0.95, %v253_v49  ;;  %v5360_v38 = vadd.f32 %v7085_v40, %v291_v62  ;;  %v259_v20 = vld [vmem:[#allocation2 + $0xb0] sm:$0xff] }
 0x26d   : > { %v4712_v28 = vsel %vm3983_vm3, 1.0, %v6024_v19  ;;  %vm3981_vm4 = vcmp.gt.f32.partialorder %v5347_v29, 1.0  ;;  %v5351_v22 = vadd.f32 %v5350_v33, %v3829_v26  ;;  %v292_v51 = vmul.f32 0.95, %v256_v54 }
 0x26e   : > { %v4091_v18 = vsub.f32 %v5345_v48, %v4712_v28  ;;  %v4787_v17 = vpack.c.bf16 %v4712_v28, %v4712_v28  ;;  %v4710_v59 = vsel %vm3981_vm4, 1.0, %v6024_v19  ;;  %vm3984_vm5 = vcmp.gt.f32.partialorder %v5349_v57, 1.0 }
 0x26f   : > { %v4089_v7 = vsub.f32 %v5347_v29, %v4710_v59  ;;  %v4785_v39 = vpack.c.bf16 %v4710_v59, %v4710_v59  ;;  %v4713_v60 = vsel %vm3984_vm5, 1.0, %v6024_v19  ;;  %vm3982_vm6 = vcmp.gt.f32.partialorder %v5351_v22, 1.0  ;;  %v257_v29 = vld [vmem:[#allocation2 + $0xa0] sm:$0xff] }
 0x270   : > { %4128 = vst.msk [vmem:[#allocation2 + $0x50] sm:$0xff] %vm4117_vm10, %v4091_v18  ;;  %v4092_v15 = vsub.f32 %v5349_v57, %v4713_v60  ;;  %v4788_v46 = vpack.c.bf16 %v4713_v60, %v4713_v60  ;;  %v4711_v58 = vsel %vm3982_vm6, 1.0, %v6024_v19  ;;  %v290_v63 = vmul.f32 0.95, %v254_v61 }
 0x271   : > { %v7135_v4 = vpop.f32.mrb[20].mxu1  ;;  %4309 = vst.msk [vmem:[%s6226_s8 + $0x28] sm:$0xf] %vm4298_vm11, %v4787_v17  ;;  %4307 = vst.msk [vmem:[%s6226_s8 + $0x20] sm:$0xf] %vm4298_vm11, %v4785_v39  ;;  %v4090_v42 = vsub.f32 %v5351_v22, %v4711_v58  ;;  %v4786_v3 = vpack.c.bf16 %v4711_v58, %v4711_v58  ;;  %v5304_v5 = vpop.f32.mrb[12].mxu0  ;;  %v5362_v0 = vadd.f32 %v7087_v50, %v289_v36 }
 0x272   : > { %v7142_v27 = vpop.f32.mrb[21].mxu1  ;;  %4126 = vst.msk [vmem:[#allocation2 + $0x40] sm:$0xff] %vm4117_vm10, %v4089_v7  ;;  %4129 = vst.msk [vmem:[#allocation2 + $0x58] sm:$0xff] %vm4117_vm10, %v4092_v15  ;;  %v5353_v44 = vadd.f32 %v5352_v11, %v5304_v5  ;;  %v3842_v31 = vpop.f32.mrb[13].mxu0  ;;  %v5364_v26 = vadd.f32 %v7089_v35, %v292_v51  ;;  %v5366_v18 = vadd.f32 %v7091_v9, %v290_v63  ;;  %v295_v17 = vmul.f32 0.95, %v259_v20 }
 0x273   : > { %v7148_v16 = vpop.f32.mrb[22].mxu1  ;;  %4310 = vst.msk [vmem:[%s6226_s8 + $0x2c] sm:$0xf] %vm4298_vm11, %v4788_v46  ;;  %4308 = vst.msk [vmem:[%s6226_s8 + $0x24] sm:$0xf] %vm4298_vm11, %v4786_v3  ;;  %v5355_v6 = vadd.f32 %v5354_v55, %v3842_v31  ;;  %v5305_v1 = vpop.f32.mrb[14].mxu0 }
 0x274   : > { %v7154_v47 = vpop.f32.mrb[23].mxu1  ;;  %4127 = vst.msk [vmem:[#allocation2 + $0x48] sm:$0xff] %vm4117_vm10, %v4090_v42  ;;  %vm3987_vm7 = vcmp.gt.f32.partialorder %v5353_v44, 1.0  ;;  %v5357_v10 = vadd.f32 %v5356_v43, %v5305_v1  ;;  %v3845_v45 = vpop.f32.mrb[15].mxu0  ;;  %v293_v39 = vmul.f32 0.95, %v257_v29  ;;  %v5368_v5 = vadd.f32 %v7135_v4, %v295_v17 }
 0x275   : > { %v4716_v34 = vsel %vm3987_vm7, 1.0, %v6024_v19  ;;  %vm3985_vm8 = vcmp.gt.f32.partialorder %v5355_v6, 1.0  ;;  %v5359_v21 = vadd.f32 %v5358_v53, %v3845_v45  ;;  %v296_v35 = vmul.f32 0.95, %v260_v2  ;;  %v263_v43 = vld [vmem:[#allocation2 + $0xd0] sm:$0xff]  ;;  %v264_v36 = vld [vmem:[#allocation2 + $0xd8] sm:$0xff] }
 0x276   : > { %v4095_v32 = vsub.f32 %v5353_v44, %v4716_v34  ;;  %v4791_v23 = vpack.c.bf16 %v4716_v34, %v4716_v34  ;;  %v4714_v14 = vsel %vm3985_vm8, 1.0, %v6024_v19  ;;  %vm3988_vm9 = vcmp.gt.f32.partialorder %v5357_v10, 1.0  ;;  %v262_v63 = vld [vmem:[#allocation2 + $0xc8] sm:$0xff] }
 0x277   : > { %v4093_v24 = vsub.f32 %v5355_v6, %v4714_v14  ;;  %v4789_v56 = vpack.c.bf16 %v4714_v14, %v4714_v14  ;;  %v4717_v41 = vsel %vm3988_vm9, 1.0, %v6024_v19  ;;  %vm3986_vm12 = vcmp.gt.f32.partialorder %v5359_v21, 1.0  ;;  %v261_v6 = vld [vmem:[#allocation2 + $0xc0] sm:$0xff] }
 0x278   : > { %4132 = vst.msk [vmem:[#allocation2 + $0x70] sm:$0xff] %vm4117_vm10, %v4095_v32  ;;  %v4096_v8 = vsub.f32 %v5357_v10, %v4717_v41  ;;  %v4792_v48 = vpack.c.bf16 %v4717_v41, %v4717_v41  ;;  %v4715_v25 = vsel %vm3986_vm12, 1.0, %v6024_v19  ;;  %v294_v13 = vmul.f32 0.95, %v258_v12 }
 0x279   : > { %v7163_v37 = vpop.f32.mrb[24].mxu1  ;;  %4313 = vst.msk [vmem:[%s6226_s8 + $0x38] sm:$0xf] %vm4298_vm11, %v4791_v23  ;;  %4311 = vst.msk [vmem:[%s6226_s8 + $0x30] sm:$0xf] %vm4298_vm11, %v4789_v56  ;;  %v4094_v40 = vsub.f32 %v5359_v21, %v4715_v25  ;;  %v4790_v30 = vpack.c.bf16 %v4715_v25, %v4715_v25  ;;  %v5308_v52 = vpop.f32.mrb[16].mxu0  ;;  %v5370_v62 = vadd.f32 %v7142_v27, %v293_v39 }
 0x27a   : > { %v7170_v33 = vpop.f32.mrb[25].mxu1  ;;  %4130 = vst.msk [vmem:[#allocation2 + $0x60] sm:$0xff] %vm4117_vm10, %v4093_v24  ;;  %4133 = vst.msk [vmem:[#allocation2 + $0x78] sm:$0xff] %vm4117_vm10, %v4096_v8  ;;  %v5361_v50 = vadd.f32 %v5360_v38, %v5308_v52  ;;  %v3858_v28 = vpop.f32.mrb[17].mxu0  ;;  %v5372_v45 = vadd.f32 %v7148_v16, %v296_v35  ;;  %v5374_v32 = vadd.f32 %v7154_v47, %v294_v13  ;;  %v299_v23 = vmul.f32 0.95, %v263_v43 }
 0x27b   : > { %v7176_v57 = vpop.f32.mrb[26].mxu1  ;;  %4314 = vst.msk [vmem:[%s6226_s8 + $0x3c] sm:$0xf] %vm4298_vm11, %v4792_v48  ;;  %4312 = vst.msk [vmem:[%s6226_s8 + $0x34] sm:$0xf] %vm4298_vm11, %v4790_v30  ;;  %v5363_v59 = vadd.f32 %v5362_v0, %v3858_v28  ;;  %v5309_v7 = vpop.f32.mrb[18].mxu0 }
 0x27c   : > { %v7182_v22 = vpop.f32.mrb[27].mxu1  ;;  %4131 = vst.msk [vmem:[#allocation2 + $0x68] sm:$0xff] %vm4117_vm10, %v4094_v40  ;;  %vm3991_vm13 = vcmp.gt.f32.partialorder %v5361_v50, 1.0  ;;  %v5365_v60 = vadd.f32 %v5364_v26, %v5309_v7  ;;  %v3861_v11 = vpop.f32.mrb[19].mxu0  ;;  %v297_v56 = vmul.f32 0.95, %v261_v6  ;;  %v5376_v52 = vadd.f32 %v7163_v37, %v299_v23 }
 0x27d   : > { %v4720_v15 = vsel %vm3991_vm13, 1.0, %v6024_v19  ;;  %vm3989_vm14 = vcmp.gt.f32.partialorder %v5363_v59, 1.0  ;;  %v5367_v46 = vadd.f32 %v5366_v18, %v3861_v11  ;;  %v300_v16 = vmul.f32 0.95, %v264_v36  ;;  %v267_v26 = vld [vmem:[#allocation2 + $0xf0] sm:$0xff]  ;;  %v268_v39 = vld [vmem:[#allocation2 + $0xf8] sm:$0xff] }
 0x27e   : > { %v4099_v58 = vsub.f32 %v5361_v50, %v4720_v15  ;;  %v4795_v9 = vpack.c.bf16 %v4720_v15, %v4720_v15  ;;  %v4718_v55 = vsel %vm3989_vm14, 1.0, %v6024_v19  ;;  %vm3992_vm15 = vcmp.gt.f32.partialorder %v5365_v60, 1.0  ;;  %v266_v13 = vld [vmem:[#allocation2 + $0xe8] sm:$0xff] }
 0x27f   : > { %v4097_v49 = vsub.f32 %v5363_v59, %v4718_v55  ;;  %v4793_v54 = vpack.c.bf16 %v4718_v55, %v4718_v55  ;;  %v4721_v42 = vsel %vm3992_vm15, 1.0, %v6024_v19  ;;  %vm3990_vm0 = vcmp.gt.f32.partialorder %v5367_v46, 1.0  ;;  %v265_v59 = vld [vmem:[#allocation2 + $0xe0] sm:$0xff] }
 0x280   : > { %4136 = vst.msk [vmem:[#allocation2 + $0x90] sm:$0xff] %vm4117_vm10, %v4099_v58  ;;  %v4100_v61 = vsub.f32 %v5365_v60, %v4721_v42  ;;  %v4796_v44 = vpack.c.bf16 %v4721_v42, %v4721_v42  ;;  %v4719_v31 = vsel %vm3990_vm0, 1.0, %v6024_v19  ;;  %v298_v20 = vmul.f32 0.95, %v262_v63 }
 0x281   : > { %v7191_v3 = vpop.f32.mrb[28].mxu1  ;;  %4317 = vst.msk [vmem:[%s6226_s8 + $0x48] sm:$0xf] %vm4298_vm11, %v4795_v9  ;;  %4315 = vst.msk [vmem:[%s6226_s8 + $0x40] sm:$0xf] %vm4298_vm11, %v4793_v54  ;;  %v4098_v4 = vsub.f32 %v5367_v46, %v4719_v31  ;;  %v4794_v1 = vpack.c.bf16 %v4719_v31, %v4719_v31  ;;  %v5312_v51 = vpop.f32.mrb[20].mxu0  ;;  %v5378_v17 = vadd.f32 %v7170_v33, %v297_v56 }
 0x282   : > { %v7198_v53 = vpop.f32.mrb[29].mxu1  ;;  %4134 = vst.msk [vmem:[#allocation2 + $0x80] sm:$0xff] %vm4117_vm10, %v4097_v49  ;;  %4137 = vst.msk [vmem:[#allocation2 + $0x98] sm:$0xff] %vm4117_vm10, %v4100_v61  ;;  %v5369_v27 = vadd.f32 %v5368_v5, %v5312_v51  ;;  %v3874_v34 = vpop.f32.mrb[21].mxu0  ;;  %v5380_v11 = vadd.f32 %v7176_v57, %v300_v16  ;;  %v5382_v58 = vadd.f32 %v7182_v22, %v298_v20  ;;  %v303_v9 = vmul.f32 0.95, %v267_v26 }
 0x283   : > { %v7204_v10 = vpop.f32.mrb[30].mxu1  ;;  %4318 = vst.msk [vmem:[%s6226_s8 + $0x4c] sm:$0xf] %vm4298_vm11, %v4796_v44  ;;  %4316 = vst.msk [vmem:[%s6226_s8 + $0x44] sm:$0xf] %vm4298_vm11, %v4794_v1  ;;  %v5371_v14 = vadd.f32 %v5370_v62, %v3874_v34  ;;  %v5313_v24 = vpop.f32.mrb[22].mxu0 }
 0x284   : > { %v7210_v21 = vpop.f32.mrb[31].mxu1  ;;  %4135 = vst.msk [vmem:[#allocation2 + $0x88] sm:$0xff] %vm4117_vm10, %v4098_v4  ;;  %vm3995_vm1 = vcmp.gt.f32.partialorder %v5369_v27, 1.0  ;;  %v5373_v41 = vadd.f32 %v5372_v45, %v5313_v24  ;;  %v3877_v38 = vpop.f32.mrb[23].mxu0  ;;  %v301_v54 = vmul.f32 0.95, %v265_v59  ;;  %v5384_v36 = vadd.f32 %v7191_v3, %v303_v9 }
 0x285   : > { %v4724_v8 = vsel %vm3995_vm1, 1.0, %v6024_v19  ;;  %vm3993_vm2 = vcmp.gt.f32.partialorder %v5371_v14, 1.0  ;;  %v5375_v48 = vadd.f32 %v5374_v32, %v3877_v38  ;;  %v304_v57 = vmul.f32 0.95, %v268_v39  ;;  %v271_v51 = vld [vmem:[#allocation2 + $0x110] sm:$0xff]  ;;  %v269_v32 = vld [vmem:[#allocation2 + $0x100] sm:$0xff] }
 0x286   : > { %v4103_v25 = vsub.f32 %v5369_v27, %v4724_v8  ;;  %v4799_v47 = vpack.c.bf16 %v4724_v8, %v4724_v8  ;;  %v4722_v0 = vsel %vm3993_vm2, 1.0, %v6024_v19  ;;  %vm3996_vm3 = vcmp.gt.f32.partialorder %v5373_v41, 1.0  ;;  %v270_v16 = vld [vmem:[#allocation2 + $0x108] sm:$0xff] }
 0x287   : > { %v4101_v29 = vsub.f32 %v5371_v14, %v4722_v0  ;;  %v4797_v40 = vpack.c.bf16 %v4722_v0, %v4722_v0  ;;  %v4725_v30 = vsel %vm3996_vm3, 1.0, %v6024_v19  ;;  %vm3994_vm4 = vcmp.gt.f32.partialorder %v5375_v48, 1.0  ;;  %v272_v14 = vld [vmem:[#allocation2 + $0x118] sm:$0xff] }
 0x288   : > { %4140 = vst.msk [vmem:[#allocation2 + $0xb0] sm:$0xff] %vm4117_vm10, %v4103_v25  ;;  %v4104_v12 = vsub.f32 %v5373_v41, %v4725_v30  ;;  %v4800_v50 = vpack.c.bf16 %v4725_v30, %v4725_v30  ;;  %v4723_v28 = vsel %vm3994_vm4, 1.0, %v6024_v19  ;;  %v302_v43 = vmul.f32 0.95, %v266_v13 }
 0x289   : > { %v7219_v2 = vpop.f32.mrb[32].mxu1  ;;  %4321 = vst.msk [vmem:[%s6226_s8 + $0x58] sm:$0xf] %vm4298_vm11, %v4799_v47  ;;  %4319 = vst.msk [vmem:[%s6226_s8 + $0x50] sm:$0xf] %vm4298_vm11, %v4797_v40  ;;  %v4102_v37 = vsub.f32 %v5375_v48, %v4723_v28  ;;  %v4798_v7 = vpack.c.bf16 %v4723_v28, %v4723_v28  ;;  %v5316_v35 = vpop.f32.mrb[24].mxu0  ;;  %v5386_v34 = vadd.f32 %v7198_v53, %v301_v54 }
 0x28a   : > { %v7226_v18 = vpop.f32.mrb[33].mxu1  ;;  %4138 = vst.msk [vmem:[#allocation2 + $0xa0] sm:$0xff] %vm4117_vm10, %v4101_v29  ;;  %4141 = vst.msk [vmem:[#allocation2 + $0xb8] sm:$0xff] %vm4117_vm10, %v4104_v12  ;;  %v5377_v33 = vadd.f32 %v5376_v52, %v5316_v35  ;;  %v3890_v15 = vpop.f32.mrb[25].mxu0  ;;  %v5388_v56 = vadd.f32 %v7204_v10, %v304_v57  ;;  %v5390_v53 = vadd.f32 %v7210_v21, %v302_v43  ;;  %v307_v20 = vmul.f32 0.95, %v271_v51 }
 0x28b   : > { %v7232_v60 = vpop.f32.mrb[34].mxu1  ;;  %4322 = vst.msk [vmem:[%s6226_s8 + $0x5c] sm:$0xf] %vm4298_vm11, %v4800_v50  ;;  %4320 = vst.msk [vmem:[%s6226_s8 + $0x54] sm:$0xf] %vm4298_vm11, %v4798_v7  ;;  %v5379_v55 = vadd.f32 %v5378_v17, %v3890_v15  ;;  %v5317_v49 = vpop.f32.mrb[26].mxu0 }
 0x28c   : > { %v7238_v46 = vpop.f32.mrb[35].mxu1  ;;  %4139 = vst.msk [vmem:[#allocation2 + $0xa8] sm:$0xff] %vm4117_vm10, %v4102_v37  ;;  %vm3999_vm5 = vcmp.gt.f32.partialorder %v5377_v33, 1.0  ;;  %v5381_v42 = vadd.f32 %v5380_v11, %v5317_v49  ;;  %v3893_v5 = vpop.f32.mrb[27].mxu0  ;;  %v305_v25 = vmul.f32 0.95, %v269_v32  ;;  %v5392_v17 = vadd.f32 %v7219_v2, %v307_v20 }
 0x28d   : > { %v4728_v61 = vsel %vm3999_vm5, 1.0, %v6024_v19  ;;  %vm3997_vm6 = vcmp.gt.f32.partialorder %v5379_v55, 1.0  ;;  %v5383_v44 = vadd.f32 %v5382_v58, %v3893_v5  ;;  %v308_v10 = vmul.f32 0.95, %v272_v14 }
 0x28e   : > { %v4107_v31 = vsub.f32 %v5377_v33, %v4728_v61  ;;  %v4803_v22 = vpack.c.bf16 %v4728_v61, %v4728_v61  ;;  %v4726_v62 = vsel %vm3997_vm6, 1.0, %v6024_v19  ;;  %vm4000_vm7 = vcmp.gt.f32.partialorder %v5381_v42, 1.0 }
 0x28f   : > { %v4105_v6 = vsub.f32 %v5379_v55, %v4726_v62  ;;  %v4801_v4 = vpack.c.bf16 %v4726_v62, %v4726_v62  ;;  %v4729_v1 = vsel %vm4000_vm7, 1.0, %v6024_v19  ;;  %vm3998_vm8 = vcmp.gt.f32.partialorder %v5383_v44, 1.0 }
 0x290   : > { %4144 = vst.msk [vmem:[#allocation2 + $0xd0] sm:$0xff] %vm4117_vm10, %v4107_v31  ;;  %v4108_v45 = vsub.f32 %v5381_v42, %v4729_v1  ;;  %v4804_v63 = vpack.c.bf16 %v4729_v1, %v4729_v1  ;;  %v4727_v27 = vsel %vm3998_vm8, 1.0, %v6024_v19  ;;  %v306_v29 = vmul.f32 0.95, %v270_v16 }
 0x291   : > { %4325 = vst.msk [vmem:[%s6226_s8 + $0x68] sm:$0xf] %vm4298_vm11, %v4803_v22  ;;  %4323 = vst.msk [vmem:[%s6226_s8 + $0x60] sm:$0xf] %vm4298_vm11, %v4801_v4  ;;  %v4106_v23 = vsub.f32 %v5383_v44, %v4727_v27  ;;  %v4802_v3 = vpack.c.bf16 %v4727_v27, %v4727_v27  ;;  %v5320_v24 = vpop.f32.mrb[28].mxu0  ;;  %v5394_v39 = vadd.f32 %v7226_v18, %v305_v25 }
 0x292   : > { %4142 = vst.msk [vmem:[#allocation2 + $0xc0] sm:$0xff] %vm4117_vm10, %v4105_v6  ;;  %4145 = vst.msk [vmem:[#allocation2 + $0xd8] sm:$0xff] %vm4117_vm10, %v4108_v45  ;;  %v5385_v41 = vadd.f32 %v5384_v36, %v5320_v24  ;;  %v3906_v38 = vpop.f32.mrb[29].mxu0  ;;  %v5396_v2 = vadd.f32 %v7232_v60, %v308_v10  ;;  %v5398_v58 = vadd.f32 %v7238_v46, %v306_v29 }
 0x293   : > { %4326 = vst.msk [vmem:[%s6226_s8 + $0x6c] sm:$0xf] %vm4298_vm11, %v4804_v63  ;;  %4324 = vst.msk [vmem:[%s6226_s8 + $0x64] sm:$0xf] %vm4298_vm11, %v4802_v3  ;;  %v5387_v8 = vadd.f32 %v5386_v34, %v3906_v38  ;;  %v5321_v48 = vpop.f32.mrb[30].mxu0 }
 0x294   : > { %4143 = vst.msk [vmem:[#allocation2 + $0xc8] sm:$0xff] %vm4117_vm10, %v4106_v23  ;;  %vm4003_vm9 = vcmp.gt.f32.partialorder %v5385_v41, 1.0  ;;  %v5389_v47 = vadd.f32 %v5388_v56, %v5321_v48  ;;  %v3909_v0 = vpop.f32.mrb[31].mxu0 }
 0x295   : > { %v4732_v40 = vsel %vm4003_vm9, 1.0, %v6024_v19  ;;  %vm4001_vm12 = vcmp.gt.f32.partialorder %v5387_v8, 1.0  ;;  %v5391_v30 = vadd.f32 %v5390_v53, %v3909_v0 }
 0x296   : > { %v4111_v21 = vsub.f32 %v5385_v41, %v4732_v40  ;;  %v4807_v52 = vpack.c.bf16 %v4732_v40, %v4732_v40  ;;  %v4730_v26 = vsel %vm4001_vm12, 1.0, %v6024_v19  ;;  %vm4004_vm13 = vcmp.gt.f32.partialorder %v5389_v47, 1.0 }
 0x297   : > { %v4109_v12 = vsub.f32 %v5387_v8, %v4730_v26  ;;  %v4805_v50 = vpack.c.bf16 %v4730_v26, %v4730_v26  ;;  %v4733_v28 = vsel %vm4004_vm13, 1.0, %v6024_v19  ;;  %vm4002_vm14 = vcmp.gt.f32.partialorder %v5391_v30, 1.0 }
 0x298   : > { %4148 = vst.msk [vmem:[#allocation2 + $0xf0] sm:$0xff] %vm4117_vm10, %v4111_v21  ;;  %v4112_v59 = vsub.f32 %v5389_v47, %v4733_v28  ;;  %v4808_v37 = vpack.c.bf16 %v4733_v28, %v4733_v28  ;;  %v4731_v7 = vsel %vm4002_vm14, 1.0, %v6024_v19 }
 0x299   : > { %4329 = vst.msk [vmem:[%s6226_s8 + $0x78] sm:$0xf] %vm4298_vm11, %v4807_v52  ;;  %4327 = vst.msk [vmem:[%s6226_s8 + $0x70] sm:$0xf] %vm4298_vm11, %v4805_v50  ;;  %v4110_v35 = vsub.f32 %v5391_v30, %v4731_v7  ;;  %v4806_v11 = vpack.c.bf16 %v4731_v7, %v4731_v7  ;;  %v5324_v13 = vpop.f32.mrb[32].mxu0 }
 0x29a   : > { %4146 = vst.msk [vmem:[#allocation2 + $0xe0] sm:$0xff] %vm4117_vm10, %v4109_v12  ;;  %4149 = vst.msk [vmem:[#allocation2 + $0xf8] sm:$0xff] %vm4117_vm10, %v4112_v59  ;;  %v5393_v33 = vadd.f32 %v5392_v17, %v5324_v13  ;;  %v3922_v15 = vpop.f32.mrb[33].mxu0 }
 0x29b   : > { %4330 = vst.msk [vmem:[%s6226_s8 + $0x7c] sm:$0xf] %vm4298_vm11, %v4808_v37  ;;  %4328 = vst.msk [vmem:[%s6226_s8 + $0x74] sm:$0xf] %vm4298_vm11, %v4806_v11  ;;  %v5395_v18 = vadd.f32 %v5394_v39, %v3922_v15  ;;  %v5325_v9 = vpop.f32.mrb[34].mxu0 }
 0x29c   : > { %4147 = vst.msk [vmem:[#allocation2 + $0xe8] sm:$0xff] %vm4117_vm10, %v4110_v35  ;;  %vm4007_vm15 = vcmp.gt.f32.partialorder %v5393_v33, 1.0  ;;  %v5397_v55 = vadd.f32 %v5396_v2, %v5325_v9  ;;  %v3925_v60 = vpop.f32.mrb[35].mxu0 }
 0x29d   : > { %v4736_v49 = vsel %vm4007_vm15, 1.0, %v6024_v19  ;;  %vm4005_vm0 = vcmp.gt.f32.partialorder %v5395_v18, 1.0  ;;  %v5399_v54 = vadd.f32 %v5398_v58, %v3925_v60 }
 0x29e   : > { %v4115_v57 = vsub.f32 %v5393_v33, %v4736_v49  ;;  %v4811_v42 = vpack.c.bf16 %v4736_v49, %v4736_v49  ;;  %v4734_v46 = vsel %vm4005_vm0, 1.0, %v6024_v19  ;;  %vm4008_vm1 = vcmp.gt.f32.partialorder %v5397_v55, 1.0 }
 0x29f   : > { %v4113_v5 = vsub.f32 %v5395_v18, %v4734_v46  ;;  %v4809_v43 = vpack.c.bf16 %v4734_v46, %v4734_v46  ;;  %v4737_v61 = vsel %vm4008_vm1, 1.0, %v6024_v19  ;;  %vm4006_vm2 = vcmp.gt.f32.partialorder %v5399_v54, 1.0 }
 0x2a0   : > { %4152 = vst.msk [vmem:[#allocation2 + $0x110] sm:$0xff] %vm4117_vm10, %v4115_v57  ;;  %v4116_v44 = vsub.f32 %v5397_v55, %v4737_v61  ;;  %v4812_v31 = vpack.c.bf16 %v4737_v61, %v4737_v61  ;;  %v4735_v22 = vsel %vm4006_vm2, 1.0, %v6024_v19 }
 0x2a1   : > { %4333 = vst.msk [vmem:[%s6226_s8 + $0x88] sm:$0xf] %vm4298_vm11, %v4811_v42  ;;  %4331 = vst.msk [vmem:[%s6226_s8 + $0x80] sm:$0xf] %vm4298_vm11, %v4809_v43  ;;  %v4114_v62 = vsub.f32 %v5399_v54, %v4735_v22  ;;  %v4810_v6 = vpack.c.bf16 %v4735_v22, %v4735_v22 }
 0x2a2   : > { %4150 = vst.msk [vmem:[#allocation2 + $0x100] sm:$0xff] %vm4117_vm10, %v4113_v5  ;;  %4153 = vst.msk [vmem:[#allocation2 + $0x118] sm:$0xff] %vm4117_vm10, %v4116_v44 }
 0x2a3   : > { %4334 = vst.msk [vmem:[%s6226_s8 + $0x8c] sm:$0xf] %vm4298_vm11, %v4812_v31  ;;  %4332 = vst.msk [vmem:[%s6226_s8 + $0x84] sm:$0xf] %vm4298_vm11, %v4810_v6 }
 0x2a4   : > { %4151 = vst.msk [vmem:[#allocation2 + $0x108] sm:$0xff] %vm4117_vm10, %v4114_v62 }
 0x2a5   : > { %5928 = shalt.err (!%p5925_p1)
}
 0x2a6   : > { %s5929_s4 = scalar_lea.hbm %s7297_s27, 2304  ;;  %s5933_s1 = scalar_lea.hbm %s7364_s2, 18432 }
 0x2a7   : > { %p5930_p2 = scmp.ne.s32.totalorder %s7297_s27, %s5929_s4  ;;  %p5934_p9 = scmp.lt.u32.totalorder %s7297_s27, %s7364_s2 }
 0x2a8   : > { %p5935_p0 = scmp.lt.u32.totalorder %s5933_s1, %s5929_s4  ;;  %p5937_p8 = scmp.lt.u32.totalorder %s5929_s4, %s7297_s27 }
 0x2a9   : > { %p5931_p4 = pnand %p5930_p2, %p6151_p11 }
 0x2aa   : > { %p5936_p6 = por %p5935_p0, %p5934_p9 }
 0x2ab   : > { %p5932_p5 = pneg %p5931_p4 }
 0x2ac   : > { %p5938_p10 = por %p5937_p8, %p5936_p6 }
 0x2ae   : > { %p5939_p12 = pnand %p5938_p10, %p5932_p5 }
 0x2b0   : > { %5942 = shalt.err (!%p5939_p12)
}
 0x2b1   : > { %s6026_s19 = smov 64   ;;  %s6027_s21 = smov 4  }
 0x2b2   : > { %5675 = dma.vmem_to_hbm [thread:$0]  (%p6151_p11), %s7299_s17, 2304, %s7297_s27, %s4336_s25, %s6026_s19, %s6026_s19, %s6027_s21  }
 0x2b3 PF: > { %p5692_p13 = scmp.ge.s32.totalorder %s6017_s16, 2  ;;  %s4366_s12 = sand.u32 1, %s5989_s9  }
 0x2b4   : > { %p7391_p3 = scmp.ne.s32.totalorder %s7377_s22, 0  ;;  %s4367_s13 = scalar_lea.sflag [#allocation5], %s4366_s12 }
 0x2b6   : > { %p5686_p7 = pnand %p5692_p13, %p7391_p3 }
 0x2b8   : > { %5984 = dma.done.wait (!%p5686_p7), %s4367_s13, 2304  }
 0x2b9   : > { %5986 = vsyncadd (!%p5686_p7), %s4367_s13, 4294964992  ;;  %s19_s16 = sadd.s32 1, %s6017_s16   ;;  %s7392_s29 = sld [smem:[#allocation12_spill]] }
 0x2ba   : > { %p16_p1 = scmp.ge.s32.totalorder %s19_s16, 10   ;;  %s7393_s7 = sld [smem:[#allocation13_spill]] }
 0x2bb   : > { %s7394_s9 = smov %s5993_s10  ;;  %s7395_s10 = smov %s5997_s11 }
 0x2bc   : > { %s7396_s11 = smov %s6168_s20  ;;  %s7397_s12 = smov %s6009_s14 }
 0x2bd   : > { %s7398_s13 = smov %s6013_s15  ;;  %18 = sbr.rel (!%p16_p1) target bundleno = 10 (0xa), region = 89 }
 0x2bf   : > { %s7399_s14 = smov %s7392_s29 }
 0x2c0   : > { %s7400_s15 = smov %s7393_s7 }
 0x2c4   :  { %4372 = vsyncpa [#allocation4], 1 }
 0x2c5   :  { %4374 = vsyncpa [#allocation4 + $0x1], 1 }
 0x2c6   :  { %4375 = vsyncpa [#allocation7], 1 }
 0x2c7   :  { %4376 = vsyncpa [#allocation5], 1 }
 0x2c8   :  { %4378 = vsyncpa [#allocation5 + $0x1], 1 }

// kernel: snn_vgg5_forward.5
= control target key start
LH: loop header
LB: loop body
LE: loop exit
PB: predicated region body
PF: predicated region fallthrough
CT: control target
= control target key end

     0   :  { %s3696_s0 = inlined_call_operand.hbm [shape: bf16[2,4,104,64], index: 0, kind: input, shape index: {}]   ;;  %s3697_s1 = inlined_call_operand.hbm [shape: bf16[9,64,128], index: 1, kind: input, shape index: {}]   ;;  %s3698_s2 = inlined_call_operand.hbm [shape: bf16[2,4,80,128], index: 2, kind: output, shape index: {}]  }
   0x1   :  { %3707 = sst [smem:[#allocation14_spill]] %s3697_s1 }
   0x2   :  { %7 = vsyncpa [#allocation4], 0 }
   0x3   :  { %9 = vsyncpa [#allocation4 + $0x1], 0 }
   0x4   :  { %10 = vsyncpa [#allocation7], 0 }
   0x5   :  { %11 = vsyncpa [#allocation5], 0 }
   0x6   :  { %13 = vsyncpa [#allocation5 + $0x1], 0  ;;  %s3033_s9 = smov 0   ;;  %s3035_s10 = smov 0  }
   0x7   :  { %s3037_s11 = smov 0   ;;  %s3039_s12 = smov 0  }
   0x8   :  { %s3041_s13 = smov 0   ;;  %s3043_s14 = smov 0  }
   0x9   :  { %s3045_s15 = smov 0   ;;  %s3047_s16 = smov 0  }
   0xa LB: > { %s2008_s17 = sadd.s32 4294967295, %s3006_s16   ;;  %s2009_s18 = sadd.s32 4294967294, %s3006_s16   ;;  %s3006_s16 = sphi %s3047_s16, %s19_s16   ;;  %s3002_s15 = sphi %s3045_s15, %s3734_s15   ;;  %s2998_s14 = sphi %s3043_s14, %s3733_s14   ;;  %s2994_s13 = sphi %s3041_s13, %s3732_s13   ;;  %s2990_s12 = sphi %s3039_s12, %s3731_s12   ;;  %s2986_s11 = sphi %s3037_s11, %s3730_s11   ;;  %s2982_s10 = sphi %s3035_s10, %s3729_s10   ;;  %s2978_s9 = sphi %s3033_s9, %s3728_s9  }
   0xb   : > { %p53_p0 = scmp.ne.s32.totalorder %s2982_s10, %s2978_s9  ;;  %p3077_p1 = scmp.eq.s32.totalorder %s2008_s17, 0 }
   0xc   : > { %p3081_p2 = scmp.eq.s32.totalorder %s2008_s17, 7  ;;  %p106_p3 = scmp.eq.s32.totalorder %s2009_s18, 7 }
   0xd   : > { %s3708_s19 = scalar_select %p3077_p1, 1, 0 }
   0xe   : > { %s3709_s20 = scalar_select %p3081_p2, 1, 0 }
   0xf   : > { %p3087_p4 = por %p3077_p1, %p53_p0  ;;  %p2010_p5 = scmp.ge.s32.totalorder %s3006_s16, 1 }
  0x10   : > { %p3092_p6 = por %p106_p3, %p53_p0  ;;  %p113_p7 = scmp.lt.s32.totalorder %s3006_s16, 9 }
  0x11   : > { %s3710_s21 = scalar_select %p3087_p4, 1, 0 }
  0x12   : > { %s3711_s22 = scalar_select %p3092_p6, 1, 0 }
  0x13   : > { %p3097_p8 = pnand %p2010_p5, %p113_p7  ;;  %s3008_s24 = smov [#allocation6]  }
  0x14   : > { %s125_s25 = sshll.u32 %s3008_s24, 4  ;;  %s3714_s1 = sld [smem:[#allocation14_spill]]  ;;  %s126_s25 = int_to_ptr.vmem [resolvable:$true] %s125_s25 }
  0x15   : > { %s3712_s23 = scalar_select %p3097_p8, 1, 0 }
  0x16   : > { %p2694_p9 = pneg %p3097_p8 }
  0x18   : > { %p3105_p10 = pnand %p2694_p9, %p3077_p1 }
  0x1a   : > { %s2846_s29 = scalar_lea.hbm %s3714_s1, 4608  ;;  %p2848_p12 = pneg %p3105_p10 }
  0x1b   : > { %p2847_p11 = scmp.ne.s32.totalorder %s3714_s1, %s2846_s29  ;;  %p2853_p3 = scmp.lt.u32.totalorder %s2846_s29, %s3714_s1 }
  0x1d   : > { %p2849_p13 = pnand %p2848_p12, %p2847_p11 }
  0x1f   : > { %p2850_p0 = pneg %p2849_p13 }
  0x21   : > { %p2855_p5 = pnand %p2853_p3, %p2850_p0 }
  0x23   : > { %2858 = shalt.err (!%p2855_p5)
}
  0x24   : > { %s2859_s6 = scalar_lea.vmem %s126_s25, 4608  ;;  %p2867_p1 = scmp.lt.s32.totalorder %s126_s25, %s126_s25 }
  0x25   : > { %p2860_p7 = scmp.ne.s32.totalorder %s126_s25, %s2859_s6  ;;  %p2868_p4 = scmp.lt.s32.totalorder %s2859_s6, %s2859_s6 }
  0x27   : > { %p2862_p9 = pnand %p2860_p7, %p2848_p12  ;;  %p2869_p8 = por %p2868_p4, %p2867_p1 }
  0x29   : > { %p2863_p6 = pneg %p2862_p9 }
  0x2b   : > { %p2870_p2 = pnand %p2869_p8, %p2863_p6 }
  0x2d   : > { %2873 = shalt.err (!%p2870_p2)
}
  0x2e   : > { %s3703_s7 = smov 64   ;;  %s3704_s8 = smov 4  }
  0x2f   : > { %2697 = dma.hbm_to_vmem [thread:$0]  (!%p3105_p10), %s3714_s1, 4608, %s126_s25, [#allocation7], %s3703_s7, %s3703_s7, %s3704_s8  }
  0x30   : > { %s28_s24 = sadd.s32 1, %s2998_s14  ;;  %s31_s27 = sadd.s32 1, %s3002_s15 }
  0x31   : > { %p29_p1 = scmp.ge.s32.totalorder %s28_s24, 4  ;;  %s40_s28 = sadd.s32 1, %s2986_s11 }
  0x32   : > { %p47_p2 = scmp.ne.s32.totalorder %s2986_s11, %s2982_s10  ;;  %p48_p4 = scmp.eq.s32.totalorder %s3006_s16, 0 }
  0x33   : > { %s3736_s24 = smov (%p29_p1, %s28_s24), 0  ;;  %s3738_s27 = smov (!%p29_p1, %s31_s27), %s3002_s15 }
  0x34   : > { %3715 = sst [smem:[#allocation12_spill]] %s3736_s24  ;;  %s36_s26 = ssub.s32 %s2998_s14, %s3736_s24 }
  0x35   : > { %p33_p6 = scmp.ge.s32.totalorder %s3738_s27, 2  ;;  %p3716_p8 = scmp.ne.s32.totalorder %s3709_s20, 0 }
  0x36   : > { %p49_p10 = por %p48_p4, %p47_p2  ;;  %p2707_p12 = scmp.lt.s32.totalorder %s3006_s16, 8 }
  0x37   : > { %p3141_p11 = por %p3716_p8, %p47_p2  ;;  %s3740_s27 = smov (%p33_p6, %s3738_s27), 0 }
  0x38   : > { %3718 = sst [smem:[#allocation13_spill]] %s3740_s27  ;;  %s139_s25 = sand.u32 1, %s2986_s11  }
  0x39   : > { %s2680_s30 = smul.u32 13, %s2998_s14  ;;  %s35_s3 = ssub.s32 %s3002_s15, %s3740_s27 }
  0x3a   : > { %s37_s4 = sor.u32 %s36_s26, %s35_s3  ;;  %s2679_s5 = smul.u32 52, %s139_s25 }
  0x3b   : > { %p38_p13 = scmp.eq.s32.totalorder %s37_s4, 0  ;;  %s2681_s6 = smul.u32 52, %s3002_s15 }
  0x3c   : > { %p3153_p0 = pnand %p2707_p12, %p49_p10  ;;  %s143_s7 = scalar_lea.vmem [#allocation3], %s2679_s5 }
  0x3d   : > { %s3158_s20 = scalar_select %p38_p13, %s2986_s11, %s40_s28  }
  0x3e   : > { %s149_s18 = sadd.s32 %s2681_s6, %s2680_s30  ;;  %s152_s8 = sshll.u32 %s143_s7, 4  ;;  %s3160_s8 = int_to_ptr.vmem [resolvable:$true] %s152_s8 }
  0x3f   : > { %s2013_s1 = sshll.u32 %s149_s18, 6  ;;  %s3167_s3 = scalar_lea.sflag [#allocation4], %s139_s25 }
  0x40   : > { %s3165_s26 = scalar_lea.hbm %s3696_s0, %s2013_s1  ;;  %p2876_p5 = pneg %p3153_p0 }
  0x41   : > { %s2874_s4 = scalar_lea.hbm %s3165_s26, 832  ;;  %s2879_s24 = scalar_lea.hbm %s3696_s0, 6656 }
  0x42   : > { %p2875_p3 = scmp.ne.s32.totalorder %s3165_s26, %s2874_s4  ;;  %p2880_p1 = scmp.lt.u32.totalorder %s3165_s26, %s3696_s0 }
  0x43   : > { %p2881_p2 = scmp.lt.u32.totalorder %s2879_s24, %s2874_s4  ;;  %p2883_p6 = scmp.lt.u32.totalorder %s2874_s4, %s3165_s26 }
  0x44   : > { %p2877_p7 = pnand %p2876_p5, %p2875_p3 }
  0x45   : > { %p2882_p4 = por %p2881_p2, %p2880_p1 }
  0x46   : > { %p2878_p9 = pneg %p2877_p7 }
  0x47   : > { %p2884_p8 = por %p2883_p6, %p2882_p4 }
  0x49   : > { %p2885_p10 = pnand %p2884_p8, %p2878_p9 }
  0x4b   : > { %2888 = shalt.err (!%p2885_p10)
}
  0x4c   : > { %s2889_s25 = scalar_lea.vmem %s3160_s8, 832  ;;  %s3011_s30 = smov [#allocation3]  }
  0x4d   : > { %p2890_p12 = scmp.ne.s32.totalorder %s3160_s8, %s2889_s25  ;;  %s2894_s5 = sshll.u32 %s3011_s30, 4  ;;  %s2895_s5 = int_to_ptr.vmem [resolvable:$false] %s2894_s5 }
  0x4e   : > { %s2896_s6 = scalar_lea.vmem %s2895_s5, 1664  ;;  %p2897_p7 = scmp.lt.s32.totalorder %s3160_s8, %s2895_s5 }
  0x4f   : > { %p2892_p13 = pnand %p2890_p12, %p2876_p5  ;;  %p2898_p1 = scmp.lt.s32.totalorder %s2896_s6, %s2889_s25 }
  0x51   : > { %p2893_p3 = pneg %p2892_p13  ;;  %p2899_p2 = por %p2898_p1, %p2897_p7 }
  0x53   : > { %p2900_p4 = pnand %p2899_p2, %p2893_p3 }
  0x55   : > { %2903 = shalt.err (!%p2900_p4)
}
  0x56   : > { %s3720_s18 = smov 4   ;;  %s3721_s4 = smov 64  }
  0x57   : > { %2701 = dma.hbm_to_vmem [thread:$0]  (!%p3153_p0), %s3165_s26, 832, %s3160_s8, %s3167_s3, %s3721_s4, %s3721_s4, %s3720_s18  }
  0x58   : > { %p3722_p5 = scmp.ne.s32.totalorder %s3712_s23, 0 }
  0x59   : > { %s3201_s7 = sand.u32 (!%p3722_p5), 1, %s2982_s10   ;;  %p3723_p9 = scmp.ne.s32.totalorder (!%p3722_p5), %s3710_s21, 0 }
  0x5a   : > { %164 = sbr.rel (%p3722_p5) target bundleno = 540 (0x21c), region = 28  ;;  %s167_s24 = scalar_lea.sflag (!%p3722_p5), [#allocation4], %s3201_s7 }
  0x5b   : > { %s2682_s28 = smul.u32 (!%p3722_p5), 52, %s3201_s7 }
  0x5d   : > { %s3205_s1 = scalar_lea.vmem (!%p3722_p5), [#allocation3], %s2682_s28 }
  0x61   : > { %2965 = dma.done.wait (%p3723_p9), %s167_s24, 832  }
  0x62   : > { %2967 = vsyncadd (%p3723_p9), %s167_s24, 4294966464  ;;  %p3724_p0 = scmp.ne.s32.totalorder %s3708_s19, 0 }
  0x64   : > { %2969 = dma.done.wait (%p3724_p0), [#allocation7], 4608  }
  0x65   : > { %2971 = vsyncadd (%p3724_p0), [#allocation7], 4294962688  ;;  %s2683_s23 = smul.u32 40, %s3201_s7  ;;  %p2016_p6 = scmp.ne.s32.totalorder %s2990_s12, 0 }
  0x66   : > { %v3012_v0 = vmov (!%p2016_p6), 0.0  }
  0x67   : > { %s3216_s8 = scalar_lea.vmem [#allocation8], %s2683_s23  ;;  %199 = sbr.rel (%p2016_p6) target bundleno = 110 (0x6e), region = 40  ;;  %200 = vst [vmem:[#allocation2] sm:$0xff] (!%p2016_p6), %v3012_v0  ;;  %201 = vst [vmem:[#allocation2 + $0x8] sm:$0xff] (!%p2016_p6), %v3012_v0 }
  0x68   : > { %202 = vst [vmem:[#allocation2 + $0x10] sm:$0xff] (!%p2016_p6), %v3012_v0  ;;  %203 = vst [vmem:[#allocation2 + $0x18] sm:$0xff] (!%p2016_p6), %v3012_v0 }
  0x69   : > { %204 = vst [vmem:[#allocation2 + $0x20] sm:$0xff] (!%p2016_p6), %v3012_v0  ;;  %205 = vst [vmem:[#allocation2 + $0x28] sm:$0xff] (!%p2016_p6), %v3012_v0 }
  0x6a   : > { %206 = vst [vmem:[#allocation2 + $0x30] sm:$0xff] (!%p2016_p6), %v3012_v0  ;;  %207 = vst [vmem:[#allocation2 + $0x38] sm:$0xff] (!%p2016_p6), %v3012_v0 }
  0x6b   : > { %208 = vst [vmem:[#allocation2 + $0x40] sm:$0xff] (!%p2016_p6), %v3012_v0  ;;  %209 = vst [vmem:[#allocation2 + $0x48] sm:$0xff] (!%p2016_p6), %v3012_v0 }
  0x6e PF: > { %v2782_v1 = vld [vmem:[#allocation6] sm:$0xff]   ;;  %v3013_v2 = vmov 0.0   ;;  %v2784_v4 = vld [vmem:[#allocation6 + $0x8] sm:$0xff]   ;;  %vm3014_vm0 = vmmov 0   ;;  %v2786_v6 = vld [vmem:[#allocation6 + $0x10] sm:$0xff]   ;;  %vm297_vm1 = vcmask 523264  }
  0x6f   : > { %2259 = vmatprep.subr.bf16.mxu1 %v3013_v2  ;;  %2371 = vmatprep.subr.bf16.mxu0 %v3013_v2  ;;  %v3221_v3 = vld [vmem:[#allocation6 + $0x80] sm:$0xff]   ;;  %v3227_v5 = vld [vmem:[#allocation6 + $0x88] sm:$0xff]   ;;  %v3234_v7 = vld [vmem:[#allocation6 + $0x90] sm:$0xff]   ;;  %vm952_vm2 = vsmask.f32 6400  ;;  %vm624_vm3 = vcmask 1046528  }
  0x70   : > { %2260 = vmatpush3.bf16.msra.mxu1 %v2782_v1  ;;  %2267 = vmatprep.mubr.msk.bf16.mxu1 %vm3014_vm0, %v3013_v2  ;;  %v2788_v8 = vld [vmem:[#allocation6 + $0x18] sm:$0xff]   ;;  %v3239_v10 = vld [vmem:[%s3205_s1 + $0x8] sm:$0xf]  ;;  %v3257_v27 = vld [vmem:[%s3205_s1 + $0x14] sm:$0xff]   ;;  %vm1141_vm4 = vcmask 1045504   ;;  %vm1658_vm6 = vcmask 1044480  }
  0x71   : > { %2372 = vmatpush3.bf16.msra.mxu0 %v3221_v3  ;;  %2261 = vmatprep.subr.bf16.mxu1 %v3013_v2  ;;  %v758_v9 = vld [vmem:[%s3205_s1 + $0x4] sm:$0xe]  ;;  %v3245_v13 = vld [vmem:[%s3205_s1 + $0xc] sm:$0xff]   ;;  %v971_v31 = vshrl.u32 %v3257_v27, 16  ;;  %v974_v32 = vshll.u32 %v3257_v27, 16  ;;  %v809_v42 = vrot.slane %v3257_v27, 1 }
  0x72   : > { %2373 = vmatprep.subr.bf16.mxu0 %v3013_v2  ;;  %2379 = vmatprep.mubr.msk.bf16.mxu0 %vm3014_vm0, %v3013_v2  ;;  %v3241_v11 = vld [vmem:[#allocation6 + $0x98] sm:$0xff]   ;;  %v2056_v12 = vcombine.low %v758_v9, %v3239_v10  ;;  %v962_v17 = vshrl.u32 %v3245_v13, 16  ;;  %v965_v18 = vshll.u32 %v3245_v13, 16  ;;  %v2793_v23 = vld [vmem:[#allocation6 + $0x20] sm:$0xff]   ;;  %v807_v29 = vrot.slane %v3245_v13, 1  ;;  %v2799_v33 = vld [vmem:[#allocation6 + $0x28] sm:$0xff]  }
  0x73   : > { %v2790_v14 = vld [vmem:[%s3205_s1] sm:$0xff]   ;;  %v2794_v24 = vld [vmem:[#allocation6 + $0xa0] sm:$0xff]   ;;  %v973_v37 = vrot.slane %v971_v31, 1  ;;  %v976_v38 = vrot.slane %v974_v32, 2  ;;  %v1143_v50 = vrot.slane %v3245_v13, 2  ;;  %v1145_v54 = vrot.slane %v3257_v27, 2 }
  0x74   : > { %2262 = vmatpush3.bf16.msra.mxu1 %v2784_v4  ;;  %v954_v15 = vshrl.u32 %v2056_v12, 16  ;;  %v957_v16 = vshll.u32 %v2056_v12, 16  ;;  %v964_v21 = vrot.slane %v962_v17, 1  ;;  %v967_v22 = vrot.slane %v965_v18, 2  ;;  %v2795_v35 = vld [vmem:[#allocation6 + $0xa8] sm:$0xff]   ;;  %v2796_v36 = vld [vmem:[%s3205_s1 + $0x8] sm:$0xff]  }
  0x75   : > { %2374 = vmatpush3.bf16.msra.mxu0 %v3227_v5  ;;  %2263 = vmatprep.subr.bf16.mxu1 %v3013_v2  ;;  %v806_v28 = vrot.slane %v2056_v12, 1  ;;  %v1128_v39 = vld [vmem:[%s3205_s1 + $0x4] sm:$0xc]  ;;  %v3276_v40 = vor.u32 %v976_v38, %v973_v37  ;;  %v3288_v46 = vsel %vm624_vm3, %v807_v29, %v809_v42  ;;  %v2801_v51 = vld [vmem:[%s3205_s1 + $0x10] sm:$0xff]   ;;  %v396_v56 = vld [vmem:[%s3205_s1] sm:$0xf]  ;;  %v1146_v61 = vsel %vm1141_vm4, %v1143_v50, %v1145_v54 }
  0x76   : > { %2375 = vmatprep.subr.bf16.mxu0 %v3013_v2  ;;  %v956_v19 = vrot.slane %v954_v15, 1  ;;  %v959_v20 = vrot.slane %v957_v16, 2  ;;  %v968_v26 = vor.u32 %v967_v22, %v964_v21  ;;  %v2803_v41 = vld [vmem:[#allocation6 + $0x30] sm:$0xff]   ;;  %v2081_v45 = vcombine.low %v1128_v39, %v3239_v10  ;;  %v2806_v47 = vld [vmem:[#allocation6 + $0x38] sm:$0xff]   ;;  %v2805_v53 = vld [vmem:[#allocation6 + $0xc0] sm:$0xff]   ;;  %s2684_s19 = smul.u32 10, %s2990_s12 }
  0x77   : > { %v3269_v34 = vsel %vm624_vm3, %v806_v28, %v807_v29  ;;  %v2798_v44 = vld [vmem:[#allocation6 + $0xb0] sm:$0xff]   ;;  %v2800_v48 = vld [vmem:[#allocation6 + $0xb8] sm:$0xff]   ;;  %v2809_v55 = vld [vmem:[#allocation6 + $0xc8] sm:$0xff]   ;;  %vm444_vm5 = vsmask.f32 7424  ;;  %s2685_s21 = smul.u32 40, %s2994_s13 }
  0x78   : > { %2264 = vmatpush3.bf16.msra.mxu1 %v2786_v6  ;;  %v960_v25 = vor.u32 %v959_v20, %v956_v19  ;;  %v978_v43 = vsel %vm952_vm2, %v968_v26, %v3276_v40  ;;  %v1142_v49 = vrot.slane %v2081_v45, 2  ;;  %v3309_v57 = vld [vmem:[%s3205_s1 + $0x4] sm:$0xf]  ;;  %v2804_v58 = vld [vmem:[%s3205_s1 + $0x18] sm:$0xff]   ;;  %v3325_v63 = vld [vmem:[%s3205_s1 + $0x8] sm:$0xff]   ;;  %s1908_s13 = sshll.u32 %s3216_s8, 4  ;;  %s3636_s13 = int_to_ptr.vmem [resolvable:$true] %s1908_s13 }
  0x79   : > { %2376 = vmatpush3.bf16.msra.mxu0 %v3234_v7  ;;  %2265 = vmatprep.subr.bf16.mxu1 %v3013_v2  ;;  %v2031_v59 = vcombine.low %v396_v56, %v3309_v57  ;;  %v3317_v60 = vld [vmem:[%s3205_s1 + $0x1c] sm:$0xff]   ;;  %v453_v10 = vshll.u32 %v3325_v63, 16  ;;  %v3336_v13 = vld [vmem:[%s3205_s1 + $0x24] sm:$0xff]   ;;  %v3343_v16 = vld [vmem:[%s3205_s1 + $0x10] sm:$0xff]   ;;  %v457_v20 = vshrl.u32 %v3325_v63, 16  ;;  %s1905_s12 = sadd.s32 %s2685_s21, %s2684_s19  ;;  %s1893_s25 = scalar_lea.sflag [#allocation5], %s3201_s7 }
  0x7a   : > { %2377 = vmatprep.subr.bf16.mxu0 %v3013_v2  ;;  %v969_v30 = vsel %vm952_vm2, %v960_v25, %v968_v26  ;;  %v1144_v52 = vsel %vm1141_vm4, %v1142_v49, %v1143_v50  ;;  %v2814_v62 = vld [vmem:[#allocation6 + $0xd0] sm:$0xff]   ;;  %v1147_v1 = vrot.slane %v3317_v60, 2  ;;  %v2818_v4 = vld [vmem:[#allocation6 + $0xd8] sm:$0xff]   ;;  %v1149_v17 = vrot.slane %v3336_v13, 2  ;;  %v2813_v18 = vld [vmem:[#allocation6 + $0x40] sm:$0xff]   ;;  %s2146_s17 = sshll.u32 %s1905_s12, 6 }
  0x7b   : > { %v448_v0 = vshll.u32 %v2031_v59, 16  ;;  %v2807_v6 = vld [vmem:[%s3205_s1 + $0x20] sm:$0xff]   ;;  %v455_v15 = vrot.slane %v453_v10, 1  ;;  %v461_v21 = vshll.u32 %v3343_v16, 16  ;;  %v3360_v28 = vld [vmem:[%s3205_s1 + $0x18] sm:$0xff]   ;;  %v813_v49 = vrot.slane %v3336_v13, 1  ;;  %s3641_s27 = scalar_lea.hbm %s3698_s2, %s2146_s17 }
  0x7c   : > { %2266 = vmatpush3.bf16.msra.mxu1 %v2788_v8  ;;  %v446_v8 = vshrl.u32 %v2031_v59, 16  ;;  %v1148_v12 = vsel %vm1141_vm4, %v1145_v54, %v1147_v1  ;;  %v1150_v22 = vsel %vm1141_vm4, %v1147_v1, %v1149_v17  ;;  %v2817_v26 = vld [vmem:[#allocation6 + $0x48] sm:$0xff]   ;;  %v1275_v31 = vld [vmem:[%s3205_s1 + $0x8] sm:$0xc]  ;;  %v1276_v32 = vld [vmem:[%s3205_s1 + $0xc] sm:$0xf] }
  0x7d   : > { %2378 = vmatpush3.bf16.msra.mxu0 %v3241_v11  ;;  %2287 = vmatprep.subr.bf16.mxu1 %v3013_v2  ;;  %v450_v9 = vrot.slane %v448_v0, 1  ;;  %v463_v25 = vrot.slane %v461_v21, 1  ;;  %v2822_v37 = vld [vmem:[#allocation6 + $0x50] sm:$0xff]   ;;  %v473_v56 = vshrl.u32 %v3360_v28, 16  ;;  %v983_v10 = vshll.u32 %v3317_v60, 16  ;;  %s2904_s30 = scalar_lea.vmem %s3636_s13, 640 }
  0x7e   : > { %2399 = vmatprep.subr.bf16.mxu0 %v3013_v2  ;;  %v3377_v38 = vld [vmem:[%s3205_s1 + $0x18] sm:$0xff]   ;;  %v3415_v0 = vld [vmem:[%s3205_s1 + $0x28] sm:$0xff]   ;;  %vm1469_vm7 = vsmask.f32 5376  ;;  %p2905_p8 = scmp.ne.s32.totalorder %s3636_s13, %s2904_s30  ;;  %s3015_s5 = smov [#allocation8]  }
  0x7f   : > { %2268 = vmatmul.mubr.msk.bf16.vlgmr.msra.gmra.mrb[0].mxu1 %vm297_vm1, %v2790_v14  ;;  %v451_v14 = vor.u32 %v450_v9, %v446_v8  ;;  %v1662_v50 = vrot.slane %v3377_v38, 3  ;;  %s2908_s6 = sshll.u32 %s3015_s5, 4  ;;  %s2909_s6 = int_to_ptr.vmem [resolvable:$false] %s2908_s6 }
  0x80   : > { %2288 = vmatpush3.bf16.msra.mxu1 %v2793_v23  ;;  %2271 = vmatprep.mubr.msk.bf16.mxu1 %vm3014_vm0, %v3013_v2  ;;  %v3354_v23 = vld [vmem:[%s3205_s1 + $0x2c] ss:$0 sps:$4 sm:$0x33]   ;;  %p2906_p10 = pnand %p2905_p8, %p3141_p11  ;;  %s2910_s18 = scalar_lea.vmem %s2909_s6, 1280 }
  0x81   : > { %2380 = vmatmul.mubr.msk.bf16.vlgmr.msra.gmra.mrb[0].mxu0 %vm297_vm1, %v969_v30  ;;  %2289 = vmatprep.subr.bf16.mxu1 %v3013_v2  ;;  %v456_v19 = vsel %vm444_vm5, %v451_v14, %v455_v15  ;;  %v1151_v29 = vrot.slane %v3354_v23, 2  ;;  %v465_v30 = vshrl.u32 %v3343_v16, 16  ;;  %p2911_p13 = scmp.lt.s32.totalorder %s3636_s13, %s2909_s6  ;;  %p2912_p3 = scmp.lt.s32.totalorder %s2910_s18, %s2904_s30 }
  0x82   : > { %2400 = vmatpush3.bf16.msra.mxu0 %v2794_v24  ;;  %2383 = vmatprep.mubr.msk.bf16.mxu0 %vm3014_vm0, %v3013_v2  ;;  %v459_v24 = vor.u32 %v457_v20, %v455_v15  ;;  %v1666_v15 = vrot.slane %v3415_v0, 3  ;;  %v985_v20 = vrot.slane %v983_v10, 2  ;;  %v626_v10 = vrot.slane %v3325_v63, 1  ;;  %p2907_p12 = pneg %p2906_p10 }
  0x83   : > { %2401 = vmatprep.subr.bf16.mxu0 %v3013_v2  ;;  %v1152_v39 = vsel %vm1141_vm4, %v1149_v17, %v1151_v29  ;;  %v467_v45 = vor.u32 %v465_v30, %v463_v25  ;;  %v989_v17 = vshrl.u32 %v3336_v13, 16  ;;  %v998_v30 = vshrl.u32 %v3354_v23, 16  ;;  %p2913_p7 = por %p2912_p3, %p2911_p13 }
  0x84   : > { %2290 = vmatpush3.bf16.msra.mxu1 %v2799_v33  ;;  %v464_v33 = vsel %vm444_vm5, %v459_v24, %v463_v25  ;;  %v628_v63 = vrot.slane %v3343_v16, 1  ;;  %v2837_v16 = vld [vmem:[#allocation6 + $0x70] sm:$0xff]  }
  0x85   : > { %2291 = vmatprep.subr.bf16.mxu1 %v3013_v2  ;;  %v991_v25 = vrot.slane %v989_v17, 1  ;;  %v2834_v17 = vld [vmem:[%s3205_s1 + $0x30] ss:$0 sps:$4 sm:$0x33]   ;;  %p2914_p1 = pnand %p2913_p7, %p2907_p12 }
  0x86   : > { %2402 = vmatpush3.bf16.msra.mxu0 %v2795_v35  ;;  %v469_v35 = vshll.u32 %v3360_v28, 16 }
  0x87   : > { %2272 = vmatmul.mubr.msk.bf16.gmra.mrb[4].mxu1 %vm297_vm1, %v2796_v36  ;;  %2403 = vmatprep.subr.bf16.mxu0 %v3013_v2  ;;  %v3373_v36 = vld [vmem:[%s3205_s1 + $0x10] sm:$0xff]  }
  0x88   : > { %2275 = vmatprep.mubr.msk.bf16.mxu1 %vm3014_vm0, %v3013_v2  ;;  %2292 = vmatpush3.bf16.msra.mxu1 %v2803_v41  ;;  %v3380_v41 = vcombine.low %v1275_v31, %v1276_v32  ;;  %v1001_v31 = vshll.u32 %v3354_v23, 16  ;;  %v1326_v23 = vrot.slane %v3377_v38, 2 }
  0x89   : > { %2384 = vmatmul.mubr.msk.bf16.gmra.mrb[4].mxu0 %vm297_vm1, %v978_v43  ;;  %2293 = vmatprep.subr.bf16.mxu1 %v3013_v2  ;;  %v3383_v43 = vld [vmem:[%s3205_s1 + $0x20] sm:$0xff]  }
  0x8a   : > { %2404 = vmatpush3.bf16.msra.mxu0 %v2798_v44  ;;  %2407 = vmatprep.mubr.msk.bf16.mxu0 %vm3014_vm0, %v3013_v2  ;;  %v811_v44 = vrot.slane %v3317_v60, 1  ;;  %v1323_v27 = vrot.slane %v3380_v41, 2 }
  0x8b   : > { %2405 = vmatprep.subr.bf16.mxu0 %v3013_v2 }
  0x8c   : > { %2294 = vmatpush3.bf16.msra.mxu1 %v2806_v47  ;;  %v3388_v47 = vld [vmem:[%s3205_s1 + $0x20] sm:$0xff]   ;;  %v3399_v54 = vsel %vm624_vm3, %v809_v42, %v811_v44  ;;  %v3406_v59 = vsel %vm624_vm3, %v811_v44, %v813_v49  ;;  %v477_v42 = vshll.u32 %v3383_v43, 16  ;;  %v1003_v44 = vrot.slane %v1001_v31, 2 }
  0x8d   : > { %2315 = vmatprep.subr.bf16.mxu1 %v3013_v2 }
  0x8e   : > { %2406 = vmatpush3.bf16.msra.mxu0 %v2800_v48  ;;  %v1645_v48 = vld [vmem:[%s3205_s1 + $0x8] sm:$0x8] }
  0x8f   : > { %2276 = vmatmul.mubr.msk.bf16.gmra.mrb[8].mxu1 %vm297_vm1, %v2801_v51  ;;  %2427 = vmatprep.subr.bf16.mxu0 %v3013_v2  ;;  %v471_v51 = vrot.slane %v469_v35, 1 }
  0x90   : > { %2279 = vmatprep.mubr.msk.bf16.mxu1 %vm3014_vm0, %v3013_v2 }
  0x91   : > { %2408 = vmatmul.mubr.msk.bf16.vlgmr.msra.gmra.mrb[0].mxu0 %vm297_vm1, %v1144_v52  ;;  %v1324_v52 = vrot.slane %v3373_v36, 2 }
  0x92   : > { %2411 = vmatprep.mubr.msk.bf16.mxu0 %vm3014_vm0, %v3013_v2  ;;  %2428 = vmatpush3.bf16.msra.mxu0 %v2805_v53  ;;  %v2826_v53 = vld [vmem:[#allocation6 + $0x58] sm:$0xff]  }
  0x93   : > { %2429 = vmatprep.subr.bf16.mxu0 %v3013_v2  ;;  %v1325_v21 = vsel %vm1141_vm4, %v1323_v27, %v1324_v52  ;;  %v1328_v27 = vrot.slane %v3388_v47, 2 }
  0x96   : > { %2430 = vmatpush3.bf16.msra.mxu0 %v2809_v55  ;;  %v1660_v55 = vrot.slane %v3373_v36, 3 }
  0x97   : > { %2280 = vmatmul.mubr.msk.bf16.gmra.mrb[12].mxu1 %vm297_vm1, %v2804_v58  ;;  %2431 = vmatprep.subr.bf16.mxu0 %v3013_v2  ;;  %v2116_v58 = vcombine.low %v1645_v48, %v1276_v32  ;;  %v479_v32 = vrot.slane %v477_v42, 1 }
  0x98   : > { %2283 = vmatprep.mubr.msk.bf16.mxu1 %vm3014_vm0, %v3013_v2  ;;  %v3418_v1 = vsel %vm1658_vm6, %v1660_v55, %v1662_v50 }
  0x99   : > { %2412 = vmatmul.mubr.msk.bf16.gmra.mrb[4].mxu0 %vm297_vm1, %v1146_v61  ;;  %v2845_v61 = vld [vmem:[%s3205_s1 + $0x2c] ss:$0 sps:$4 sm:$0x11]  }
  0x9a   : > { %2415 = vmatprep.mubr.msk.bf16.mxu0 %vm3014_vm0, %v3013_v2  ;;  %2432 = vmatpush3.bf16.msra.mxu0 %v2814_v62  ;;  %v1664_v62 = vrot.slane %v3388_v47, 3  ;;  %v815_v8 = vrot.slane %v2845_v61, 1 }
  0x9b   : > { %2433 = vmatprep.subr.bf16.mxu0 %v3013_v2 }
  0x9c   : > { %v3422_v9 = vsel %vm1658_vm6, %v1662_v50, %v1664_v62  ;;  %v3440_v24 = vsel %vm1658_vm6, %v1664_v62, %v1666_v15  ;;  %v481_v50 = vshrl.u32 %v3383_v43, 16  ;;  %v611_v62 = vld [vmem:[%s3205_s1] sm:$0xe] }
  0x9e   : > { %2434 = vmatpush3.bf16.msra.mxu0 %v2818_v4  ;;  %v980_v4 = vshrl.u32 %v3317_v60, 16  ;;  %v992_v60 = vshll.u32 %v3336_v13, 16  ;;  %v475_v13 = vor.u32 %v473_v56, %v471_v51  ;;  %v2833_v56 = vld [vmem:[#allocation6 + $0xf0] sm:$0xff]  }
  0x9f   : > { %2284 = vmatmul.mubr.msk.bf16.gmra.mrb[16].mxu1 %vm297_vm1, %v2807_v6  ;;  %2455 = vmatprep.subr.bf16.mxu0 %v3013_v2  ;;  %v1659_v6 = vrot.slane %v2116_v58, 3  ;;  %v483_v58 = vor.u32 %v481_v50, %v479_v32 }
  0xa0   : > { %2295 = vmatprep.mubr.msk.bf16.mxu1 %vm3014_vm0, %v3013_v2  ;;  %v982_v14 = vrot.slane %v980_v4, 1  ;;  %v994_v29 = vrot.slane %v992_v60, 2  ;;  %v2046_v4 = vcombine.low %v611_v62, %v3309_v57  ;;  %v1330_v57 = vrot.slane %v3415_v0, 2  ;;  %v2835_v60 = vld [vmem:[#allocation6 + $0x68] sm:$0xff]  }
  0xa1   : > { %2416 = vmatmul.mubr.msk.bf16.gmra.mrb[8].mxu0 %vm297_vm1, %v1148_v12  ;;  %v472_v12 = vsel %vm444_vm5, %v467_v45, %v471_v51  ;;  %v2829_v45 = vld [vmem:[#allocation6 + $0xe8] sm:$0xff]  }
  0xa2   : > { %2419 = vmatprep.mubr.msk.bf16.mxu0 %vm3014_vm0, %v3013_v2  ;;  %v2840_v62 = vld [vmem:[#allocation6 + $0x108] sm:$0xff]  }
  0xa7   : > { %2296 = vmatmul.mubr.msk.bf16.vlgmr.msra.gmra.mrb[0].mxu1 %vm297_vm1, %v456_v19  ;;  %v3433_v19 = vsel %vm624_vm3, %v813_v49, %v815_v8  ;;  %v625_v8 = vrot.slane %v2046_v4, 1  ;;  %v2841_v4 = vld [vmem:[#allocation6 + $0x110] sm:$0xff]  }
  0xa8   : > { %2316 = vmatpush3.bf16.msra.mxu1 %v2813_v18  ;;  %2299 = vmatprep.mubr.msk.bf16.mxu1 %vm3014_vm0, %v3013_v2  ;;  %v3430_v18 = vsel %vm1658_vm6, %v1659_v6, %v1660_v55  ;;  %v1327_v55 = vsel %vm1141_vm4, %v1324_v52, %v1326_v23  ;;  %v2836_v52 = vld [vmem:[#allocation6 + $0xf8] sm:$0xff]   ;;  %v1329_v6 = vsel %vm1141_vm4, %v1326_v23, %v1328_v27 }
  0xa9   : > { %2420 = vmatmul.mubr.msk.bf16.gmra.mrb[12].mxu0 %vm297_vm1, %v1150_v22  ;;  %2317 = vmatprep.subr.bf16.mxu1 %v3013_v2  ;;  %v2825_v22 = vld [vmem:[#allocation6 + $0xe0] sm:$0xff]  }
  0xaa   : > { %2423 = vmatprep.mubr.msk.bf16.mxu0 %vm3014_vm0, %v3013_v2 }
  0xac   : > { %2318 = vmatpush3.bf16.msra.mxu1 %v2817_v26  ;;  %v986_v26 = vor.u32 %v985_v20, %v982_v14  ;;  %v2832_v14 = vld [vmem:[#allocation6 + $0x60] sm:$0xff]   ;;  %v1331_v20 = vsel %vm1141_vm4, %v1328_v27, %v1330_v57 }
  0xad   : > { %2319 = vmatprep.subr.bf16.mxu1 %v3013_v2 }
  0xae   : > { %v3453_v35 = vsel %vm952_vm2, %v3276_v40, %v986_v26  ;;  %v480_v40 = vsel %vm444_vm5, %v475_v13, %v479_v32 }
  0xaf   : > { %2300 = vmatmul.mubr.msk.bf16.gmra.mrb[4].mxu1 %vm297_vm1, %v464_v33  ;;  %v3448_v33 = vld [vmem:[%s3205_s1 + $0x28] ss:$0 sps:$4 sm:$0x11]  }
  0xb0   : > { %2303 = vmatprep.mubr.msk.bf16.mxu1 %vm3014_vm0, %v3013_v2  ;;  %2320 = vmatpush3.bf16.msra.mxu1 %v2822_v37  ;;  %v995_v37 = vor.u32 %v994_v29, %v991_v25  ;;  %v485_v51 = vshll.u32 %v3448_v33, 16  ;;  %v1474_v25 = vshll.u32 %v3380_v41, 16  ;;  %v1482_v29 = vshll.u32 %v3373_v36, 16 }
  0xb1   : > { %2424 = vmatmul.mubr.msk.bf16.gmra.mrb[16].mxu0 %vm297_vm1, %v1152_v39  ;;  %2321 = vmatprep.subr.bf16.mxu1 %v3013_v2  ;;  %v1000_v39 = vrot.slane %v998_v30, 1  ;;  %v629_v30 = vsel %vm624_vm3, %v626_v10, %v628_v63 }
  0xb2   : > { %2435 = vmatprep.mubr.msk.bf16.mxu0 %vm3014_vm0, %v3013_v2  ;;  %v3460_v48 = vsel %vm952_vm2, %v986_v26, %v995_v37  ;;  %v487_v61 = vrot.slane %v485_v51, 1  ;;  %v1479_v26 = vshrl.u32 %v3373_v36, 16  ;;  %v1476_v32 = vrot.slane %v1474_v25, 3  ;;  %v2839_v36 = vld [vmem:[#allocation6 + $0x78] sm:$0xff]  }
  0xb3   : > { %v1004_v49 = vor.u32 %v1003_v44, %v1000_v39  ;;  %v1484_v39 = vrot.slane %v1482_v29, 3 }
  0xb4   : > { %2322 = vmatpush3.bf16.msra.mxu1 %v2826_v53  ;;  %v488_v42 = vsel %vm444_vm5, %v483_v58, %v487_v61  ;;  %v1497_v58 = vshrl.u32 %v3388_v47, 16  ;;  %v1500_v61 = vshll.u32 %v3388_v47, 16  ;;  %v634_v47 = vrot.slane %v3448_v33, 1 }
  0xb5   : > { %2343 = vmatprep.subr.bf16.mxu1 %v3013_v2  ;;  %v3466_v53 = vsel %vm952_vm2, %v995_v37, %v1004_v49  ;;  %v1481_v37 = vrot.slane %v1479_v26, 2  ;;  %v1491_v49 = vshll.u32 %v3377_v38, 16 }
  0xb7   : > { %2304 = vmatmul.mubr.msk.bf16.gmra.mrb[8].mxu1 %vm297_vm1, %v472_v12  ;;  %v627_v12 = vsel %vm624_vm3, %v625_v8, %v626_v10  ;;  %v1485_v23 = vor.u32 %v1484_v39, %v1481_v37  ;;  %v1493_v51 = vrot.slane %v1491_v49, 3  ;;  %v1506_v8 = vshrl.u32 %v3415_v0, 16 }
  0xb8   : > { %2307 = vmatprep.mubr.msk.bf16.mxu1 %vm3014_vm0, %v3013_v2  ;;  %v1509_v10 = vshll.u32 %v3415_v0, 16  ;;  %v210_v0 = vld [vmem:[#allocation2] sm:$0xff] }
  0xb9   : > { %2436 = vmatmul.mubr.msk.bf16.vlgmr.msra.gmra.mrb[0].mxu0 %vm297_vm1, %v1325_v21  ;;  %v1332_v21 = vrot.slane %v2834_v17, 2  ;;  %v1508_v17 = vrot.slane %v1506_v8, 2 }
  0xba   : > { %2439 = vmatprep.mubr.msk.bf16.mxu0 %vm3014_vm0, %v3013_v2  ;;  %2456 = vmatpush3.bf16.msra.mxu0 %v2825_v22  ;;  %v1471_v22 = vshrl.u32 %v3380_v41, 16  ;;  %v630_v41 = vrot.slane %v3360_v28, 1  ;;  %v1511_v33 = vrot.slane %v1509_v10, 3  ;;  %v215_v10 = vld [vmem:[#allocation2 + $0x28] sm:$0xff] }
  0xbb   : > { %2457 = vmatprep.subr.bf16.mxu0 %v3013_v2  ;;  %v1333_v31 = vsel %vm1141_vm4, %v1330_v57, %v1332_v21  ;;  %v2843_v57 = vld [vmem:[#allocation6 + $0x118] sm:$0xff]  }
  0xbc   : > { %v1473_v13 = vrot.slane %v1471_v22, 2 }
  0xbe   : > { %2458 = vmatpush3.bf16.msra.mxu0 %v2829_v45  ;;  %v1477_v44 = vor.u32 %v1476_v32, %v1473_v13  ;;  %v1488_v45 = vshrl.u32 %v3377_v38, 16  ;;  %v213_v32 = vld [vmem:[#allocation2 + $0x18] sm:$0xff] }
  0xbf   : > { %2308 = vmatmul.mubr.msk.bf16.gmra.mrb[12].mxu1 %vm297_vm1, %v480_v40  ;;  %2459 = vmatprep.subr.bf16.mxu0 %v3013_v2  ;;  %v631_v40 = vsel %vm624_vm3, %v628_v63, %v630_v41  ;;  %v1512_v63 = vor.u32 %v1511_v33, %v1508_v17 }
  0xc0   : > { %2311 = vmatprep.mubr.msk.bf16.mxu1 %vm3014_vm0, %v3013_v2  ;;  %v1486_v28 = vsel %vm1469_vm7, %v1477_v44, %v1485_v23  ;;  %v1490_v50 = vrot.slane %v1488_v45, 2  ;;  %v223_v44 = vmul.f32 0.95, %v213_v32 }
  0xc1   : > { %2440 = vmatmul.mubr.msk.bf16.gmra.mrb[4].mxu0 %vm297_vm1, %v1327_v55  ;;  %v2838_v55 = vld [vmem:[#allocation6 + $0x100] sm:$0xff]  }
  0xc2   : > { %2443 = vmatprep.mubr.msk.bf16.mxu0 %vm3014_vm0, %v3013_v2  ;;  %2460 = vmatpush3.bf16.msra.mxu0 %v2833_v56  ;;  %v632_v56 = vrot.slane %v3383_v43, 1  ;;  %v1494_v38 = vor.u32 %v1493_v51, %v1490_v50  ;;  %v1502_v43 = vrot.slane %v1500_v61, 3 }
  0xc3   : > { %2461 = vmatprep.subr.bf16.mxu0 %v3013_v2 }
  0xc4   : > { %v633_v27 = vsel %vm624_vm3, %v630_v41, %v632_v56 }
  0xc6   : > { %2462 = vmatpush3.bf16.msra.mxu0 %v2836_v52  ;;  %v1495_v52 = vsel %vm1469_vm7, %v1485_v23, %v1494_v38 }
  0xc7   : > { %2312 = vmatmul.mubr.msk.bf16.gmra.mrb[16].mxu1 %vm297_vm1, %v488_v42  ;;  %2483 = vmatprep.subr.bf16.mxu0 %v3013_v2  ;;  %v1499_v42 = vrot.slane %v1497_v58, 2 }
  0xc8   : > { %2323 = vmatprep.mubr.msk.bf16.mxu1 %vm3014_vm0, %v3013_v2 }
  0xc9   : > { %2444 = vmatmul.mubr.msk.bf16.gmra.mrb[8].mxu0 %vm297_vm1, %v1329_v6  ;;  %v1503_v6 = vor.u32 %v1502_v43, %v1499_v42 }
  0xca   : > { %2447 = vmatprep.mubr.msk.bf16.mxu0 %vm3014_vm0, %v3013_v2 }
  0xcb   : > { %v1513_v22 = vsel %vm1469_vm7, %v1503_v6, %v1512_v63 }
  0xcf   : > { %2324 = vmatmul.mubr.msk.bf16.vlgmr.msra.gmra.mrb[0].mxu1 %vm297_vm1, %v627_v12  ;;  %v635_v12 = vsel %vm624_vm3, %v632_v56, %v634_v47  ;;  %v214_v47 = vld [vmem:[#allocation2 + $0x20] sm:$0xff] }
  0xd0   : > { %2344 = vmatpush3.bf16.msra.mxu1 %v2832_v14  ;;  %2327 = vmatprep.mubr.msk.bf16.mxu1 %vm3014_vm0, %v3013_v2  ;;  %v1504_v14 = vsel %vm1469_vm7, %v1494_v38, %v1503_v6 }
  0xd1   : > { %2448 = vmatmul.mubr.msk.bf16.gmra.mrb[12].mxu0 %vm297_vm1, %v1331_v20  ;;  %2345 = vmatprep.subr.bf16.mxu1 %v3013_v2  ;;  %v2842_v20 = vld [vmem:[%s3205_s1 + $0x30] ss:$0 sps:$4 sm:$0x77]  }
  0xd2   : > { %2451 = vmatprep.mubr.msk.bf16.mxu0 %vm3014_vm0, %v3013_v2  ;;  %v1518_v21 = vshll.u32 %v2842_v20, 16 }
  0xd4   : > { %2346 = vmatpush3.bf16.msra.mxu1 %v2835_v60  ;;  %v1515_v60 = vshrl.u32 %v2842_v20, 16  ;;  %v1520_v26 = vrot.slane %v1518_v21, 3  ;;  %v216_v21 = vld [vmem:[#allocation2 + $0x30] sm:$0xff] }
  0xd5   : > { %2347 = vmatprep.subr.bf16.mxu1 %v3013_v2 }
  0xd6   : > { %v1517_v25 = vrot.slane %v1515_v60, 2 }
  0xd7   : > { %2328 = vmatmul.mubr.msk.bf16.gmra.mrb[4].mxu1 %vm297_vm1, %v629_v30 }
  0xd8   : > { %2331 = vmatprep.mubr.msk.bf16.mxu1 %vm3014_vm0, %v3013_v2  ;;  %2348 = vmatpush3.bf16.msra.mxu1 %v2837_v16  ;;  %v1521_v29 = vor.u32 %v1520_v26, %v1517_v25 }
  0xd9   : > { %2452 = vmatmul.mubr.msk.bf16.gmra.mrb[16].mxu0 %vm297_vm1, %v1333_v31  ;;  %2349 = vmatprep.subr.bf16.mxu1 %v3013_v2 }
  0xda   : > { %2463 = vmatprep.mubr.msk.bf16.mxu0 %vm3014_vm0, %v3013_v2  ;;  %v1522_v30 = vsel %vm1469_vm7, %v1512_v63, %v1521_v29 }
  0xdc   : > { %2350 = vmatpush3.bf16.msra.mxu1 %v2839_v36 }
  0xdd   : > { %2511 = vmatprep.subr.bf16.mxu1 %v3013_v2 }
  0xdf   : > { %2332 = vmatmul.mubr.msk.bf16.gmra.mrb[8].mxu1 %vm297_vm1, %v631_v40 }
  0xe0   : > { %2335 = vmatprep.mubr.msk.bf16.mxu1 %vm3014_vm0, %v3013_v2 }
  0xe1   : > { %2464 = vmatmul.mubr.msk.bf16.vlgmr.msra.gmra.mrb[0].mxu0 %vm297_vm1, %v1486_v28 }
  0xe2   : > { %2467 = vmatprep.mubr.msk.bf16.mxu0 %vm3014_vm0, %v3013_v2  ;;  %2484 = vmatpush3.bf16.msra.mxu0 %v2838_v55 }
  0xe3   : > { %2485 = vmatprep.subr.bf16.mxu0 %v3013_v2 }
  0xe6   : > { %2486 = vmatpush3.bf16.msra.mxu0 %v2840_v62 }
  0xe7   : > { %2336 = vmatmul.mubr.msk.bf16.gmra.mrb[12].mxu1 %vm297_vm1, %v633_v27  ;;  %2487 = vmatprep.subr.bf16.mxu0 %v3013_v2 }
  0xe8   : > { %2339 = vmatprep.mubr.msk.bf16.mxu1 %vm3014_vm0, %v3013_v2 }
  0xe9   : > { %2468 = vmatmul.mubr.msk.bf16.gmra.mrb[4].mxu0 %vm297_vm1, %v1495_v52 }
  0xea   : > { %2471 = vmatprep.mubr.msk.bf16.mxu0 %vm3014_vm0, %v3013_v2  ;;  %2488 = vmatpush3.bf16.msra.mxu0 %v2841_v4 }
  0xeb   : > { %2489 = vmatprep.subr.bf16.mxu0 %v3013_v2 }
  0xee   : > { %2490 = vmatpush3.bf16.msra.mxu0 %v2843_v57 }
  0xef   : > { %2340 = vmatmul.mubr.msk.bf16.gmra.mrb[16].mxu1 %vm297_vm1, %v635_v12  ;;  %v224_v12 = vmul.f32 0.95, %v214_v47 }
  0xf0   : > { %2351 = vmatprep.mubr.msk.bf16.mxu1 %vm3014_vm0, %v3013_v2 }
  0xf1   : > { %2472 = vmatmul.mubr.msk.bf16.gmra.mrb[8].mxu0 %vm297_vm1, %v1504_v14  ;;  %v225_v14 = vmul.f32 0.95, %v215_v10 }
  0xf2   : > { %2475 = vmatprep.mubr.msk.bf16.mxu0 %vm3014_vm0, %v3013_v2 }
  0xf7   : > { %2352 = vmatmul.mubr.msk.bf16.vlgmr.msra.gmra.mrb[0].mxu1 %vm297_vm1, %v3269_v34 }
  0xf8   : > { %2515 = vmatpush3.bf16.msra.mxu1 %v3221_v3  ;;  %2355 = vmatprep.mubr.msk.bf16.mxu1 %vm3014_vm0, %v3013_v2  ;;  %v1668_v3 = vrot.slane %v2842_v20, 3 }
  0xf9   : > { %2476 = vmatmul.mubr.msk.bf16.gmra.mrb[12].mxu0 %vm297_vm1, %v1513_v22  ;;  %2512 = vmatprep.subr.bf16.mxu1 %v3013_v2 }
  0xfa   : > { %2479 = vmatprep.mubr.msk.bf16.mxu0 %vm3014_vm0, %v3013_v2 }
  0xfc   : > { %2516 = vmatpush3.bf16.msra.mxu1 %v3227_v5  ;;  %v1669_v5 = vsel %vm1658_vm6, %v1666_v15, %v1668_v3  ;;  %v211_v15 = vld [vmem:[#allocation2 + $0x8] sm:$0xff]  ;;  %v217_v3 = vld [vmem:[#allocation2 + $0x38] sm:$0xff] }
  0xfd   : > { %2513 = vmatprep.subr.bf16.mxu1 %v3013_v2 }
  0xff   : > { %2356 = vmatmul.mubr.msk.bf16.gmra.mrb[4].mxu1 %vm297_vm1, %v3288_v46 }
 0x100   : > { %2359 = vmatprep.mubr.msk.bf16.mxu1 %vm3014_vm0, %v3013_v2  ;;  %2517 = vmatpush3.bf16.msra.mxu1 %v3234_v7 }
 0x101   : > { %2480 = vmatmul.mubr.msk.bf16.gmra.mrb[16].mxu0 %vm297_vm1, %v1522_v30  ;;  %2514 = vmatprep.subr.bf16.mxu1 %v3013_v2 }
 0x102   : > { %2491 = vmatprep.mubr.msk.bf16.mxu0 %vm3014_vm0, %v3013_v2 }
 0x104   : > { %2518 = vmatpush3.bf16.msra.mxu1 %v3241_v11 }
 0x107   : > { %2360 = vmatmul.mubr.msk.bf16.gmra.mrb[8].mxu1 %vm297_vm1, %v3399_v54 }
 0x108   : > { %2363 = vmatprep.mubr.msk.bf16.mxu1 %vm3014_vm0, %v3013_v2 }
 0x109   : > { %2492 = vmatmul.mubr.msk.bf16.vlgmr.msra.gmra.mrb[0].mxu0 %vm297_vm1, %v3430_v18  ;;  %v220_v18 = vmul.f32 0.95, %v210_v0 }
 0x10a   : > { %2495 = vmatprep.mubr.msk.bf16.mxu0 %vm3014_vm0, %v3013_v2 }
 0x10f   : > { %2364 = vmatmul.mubr.msk.bf16.gmra.mrb[12].mxu1 %vm297_vm1, %v3406_v59 }
 0x110   : > { %2367 = vmatprep.mubr.msk.bf16.mxu1 %vm3014_vm0, %v3013_v2 }
 0x111   : > { %2496 = vmatmul.mubr.msk.bf16.gmra.mrb[4].mxu0 %vm297_vm1, %v3418_v1 }
 0x112   : > { %2499 = vmatprep.mubr.msk.bf16.mxu0 %vm3014_vm0, %v3013_v2 }
 0x117   : > { %2368 = vmatmul.mubr.msk.bf16.gmra.mrb[16].mxu1 %vm297_vm1, %v3433_v19  ;;  %v221_v19 = vmul.f32 0.95, %v211_v15 }
 0x118   : > { %2387 = vmatprep.mubr.msk.bf16.mxu1 %vm3014_vm0, %v3013_v2 }
 0x119   : > { %2500 = vmatmul.mubr.msk.bf16.gmra.mrb[8].mxu0 %vm297_vm1, %v3422_v9 }
 0x11a   : > { %2503 = vmatprep.mubr.msk.bf16.mxu0 %vm3014_vm0, %v3013_v2 }
 0x11f   : > { %2388 = vmatmul.mubr.msk.bf16.vlgmr.msra.gmra.mrb[8].mxu1 %vm297_vm1, %v3453_v35  ;;  %v212_v35 = vld [vmem:[#allocation2 + $0x10] sm:$0xff] }
 0x120   : > { %2391 = vmatprep.mubr.msk.bf16.mxu1 %vm3014_vm0, %v3013_v2  ;;  %v222_v37 = vmul.f32 0.95, %v212_v35  ;;  %v218_v35 = vld [vmem:[#allocation2 + $0x40] sm:$0xff] }
 0x121   : > { %2504 = vmatmul.mubr.msk.bf16.gmra.mrb[12].mxu0 %vm297_vm1, %v3440_v24 }
 0x122   : > { %2507 = vmatprep.mubr.msk.bf16.mxu0 %vm3014_vm0, %v3013_v2 }
 0x127   : > { %2392 = vmatmul.mubr.msk.bf16.gmra.mrb[12].mxu1 %vm297_vm1, %v3460_v48 }
 0x128   : > { %2395 = vmatprep.mubr.msk.bf16.mxu1 %vm3014_vm0, %v3013_v2 }
 0x129   : > { %2508 = vmatmul.mubr.msk.bf16.gmra.mrb[16].mxu0 %vm297_vm1, %v1669_v5 }
 0x12f   : > { %2396 = vmatmul.mubr.msk.bf16.gmra.mrb[16].mxu1 %vm297_vm1, %v3466_v53 }
 0x1ca   : > { %v890_v7 = vpop.f32.mrb[0].mxu1 }
 0x1cb   : > { %v2353_v11 = vpop.f32.mrb[1].mxu1  ;;  %v2519_v24 = vadd.f32 %v890_v7, %v220_v18 }
 0x1cc   : > { %v893_v34 = vpop.f32.mrb[2].mxu1  ;;  %v226_v11 = vmul.f32 0.95, %v216_v21 }
 0x1cd   : > { %v2354_v46 = vpop.f32.mrb[3].mxu1  ;;  %v2521_v16 = vadd.f32 %v893_v34, %v221_v19 }
 0x1d2   : > { %v898_v54 = vpop.f32.mrb[4].mxu1 }
 0x1d3   : > { %v2357_v59 = vpop.f32.mrb[5].mxu1  ;;  %v2523_v49 = vadd.f32 %v898_v54, %v222_v37  ;;  %v227_v54 = vmul.f32 0.95, %v217_v3 }
 0x1d4   : > { %v901_v1 = vpop.f32.mrb[6].mxu1 }
 0x1d5   : > { %v2358_v9 = vpop.f32.mrb[7].mxu1  ;;  %v2525_v51 = vadd.f32 %v901_v1, %v223_v44 }
 0x1dc   : > { %v1743_v48 = vpop.f32.mrb[0].mxu0 }
 0x1dd   : > { %v2520_v31 = vadd.f32 %v2519_v24, %v1743_v48  ;;  %v2493_v13 = vpop.f32.mrb[1].mxu0 }
 0x1de   : > { %v1746_v53 = vpop.f32.mrb[2].mxu0 }
 0x1df   : > { %vm1792_vm8 = vcmp.gt.f32.partialorder %v2520_v31, 1.0  ;;  %v2522_v39 = vadd.f32 %v2521_v16, %v1746_v53  ;;  %v2494_v41 = vpop.f32.mrb[3].mxu0  ;;  %v219_v53 = vld [vmem:[#allocation2 + $0x48] sm:$0xff] }
 0x1e0   : > { %v2126_v36 = vsel %vm1792_vm8, 1.0, %v3013_v2  ;;  %v228_v41 = vmul.f32 0.95, %v218_v35 }
 0x1e1   : > { %v1822_v23 = vsub.f32 %v2520_v31, %v2126_v36  ;;  %vm1793_vm9 = vcmp.gt.f32.partialorder %v2522_v39, 1.0 }
 0x1e2   : > { %v2127_v45 = vsel %vm1793_vm9, 1.0, %v3013_v2 }
 0x1e3   : > { %1832 = vst [vmem:[#allocation2] sm:$0xff] %v1822_v23  ;;  %v1823_v40 = vsub.f32 %v2522_v39, %v2127_v45  ;;  %v2160_v28 = vpack.c.bf16 %v2127_v45, %v2126_v36  ;;  %v229_v23 = vmul.f32 0.95, %v219_v53 }
 0x1e4   : > { %v1751_v50 = vpop.f32.mrb[4].mxu0 }
 0x1e5   : > { %1833 = vst [vmem:[#allocation2 + $0x8] sm:$0xff] %v1823_v40  ;;  %2161 = vst [vmem:[%s3216_s8] sm:$0xff] %v2160_v28   ;;  %v2524_v55 = vadd.f32 %v2523_v49, %v1751_v50  ;;  %v2497_v56 = vpop.f32.mrb[5].mxu0 }
 0x1e6   : > { %v1754_v38 = vpop.f32.mrb[6].mxu0 }
 0x1e7   : > { %vm1794_vm10 = vcmp.gt.f32.partialorder %v2524_v55, 1.0  ;;  %v2526_v58 = vadd.f32 %v2525_v51, %v1754_v38  ;;  %v2498_v61 = vpop.f32.mrb[7].mxu0 }
 0x1e8   : > { %v2128_v62 = vsel %vm1794_vm10, 1.0, %v3013_v2 }
 0x1e9   : > { %v1824_v27 = vsub.f32 %v2524_v55, %v2128_v62  ;;  %vm1795_vm11 = vcmp.gt.f32.partialorder %v2526_v58, 1.0 }
 0x1ea   : > { %v2129_v52 = vsel %vm1795_vm11, 1.0, %v3013_v2 }
 0x1eb   : > { %1834 = vst [vmem:[#allocation2 + $0x10] sm:$0xff] %v1824_v27  ;;  %v1825_v42 = vsub.f32 %v2526_v58, %v2129_v52  ;;  %v2163_v43 = vpack.c.bf16 %v2129_v52, %v2128_v62 }
 0x1ec   : > { %v1759_v4 = vpop.f32.mrb[8].mxu0 }
 0x1ed   : > { %1835 = vst [vmem:[#allocation2 + $0x18] sm:$0xff] %v1825_v42  ;;  %2174 = vst [vmem:[%s3216_s8 + $0x8] sm:$0xff] %v2163_v43   ;;  %v2501_v6 = vpop.f32.mrb[9].mxu0 }
 0x1ee   : > { %v1762_v8 = vpop.f32.mrb[10].mxu0 }
 0x1ef   : > { %v2502_v57 = vpop.f32.mrb[11].mxu0 }
 0x1f2   : > { %v1095_v17 = vpop.f32.mrb[8].mxu1 }
 0x1f3   : > { %v2527_v33 = vadd.f32 %v1095_v17, %v224_v12  ;;  %v2389_v20 = vpop.f32.mrb[9].mxu1 }
 0x1f4   : > { %v1767_v63 = vpop.f32.mrb[12].mxu0  ;;  %v1098_v60 = vpop.f32.mrb[10].mxu1 }
 0x1f5   : > { %v2528_v22 = vadd.f32 %v2527_v33, %v1759_v4  ;;  %v2505_v25 = vpop.f32.mrb[13].mxu0  ;;  %v2529_v26 = vadd.f32 %v1098_v60, %v225_v14  ;;  %v2390_v29 = vpop.f32.mrb[11].mxu1 }
 0x1f6   : > { %v1770_v30 = vpop.f32.mrb[14].mxu0 }
 0x1f7   : > { %vm1796_vm12 = vcmp.gt.f32.partialorder %v2528_v22, 1.0  ;;  %v2530_v5 = vadd.f32 %v2529_v26, %v1762_v8  ;;  %v2506_v7 = vpop.f32.mrb[15].mxu0 }
 0x1f8   : > { %v2130_v34 = vsel %vm1796_vm12, 1.0, %v3013_v2 }
 0x1f9   : > { %v1826_v46 = vsub.f32 %v2528_v22, %v2130_v34  ;;  %vm1797_vm13 = vcmp.gt.f32.partialorder %v2530_v5, 1.0 }
 0x1fa   : > { %v2131_v59 = vsel %vm1797_vm13, 1.0, %v3013_v2  ;;  %v1103_v0 = vpop.f32.mrb[12].mxu1 }
 0x1fb   : > { %1836 = vst [vmem:[#allocation2 + $0x20] sm:$0xff] %v1826_v46  ;;  %v1827_v1 = vsub.f32 %v2530_v5, %v2131_v59  ;;  %v2166_v9 = vpack.c.bf16 %v2131_v59, %v2130_v34  ;;  %v2531_v15 = vadd.f32 %v1103_v0, %v226_v11  ;;  %v2393_v18 = vpop.f32.mrb[13].mxu1 }
 0x1fc   : > { %v1775_v19 = vpop.f32.mrb[16].mxu0  ;;  %v1106_v24 = vpop.f32.mrb[14].mxu1 }
 0x1fd   : > { %1837 = vst [vmem:[#allocation2 + $0x28] sm:$0xff] %v1827_v1  ;;  %2175 = vst [vmem:[%s3216_s8 + $0x10] sm:$0xff] %v2166_v9   ;;  %v2532_v48 = vadd.f32 %v2531_v15, %v1767_v63  ;;  %v2509_v16 = vpop.f32.mrb[17].mxu0  ;;  %v2533_v31 = vadd.f32 %v1106_v24, %v227_v54  ;;  %v2394_v13 = vpop.f32.mrb[15].mxu1 }
 0x1fe   : > { %v1778_v32 = vpop.f32.mrb[18].mxu0 }
 0x1ff   : > { %vm1798_vm14 = vcmp.gt.f32.partialorder %v2532_v48, 1.0  ;;  %v2534_v37 = vadd.f32 %v2533_v31, %v1770_v30  ;;  %v2510_v39 = vpop.f32.mrb[19].mxu0 }
 0x200   : > { %v2132_v36 = vsel %vm1798_vm14, 1.0, %v3013_v2 }
 0x201   : > { %v1828_v44 = vsub.f32 %v2532_v48, %v2132_v36  ;;  %vm1799_vm15 = vcmp.gt.f32.partialorder %v2534_v37, 1.0 }
 0x202   : > { %v2133_v45 = vsel %vm1799_vm15, 1.0, %v3013_v2  ;;  %v1111_v49 = vpop.f32.mrb[16].mxu1 }
 0x203   : > { %1838 = vst [vmem:[#allocation2 + $0x30] sm:$0xff] %v1828_v44  ;;  %v1829_v40 = vsub.f32 %v2534_v37, %v2133_v45  ;;  %v2169_v28 = vpack.c.bf16 %v2133_v45, %v2132_v36  ;;  %v2535_v50 = vadd.f32 %v1111_v49, %v228_v41  ;;  %v2397_v51 = vpop.f32.mrb[17].mxu1 }
 0x204   : > { %v1114_v55 = vpop.f32.mrb[18].mxu1 }
 0x205   : > { %1839 = vst [vmem:[#allocation2 + $0x38] sm:$0xff] %v1829_v40  ;;  %2176 = vst [vmem:[%s3216_s8 + $0x18] sm:$0xff] %v2169_v28   ;;  %v2536_v56 = vadd.f32 %v2535_v50, %v1775_v19  ;;  %v2537_v38 = vadd.f32 %v1114_v55, %v229_v23  ;;  %v2398_v58 = vpop.f32.mrb[19].mxu1 }
 0x207   : > { %vm1800_vm0 = vcmp.gt.f32.partialorder %v2536_v56, 1.0  ;;  %v2538_v61 = vadd.f32 %v2537_v38, %v1778_v32 }
 0x208   : > { %v2134_v62 = vsel %vm1800_vm0, 1.0, %v3013_v2 }
 0x209   : > { %v1830_v27 = vsub.f32 %v2536_v56, %v2134_v62  ;;  %vm1801_vm1 = vcmp.gt.f32.partialorder %v2538_v61, 1.0 }
 0x20a   : > { %v2135_v52 = vsel %vm1801_vm1, 1.0, %v3013_v2 }
 0x20b   : > { %1840 = vst [vmem:[#allocation2 + $0x40] sm:$0xff] %v1830_v27  ;;  %v1831_v42 = vsub.f32 %v2538_v61, %v2135_v52  ;;  %v2172_v43 = vpack.c.bf16 %v2135_v52, %v2134_v62 }
 0x20d   : > { %1841 = vst [vmem:[#allocation2 + $0x48] sm:$0xff] %v1831_v42  ;;  %2177 = vst [vmem:[%s3216_s8 + $0x20] sm:$0xff] %v2172_v43  }
 0x20e   : > { %2917 = shalt.err (!%p2914_p1)
}
 0x20f   : > { %s2918_s4 = scalar_lea.hbm %s3641_s27, 640  ;;  %s2922_s1 = scalar_lea.hbm %s3698_s2, 5120 }
 0x210   : > { %p2919_p2 = scmp.ne.s32.totalorder %s3641_s27, %s2918_s4  ;;  %p2923_p9 = scmp.lt.u32.totalorder %s3641_s27, %s3698_s2 }
 0x211   : > { %p2924_p0 = scmp.lt.u32.totalorder %s2922_s1, %s2918_s4  ;;  %p2926_p8 = scmp.lt.u32.totalorder %s2918_s4, %s3641_s27 }
 0x212   : > { %p2920_p4 = pnand %p2919_p2, %p3141_p11 }
 0x213   : > { %p2925_p6 = por %p2924_p0, %p2923_p9 }
 0x214   : > { %p2921_p5 = pneg %p2920_p4 }
 0x215   : > { %p2927_p10 = por %p2926_p8, %p2925_p6 }
 0x217   : > { %p2928_p12 = pnand %p2927_p10, %p2921_p5 }
 0x219   : > { %2931 = shalt.err (!%p2928_p12)
}
 0x21a   : > { %s3016_s19 = smov 64   ;;  %s3017_s21 = smov 4  }
 0x21b   : > { %2692 = dma.vmem_to_hbm [thread:$0]  (%p3141_p11), %s3636_s13, 640, %s3641_s27, %s1893_s25, %s3016_s19, %s3016_s19, %s3017_s21  }
 0x21c PF: > { %p2709_p13 = scmp.ge.s32.totalorder %s3006_s16, 2  ;;  %s1923_s12 = sand.u32 1, %s2978_s9  }
 0x21d   : > { %p3725_p3 = scmp.ne.s32.totalorder %s3711_s22, 0  ;;  %s1924_s17 = scalar_lea.sflag [#allocation5], %s1923_s12 }
 0x21f   : > { %p2703_p7 = pnand %p2709_p13, %p3725_p3 }
 0x221   : > { %2973 = dma.done.wait (!%p2703_p7), %s1924_s17, 640  }
 0x222   : > { %2975 = vsyncadd (!%p2703_p7), %s1924_s17, 4294966656  ;;  %s19_s16 = sadd.s32 1, %s3006_s16   ;;  %s3726_s29 = sld [smem:[#allocation12_spill]] }
 0x223   : > { %p16_p1 = scmp.ge.s32.totalorder %s19_s16, 10   ;;  %s3727_s7 = sld [smem:[#allocation13_spill]] }
 0x224   : > { %s3728_s9 = smov %s2982_s10  ;;  %s3729_s10 = smov %s2986_s11 }
 0x225   : > { %s3730_s11 = smov %s3158_s20  ;;  %s3731_s12 = smov %s2998_s14 }
 0x226   : > { %s3732_s13 = smov %s3002_s15  ;;  %18 = sbr.rel (!%p16_p1) target bundleno = 10 (0xa), region = 89 }
 0x228   : > { %s3733_s14 = smov %s3726_s29 }
 0x229   : > { %s3734_s15 = smov %s3727_s7 }
 0x22d   :  { %1929 = vsyncpa [#allocation4], 1 }
 0x22e   :  { %1931 = vsyncpa [#allocation4 + $0x1], 1 }
 0x22f   :  { %1932 = vsyncpa [#allocation7], 1 }
 0x230   :  { %1933 = vsyncpa [#allocation5], 1 }
 0x231   :  { %1935 = vsyncpa [#allocation5 + $0x1], 1 }

// kernel: snn_vgg5_forward.6
= control target key start
LH: loop header
LB: loop body
LE: loop exit
PB: predicated region body
PF: predicated region fallthrough
CT: control target
= control target key end

     0   :  { %s4007_s0 = inlined_call_operand.hbm [shape: bf16[2,4,104,128], index: 0, kind: input, shape index: {}]   ;;  %s4008_s1 = inlined_call_operand.hbm [shape: bf16[9,128,128], index: 1, kind: input, shape index: {}]   ;;  %s4009_s2 = inlined_call_operand.hbm [shape: bf16[2,4,80,128], index: 2, kind: output, shape index: {}]  }
   0x1   :  { %4018 = sst [smem:[#allocation14_spill]] %s4008_s1 }
   0x2   :  { %7 = vsyncpa [#allocation4], 0 }
   0x3   :  { %9 = vsyncpa [#allocation4 + $0x1], 0 }
   0x4   :  { %10 = vsyncpa [#allocation7], 0 }
   0x5   :  { %11 = vsyncpa [#allocation5], 0 }
   0x6   :  { %13 = vsyncpa [#allocation5 + $0x1], 0  ;;  %s3369_s9 = smov 0   ;;  %s3371_s10 = smov 0  }
   0x7   :  { %s3373_s11 = smov 0   ;;  %s3375_s12 = smov 0  }
   0x8   :  { %s3377_s13 = smov 0   ;;  %s3379_s14 = smov 0  }
   0x9   :  { %s3381_s15 = smov 0   ;;  %s3383_s16 = smov 0  }
   0xa LB: > { %s2205_s17 = sadd.s32 4294967295, %s3342_s16   ;;  %s2206_s18 = sadd.s32 4294967294, %s3342_s16   ;;  %s3342_s16 = sphi %s3383_s16, %s19_s16   ;;  %s3338_s15 = sphi %s3381_s15, %s4045_s15   ;;  %s3334_s14 = sphi %s3379_s14, %s4044_s14   ;;  %s3330_s13 = sphi %s3377_s13, %s4043_s13   ;;  %s3326_s12 = sphi %s3375_s12, %s4042_s12   ;;  %s3322_s11 = sphi %s3373_s11, %s4041_s11   ;;  %s3318_s10 = sphi %s3371_s10, %s4040_s10   ;;  %s3314_s9 = sphi %s3369_s9, %s4039_s9  }
   0xb   : > { %p53_p0 = scmp.ne.s32.totalorder %s3318_s10, %s3314_s9  ;;  %p3413_p1 = scmp.eq.s32.totalorder %s2205_s17, 0 }
   0xc   : > { %p3417_p2 = scmp.eq.s32.totalorder %s2205_s17, 7  ;;  %p106_p3 = scmp.eq.s32.totalorder %s2206_s18, 7 }
   0xd   : > { %s4019_s19 = scalar_select %p3413_p1, 1, 0 }
   0xe   : > { %s4020_s20 = scalar_select %p3417_p2, 1, 0 }
   0xf   : > { %p3423_p4 = por %p3413_p1, %p53_p0  ;;  %p2207_p5 = scmp.ge.s32.totalorder %s3342_s16, 1 }
  0x10   : > { %p3428_p6 = por %p106_p3, %p53_p0  ;;  %p113_p7 = scmp.lt.s32.totalorder %s3342_s16, 9 }
  0x11   : > { %s4021_s21 = scalar_select %p3423_p4, 1, 0 }
  0x12   : > { %s4022_s22 = scalar_select %p3428_p6, 1, 0 }
  0x13   : > { %p3433_p8 = pnand %p2207_p5, %p113_p7  ;;  %s3344_s24 = smov [#allocation6]  }
  0x14   : > { %s125_s25 = sshll.u32 %s3344_s24, 4  ;;  %s4025_s1 = sld [smem:[#allocation14_spill]]  ;;  %s126_s25 = int_to_ptr.vmem [resolvable:$true] %s125_s25 }
  0x15   : > { %s4023_s23 = scalar_select %p3433_p8, 1, 0 }
  0x16   : > { %p2994_p9 = pneg %p3433_p8 }
  0x18   : > { %p3441_p10 = pnand %p2994_p9, %p3413_p1 }
  0x1a   : > { %s3182_s29 = scalar_lea.hbm %s4025_s1, 9216  ;;  %p3184_p12 = pneg %p3441_p10 }
  0x1b   : > { %p3183_p11 = scmp.ne.s32.totalorder %s4025_s1, %s3182_s29  ;;  %p3189_p3 = scmp.lt.u32.totalorder %s3182_s29, %s4025_s1 }
  0x1d   : > { %p3185_p13 = pnand %p3184_p12, %p3183_p11 }
  0x1f   : > { %p3186_p0 = pneg %p3185_p13 }
  0x21   : > { %p3191_p5 = pnand %p3189_p3, %p3186_p0 }
  0x23   : > { %3194 = shalt.err (!%p3191_p5)
}
  0x24   : > { %s3195_s6 = scalar_lea.vmem %s126_s25, 9216  ;;  %p3203_p1 = scmp.lt.s32.totalorder %s126_s25, %s126_s25 }
  0x25   : > { %p3196_p7 = scmp.ne.s32.totalorder %s126_s25, %s3195_s6  ;;  %p3204_p4 = scmp.lt.s32.totalorder %s3195_s6, %s3195_s6 }
  0x27   : > { %p3198_p9 = pnand %p3196_p7, %p3184_p12  ;;  %p3205_p8 = por %p3204_p4, %p3203_p1 }
  0x29   : > { %p3199_p6 = pneg %p3198_p9 }
  0x2b   : > { %p3206_p2 = pnand %p3205_p8, %p3199_p6 }
  0x2d   : > { %3209 = shalt.err (!%p3206_p2)
}
  0x2e   : > { %s4014_s7 = smov 64   ;;  %s4015_s8 = smov 4  }
  0x2f   : > { %2997 = dma.hbm_to_vmem [thread:$0]  (!%p3441_p10), %s4025_s1, 9216, %s126_s25, [#allocation7], %s4014_s7, %s4014_s7, %s4015_s8  }
  0x30   : > { %s28_s24 = sadd.s32 1, %s3334_s14  ;;  %s31_s27 = sadd.s32 1, %s3338_s15 }
  0x31   : > { %p29_p1 = scmp.ge.s32.totalorder %s28_s24, 4  ;;  %s40_s28 = sadd.s32 1, %s3322_s11 }
  0x32   : > { %p47_p2 = scmp.ne.s32.totalorder %s3322_s11, %s3318_s10  ;;  %p48_p4 = scmp.eq.s32.totalorder %s3342_s16, 0 }
  0x33   : > { %s4047_s24 = smov (%p29_p1, %s28_s24), 0  ;;  %s4049_s27 = smov (!%p29_p1, %s31_s27), %s3338_s15 }
  0x34   : > { %4026 = sst [smem:[#allocation12_spill]] %s4047_s24  ;;  %s36_s26 = ssub.s32 %s3334_s14, %s4047_s24 }
  0x35   : > { %p33_p6 = scmp.ge.s32.totalorder %s4049_s27, 2  ;;  %p4027_p8 = scmp.ne.s32.totalorder %s4020_s20, 0 }
  0x36   : > { %p49_p10 = por %p48_p4, %p47_p2  ;;  %p3007_p12 = scmp.lt.s32.totalorder %s3342_s16, 8 }
  0x37   : > { %p3477_p11 = por %p4027_p8, %p47_p2  ;;  %s4051_s27 = smov (%p33_p6, %s4049_s27), 0 }
  0x38   : > { %4029 = sst [smem:[#allocation13_spill]] %s4051_s27  ;;  %s139_s25 = sand.u32 1, %s3322_s11  }
  0x39   : > { %s2980_s30 = smul.u32 13, %s3334_s14  ;;  %s35_s3 = ssub.s32 %s3338_s15, %s4051_s27 }
  0x3a   : > { %s37_s4 = sor.u32 %s36_s26, %s35_s3  ;;  %s2979_s5 = smul.u32 52, %s139_s25 }
  0x3b   : > { %p38_p13 = scmp.eq.s32.totalorder %s37_s4, 0  ;;  %s2981_s6 = smul.u32 52, %s3338_s15 }
  0x3c   : > { %p3489_p0 = pnand %p3007_p12, %p49_p10  ;;  %s143_s7 = scalar_lea.vmem [#allocation3], %s2979_s5 }
  0x3d   : > { %s3494_s20 = scalar_select %p38_p13, %s3322_s11, %s40_s28  }
  0x3e   : > { %s149_s18 = sadd.s32 %s2981_s6, %s2980_s30  ;;  %s152_s8 = sshll.u32 %s143_s7, 4  ;;  %s3496_s8 = int_to_ptr.vmem [resolvable:$true] %s152_s8 }
  0x3f   : > { %s2210_s1 = sshll.u32 %s149_s18, 6  ;;  %s3503_s3 = scalar_lea.sflag [#allocation4], %s139_s25 }
  0x40   : > { %s3501_s26 = scalar_lea.hbm %s4007_s0, %s2210_s1  ;;  %p3212_p5 = pneg %p3489_p0 }
  0x41   : > { %s3210_s4 = scalar_lea.hbm %s3501_s26, 832  ;;  %s3215_s24 = scalar_lea.hbm %s4007_s0, 6656 }
  0x42   : > { %p3211_p3 = scmp.ne.s32.totalorder %s3501_s26, %s3210_s4  ;;  %p3216_p1 = scmp.lt.u32.totalorder %s3501_s26, %s4007_s0 }
  0x43   : > { %p3217_p2 = scmp.lt.u32.totalorder %s3215_s24, %s3210_s4  ;;  %p3219_p6 = scmp.lt.u32.totalorder %s3210_s4, %s3501_s26 }
  0x44   : > { %p3213_p7 = pnand %p3212_p5, %p3211_p3 }
  0x45   : > { %p3218_p4 = por %p3217_p2, %p3216_p1 }
  0x46   : > { %p3214_p9 = pneg %p3213_p7 }
  0x47   : > { %p3220_p8 = por %p3219_p6, %p3218_p4 }
  0x49   : > { %p3221_p10 = pnand %p3220_p8, %p3214_p9 }
  0x4b   : > { %3224 = shalt.err (!%p3221_p10)
}
  0x4c   : > { %s3225_s25 = scalar_lea.vmem %s3496_s8, 832  ;;  %s3347_s30 = smov [#allocation3]  }
  0x4d   : > { %p3226_p12 = scmp.ne.s32.totalorder %s3496_s8, %s3225_s25  ;;  %s3230_s5 = sshll.u32 %s3347_s30, 4  ;;  %s3231_s5 = int_to_ptr.vmem [resolvable:$false] %s3230_s5 }
  0x4e   : > { %s3232_s6 = scalar_lea.vmem %s3231_s5, 1664  ;;  %p3233_p7 = scmp.lt.s32.totalorder %s3496_s8, %s3231_s5 }
  0x4f   : > { %p3228_p13 = pnand %p3226_p12, %p3212_p5  ;;  %p3234_p1 = scmp.lt.s32.totalorder %s3232_s6, %s3225_s25 }
  0x51   : > { %p3229_p3 = pneg %p3228_p13  ;;  %p3235_p2 = por %p3234_p1, %p3233_p7 }
  0x53   : > { %p3236_p4 = pnand %p3235_p2, %p3229_p3 }
  0x55   : > { %3239 = shalt.err (!%p3236_p4)
}
  0x56   : > { %s4031_s18 = smov 4   ;;  %s4032_s4 = smov 64  }
  0x57   : > { %3001 = dma.hbm_to_vmem [thread:$0]  (!%p3489_p0), %s3501_s26, 832, %s3496_s8, %s3503_s3, %s4032_s4, %s4032_s4, %s4031_s18  }
  0x58   : > { %p4033_p5 = scmp.ne.s32.totalorder %s4023_s23, 0 }
  0x59   : > { %s3537_s7 = sand.u32 (!%p4033_p5), 1, %s3318_s10   ;;  %p4034_p9 = scmp.ne.s32.totalorder (!%p4033_p5), %s4021_s21, 0 }
  0x5a   : > { %164 = sbr.rel (%p4033_p5) target bundleno = 555 (0x22b), region = 28  ;;  %s167_s24 = scalar_lea.sflag (!%p4033_p5), [#allocation4], %s3537_s7 }
  0x5b   : > { %s2982_s28 = smul.u32 (!%p4033_p5), 52, %s3537_s7 }
  0x5d   : > { %s3541_s1 = scalar_lea.vmem (!%p4033_p5), [#allocation3], %s2982_s28 }
  0x61   : > { %3301 = dma.done.wait (%p4034_p9), %s167_s24, 832  }
  0x62   : > { %3303 = vsyncadd (%p4034_p9), %s167_s24, 4294966464  ;;  %p4035_p0 = scmp.ne.s32.totalorder %s4019_s19, 0 }
  0x64   : > { %3305 = dma.done.wait (%p4035_p0), [#allocation7], 9216  }
  0x65   : > { %3307 = vsyncadd (%p4035_p0), [#allocation7], 4294958080  ;;  %s2983_s23 = smul.u32 40, %s3537_s7  ;;  %p2213_p6 = scmp.ne.s32.totalorder %s3326_s12, 0 }
  0x66   : > { %v3348_v0 = vmov (!%p2213_p6), 0.0  }
  0x67   : > { %s3552_s8 = scalar_lea.vmem [#allocation8], %s2983_s23  ;;  %199 = sbr.rel (%p2213_p6) target bundleno = 110 (0x6e), region = 40  ;;  %200 = vst [vmem:[#allocation2] sm:$0xff] (!%p2213_p6), %v3348_v0  ;;  %201 = vst [vmem:[#allocation2 + $0x8] sm:$0xff] (!%p2213_p6), %v3348_v0 }
  0x68   : > { %202 = vst [vmem:[#allocation2 + $0x10] sm:$0xff] (!%p2213_p6), %v3348_v0  ;;  %203 = vst [vmem:[#allocation2 + $0x18] sm:$0xff] (!%p2213_p6), %v3348_v0 }
  0x69   : > { %204 = vst [vmem:[#allocation2 + $0x20] sm:$0xff] (!%p2213_p6), %v3348_v0  ;;  %205 = vst [vmem:[#allocation2 + $0x28] sm:$0xff] (!%p2213_p6), %v3348_v0 }
  0x6a   : > { %206 = vst [vmem:[#allocation2 + $0x30] sm:$0xff] (!%p2213_p6), %v3348_v0  ;;  %207 = vst [vmem:[#allocation2 + $0x38] sm:$0xff] (!%p2213_p6), %v3348_v0 }
  0x6b   : > { %208 = vst [vmem:[#allocation2 + $0x40] sm:$0xff] (!%p2213_p6), %v3348_v0  ;;  %209 = vst [vmem:[#allocation2 + $0x48] sm:$0xff] (!%p2213_p6), %v3348_v0 }
  0x6e PF: > { %v3082_v1 = vld [vmem:[#allocation6] sm:$0xff]   ;;  %v3349_v2 = vmov 0.0   ;;  %v3084_v4 = vld [vmem:[#allocation6 + $0x8] sm:$0xff]   ;;  %vm3350_vm0 = vmmov 0   ;;  %v3086_v6 = vld [vmem:[#allocation6 + $0x10] sm:$0xff]   ;;  %vm675_vm2 = vcmask 1046528  }
  0x6f   : > { %2483 = vmatprep.subr.bf16.mxu1 %v3349_v2  ;;  %2627 = vmatprep.subr.bf16.mxu0 %v3349_v2  ;;  %v3083_v3 = vld [vmem:[#allocation6 + $0x100] sm:$0xff]   ;;  %v3085_v5 = vld [vmem:[#allocation6 + $0x108] sm:$0xff]   ;;  %v3087_v7 = vld [vmem:[#allocation6 + $0x110] sm:$0xff]   ;;  %vm1047_vm1 = vsmask.f32 6400  ;;  %vm1258_vm4 = vcmask 1045504  }
  0x70   : > { %2484 = vmatpush3.bf16.msra.mxu1 %v3082_v1  ;;  %2499 = vmatprep.mubr.msk.bf16.mxu1 %vm3350_vm0, %v3349_v2  ;;  %v3088_v8 = vld [vmem:[#allocation6 + $0x18] sm:$0xff]   ;;  %v3090_v10 = vld [vmem:[#allocation6 + $0x20] sm:$0xff]   ;;  %v3092_v12 = vld [vmem:[#allocation6 + $0x28] sm:$0xff]   ;;  %vm473_vm3 = vsmask.f32 7424  ;;  %vm1841_vm5 = vcmask 1044480  }
  0x71   : > { %2628 = vmatpush3.bf16.msra.mxu0 %v3083_v3  ;;  %2485 = vmatprep.subr.bf16.mxu1 %v3349_v2  ;;  %v3089_v9 = vld [vmem:[#allocation6 + $0x118] sm:$0xff]   ;;  %v3091_v11 = vld [vmem:[#allocation6 + $0x120] sm:$0xff]   ;;  %v3093_v15 = vld [vmem:[#allocation6 + $0x128] sm:$0xff]   ;;  %vm1630_vm6 = vsmask.f32 5376  ;;  %s2984_s19 = smul.u32 10, %s3326_s12 }
  0x72   : > { %2629 = vmatprep.subr.bf16.mxu0 %v3349_v2  ;;  %2643 = vmatprep.mubr.msk.bf16.mxu0 %vm3350_vm0, %v3349_v2  ;;  %v823_v13 = vld [vmem:[%s3541_s1 + $0x4] sm:$0xe]  ;;  %v3571_v14 = vld [vmem:[%s3541_s1 + $0x8] sm:$0xf]  ;;  %v3575_v17 = vld [vmem:[%s3541_s1 + $0xc] sm:$0xff]   ;;  %s2985_s21 = smul.u32 40, %s3330_s13 }
  0x73   : > { %v2250_v16 = vcombine.low %v823_v13, %v3571_v14  ;;  %v1057_v20 = vshrl.u32 %v3575_v17, 16  ;;  %v1060_v21 = vshll.u32 %v3575_v17, 16  ;;  %v3094_v22 = vld [vmem:[#allocation6 + $0x30] sm:$0xff]   ;;  %v3096_v29 = vld [vmem:[#allocation6 + $0x38] sm:$0xff]   ;;  %v3101_v36 = vld [vmem:[#allocation6 + $0x140] sm:$0xff]   ;;  %v880_v47 = vrot.slane %v3575_v17, 1 }
  0x74   : > { %2486 = vmatpush3.bf16.msra.mxu1 %v3084_v4  ;;  %v3095_v23 = vld [vmem:[#allocation6 + $0x130] sm:$0xff]   ;;  %v3097_v30 = vld [vmem:[#allocation6 + $0x138] sm:$0xff]   ;;  %v3105_v41 = vld [vmem:[#allocation6 + $0x40] sm:$0xff]   ;;  %s2102_s12 = sadd.s32 %s2985_s21, %s2984_s19  ;;  %s2105_s17 = sshll.u32 %s3552_s8, 4  ;;  %s3952_s17 = int_to_ptr.vmem [resolvable:$true] %s2105_s17 }
  0x75   : > { %2630 = vmatpush3.bf16.msra.mxu0 %v3085_v5  ;;  %2487 = vmatprep.subr.bf16.mxu1 %v3349_v2  ;;  %v1049_v18 = vshrl.u32 %v2250_v16, 16  ;;  %v1052_v19 = vshll.u32 %v2250_v16, 16  ;;  %v1059_v26 = vrot.slane %v1057_v20, 1  ;;  %v1062_v27 = vrot.slane %v1060_v21, 2  ;;  %v3582_v28 = vld [vmem:[%s3541_s1 + $0x14] sm:$0xff]   ;;  %v3098_v35 = vld [vmem:[%s3541_s1] sm:$0xff]  }
  0x76   : > { %2631 = vmatprep.subr.bf16.mxu0 %v3349_v2  ;;  %v1066_v31 = vshrl.u32 %v3582_v28, 16  ;;  %v1069_v32 = vshll.u32 %v3582_v28, 16  ;;  %v3592_v39 = vld [vmem:[%s3541_s1 + $0x1c] sm:$0xff]   ;;  %v879_v42 = vrot.slane %v2250_v16, 1  ;;  %v3103_v48 = vld [vmem:[%s3541_s1 + $0x8] sm:$0xff]   ;;  %v3108_v62 = vld [vmem:[%s3541_s1 + $0x10] sm:$0xff]  }
  0x77   : > { %v1051_v24 = vrot.slane %v1049_v18, 1  ;;  %v1054_v25 = vrot.slane %v1052_v19, 2  ;;  %v1063_v34 = vor.u32 %v1062_v27, %v1059_v26  ;;  %v1075_v43 = vshrl.u32 %v3592_v39, 16  ;;  %v3102_v45 = vld [vmem:[#allocation6 + $0x148] sm:$0xff]   ;;  %v3106_v51 = vld [vmem:[#allocation6 + $0x150] sm:$0xff]   ;;  %v3110_v58 = vld [vmem:[#allocation6 + $0x158] sm:$0xff]  }
  0x78   : > { %2488 = vmatpush3.bf16.msra.mxu1 %v3086_v6  ;;  %v1068_v37 = vrot.slane %v1066_v31, 1  ;;  %v1071_v38 = vrot.slane %v1069_v32, 2  ;;  %v1078_v44 = vshll.u32 %v3592_v39, 16  ;;  %v3107_v49 = vld [vmem:[#allocation6 + $0x48] sm:$0xff]   ;;  %v3610_v50 = vsel %vm675_vm2, %v879_v42, %v880_v47  ;;  %v3613_v54 = vld [vmem:[%s3541_s1 + $0x24] sm:$0xff]   ;;  %s2334_s13 = sshll.u32 %s2102_s12, 6 }
  0x79   : > { %2632 = vmatpush3.bf16.msra.mxu0 %v3087_v7  ;;  %2489 = vmatprep.subr.bf16.mxu1 %v3349_v2  ;;  %v1055_v33 = vor.u32 %v1054_v25, %v1051_v24  ;;  %v1077_v52 = vrot.slane %v1075_v43, 1  ;;  %v3111_v56 = vld [vmem:[#allocation6 + $0x50] sm:$0xff]   ;;  %v1084_v59 = vshrl.u32 %v3613_v54, 16  ;;  %v1087_v60 = vshll.u32 %v3613_v54, 16  ;;  %v3112_v61 = vld [vmem:[#allocation6 + $0x58] sm:$0xff]   ;;  %v3113_v0 = vld [vmem:[#allocation6 + $0x160] sm:$0xff]   ;;  %s3950_s27 = scalar_lea.hbm %s4009_s2, %s2334_s13 }
  0x7a   : > { %2633 = vmatprep.subr.bf16.mxu0 %v3349_v2  ;;  %v1072_v46 = vor.u32 %v1071_v38, %v1068_v37  ;;  %v1080_v53 = vrot.slane %v1078_v44, 2  ;;  %v3628_v63 = vld [vmem:[%s3541_s1 + $0x2c] ss:$0 sps:$4 sm:$0x33]   ;;  %v3117_v6 = vld [vmem:[#allocation6 + $0x168] sm:$0xff]   ;;  %v3122_v21 = vld [vmem:[#allocation6 + $0x70] sm:$0xff]  }
  0x7b   : > { %v1064_v40 = vsel %vm1047_vm1, %v1055_v33, %v1063_v34  ;;  %v1086_v3 = vrot.slane %v1084_v59, 1  ;;  %v1089_v4 = vrot.slane %v1087_v60, 2  ;;  %v3116_v5 = vld [vmem:[#allocation6 + $0x60] sm:$0xff]   ;;  %v1093_v7 = vshrl.u32 %v3628_v63, 16  ;;  %v3124_v26 = vld [vmem:[#allocation6 + $0x78] sm:$0xff]   ;;  %v3132_v59 = vld [vmem:[#allocation6 + $0x190] sm:$0xff]  }
  0x7c   : > { %2490 = vmatpush3.bf16.msra.mxu1 %v3088_v8  ;;  %v1073_v55 = vsel %vm1047_vm1, %v1063_v34, %v1072_v46  ;;  %v1081_v57 = vor.u32 %v1080_v53, %v1077_v52  ;;  %v1096_v8 = vshll.u32 %v3628_v63, 16  ;;  %v3114_v13 = vld [vmem:[%s3541_s1 + $0x18] sm:$0xff]   ;;  %v1237_v27 = vld [vmem:[%s3541_s1 + $0x4] sm:$0xc]  ;;  %v1260_v38 = vrot.slane %v3575_v17, 2  ;;  %s2090_s25 = scalar_lea.sflag [#allocation5], %s3537_s7 }
  0x7d   : > { %2634 = vmatpush3.bf16.msra.mxu0 %v3089_v9  ;;  %2491 = vmatprep.subr.bf16.mxu1 %v3349_v2  ;;  %v417_v9 = vld [vmem:[%s3541_s1] sm:$0xf]  ;;  %v1095_v19 = vrot.slane %v1093_v7, 1  ;;  %v2273_v34 = vcombine.low %v1237_v27, %v3571_v14  ;;  %v3128_v44 = vld [vmem:[#allocation6 + $0x180] sm:$0xff]   ;;  %v1262_v52 = vrot.slane %v3582_v28, 2  ;;  %v3136_v60 = vld [vmem:[#allocation6 + $0x90] sm:$0xff]  }
  0x7e   : > { %2635 = vmatprep.subr.bf16.mxu0 %v3349_v2  ;;  %v1082_v1 = vsel %vm1047_vm1, %v1072_v46, %v1081_v57  ;;  %v1098_v20 = vrot.slane %v1096_v8, 2  ;;  %v3133_v53 = vld [vmem:[#allocation6 + $0x88] sm:$0xff]   ;;  %v1266_v17 = vrot.slane %v3613_v54, 2  ;;  %s3240_s30 = scalar_lea.vmem %s3952_s17, 640  ;;  %s3351_s5 = smov [#allocation8]  }
  0x7f   : > { %v1259_v14 = vrot.slane %v2273_v34, 2  ;;  %p3241_p8 = scmp.ne.s32.totalorder %s3952_s17, %s3240_s30  ;;  %s3244_s6 = sshll.u32 %s3351_s5, 4  ;;  %s3245_s6 = int_to_ptr.vmem [resolvable:$false] %s3244_s6 }
  0x80   : > { %2492 = vmatpush3.bf16.msra.mxu1 %v3090_v10  ;;  %v1090_v10 = vor.u32 %v1089_v4, %v1086_v3  ;;  %v1099_v25 = vor.u32 %v1098_v20, %v1095_v19  ;;  %v3135_v3 = vld [vmem:[#allocation6 + $0x198] sm:$0xff]   ;;  %v3142_v19 = vld [vmem:[#allocation6 + $0xa8] sm:$0xff]   ;;  %s3246_s18 = scalar_lea.vmem %s3245_s6, 1280  ;;  %p3247_p13 = scmp.lt.s32.totalorder %s3952_s17, %s3245_s6 }
  0x81   : > { %2636 = vmatpush3.bf16.msra.mxu0 %v3091_v11  ;;  %2493 = vmatprep.subr.bf16.mxu1 %v3349_v2  ;;  %v3641_v11 = vld [vmem:[%s3541_s1 + $0x4] sm:$0xf]  ;;  %v1261_v43 = vsel %vm1258_vm4, %v1259_v14, %v1260_v38  ;;  %v3750_v14 = vld [vmem:[%s3541_s1 + $0x18] sm:$0xff]   ;;  %p3242_p10 = pnand %p3241_p8, %p3477_p11  ;;  %p3248_p3 = scmp.lt.s32.totalorder %s3246_s18, %s3240_s30 }
  0x82   : > { %2637 = vmatprep.subr.bf16.mxu0 %v3349_v2  ;;  %v2227_v16 = vcombine.low %v417_v9, %v3641_v11  ;;  %v1091_v18 = vsel %vm1047_vm1, %v1081_v57, %v1090_v10  ;;  %v1100_v33 = vsel %vm1047_vm1, %v1090_v10, %v1099_v25  ;;  %v3137_v4 = vld [vmem:[#allocation6 + $0x98] sm:$0xff]   ;;  %v3138_v10 = vld [vmem:[#allocation6 + $0x1a0] sm:$0xff]  }
  0x83   : > { %p3243_p12 = pneg %p3242_p10  ;;  %p3249_p7 = por %p3248_p3, %p3247_p13 }
  0x84   : > { %2494 = vmatpush3.bf16.msra.mxu1 %v3092_v12  ;;  %v3118_v12 = vld [vmem:[#allocation6 + $0x68] sm:$0xff]   ;;  %v477_v24 = vshll.u32 %v2227_v16, 16 }
  0x85   : > { %2638 = vmatpush3.bf16.msra.mxu0 %v3093_v15  ;;  %2495 = vmatprep.subr.bf16.mxu1 %v3349_v2  ;;  %v3119_v15 = vld [vmem:[#allocation6 + $0x170] sm:$0xff]   ;;  %p3250_p1 = pnand %p3249_p7, %p3243_p12 }
  0x86   : > { %2639 = vmatprep.subr.bf16.mxu0 %v3349_v2  ;;  %v479_v31 = vrot.slane %v477_v24, 1 }
  0x88   : > { %2496 = vmatpush3.bf16.msra.mxu1 %v3094_v22  ;;  %v3123_v22 = vld [vmem:[#allocation6 + $0x178] sm:$0xff]  }
  0x89   : > { %2640 = vmatpush3.bf16.msra.mxu0 %v3095_v23  ;;  %2497 = vmatprep.subr.bf16.mxu1 %v3349_v2  ;;  %v3653_v23 = vld [vmem:[%s3541_s1 + $0x8] sm:$0xff]  }
  0x8a   : > { %2641 = vmatprep.subr.bf16.mxu0 %v3349_v2  ;;  %v482_v32 = vshll.u32 %v3653_v23, 16 }
  0x8c   : > { %2498 = vmatpush3.bf16.msra.mxu1 %v3096_v29  ;;  %v3120_v29 = vld [vmem:[%s3541_s1 + $0x20] sm:$0xff]   ;;  %v484_v37 = vrot.slane %v482_v32, 1  ;;  %v3178_v32 = vld [vmem:[%s3541_s1 + $0x2c] ss:$0 sps:$4 sm:$0x11]  }
  0x8d   : > { %2642 = vmatpush3.bf16.msra.mxu0 %v3097_v30  ;;  %2519 = vmatprep.subr.bf16.mxu1 %v3349_v2  ;;  %v475_v30 = vshrl.u32 %v2227_v16, 16 }
  0x8e   : > { %2663 = vmatprep.subr.bf16.mxu0 %v3349_v2 }
  0x8f   : > { %2500 = vmatmul.mubr.bf16.vlgmr.msra.gmra.mrb[0].mxu1 %v3098_v35  ;;  %v3666_v35 = vld [vmem:[%s3541_s1 + $0x10] sm:$0xff]  }
  0x90   : > { %2644 = vmatmul.mubr.bf16.vlgmr.msra.gmra.mrb[0].mxu0 %v1064_v40  ;;  %2503 = vmatprep.mubr.msk.bf16.mxu1 %vm3350_vm0, %v3349_v2  ;;  %v486_v40 = vshrl.u32 %v3653_v23, 16 }
  0x91   : > { %2664 = vmatpush3.bf16.msra.mxu0 %v3101_v36  ;;  %2647 = vmatprep.mubr.msk.bf16.mxu0 %vm3350_vm0, %v3349_v2  ;;  %v480_v36 = vor.u32 %v479_v31, %v475_v30  ;;  %v654_v30 = vld [vmem:[%s3541_s1] sm:$0xe]  ;;  %v1407_v31 = vld [vmem:[%s3541_s1 + $0xc] sm:$0xf] }
  0x92   : > { %2665 = vmatprep.subr.bf16.mxu0 %v3349_v2  ;;  %2520 = vmatpush3.bf16.msra.mxu1 %v3105_v41  ;;  %v490_v41 = vshll.u32 %v3666_v35, 16  ;;  %v488_v46 = vor.u32 %v486_v40, %v484_v37  ;;  %v888_v40 = vrot.slane %v3178_v32, 1 }
  0x93   : > { %2521 = vmatprep.subr.bf16.mxu1 %v3349_v2  ;;  %v485_v42 = vsel %vm473_vm3, %v480_v36, %v484_v37  ;;  %v1268_v36 = vrot.slane %v3628_v63, 2  ;;  %v3747_v37 = vld [vmem:[%s3541_s1 + $0x10] sm:$0xff]  }
  0x94   : > { %v1843_v63 = vrot.slane %v3747_v37, 3 }
  0x95   : > { %2666 = vmatpush3.bf16.msra.mxu0 %v3102_v45  ;;  %v3131_v45 = vld [vmem:[#allocation6 + $0x80] sm:$0xff]  }
  0x96   : > { %2667 = vmatprep.subr.bf16.mxu0 %v3349_v2  ;;  %2522 = vmatpush3.bf16.msra.mxu1 %v3107_v49  ;;  %v3681_v49 = vld [vmem:[%s3541_s1 + $0x18] sm:$0xff]  }
  0x97   : > { %2504 = vmatmul.mubr.bf16.gmra.mrb[4].mxu1 %v3103_v48  ;;  %2523 = vmatprep.subr.bf16.mxu1 %v3349_v2  ;;  %v492_v48 = vrot.slane %v490_v41, 1  ;;  %v498_v57 = vshll.u32 %v3681_v49, 16  ;;  %v502_v7 = vshrl.u32 %v3681_v49, 16  ;;  %v1820_v41 = vld [vmem:[%s3541_s1 + $0x8] sm:$0x8] }
  0x98   : > { %2648 = vmatmul.mubr.bf16.gmra.mrb[4].mxu0 %v1073_v55  ;;  %2507 = vmatprep.mubr.msk.bf16.mxu1 %vm3350_vm0, %v3349_v2 }
  0x99   : > { %2668 = vmatpush3.bf16.msra.mxu0 %v3106_v51  ;;  %2651 = vmatprep.mubr.msk.bf16.mxu0 %vm3350_vm0, %v3349_v2  ;;  %v3129_v51 = vld [vmem:[#allocation6 + $0x188] sm:$0xff]   ;;  %v493_v55 = vsel %vm473_vm3, %v488_v46, %v492_v48 }
  0x9a   : > { %2669 = vmatprep.subr.bf16.mxu0 %v3349_v2  ;;  %2524 = vmatpush3.bf16.msra.mxu1 %v3111_v56  ;;  %v494_v56 = vshrl.u32 %v3666_v35, 16 }
  0x9b   : > { %2525 = vmatprep.subr.bf16.mxu1 %v3349_v2 }
  0x9d   : > { %2670 = vmatpush3.bf16.msra.mxu0 %v3110_v58  ;;  %v1263_v58 = vsel %vm1258_vm4, %v1260_v38, %v1262_v52  ;;  %v3755_v38 = vld [vmem:[%s3541_s1 + $0x20] sm:$0xff]  }
  0x9e   : > { %2671 = vmatprep.subr.bf16.mxu0 %v3349_v2  ;;  %2526 = vmatpush3.bf16.msra.mxu1 %v3112_v61  ;;  %v496_v61 = vor.u32 %v494_v56, %v492_v48  ;;  %v1847_v46 = vrot.slane %v3755_v38, 3  ;;  %v1845_v48 = vrot.slane %v3750_v14, 3 }
  0x9f   : > { %2508 = vmatmul.mubr.bf16.gmra.mrb[8].mxu1 %v3108_v62  ;;  %2527 = vmatprep.subr.bf16.mxu1 %v3349_v2  ;;  %v500_v62 = vrot.slane %v498_v57, 1 }
  0xa0   : > { %2652 = vmatmul.mubr.bf16.gmra.mrb[8].mxu0 %v1082_v1  ;;  %2511 = vmatprep.mubr.msk.bf16.mxu1 %vm3350_vm0, %v3349_v2  ;;  %v1264_v1 = vrot.slane %v3592_v39, 2  ;;  %v3773_v57 = vsel %vm1841_vm5, %v1843_v63, %v1845_v48 }
  0xa1   : > { %2672 = vmatpush3.bf16.msra.mxu0 %v3113_v0  ;;  %2655 = vmatprep.mubr.msk.bf16.mxu0 %vm3350_vm0, %v3349_v2  ;;  %v3697_v0 = vld [vmem:[%s3541_s1 + $0x20] sm:$0xff]  }
  0xa2   : > { %2528 = vmatpush3.bf16.msra.mxu1 %v3116_v5  ;;  %2673 = vmatprep.subr.bf16.mxu0 %v3349_v2  ;;  %v882_v5 = vrot.slane %v3582_v28, 1  ;;  %v506_v8 = vshll.u32 %v3697_v0, 16  ;;  %v1265_v9 = vsel %vm1258_vm4, %v1262_v52, %v1264_v1  ;;  %v3716_v28 = vld [vmem:[%s3541_s1 + $0x28] ss:$0 sps:$4 sm:$0x11]   ;;  %v510_v24 = vshrl.u32 %v3697_v0, 16 }
  0xa3   : > { %2529 = vmatprep.subr.bf16.mxu1 %v3349_v2  ;;  %v1267_v25 = vsel %vm1258_vm4, %v1264_v1, %v1266_v17  ;;  %v2241_v52 = vcombine.low %v654_v30, %v3641_v11  ;;  %v3166_v30 = vld [vmem:[#allocation6 + $0x1f0] sm:$0xff]   ;;  %v685_v32 = vrot.slane %v3716_v28, 1 }
  0xa4   : > { %v508_v16 = vrot.slane %v506_v8, 1  ;;  %v3156_v8 = vld [vmem:[#allocation6 + $0xc8] sm:$0xff]  }
  0xa5   : > { %2674 = vmatpush3.bf16.msra.mxu0 %v3117_v6  ;;  %v501_v6 = vsel %vm473_vm3, %v496_v61, %v500_v62  ;;  %v676_v11 = vrot.slane %v2241_v52, 1 }
  0xa6   : > { %2530 = vmatpush3.bf16.msra.mxu1 %v3118_v12  ;;  %2675 = vmatprep.subr.bf16.mxu0 %v3349_v2  ;;  %v3712_v12 = vsel %vm675_vm2, %v880_v47, %v882_v5  ;;  %v3141_v47 = vld [vmem:[#allocation6 + $0x1a8] sm:$0xff]  }
  0xa7   : > { %2512 = vmatmul.mubr.bf16.gmra.mrb[12].mxu1 %v3114_v13  ;;  %2531 = vmatprep.subr.bf16.mxu1 %v3349_v2  ;;  %v3140_v13 = vld [vmem:[#allocation6 + $0xa0] sm:$0xff]  }
  0xa8   : > { %2656 = vmatmul.mubr.bf16.gmra.mrb[12].mxu0 %v1091_v18  ;;  %2515 = vmatprep.mubr.msk.bf16.mxu1 %vm3350_vm0, %v3349_v2  ;;  %v884_v18 = vrot.slane %v3592_v39, 1  ;;  %v514_v39 = vshll.u32 %v3716_v28, 16 }
  0xa9   : > { %2659 = vmatprep.mubr.msk.bf16.mxu0 %vm3350_vm0, %v3349_v2  ;;  %2676 = vmatpush3.bf16.msra.mxu0 %v3119_v15  ;;  %v504_v15 = vor.u32 %v502_v7, %v500_v62  ;;  %v1463_v62 = vrot.slane %v3747_v37, 2  ;;  %v1465_v7 = vrot.slane %v3750_v14, 2 }
  0xaa   : > { %2532 = vmatpush3.bf16.msra.mxu1 %v3122_v21  ;;  %2677 = vmatprep.subr.bf16.mxu0 %v3349_v2  ;;  %v3728_v20 = vsel %vm675_vm2, %v882_v5, %v884_v18  ;;  %v886_v21 = vrot.slane %v3613_v54, 1  ;;  %v3145_v54 = vld [vmem:[#allocation6 + $0xb0] sm:$0xff]   ;;  %v516_v34 = vrot.slane %v514_v39, 1  ;;  %v3154_v5 = vld [vmem:[#allocation6 + $0xc0] sm:$0xff]  }
  0xab   : > { %2533 = vmatprep.subr.bf16.mxu1 %v3349_v2 }
  0xac   : > { %v3736_v27 = vsel %vm675_vm2, %v884_v18, %v886_v21 }
  0xad   : > { %2678 = vmatpush3.bf16.msra.mxu0 %v3123_v22  ;;  %v509_v22 = vsel %vm473_vm3, %v504_v15, %v508_v16  ;;  %v681_v15 = vrot.slane %v3681_v49, 1  ;;  %v3817_v49 = vld [vmem:[%s3541_s1 + $0x28] sm:$0xff]  }
  0xae   : > { %2534 = vmatpush3.bf16.msra.mxu1 %v3124_v26  ;;  %2699 = vmatprep.subr.bf16.mxu0 %v3349_v2  ;;  %v3143_v26 = vld [vmem:[#allocation6 + $0x1b0] sm:$0xff]   ;;  %v1469_v39 = vrot.slane %v3817_v49, 2 }
  0xaf   : > { %2516 = vmatmul.mubr.bf16.gmra.mrb[16].mxu1 %v3120_v29  ;;  %2555 = vmatprep.subr.bf16.mxu1 %v3349_v2  ;;  %v3146_v29 = vld [vmem:[#allocation6 + $0x1b8] sm:$0xff]  }
  0xb0   : > { %2660 = vmatmul.mubr.bf16.gmra.mrb[16].mxu0 %v1100_v33  ;;  %2535 = vmatprep.mubr.msk.bf16.mxu1 %vm3350_vm0, %v3349_v2  ;;  %v512_v33 = vor.u32 %v510_v24, %v508_v16  ;;  %v1467_v16 = vrot.slane %v3755_v38, 2  ;;  %v683_v24 = vrot.slane %v3697_v0, 1  ;;  %v3167_v0 = vld [vmem:[%s3541_s1 + $0x30] ss:$0 sps:$4 sm:$0x33]  }
  0xb1   : > { %2679 = vmatprep.mubr.msk.bf16.mxu0 %vm3350_vm0, %v3349_v2 }
  0xb2   : > { %v686_v28 = vsel %vm675_vm2, %v683_v24, %v685_v32 }
  0xb7   : > { %2536 = vmatmul.mubr.bf16.vlgmr.msra.gmra.mrb[0].mxu1 %v485_v42  ;;  %v3147_v42 = vld [vmem:[#allocation6 + $0xb8] sm:$0xff]  }
  0xb8   : > { %2680 = vmatmul.mubr.bf16.vlgmr.msra.gmra.mrb[0].mxu0 %v1261_v43  ;;  %2539 = vmatprep.mubr.msk.bf16.mxu1 %vm3350_vm0, %v3349_v2  ;;  %v1406_v43 = vld [vmem:[%s3541_s1 + $0x8] sm:$0xc] }
  0xb9   : > { %2700 = vmatpush3.bf16.msra.mxu0 %v3128_v44  ;;  %2683 = vmatprep.mubr.msk.bf16.mxu0 %vm3350_vm0, %v3349_v2  ;;  %v2305_v44 = vcombine.low %v1820_v41, %v1407_v31  ;;  %v3770_v56 = vcombine.low %v1406_v43, %v1407_v31  ;;  %v3168_v31 = vld [vmem:[#allocation6 + $0xf0] sm:$0xff]   ;;  %v1640_v41 = vshrl.u32 %v3747_v37, 16  ;;  %v3170_v43 = vld [vmem:[#allocation6 + $0xf8] sm:$0xff]  }
  0xba   : > { %2701 = vmatprep.subr.bf16.mxu0 %v3349_v2  ;;  %2556 = vmatpush3.bf16.msra.mxu1 %v3131_v45  ;;  %v3763_v45 = vsel %vm675_vm2, %v886_v21, %v888_v40  ;;  %v3161_v21 = vld [vmem:[#allocation6 + $0x1e0] sm:$0xff]  }
  0xbb   : > { %2557 = vmatprep.subr.bf16.mxu1 %v3349_v2  ;;  %v1462_v61 = vrot.slane %v3770_v56, 2  ;;  %v1635_v40 = vshll.u32 %v3770_v56, 16 }
  0xbd   : > { %2702 = vmatpush3.bf16.msra.mxu0 %v3129_v51  ;;  %v517_v51 = vsel %vm473_vm3, %v512_v33, %v516_v34  ;;  %v1632_v33 = vshrl.u32 %v3770_v56, 16  ;;  %v1471_v34 = vrot.slane %v3167_v0, 2  ;;  %v1652_v56 = vshll.u32 %v3750_v14, 16 }
  0xbe   : > { %2703 = vmatprep.subr.bf16.mxu0 %v3349_v2  ;;  %2558 = vmatpush3.bf16.msra.mxu1 %v3133_v53  ;;  %v1842_v53 = vrot.slane %v2305_v44, 3 }
  0xbf   : > { %2540 = vmatmul.mubr.bf16.gmra.mrb[4].mxu1 %v493_v55  ;;  %2559 = vmatprep.subr.bf16.mxu1 %v3349_v2  ;;  %v1269_v55 = vsel %vm1258_vm4, %v1266_v17, %v1268_v36  ;;  %v3158_v17 = vld [vmem:[#allocation6 + $0x1d8] sm:$0xff]   ;;  %v1634_v44 = vrot.slane %v1632_v33, 2 }
  0xc0   : > { %2684 = vmatmul.mubr.bf16.gmra.mrb[4].mxu0 %v1263_v58  ;;  %2543 = vmatprep.mubr.msk.bf16.mxu1 %vm3350_vm0, %v3349_v2  ;;  %v3778_v58 = vsel %vm1841_vm5, %v1845_v48, %v1847_v46  ;;  %v3169_v36 = vld [vmem:[#allocation6 + $0x1f8] sm:$0xff]   ;;  %v1637_v48 = vrot.slane %v1635_v40, 3 }
  0xc1   : > { %2704 = vmatpush3.bf16.msra.mxu0 %v3132_v59  ;;  %2687 = vmatprep.mubr.msk.bf16.mxu0 %vm3350_vm0, %v3349_v2  ;;  %v3782_v59 = vsel %vm1841_vm5, %v1842_v53, %v1843_v63  ;;  %v1472_v63 = vsel %vm1258_vm4, %v1469_v39, %v1471_v34 }
  0xc2   : > { %2705 = vmatprep.subr.bf16.mxu0 %v3349_v2  ;;  %2560 = vmatpush3.bf16.msra.mxu1 %v3136_v60  ;;  %v677_v60 = vrot.slane %v3653_v23, 1  ;;  %v679_v23 = vrot.slane %v3666_v35, 1  ;;  %v3159_v35 = vld [vmem:[#allocation6 + $0xd0] sm:$0xff]  }
  0xc3   : > { %2561 = vmatprep.subr.bf16.mxu1 %v3349_v2 }
  0xc4   : > { %v678_v1 = vsel %vm675_vm2, %v676_v11, %v677_v60  ;;  %v682_v18 = vsel %vm675_vm2, %v679_v23, %v681_v15 }
  0xc5   : > { %2706 = vmatpush3.bf16.msra.mxu0 %v3135_v3  ;;  %v1464_v3 = vsel %vm1258_vm4, %v1462_v61, %v1463_v62 }
  0xc6   : > { %2707 = vmatprep.subr.bf16.mxu0 %v3349_v2  ;;  %2562 = vmatpush3.bf16.msra.mxu1 %v3137_v4  ;;  %v3151_v4 = vld [vmem:[#allocation6 + $0x1c0] sm:$0xff]  }
  0xc7   : > { %2544 = vmatmul.mubr.bf16.gmra.mrb[8].mxu1 %v501_v6  ;;  %2563 = vmatprep.subr.bf16.mxu1 %v3349_v2  ;;  %v3152_v6 = vld [vmem:[#allocation6 + $0x1c8] sm:$0xff]  }
  0xc8   : > { %2688 = vmatmul.mubr.bf16.gmra.mrb[8].mxu0 %v1265_v9  ;;  %2547 = vmatprep.mubr.msk.bf16.mxu1 %vm3350_vm0, %v3349_v2  ;;  %v680_v9 = vsel %vm675_vm2, %v677_v60, %v679_v23  ;;  %v3171_v60 = vld [vmem:[#allocation6 + $0x200] sm:$0xff]  }
  0xc9   : > { %2708 = vmatpush3.bf16.msra.mxu0 %v3138_v10  ;;  %2691 = vmatprep.mubr.msk.bf16.mxu0 %vm3350_vm0, %v3349_v2  ;;  %v1466_v10 = vsel %vm1258_vm4, %v1463_v62, %v1465_v7  ;;  %v1654_v62 = vrot.slane %v1652_v56, 3 }
  0xca   : > { %2564 = vmatpush3.bf16.msra.mxu1 %v3140_v13  ;;  %2709 = vmatprep.subr.bf16.mxu0 %v3349_v2  ;;  %v3155_v13 = vld [vmem:[#allocation6 + $0x1d0] sm:$0xff]  }
  0xcb   : > { %2565 = vmatprep.subr.bf16.mxu1 %v3349_v2 }
  0xcd   : > { %2710 = vmatpush3.bf16.msra.mxu0 %v3141_v47  ;;  %v3160_v47 = vld [vmem:[#allocation6 + $0xd8] sm:$0xff]  }
  0xce   : > { %2566 = vmatpush3.bf16.msra.mxu1 %v3142_v19  ;;  %2711 = vmatprep.subr.bf16.mxu0 %v3349_v2  ;;  %v1468_v19 = vsel %vm1258_vm4, %v1465_v7, %v1467_v16 }
  0xcf   : > { %2548 = vmatmul.mubr.bf16.gmra.mrb[12].mxu1 %v509_v22  ;;  %2567 = vmatprep.subr.bf16.mxu1 %v3349_v2  ;;  %v3163_v22 = vld [vmem:[#allocation6 + $0xe0] sm:$0xff]  }
  0xd0   : > { %2692 = vmatmul.mubr.bf16.gmra.mrb[12].mxu0 %v1267_v25  ;;  %2551 = vmatprep.mubr.msk.bf16.mxu1 %vm3350_vm0, %v3349_v2  ;;  %v3164_v25 = vld [vmem:[#allocation6 + $0x1e8] sm:$0xff]  }
  0xd1   : > { %2695 = vmatprep.mubr.msk.bf16.mxu0 %vm3350_vm0, %v3349_v2  ;;  %2712 = vmatpush3.bf16.msra.mxu0 %v3143_v26  ;;  %v3165_v26 = vld [vmem:[#allocation6 + $0xe8] sm:$0xff]  }
  0xd2   : > { %2568 = vmatpush3.bf16.msra.mxu1 %v3145_v54  ;;  %2713 = vmatprep.subr.bf16.mxu0 %v3349_v2  ;;  %v684_v54 = vsel %vm675_vm2, %v681_v15, %v683_v24 }
  0xd3   : > { %2569 = vmatprep.subr.bf16.mxu1 %v3349_v2 }
  0xd5   : > { %2714 = vmatpush3.bf16.msra.mxu0 %v3146_v29  ;;  %v1470_v29 = vsel %vm1258_vm4, %v1467_v16, %v1469_v39  ;;  %v3179_v16 = vld [vmem:[%s3541_s1 + $0x30] ss:$0 sps:$4 sm:$0x77]  }
  0xd6   : > { %2570 = vmatpush3.bf16.msra.mxu1 %v3147_v42  ;;  %2735 = vmatprep.subr.bf16.mxu0 %v3349_v2  ;;  %v1643_v42 = vshll.u32 %v3747_v37, 16  ;;  %v1638_v37 = vor.u32 %v1637_v48, %v1634_v44 }
  0xd7   : > { %2552 = vmatmul.mubr.bf16.gmra.mrb[16].mxu1 %v517_v51  ;;  %2591 = vmatprep.subr.bf16.mxu1 %v3349_v2  ;;  %v1642_v51 = vrot.slane %v1640_v41, 2  ;;  %v217_v41 = vld [vmem:[#allocation2 + $0x38] sm:$0xff] }
  0xd8   : > { %2696 = vmatmul.mubr.bf16.gmra.mrb[16].mxu0 %v1269_v55  ;;  %2571 = vmatprep.mubr.msk.bf16.mxu1 %vm3350_vm0, %v3349_v2  ;;  %v1645_v52 = vrot.slane %v1643_v42, 3  ;;  %v1649_v55 = vshrl.u32 %v3750_v14, 16  ;;  %v1658_v14 = vshrl.u32 %v3755_v38, 16 }
  0xd9   : > { %2715 = vmatprep.mubr.msk.bf16.mxu0 %vm3350_vm0, %v3349_v2 }
  0xda   : > { %v1646_v53 = vor.u32 %v1645_v52, %v1642_v51  ;;  %v1651_v61 = vrot.slane %v1649_v55, 2  ;;  %v1660_v23 = vrot.slane %v1658_v14, 2  ;;  %v218_v52 = vld [vmem:[#allocation2 + $0x40] sm:$0xff] }
  0xdb   : > { %v210_v14 = vld [vmem:[#allocation2] sm:$0xff] }
  0xdc   : > { %v1647_v11 = vsel %vm1630_vm6, %v1638_v37, %v1646_v53 }
  0xdf   : > { %2572 = vmatmul.mubr.bf16.vlgmr.msra.gmra.mrb[0].mxu1 %v678_v1  ;;  %v3172_v1 = vld [vmem:[#allocation6 + $0x208] sm:$0xff]  }
  0xe0   : > { %2716 = vmatmul.mubr.bf16.vlgmr.msra.gmra.mrb[0].mxu0 %v1464_v3  ;;  %2575 = vmatprep.mubr.msk.bf16.mxu1 %vm3350_vm0, %v3349_v2  ;;  %v1655_v3 = vor.u32 %v1654_v62, %v1651_v61  ;;  %v228_v62 = vmul.f32 0.95, %v218_v52 }
  0xe1   : > { %2736 = vmatpush3.bf16.msra.mxu0 %v3151_v4  ;;  %2719 = vmatprep.mubr.msk.bf16.mxu0 %vm3350_vm0, %v3349_v2  ;;  %v1661_v4 = vshll.u32 %v3755_v38, 16 }
  0xe2   : > { %2737 = vmatprep.subr.bf16.mxu0 %v3349_v2  ;;  %2592 = vmatpush3.bf16.msra.mxu1 %v3154_v5  ;;  %v3173_v5 = vld [vmem:[#allocation6 + $0x210] sm:$0xff]  }
  0xe3   : > { %2593 = vmatprep.subr.bf16.mxu1 %v3349_v2 }
  0xe5   : > { %2738 = vmatpush3.bf16.msra.mxu0 %v3152_v6  ;;  %v1663_v6 = vrot.slane %v1661_v4, 3 }
  0xe6   : > { %2739 = vmatprep.subr.bf16.mxu0 %v3349_v2  ;;  %2594 = vmatpush3.bf16.msra.mxu1 %v3156_v8  ;;  %v3174_v8 = vld [vmem:[#allocation6 + $0x218] sm:$0xff]  }
  0xe7   : > { %2576 = vmatmul.mubr.bf16.gmra.mrb[4].mxu1 %v680_v9  ;;  %2595 = vmatprep.subr.bf16.mxu1 %v3349_v2  ;;  %v1664_v7 = vor.u32 %v1663_v6, %v1660_v23  ;;  %v1667_v9 = vshrl.u32 %v3817_v49, 16 }
  0xe8   : > { %2720 = vmatmul.mubr.bf16.gmra.mrb[4].mxu0 %v1466_v10  ;;  %2579 = vmatprep.mubr.msk.bf16.mxu1 %vm3350_vm0, %v3349_v2  ;;  %v1670_v10 = vshll.u32 %v3817_v49, 16 }
  0xe9   : > { %2740 = vmatpush3.bf16.msra.mxu0 %v3155_v13  ;;  %2723 = vmatprep.mubr.msk.bf16.mxu0 %vm3350_vm0, %v3349_v2  ;;  %v3175_v13 = vld [vmem:[#allocation6 + $0x220] sm:$0xff]  }
  0xea   : > { %2741 = vmatprep.subr.bf16.mxu0 %v3349_v2  ;;  %2596 = vmatpush3.bf16.msra.mxu1 %v3159_v35  ;;  %v1669_v35 = vrot.slane %v1667_v9, 2  ;;  %v1672_v15 = vrot.slane %v1670_v10, 3 }
  0xeb   : > { %2597 = vmatprep.subr.bf16.mxu1 %v3349_v2 }
  0xed   : > { %2742 = vmatpush3.bf16.msra.mxu0 %v3158_v17  ;;  %v1673_v17 = vor.u32 %v1672_v15, %v1669_v35 }
  0xee   : > { %2743 = vmatprep.subr.bf16.mxu0 %v3349_v2  ;;  %2598 = vmatpush3.bf16.msra.mxu1 %v3160_v47  ;;  %v3176_v47 = vld [vmem:[#allocation6 + $0x228] sm:$0xff]  }
  0xef   : > { %2580 = vmatmul.mubr.bf16.gmra.mrb[8].mxu1 %v682_v18  ;;  %2599 = vmatprep.subr.bf16.mxu1 %v3349_v2  ;;  %v1676_v18 = vshrl.u32 %v3179_v16, 16 }
  0xf0   : > { %2724 = vmatmul.mubr.bf16.gmra.mrb[8].mxu0 %v1468_v19  ;;  %2583 = vmatprep.mubr.msk.bf16.mxu1 %vm3350_vm0, %v3349_v2  ;;  %v1679_v19 = vshll.u32 %v3179_v16, 16 }
  0xf1   : > { %2744 = vmatpush3.bf16.msra.mxu0 %v3161_v21  ;;  %2727 = vmatprep.mubr.msk.bf16.mxu0 %vm3350_vm0, %v3349_v2  ;;  %v3177_v21 = vld [vmem:[#allocation6 + $0x230] sm:$0xff]  }
  0xf2   : > { %2600 = vmatpush3.bf16.msra.mxu1 %v3163_v22  ;;  %2745 = vmatprep.subr.bf16.mxu0 %v3349_v2  ;;  %v1678_v22 = vrot.slane %v1676_v18, 2  ;;  %v1681_v24 = vrot.slane %v1679_v19, 3  ;;  %v212_v18 = vld [vmem:[#allocation2 + $0x10] sm:$0xff] }
  0xf3   : > { %2601 = vmatprep.subr.bf16.mxu1 %v3349_v2 }
  0xf4   : > { %v1682_v39 = vor.u32 %v1681_v24, %v1678_v22 }
  0xf5   : > { %2746 = vmatpush3.bf16.msra.mxu0 %v3164_v25  ;;  %v3180_v25 = vld [vmem:[#allocation6 + $0x238] sm:$0xff]  }
  0xf6   : > { %2602 = vmatpush3.bf16.msra.mxu1 %v3165_v26  ;;  %2747 = vmatprep.subr.bf16.mxu0 %v3349_v2  ;;  %v1683_v26 = vsel %vm1630_vm6, %v1673_v17, %v1682_v39 }
  0xf7   : > { %2584 = vmatmul.mubr.bf16.gmra.mrb[12].mxu1 %v684_v54  ;;  %2603 = vmatprep.subr.bf16.mxu1 %v3349_v2 }
  0xf8   : > { %2728 = vmatmul.mubr.bf16.gmra.mrb[12].mxu0 %v1470_v29  ;;  %2587 = vmatprep.mubr.msk.bf16.mxu1 %vm3350_vm0, %v3349_v2 }
  0xf9   : > { %2731 = vmatprep.mubr.msk.bf16.mxu0 %vm3350_vm0, %v3349_v2  ;;  %2748 = vmatpush3.bf16.msra.mxu0 %v3166_v30 }
  0xfa   : > { %2604 = vmatpush3.bf16.msra.mxu1 %v3168_v31  ;;  %2749 = vmatprep.subr.bf16.mxu0 %v3349_v2 }
  0xfb   : > { %2605 = vmatprep.subr.bf16.mxu1 %v3349_v2 }
  0xfd   : > { %2750 = vmatpush3.bf16.msra.mxu0 %v3169_v36 }
  0xfe   : > { %2606 = vmatpush3.bf16.msra.mxu1 %v3170_v43  ;;  %2771 = vmatprep.subr.bf16.mxu0 %v3349_v2 }
  0xff   : > { %2588 = vmatmul.mubr.bf16.gmra.mrb[16].mxu1 %v686_v28  ;;  %2807 = vmatprep.subr.bf16.mxu1 %v3349_v2 }
 0x100   : > { %2732 = vmatmul.mubr.bf16.gmra.mrb[16].mxu0 %v1472_v63  ;;  %2607 = vmatprep.mubr.msk.bf16.mxu1 %vm3350_vm0, %v3349_v2 }
 0x101   : > { %2751 = vmatprep.mubr.msk.bf16.mxu0 %vm3350_vm0, %v3349_v2 }
 0x107   : > { %2608 = vmatmul.mubr.bf16.vlgmr.msra.gmra.mrb[0].mxu1 %v3610_v50  ;;  %v1656_v50 = vsel %vm1630_vm6, %v1646_v53, %v1655_v3 }
 0x108   : > { %2752 = vmatmul.mubr.bf16.vlgmr.msra.gmra.mrb[0].mxu0 %v1647_v11  ;;  %2611 = vmatprep.mubr.msk.bf16.mxu1 %vm3350_vm0, %v3349_v2 }
 0x109   : > { %2772 = vmatpush3.bf16.msra.mxu0 %v3171_v60  ;;  %2755 = vmatprep.mubr.msk.bf16.mxu0 %vm3350_vm0, %v3349_v2 }
 0x10a   : > { %2773 = vmatprep.subr.bf16.mxu0 %v3349_v2  ;;  %2815 = vmatpush3.bf16.msra.mxu1 %v3171_v60  ;;  %v219_v60 = vld [vmem:[#allocation2 + $0x48] sm:$0xff] }
 0x10b   : > { %2808 = vmatprep.subr.bf16.mxu1 %v3349_v2 }
 0x10d   : > { %2774 = vmatpush3.bf16.msra.mxu0 %v3172_v1 }
 0x10e   : > { %2775 = vmatprep.subr.bf16.mxu0 %v3349_v2  ;;  %2816 = vmatpush3.bf16.msra.mxu1 %v3172_v1  ;;  %v229_v1 = vmul.f32 0.95, %v219_v60 }
 0x10f   : > { %2612 = vmatmul.mubr.bf16.gmra.mrb[4].mxu1 %v3712_v12  ;;  %2809 = vmatprep.subr.bf16.mxu1 %v3349_v2  ;;  %v1665_v12 = vsel %vm1630_vm6, %v1655_v3, %v1664_v7 }
 0x110   : > { %2756 = vmatmul.mubr.bf16.gmra.mrb[4].mxu0 %v1656_v50  ;;  %2615 = vmatprep.mubr.msk.bf16.mxu1 %vm3350_vm0, %v3349_v2 }
 0x111   : > { %2776 = vmatpush3.bf16.msra.mxu0 %v3173_v5  ;;  %2759 = vmatprep.mubr.msk.bf16.mxu0 %vm3350_vm0, %v3349_v2 }
 0x112   : > { %2777 = vmatprep.subr.bf16.mxu0 %v3349_v2  ;;  %2817 = vmatpush3.bf16.msra.mxu1 %v3173_v5 }
 0x113   : > { %2810 = vmatprep.subr.bf16.mxu1 %v3349_v2 }
 0x115   : > { %2778 = vmatpush3.bf16.msra.mxu0 %v3174_v8 }
 0x116   : > { %2779 = vmatprep.subr.bf16.mxu0 %v3349_v2  ;;  %2818 = vmatpush3.bf16.msra.mxu1 %v3174_v8 }
 0x117   : > { %2616 = vmatmul.mubr.bf16.gmra.mrb[8].mxu1 %v3728_v20  ;;  %2811 = vmatprep.subr.bf16.mxu1 %v3349_v2  ;;  %v1674_v20 = vsel %vm1630_vm6, %v1664_v7, %v1673_v17  ;;  %v211_v7 = vld [vmem:[#allocation2 + $0x8] sm:$0xff] }
 0x118   : > { %2760 = vmatmul.mubr.bf16.gmra.mrb[8].mxu0 %v1665_v12  ;;  %2619 = vmatprep.mubr.msk.bf16.mxu1 %vm3350_vm0, %v3349_v2 }
 0x119   : > { %2780 = vmatpush3.bf16.msra.mxu0 %v3175_v13  ;;  %2763 = vmatprep.mubr.msk.bf16.mxu0 %vm3350_vm0, %v3349_v2 }
 0x11a   : > { %2819 = vmatpush3.bf16.msra.mxu1 %v3175_v13  ;;  %2781 = vmatprep.subr.bf16.mxu0 %v3349_v2  ;;  %v220_v13 = vmul.f32 0.95, %v210_v14 }
 0x11b   : > { %2812 = vmatprep.subr.bf16.mxu1 %v3349_v2 }
 0x11d   : > { %2782 = vmatpush3.bf16.msra.mxu0 %v3176_v47 }
 0x11e   : > { %2820 = vmatpush3.bf16.msra.mxu1 %v3176_v47  ;;  %2783 = vmatprep.subr.bf16.mxu0 %v3349_v2 }
 0x11f   : > { %2620 = vmatmul.mubr.bf16.gmra.mrb[12].mxu1 %v3736_v27  ;;  %2813 = vmatprep.subr.bf16.mxu1 %v3349_v2  ;;  %v1849_v27 = vrot.slane %v3817_v49, 3 }
 0x120   : > { %2764 = vmatmul.mubr.bf16.gmra.mrb[12].mxu0 %v1674_v20  ;;  %2623 = vmatprep.mubr.msk.bf16.mxu1 %vm3350_vm0, %v3349_v2 }
 0x121   : > { %2767 = vmatprep.mubr.msk.bf16.mxu0 %vm3350_vm0, %v3349_v2  ;;  %2784 = vmatpush3.bf16.msra.mxu0 %v3177_v21  ;;  %v1850_v54 = vsel %vm1841_vm5, %v1847_v46, %v1849_v27 }
 0x122   : > { %2821 = vmatpush3.bf16.msra.mxu1 %v3177_v21  ;;  %2785 = vmatprep.subr.bf16.mxu0 %v3349_v2 }
 0x123   : > { %2814 = vmatprep.subr.bf16.mxu1 %v3349_v2 }
 0x125   : > { %2786 = vmatpush3.bf16.msra.mxu0 %v3180_v25 }
 0x126   : > { %2822 = vmatpush3.bf16.msra.mxu1 %v3180_v25 }
 0x127   : > { %2624 = vmatmul.mubr.bf16.gmra.mrb[16].mxu1 %v3763_v45  ;;  %v1851_v45 = vrot.slane %v3179_v16, 3  ;;  %v221_v16 = vmul.f32 0.95, %v211_v7 }
 0x128   : > { %2768 = vmatmul.mubr.bf16.gmra.mrb[16].mxu0 %v1683_v26  ;;  %2799 = vmatprep.mubr.msk.bf16.mxu1 %vm3350_vm0, %v3349_v2  ;;  %v213_v26 = vld [vmem:[#allocation2 + $0x18] sm:$0xff] }
 0x129   : > { %2787 = vmatprep.mubr.msk.bf16.mxu0 %vm3350_vm0, %v3349_v2  ;;  %v1852_v29 = vsel %vm1841_vm5, %v1849_v27, %v1851_v45 }
 0x12f   : > { %2800 = vmatmul.mubr.bf16.vlgmr.msra.gmra.mrb[20].mxu1 %v1850_v54 }
 0x130   : > { %2788 = vmatmul.mubr.bf16.vlgmr.msra.gmra.mrb[0].mxu0 %v3782_v59  ;;  %2803 = vmatprep.mubr.msk.bf16.mxu1 %vm3350_vm0, %v3349_v2 }
 0x131   : > { %2791 = vmatprep.mubr.msk.bf16.mxu0 %vm3350_vm0, %v3349_v2 }
 0x137   : > { %2804 = vmatmul.mubr.bf16.gmra.mrb[24].mxu1 %v1852_v29  ;;  %v222_v29 = vmul.f32 0.95, %v212_v18 }
 0x138   : > { %2792 = vmatmul.mubr.bf16.gmra.mrb[4].mxu0 %v3773_v57  ;;  %v216_v57 = vld [vmem:[#allocation2 + $0x30] sm:$0xff] }
 0x139   : > { %2795 = vmatprep.mubr.msk.bf16.mxu0 %vm3350_vm0, %v3349_v2  ;;  %v226_v42 = vmul.f32 0.95, %v216_v57 }
 0x140   : > { %2796 = vmatmul.mubr.bf16.gmra.mrb[8].mxu0 %v3778_v58  ;;  %v227_v58 = vmul.f32 0.95, %v217_v41 }
 0x1da   : > { %v977_v38 = vpop.f32.mrb[0].mxu1 }
 0x1db   : > { %v2609_v46 = vpop.f32.mrb[1].mxu1  ;;  %v2823_v17 = vadd.f32 %v977_v38, %v220_v13 }
 0x1dc   : > { %v980_v59 = vpop.f32.mrb[2].mxu1 }
 0x1dd   : > { %v2610_v49 = vpop.f32.mrb[3].mxu1  ;;  %v2825_v22 = vadd.f32 %v980_v59, %v221_v16  ;;  %v223_v59 = vmul.f32 0.95, %v213_v26 }
 0x1e2   : > { %v3918_v30 = vpop.f32.mrb[4].mxu1 }
 0x1e3   : > { %v2613_v0 = vpop.f32.mrb[5].mxu1 }
 0x1e4   : > { %v3920_v31 = vpop.f32.mrb[6].mxu1 }
 0x1e5   : > { %v2614_v32 = vpop.f32.mrb[7].mxu1 }
 0x1ea   : > { %v3922_v33 = vpop.f32.mrb[8].mxu1 }
 0x1eb   : > { %v2617_v34 = vpop.f32.mrb[9].mxu1 }
 0x1ec   : > { %v3924_v36 = vpop.f32.mrb[10].mxu1 }
 0x1ed   : > { %v2618_v40 = vpop.f32.mrb[11].mxu1 }
 0x1f2   : > { %v1001_v43 = vpop.f32.mrb[12].mxu1 }
 0x1f3   : > { %v2835_v28 = vadd.f32 %v1001_v43, %v226_v42  ;;  %v1795_v44 = vpop.f32.mrb[12].mxu0  ;;  %v2621_v63 = vpop.f32.mrb[13].mxu1 }
 0x1f4   : > { %v2765_v48 = vpop.f32.mrb[13].mxu0  ;;  %v1004_v51 = vpop.f32.mrb[14].mxu1  ;;  %v214_v63 = vld [vmem:[#allocation2 + $0x20] sm:$0xff] }
 0x1f5   : > { %v2836_v37 = vadd.f32 %v2835_v28, %v1795_v44  ;;  %v2838_v53 = vadd.f32 %v1004_v51, %v227_v58  ;;  %v1798_v55 = vpop.f32.mrb[14].mxu0  ;;  %v2622_v56 = vpop.f32.mrb[15].mxu1  ;;  %v2827_v58 = vadd.f32 %v3918_v30, %v222_v29  ;;  %v215_v30 = vld [vmem:[#allocation2 + $0x28] sm:$0xff] }
 0x1f6   : > { %v2766_v11 = vpop.f32.mrb[15].mxu0 }
 0x1f7   : > { %v2839_v61 = vadd.f32 %v2838_v53, %v1798_v55 }
 0x1fa   : > { %v1009_v3 = vpop.f32.mrb[16].mxu1 }
 0x1fb   : > { %v2841_v4 = vadd.f32 %v1009_v3, %v228_v62  ;;  %v1803_v50 = vpop.f32.mrb[16].mxu0  ;;  %v2625_v5 = vpop.f32.mrb[17].mxu1  ;;  %v224_v62 = vmul.f32 0.95, %v214_v63 }
 0x1fc   : > { %v2769_v23 = vpop.f32.mrb[17].mxu0  ;;  %v1012_v6 = vpop.f32.mrb[18].mxu1 }
 0x1fd   : > { %v2842_v8 = vadd.f32 %v2841_v4, %v1803_v50  ;;  %v2844_v9 = vadd.f32 %v1012_v6, %v229_v1  ;;  %v1806_v10 = vpop.f32.mrb[18].mxu0  ;;  %v2626_v12 = vpop.f32.mrb[19].mxu1  ;;  %v225_v50 = vmul.f32 0.95, %v215_v30 }
 0x1fe   : > { %v2770_v35 = vpop.f32.mrb[19].mxu0 }
 0x1ff   : > { %v2845_v15 = vadd.f32 %v2844_v9, %v1806_v10  ;;  %v2831_v9 = vadd.f32 %v3922_v33, %v224_v62  ;;  %v2833_v35 = vadd.f32 %v3924_v36, %v225_v50 }
 0x202   : > { %v1964_v47 = vpop.f32.mrb[20].mxu1 }
 0x203   : > { %v1940_v19 = vpop.f32.mrb[0].mxu0  ;;  %v2837_v20 = vadd.f32 %v2836_v37, %v1964_v47  ;;  %v2801_v21 = vpop.f32.mrb[21].mxu1  ;;  %v2829_v37 = vadd.f32 %v3920_v31, %v223_v59 }
 0x204   : > { %v2824_v24 = vadd.f32 %v2823_v17, %v1940_v19  ;;  %v2789_v39 = vpop.f32.mrb[1].mxu0  ;;  %v1967_v25 = vpop.f32.mrb[22].mxu1 }
 0x205   : > { %vm1995_vm7 = vcmp.gt.f32.partialorder %v2837_v20, 1.0  ;;  %v1943_v27 = vpop.f32.mrb[2].mxu0  ;;  %v2840_v54 = vadd.f32 %v2839_v61, %v1967_v25  ;;  %v2802_v45 = vpop.f32.mrb[23].mxu1 }
 0x206   : > { %vm1989_vm8 = vcmp.gt.f32.partialorder %v2824_v24, 1.0  ;;  %v2320_v46 = vsel %vm1995_vm7, 1.0, %v3349_v2  ;;  %v2826_v49 = vadd.f32 %v2825_v22, %v1943_v27  ;;  %v2790_v38 = vpop.f32.mrb[3].mxu0 }
 0x207   : > { %v2314_v0 = vsel %vm1989_vm8, 1.0, %v3349_v2  ;;  %v2025_v32 = vsub.f32 %v2837_v20, %v2320_v46  ;;  %vm1996_vm9 = vcmp.gt.f32.partialorder %v2840_v54, 1.0 }
 0x208   : > { %v2019_v34 = vsub.f32 %v2824_v24, %v2314_v0  ;;  %vm1990_vm10 = vcmp.gt.f32.partialorder %v2826_v49, 1.0  ;;  %v2321_v57 = vsel %vm1996_vm9, 1.0, %v3349_v2 }
 0x209   : > { %2035 = vst [vmem:[#allocation2 + $0x30] sm:$0xff] %v2025_v32  ;;  %v2315_v40 = vsel %vm1990_vm10, 1.0, %v3349_v2  ;;  %v2026_v41 = vsub.f32 %v2840_v54, %v2321_v57  ;;  %v2357_v42 = vpack.c.bf16 %v2321_v57, %v2320_v46 }
 0x20a   : > { %2029 = vst [vmem:[#allocation2] sm:$0xff] %v2019_v34  ;;  %v2020_v43 = vsub.f32 %v2826_v49, %v2315_v40  ;;  %v2348_v28 = vpack.c.bf16 %v2315_v40, %v2314_v0  ;;  %v1972_v44 = vpop.f32.mrb[24].mxu1 }
 0x20b   : > { %2036 = vst [vmem:[#allocation2 + $0x38] sm:$0xff] %v2026_v41  ;;  %2364 = vst [vmem:[%s3552_s8 + $0x18] sm:$0xff] %v2357_v42   ;;  %v1948_v48 = vpop.f32.mrb[4].mxu0  ;;  %v2843_v51 = vadd.f32 %v2842_v8, %v1972_v44  ;;  %v2805_v52 = vpop.f32.mrb[25].mxu1 }
 0x20c   : > { %2030 = vst [vmem:[#allocation2 + $0x8] sm:$0xff] %v2020_v43  ;;  %2349 = vst [vmem:[%s3552_s8] sm:$0xff] %v2348_v28   ;;  %v2828_v53 = vadd.f32 %v2827_v58, %v1948_v48  ;;  %v2793_v55 = vpop.f32.mrb[5].mxu0  ;;  %v1975_v56 = vpop.f32.mrb[26].mxu1 }
 0x20d   : > { %vm1997_vm11 = vcmp.gt.f32.partialorder %v2843_v51, 1.0  ;;  %v1951_v11 = vpop.f32.mrb[6].mxu0  ;;  %v2846_v60 = vadd.f32 %v2845_v15, %v1975_v56  ;;  %v2806_v61 = vpop.f32.mrb[27].mxu1 }
 0x20e   : > { %vm1991_vm12 = vcmp.gt.f32.partialorder %v2828_v53, 1.0  ;;  %v2322_v1 = vsel %vm1997_vm11, 1.0, %v3349_v2  ;;  %v2830_v3 = vadd.f32 %v2829_v37, %v1951_v11  ;;  %v2794_v14 = vpop.f32.mrb[7].mxu0 }
 0x20f   : > { %v2316_v31 = vsel %vm1991_vm12, 1.0, %v3349_v2  ;;  %v2027_v4 = vsub.f32 %v2843_v51, %v2322_v1  ;;  %vm1998_vm13 = vcmp.gt.f32.partialorder %v2846_v60, 1.0 }
 0x210   : > { %v2021_v5 = vsub.f32 %v2828_v53, %v2316_v31  ;;  %vm1992_vm14 = vcmp.gt.f32.partialorder %v2830_v3, 1.0  ;;  %v2323_v23 = vsel %vm1998_vm13, 1.0, %v3349_v2 }
 0x211   : > { %2037 = vst [vmem:[#allocation2 + $0x40] sm:$0xff] %v2027_v4  ;;  %v2317_v6 = vsel %vm1992_vm14, 1.0, %v3349_v2  ;;  %v2028_v7 = vsub.f32 %v2846_v60, %v2323_v23  ;;  %v2360_v8 = vpack.c.bf16 %v2323_v23, %v2322_v1 }
 0x212   : > { %2031 = vst [vmem:[#allocation2 + $0x10] sm:$0xff] %v2021_v5  ;;  %v2022_v10 = vsub.f32 %v2830_v3, %v2317_v6  ;;  %v2351_v12 = vpack.c.bf16 %v2317_v6, %v2316_v31 }
 0x213   : > { %2038 = vst [vmem:[#allocation2 + $0x48] sm:$0xff] %v2028_v7  ;;  %2365 = vst [vmem:[%s3552_s8 + $0x20] sm:$0xff] %v2360_v8   ;;  %v1956_v13 = vpop.f32.mrb[8].mxu0 }
 0x214   : > { %2032 = vst [vmem:[#allocation2 + $0x18] sm:$0xff] %v2022_v10  ;;  %2362 = vst [vmem:[%s3552_s8 + $0x8] sm:$0xff] %v2351_v12   ;;  %v2832_v15 = vadd.f32 %v2831_v9, %v1956_v13  ;;  %v2797_v16 = vpop.f32.mrb[9].mxu0 }
 0x215   : > { %v1959_v17 = vpop.f32.mrb[10].mxu0 }
 0x216   : > { %vm1993_vm15 = vcmp.gt.f32.partialorder %v2832_v15, 1.0  ;;  %v2834_v47 = vadd.f32 %v2833_v35, %v1959_v17  ;;  %v2798_v33 = vpop.f32.mrb[11].mxu0 }
 0x217   : > { %v2318_v18 = vsel %vm1993_vm15, 1.0, %v3349_v2 }
 0x218   : > { %v2023_v19 = vsub.f32 %v2832_v15, %v2318_v18  ;;  %vm1994_vm0 = vcmp.gt.f32.partialorder %v2834_v47, 1.0 }
 0x219   : > { %v2319_v20 = vsel %vm1994_vm0, 1.0, %v3349_v2 }
 0x21a   : > { %2033 = vst [vmem:[#allocation2 + $0x20] sm:$0xff] %v2023_v19  ;;  %v2024_v36 = vsub.f32 %v2834_v47, %v2319_v20  ;;  %v2354_v21 = vpack.c.bf16 %v2319_v20, %v2318_v18 }
 0x21c   : > { %2034 = vst [vmem:[#allocation2 + $0x28] sm:$0xff] %v2024_v36  ;;  %2363 = vst [vmem:[%s3552_s8 + $0x10] sm:$0xff] %v2354_v21  }
 0x21d   : > { %3253 = shalt.err (!%p3250_p1)
}
 0x21e   : > { %s3254_s4 = scalar_lea.hbm %s3950_s27, 640  ;;  %s3258_s1 = scalar_lea.hbm %s4009_s2, 5120 }
 0x21f   : > { %p3255_p2 = scmp.ne.s32.totalorder %s3950_s27, %s3254_s4  ;;  %p3259_p9 = scmp.lt.u32.totalorder %s3950_s27, %s4009_s2 }
 0x220   : > { %p3260_p0 = scmp.lt.u32.totalorder %s3258_s1, %s3254_s4  ;;  %p3262_p8 = scmp.lt.u32.totalorder %s3254_s4, %s3950_s27 }
 0x221   : > { %p3256_p4 = pnand %p3255_p2, %p3477_p11 }
 0x222   : > { %p3261_p6 = por %p3260_p0, %p3259_p9 }
 0x223   : > { %p3257_p5 = pneg %p3256_p4 }
 0x224   : > { %p3263_p10 = por %p3262_p8, %p3261_p6 }
 0x226   : > { %p3264_p12 = pnand %p3263_p10, %p3257_p5 }
 0x228   : > { %3267 = shalt.err (!%p3264_p12)
}
 0x229   : > { %s3352_s19 = smov 64   ;;  %s3353_s21 = smov 4  }
 0x22a   : > { %2992 = dma.vmem_to_hbm [thread:$0]  (%p3477_p11), %s3952_s17, 640, %s3950_s27, %s2090_s25, %s3352_s19, %s3352_s19, %s3353_s21  }
 0x22b PF: > { %p3009_p13 = scmp.ge.s32.totalorder %s3342_s16, 2  ;;  %s2120_s12 = sand.u32 1, %s3314_s9  }
 0x22c   : > { %p4036_p3 = scmp.ne.s32.totalorder %s4022_s22, 0  ;;  %s2121_s13 = scalar_lea.sflag [#allocation5], %s2120_s12 }
 0x22e   : > { %p3003_p7 = pnand %p3009_p13, %p4036_p3 }
 0x230   : > { %3309 = dma.done.wait (!%p3003_p7), %s2121_s13, 640  }
 0x231   : > { %3311 = vsyncadd (!%p3003_p7), %s2121_s13, 4294966656  ;;  %s19_s16 = sadd.s32 1, %s3342_s16   ;;  %s4037_s29 = sld [smem:[#allocation12_spill]] }
 0x232   : > { %p16_p1 = scmp.ge.s32.totalorder %s19_s16, 10   ;;  %s4038_s7 = sld [smem:[#allocation13_spill]] }
 0x233   : > { %s4039_s9 = smov %s3318_s10  ;;  %s4040_s10 = smov %s3322_s11 }
 0x234   : > { %s4041_s11 = smov %s3494_s20  ;;  %s4042_s12 = smov %s3334_s14 }
 0x235   : > { %s4043_s13 = smov %s3338_s15  ;;  %18 = sbr.rel (!%p16_p1) target bundleno = 10 (0xa), region = 89 }
 0x237   : > { %s4044_s14 = smov %s4037_s29 }
 0x238   : > { %s4045_s15 = smov %s4038_s7 }
 0x23c   :  { %2126 = vsyncpa [#allocation4], 1 }
 0x23d   :  { %2128 = vsyncpa [#allocation4 + $0x1], 1 }
 0x23e   :  { %2129 = vsyncpa [#allocation7], 1 }
 0x23f   :  { %2130 = vsyncpa [#allocation5], 1 }
 0x240   :  { %2132 = vsyncpa [#allocation5 + $0x1], 1 }

// kernel: snn_vgg5_forward.7
= control target key start
LH: loop header
LB: loop body
LE: loop exit
PB: predicated region body
PF: predicated region fallthrough
CT: control target
= control target key end

     0   :  { %8 = vsyncpa [#allocation5], 0  ;;  %s10682_s0 = inlined_call_operand.hbm [shape: bf16[4,2,2048], index: 0, kind: input, shape index: {}]   ;;  %s10683_s1 = inlined_call_operand.hbm [shape: bf16[2048,1024], index: 1, kind: input, shape index: {}]   ;;  %s10684_s2 = inlined_call_operand.hbm [shape: bf16[1024,10], index: 2, kind: input, shape index: {}]   ;;  %s10685_s3 = inlined_call_operand.hbm [shape: f32[2,10], index: 3, kind: output, shape index: {}]  }
   0x1   :  { %10 = vsyncpa [#allocation5 + $0x1], 0 }
   0x2   :  { %11 = vsyncpa [#allocation8], 0 }
   0x3   :  { %12 = vsyncpa [#allocation6], 0  ;;  %s10292_s12 = smov 0   ;;  %s10294_s13 = smov 0  }
   0x4   :  { %s10296_s14 = smov 0   ;;  %s10298_s15 = smov 0  }
   0x5 LB: > { %s10311_s16 = sadd.s32 4294967295, %s10258_s15   ;;  %p38_p0 = scmp.ne.s32.totalorder %s10250_s13, %s10246_s12  ;;  %s10258_s15 = sphi %s10298_s15, %s10701_s15   ;;  %s10254_s14 = sphi %s10296_s14, %s10700_s14   ;;  %s10250_s13 = sphi %s10294_s13, %s10699_s13   ;;  %s10246_s12 = sphi %s10292_s12, %s10698_s12  }
   0x6   : > { %p10686_p1 = scmp.eq.s32.totalorder %s10311_s16, 0  ;;  %p8656_p2 = scmp.ge.s32.totalorder %s10258_s15, 1 }
   0x7   : > { %p112_p3 = scmp.lt.s32.totalorder %s10258_s15, 5  ;;  %s10260_s19 = smov [#allocation7]  }
   0x8   : > { %p10320_p5 = por %p10686_p1, %p38_p0  ;;  %s124_s20 = sshll.u32 %s10260_s19, 4  ;;  %s125_s20 = int_to_ptr.vmem [resolvable:$true] %s124_s20 }
   0x9   : > { %p10324_p6 = pnand %p8656_p2, %p112_p3  ;;  %s10261_s22 = smov [#allocation9]  }
   0xa   : > { %s10689_s17 = scalar_select %p10320_p5, 1, 0 }
   0xb   : > { %s10690_s18 = scalar_select %p10324_p6, 1, 0 }
   0xc   : > { %p9977_p7 = pneg %p10324_p6  ;;  %s137_s23 = sshll.u32 %s10261_s22, 4  ;;  %s10336_s23 = int_to_ptr.vmem [resolvable:$true] %s137_s23 }
   0xd   : > { %s10104_s26 = scalar_lea.hbm %s10683_s1, 131072 }
   0xe   : > { %p10332_p8 = pnand %p9977_p7, %p10686_p1  ;;  %p10105_p9 = scmp.ne.s32.totalorder %s10683_s1, %s10104_s26 }
   0xf   : > { %p10111_p13 = scmp.lt.u32.totalorder %s10104_s26, %s10683_s1 }
  0x10   : > { %p10106_p10 = pneg %p10332_p8 }
  0x12   : > { %p10107_p11 = pnand %p10106_p10, %p10105_p9 }
  0x14   : > { %p10108_p12 = pneg %p10107_p11 }
  0x16   : > { %p10113_p0 = pnand %p10111_p13, %p10108_p12 }
  0x18   : > { %10116 = shalt.err (!%p10113_p0)
}
  0x19   : > { %s10117_s4 = scalar_lea.vmem %s125_s20, 131072  ;;  %p10125_p4 = scmp.lt.s32.totalorder %s125_s20, %s125_s20 }
  0x1a   : > { %p10118_p2 = scmp.ne.s32.totalorder %s125_s20, %s10117_s4  ;;  %p10126_p1 = scmp.lt.s32.totalorder %s10117_s4, %s10117_s4 }
  0x1c   : > { %p10120_p3 = pnand %p10118_p2, %p10106_p10  ;;  %p10127_p5 = por %p10126_p1, %p10125_p4 }
  0x1e   : > { %p10121_p7 = pneg %p10120_p3 }
  0x20   : > { %p10128_p6 = pnand %p10127_p5, %p10121_p7 }
  0x22   : > { %10131 = shalt.err (!%p10128_p6)
}
  0x23   : > { %s10262_s5 = smov 512   ;;  %s10263_s6 = smov 32  }
  0x24   : > { %9980 = dma.hbm_to_vmem [thread:$0]  (!%p10332_p8), %s10683_s1, 131072, %s125_s20, [#allocation8], %s10262_s5, %s10262_s5, %s10263_s6  }
  0x25   : > { %s10132_s11 = scalar_lea.hbm %s10684_s2, 8192 }
  0x26   : > { %p10133_p9 = scmp.ne.s32.totalorder %s10684_s2, %s10132_s11  ;;  %p10139_p5 = scmp.lt.u32.totalorder %s10132_s11, %s10684_s2 }
  0x28   : > { %p10135_p1 = pnand %p10133_p9, %p10106_p10 }
  0x2a   : > { %p10136_p4 = pneg %p10135_p1 }
  0x2c   : > { %p10141_p6 = pnand %p10139_p5, %p10136_p4 }
  0x2e   : > { %10144 = shalt.err (!%p10141_p6)
}
  0x2f   : > { %s10145_s20 = scalar_lea.vmem %s10336_s23, 8192  ;;  %p10153_p0 = scmp.lt.s32.totalorder %s10336_s23, %s10336_s23 }
  0x30   : > { %p10146_p11 = scmp.ne.s32.totalorder %s10336_s23, %s10145_s20  ;;  %p10154_p2 = scmp.lt.s32.totalorder %s10145_s20, %s10145_s20 }
  0x32   : > { %p10148_p12 = pnand %p10146_p11, %p10106_p10  ;;  %p10155_p3 = por %p10154_p2, %p10153_p0 }
  0x34   : > { %p10149_p13 = pneg %p10148_p12 }
  0x36   : > { %p10156_p7 = pnand %p10155_p3, %p10149_p13 }
  0x38   : > { %10159 = shalt.err (!%p10156_p7)
}
  0x39   : > { %s10264_s25 = smov 64   ;;  %s10265_s26 = smov 4  }
  0x3a   : > { %9983 = dma.hbm_to_vmem [thread:$0]  (!%p10332_p8), %s10684_s2, 8192, %s10336_s23, [#allocation8], %s10264_s25, %s10264_s25, %s10265_s26  }
  0x3b   : > { %s10386_s29 = sadd.s32 1, %s10258_s15   ;;  %s25_s4 = sadd.s32 1, %s10254_s14 }
  0x3c   : > { %s22_s30 = ssub.s32 %s10258_s15, %s10386_s29  ;;  %p32_p9 = scmp.ne.s32.totalorder %s10254_s14, %s10250_s13 }
  0x3d   : > { %p23_p10 = scmp.eq.s32.totalorder %s22_s30, 0  ;;  %p33_p1 = scmp.eq.s32.totalorder %s10258_s15, 0 }
  0x3e   : > { %p9990_p5 = scmp.lt.s32.totalorder %s10258_s15, 4  ;;  %s151_s6 = sand.u32 1, %s10254_s14  }
  0x3f   : > { %s10395_s5 = scalar_select %p23_p10, %s10254_s14, %s25_s4  }
  0x40   : > { %p34_p4 = por %p33_p1, %p32_p9  ;;  %s9762_s7 = sshll.u32 %s10258_s15, 8 }
  0x41   : > { %s8660_s8 = sshll.u32 %s151_s6, 4  ;;  %s10403_s10 = scalar_lea.hbm %s10682_s0, %s9762_s7 }
  0x42   : > { %s155_s23 = scalar_lea.vmem [#allocation4], %s8660_s8  ;;  %p10405_p8 = pnand %p9990_p5, %p34_p4 }
  0x43   : > { %s163_s11 = sshll.u32 %s155_s23, 4  ;;  %s152_s15 = scalar_lea.sflag [#allocation5], %s151_s6  ;;  %s10409_s11 = int_to_ptr.vmem [resolvable:$true] %s163_s11 }
  0x44   : > { %s10160_s19 = scalar_lea.hbm %s10403_s10, 256  ;;  %p10162_p11 = pneg %p10405_p8 }
  0x45   : > { %p10161_p6 = scmp.ne.s32.totalorder %s10403_s10, %s10160_s19  ;;  %s10165_s20 = scalar_lea.hbm %s10682_s0, 1024 }
  0x46   : > { %p10166_p0 = scmp.lt.u32.totalorder %s10403_s10, %s10682_s0  ;;  %p10167_p2 = scmp.lt.u32.totalorder %s10165_s20, %s10160_s19 }
  0x47   : > { %p10163_p12 = pnand %p10162_p11, %p10161_p6  ;;  %p10169_p7 = scmp.lt.u32.totalorder %s10160_s19, %s10403_s10 }
  0x48   : > { %p10168_p3 = por %p10167_p2, %p10166_p0 }
  0x49   : > { %p10164_p13 = pneg %p10163_p12 }
  0x4a   : > { %p10170_p10 = por %p10169_p7, %p10168_p3 }
  0x4c   : > { %p10171_p9 = pnand %p10170_p10, %p10164_p13 }
  0x4e   : > { %10174 = shalt.err (!%p10171_p9)
}
  0x4f   : > { %s10175_s27 = scalar_lea.vmem %s10409_s11, 256  ;;  %s10266_s28 = smov [#allocation4]  }
  0x50   : > { %p10176_p1 = scmp.ne.s32.totalorder %s10409_s11, %s10175_s27  ;;  %s10180_s30 = sshll.u32 %s10266_s28, 4  ;;  %s10181_s30 = int_to_ptr.vmem [resolvable:$false] %s10180_s30 }
  0x51   : > { %s10182_s4 = scalar_lea.vmem %s10181_s30, 512  ;;  %p10183_p6 = scmp.lt.s32.totalorder %s10409_s11, %s10181_s30 }
  0x52   : > { %p10178_p4 = pnand %p10176_p1, %p10162_p11  ;;  %p10184_p12 = scmp.lt.s32.totalorder %s10182_s4, %s10175_s27 }
  0x54   : > { %p10179_p5 = pneg %p10178_p4  ;;  %p10185_p0 = por %p10184_p12, %p10183_p6 }
  0x56   : > { %p10186_p2 = pnand %p10185_p0, %p10179_p5 }
  0x58   : > { %10189 = shalt.err (!%p10186_p2)
}
  0x59   : > { %9987 = dma.hbm_to_vmem [thread:$0]  (!%p10405_p8), %s10403_s10, 256, %s10409_s11, %s152_s15  }
  0x5a   : > { %p10693_p13 = scmp.ne.s32.totalorder %s10690_s18, 0 }
  0x5b   : > { %s174_s6 = sand.u32 (!%p10693_p13), 1, %s10250_s13   ;;  %p10694_p11 = scmp.ne.s32.totalorder (!%p10693_p13), %s10689_s17, 0 }
  0x5c   : > { %172 = sbr.rel (%p10693_p13) target bundleno = 1616 (0x650), region = 32  ;;  %s10439_s7 = sshll.u32 (!%p10693_p13), %s174_s6, 4 }
  0x5d   : > { %s175_s8 = scalar_lea.sflag (!%p10693_p13), [#allocation5], %s174_s6  ;;  %s178_s21 = scalar_lea.vmem (!%p10693_p13), [#allocation4], %s10439_s7 }
  0x63   : > { %10233 = dma.done.wait (%p10694_p11), %s175_s8, 256  }
  0x64   : > { %10235 = vsyncadd (%p10694_p11), %s175_s8, 4294967040  ;;  %p10695_p3 = scmp.eq.s32.totalorder %s10311_s16, 0 }
  0x66   : > { %10237 = dma.done.wait (%p10695_p3), [#allocation8], 139264   ;;  %p10696_p8 = pmov %p10695_p3 }
  0x67   : > { %p10697_p7 = scmp.ne.s32.totalorder %s10311_s16, 0 }
  0x68   : > { %10239 = vsyncadd (%p10696_p8), [#allocation8], 4294828032  ;;  %vm211_vm0 = vcmask (!%p10697_p7), 74752   ;;  %v10267_v0 = vmov (!%p10697_p7), 0.0  }
  0x69   : > { %208 = sbr.rel (%p10697_p7) target bundleno = 112 (0x70), region = 48  ;;  %209 = vst [vmem:[#allocation2] sm:$0xff] (!%p10697_p7), %v10267_v0  ;;  %210 = vst [vmem:[#allocation2 + $0x8] sm:$0xff] (!%p10697_p7), %v10267_v0 }
  0x6a   : > { %212 = vst.msk [vmem:[#allocation3] sm:$0x3] (!%p10697_p7), %vm211_vm0, %v10267_v0 }
  0x70 PF: > { %v215_v1 = vld [vmem:[#allocation7] sm:$0xff]  ;;  %v216_v3 = vld [vmem:[#allocation7 + $0x8] sm:$0xff]  ;;  %v10268_v33 = vmov 1966171168   ;;  %v1245_v35 = vlaneseq  ;;  %vm8573_vm3 = vcmask 74752   ;;  %s10271_s17 = smov [#allocation10]  }
  0x71   : > { %v219_v2 = vld [vmem:[#allocation7 + $0x20] sm:$0xff]  ;;  %v220_v5 = vld [vmem:[#allocation7 + $0x28] sm:$0xff]  ;;  %v1243_v34 = vunpack.c.l.s4 %v10268_v33  ;;  %s8586_s18 = sshll.u32 %s10271_s17, 4  ;;  %p9993_p10 = scmp.eq.s32.totalorder %s10311_s16, 3  ;;  %s8587_s18 = int_to_ptr.vmem [resolvable:$true] %s8586_s18 }
  0x72   : > { %v8669_v4 = vcombine.high %v215_v1, %v219_v2  ;;  %v8668_v6 = vcombine.low %v215_v1, %v219_v2  ;;  %v223_v7 = vld [vmem:[#allocation7 + $0x40] sm:$0xff]  ;;  %v8671_v9 = vcombine.high %v216_v3, %v220_v5  ;;  %v8670_v10 = vcombine.low %v216_v3, %v220_v5  ;;  %v224_v12 = vld [vmem:[#allocation7 + $0x48] sm:$0xff]  ;;  %s10190_s9 = scalar_lea.vmem %s8587_s18, 32  ;;  %p10197_p5 = scmp.lt.s32.totalorder %s8587_s18, %s8587_s18 }
  0x73   : > { %v227_v8 = vld [vmem:[#allocation7 + $0x60] sm:$0xff]  ;;  %v228_v13 = vld [vmem:[#allocation7 + $0x68] sm:$0xff]  ;;  %v1244_v44 = vunpack.c.0.s8 %v1243_v34  ;;  %v10452_v45 = vshrl.u32 %v1245_v35, 7  ;;  %p10191_p9 = scmp.ne.s32.totalorder %s8587_s18, %s10190_s9  ;;  %p10198_p6 = scmp.lt.s32.totalorder %s10190_s9, %s10190_s9 }
  0x74   : > { %v8677_v11 = vcombine.high %v223_v7, %v227_v8  ;;  %v231_v14 = vld [vmem:[#allocation7 + $0x80] sm:$0xff]  ;;  %6475 = vmatprep.subr.bf16.mxu0 %v8669_v4  ;;  %v8679_v15 = vcombine.high %v224_v12, %v228_v13  ;;  %v232_v17 = vld [vmem:[#allocation7 + $0x88] sm:$0xff]  ;;  %6803 = vmatprep.subr.bf16.mxu1 %v8671_v9  ;;  %v8676_v19 = vcombine.low %v223_v7, %v227_v8 }
  0x75   : > { %v235_v16 = vld [vmem:[#allocation7 + $0xa0] sm:$0xff]  ;;  %v236_v18 = vld [vmem:[#allocation7 + $0xa8] sm:$0xff]  ;;  %6476 = vmatpush1.bf16.msra.mxu0 %v8668_v6  ;;  %6804 = vmatpush1.bf16.msra.mxu1 %v8670_v10  ;;  %v8678_v20 = vcombine.low %v224_v12, %v228_v13  ;;  %v10455_v54 = vsub.s32 %v1244_v44, %v10452_v45  ;;  %p10192_p1 = pnand %p10191_p9, %p9993_p10  ;;  %p10199_p12 = por %p10198_p6, %p10197_p5 }
  0x76   : > { %6477 = vmatprep.subr.bf16.mxu0 %v8677_v11  ;;  %v8685_v21 = vcombine.high %v231_v14, %v235_v16  ;;  %6805 = vmatprep.subr.bf16.mxu1 %v8679_v15  ;;  %v8687_v22 = vcombine.high %v232_v17, %v236_v18  ;;  %v239_v23 = vld [vmem:[#allocation7 + $0xc0] sm:$0xff]  ;;  %v240_v25 = vld [vmem:[#allocation7 + $0xc8] sm:$0xff]  ;;  %v8684_v27 = vcombine.low %v231_v14, %v235_v16 }
  0x77   : > { %v243_v24 = vld [vmem:[#allocation7 + $0xe0] sm:$0xff]  ;;  %v244_v26 = vld [vmem:[#allocation7 + $0xe8] sm:$0xff]  ;;  %v8686_v28 = vcombine.low %v232_v17, %v236_v18  ;;  %p10193_p4 = pneg %p10192_p1 }
  0x78   : > { %v8693_v29 = vcombine.high %v239_v23, %v243_v24  ;;  %v8695_v30 = vcombine.high %v240_v25, %v244_v26  ;;  %v247_v31 = vld [vmem:[#allocation7 + $0x100] sm:$0xff]  ;;  %v248_v36 = vld [vmem:[#allocation7 + $0x108] sm:$0xff]  ;;  %v8692_v38 = vcombine.low %v239_v23, %v243_v24  ;;  %v8694_v39 = vcombine.low %v240_v25, %v244_v26 }
  0x79   : > { %6478 = vmatpush1.bf16.msra.mxu0 %v8676_v19  ;;  %6806 = vmatpush1.bf16.msra.mxu1 %v8678_v20  ;;  %v251_v32 = vld [vmem:[#allocation7 + $0x120] sm:$0xff]  ;;  %v252_v37 = vld [vmem:[#allocation7 + $0x128] sm:$0xff]  ;;  %p10200_p0 = pnand %p10199_p12, %p10193_p4 }
  0x7a   : > { %6479 = vmatprep.subr.bf16.mxu0 %v8685_v21  ;;  %6807 = vmatprep.subr.bf16.mxu1 %v8687_v22  ;;  %v8701_v40 = vcombine.high %v247_v31, %v251_v32  ;;  %v8703_v41 = vcombine.high %v248_v36, %v252_v37  ;;  %v255_v42 = vld [vmem:[#allocation7 + $0x140] sm:$0xff]  ;;  %v256_v46 = vld [vmem:[#allocation7 + $0x148] sm:$0xff]  ;;  %v8700_v48 = vcombine.low %v247_v31, %v251_v32 }
  0x7b   : > { %v259_v43 = vld [vmem:[#allocation7 + $0x160] sm:$0xff]  ;;  %v260_v47 = vld [vmem:[#allocation7 + $0x168] sm:$0xff]  ;;  %v8702_v49 = vcombine.low %v248_v36, %v252_v37 }
  0x7c   : > { %v8709_v50 = vcombine.high %v255_v42, %v259_v43  ;;  %v8711_v51 = vcombine.high %v256_v46, %v260_v47  ;;  %v263_v52 = vld [vmem:[#allocation7 + $0x180] sm:$0xff]  ;;  %v264_v55 = vld [vmem:[#allocation7 + $0x188] sm:$0xff]  ;;  %v8708_v57 = vcombine.low %v255_v42, %v259_v43  ;;  %v8710_v58 = vcombine.low %v256_v46, %v260_v47 }
  0x7d   : > { %6480 = vmatpush1.bf16.msra.mxu0 %v8684_v27  ;;  %6808 = vmatpush1.bf16.msra.mxu1 %v8686_v28  ;;  %v267_v53 = vld [vmem:[#allocation7 + $0x1a0] sm:$0xff]  ;;  %v268_v56 = vld [vmem:[#allocation7 + $0x1a8] sm:$0xff] }
  0x7e   : > { %6481 = vmatprep.subr.bf16.mxu0 %v8693_v29  ;;  %6809 = vmatprep.subr.bf16.mxu1 %v8695_v30  ;;  %v8717_v59 = vcombine.high %v263_v52, %v267_v53  ;;  %v10459_v60 = vld [vmem:[%s178_s21] sm:$0xff]  ;;  %v8719_v61 = vcombine.high %v264_v55, %v268_v56  ;;  %v272_v1 = vld [vmem:[#allocation7 + $0x1c8] sm:$0xff]  ;;  %v8716_v3 = vcombine.low %v263_v52, %v267_v53 }
  0x7f   : > { %v271_v62 = vld [vmem:[#allocation7 + $0x1c0] sm:$0xff]  ;;  %v10463_v0 = vrot.slane %v10459_v60, %v10455_v54  ;;  %v276_v2 = vld [vmem:[#allocation7 + $0x1e8] sm:$0xff]  ;;  %v8718_v5 = vcombine.low %v264_v55, %v268_v56 }
  0x80   : > { %v275_v63 = vld [vmem:[#allocation7 + $0x1e0] sm:$0xff]  ;;  %v8727_v7 = vcombine.high %v272_v1, %v276_v2  ;;  %v280_v11 = vld [vmem:[#allocation7 + $0x208] sm:$0xff]  ;;  %v8726_v14 = vcombine.low %v272_v1, %v276_v2 }
  0x81   : > { %6482 = vmatpush1.bf16.msra.mxu0 %v8692_v38  ;;  %6810 = vmatpush1.bf16.msra.mxu1 %v8694_v39  ;;  %v1256_v4 = vcombine.high %v10463_v0, %v10463_v0  ;;  %v8725_v6 = vcombine.high %v271_v62, %v275_v63  ;;  %v279_v8 = vld [vmem:[#allocation7 + $0x200] sm:$0xff]  ;;  %v284_v12 = vld [vmem:[#allocation7 + $0x228] sm:$0xff]  ;;  %v8724_v13 = vcombine.low %v271_v62, %v275_v63 }
  0x82   : > { %6483 = vmatprep.subr.bf16.mxu0 %v8701_v40  ;;  %6811 = vmatprep.subr.bf16.mxu1 %v8703_v41  ;;  %v283_v9 = vld [vmem:[#allocation7 + $0x220] sm:$0xff]  ;;  %v8735_v16 = vcombine.high %v280_v11, %v284_v12  ;;  %v288_v19 = vld [vmem:[#allocation7 + $0x248] sm:$0xff]  ;;  %v8734_v22 = vcombine.low %v280_v11, %v284_v12 }
  0x83   : > { %v10468_v10 = vrot.slane %v1256_v4, %v10455_v54  ;;  %v8733_v15 = vcombine.high %v279_v8, %v283_v9  ;;  %v287_v17 = vld [vmem:[#allocation7 + $0x240] sm:$0xff]  ;;  %v292_v20 = vld [vmem:[#allocation7 + $0x268] sm:$0xff]  ;;  %v8732_v21 = vcombine.low %v279_v8, %v283_v9 }
  0x84   : > { %v291_v18 = vld [vmem:[#allocation7 + $0x260] sm:$0xff]  ;;  %v8743_v24 = vcombine.high %v288_v19, %v292_v20  ;;  %v296_v27 = vld [vmem:[#allocation7 + $0x288] sm:$0xff]  ;;  %v8742_v30 = vcombine.low %v288_v19, %v292_v20 }
  0x85   : > { %6484 = vmatpush1.bf16.msra.mxu0 %v8700_v48  ;;  %6812 = vmatpush1.bf16.msra.mxu1 %v8702_v49  ;;  %v8741_v23 = vcombine.high %v287_v17, %v291_v18  ;;  %v295_v25 = vld [vmem:[#allocation7 + $0x280] sm:$0xff]  ;;  %v300_v28 = vld [vmem:[#allocation7 + $0x2a8] sm:$0xff]  ;;  %v8740_v29 = vcombine.low %v287_v17, %v291_v18 }
  0x86   : > { %6485 = vmatprep.subr.bf16.mxu0 %v8709_v50  ;;  %6813 = vmatprep.subr.bf16.mxu1 %v8711_v51  ;;  %v299_v26 = vld [vmem:[#allocation7 + $0x2a0] sm:$0xff]  ;;  %v8751_v32 = vcombine.high %v296_v27, %v300_v28  ;;  %v304_v35 = vld [vmem:[#allocation7 + $0x2c8] sm:$0xff]  ;;  %v8750_v38 = vcombine.low %v296_v27, %v300_v28 }
  0x87   : > { %6507 = vmatprep.mubr.bf16.mxu0 %v10468_v10  ;;  %6835 = vmatprep.mubr.bf16.mxu1 %v10468_v10  ;;  %v8749_v31 = vcombine.high %v295_v25, %v299_v26  ;;  %v303_v33 = vld [vmem:[#allocation7 + $0x2c0] sm:$0xff]  ;;  %v308_v36 = vld [vmem:[#allocation7 + $0x2e8] sm:$0xff]  ;;  %v8748_v37 = vcombine.low %v295_v25, %v299_v26 }
  0x88   : > { %v307_v34 = vld [vmem:[#allocation7 + $0x2e0] sm:$0xff]  ;;  %v8759_v40 = vcombine.high %v304_v35, %v308_v36  ;;  %v312_v43 = vld [vmem:[#allocation7 + $0x308] sm:$0xff]  ;;  %v8758_v47 = vcombine.low %v304_v35, %v308_v36  ;;  %v10478_v35 = vcombine.high %v10468_v10, %v10468_v10 }
  0x89   : > { %6486 = vmatpush1.bf16.msra.mxu0 %v8708_v57  ;;  %6814 = vmatpush1.bf16.msra.mxu1 %v8710_v58  ;;  %v8757_v39 = vcombine.high %v303_v33, %v307_v34  ;;  %v311_v41 = vld [vmem:[#allocation7 + $0x300] sm:$0xff]  ;;  %v316_v44 = vld [vmem:[#allocation7 + $0x328] sm:$0xff]  ;;  %v8756_v46 = vcombine.low %v303_v33, %v307_v34 }
  0x8a   : > { %6487 = vmatprep.subr.bf16.mxu0 %v8717_v59  ;;  %6815 = vmatprep.subr.bf16.mxu1 %v8719_v61  ;;  %v315_v42 = vld [vmem:[#allocation7 + $0x320] sm:$0xff]  ;;  %v8767_v49 = vcombine.high %v312_v43, %v316_v44  ;;  %v320_v52 = vld [vmem:[#allocation7 + $0x348] sm:$0xff]  ;;  %v8766_v56 = vcombine.low %v312_v43, %v316_v44 }
  0x8b   : > { %v8765_v48 = vcombine.high %v311_v41, %v315_v42  ;;  %v319_v50 = vld [vmem:[#allocation7 + $0x340] sm:$0xff]  ;;  %v324_v53 = vld [vmem:[#allocation7 + $0x368] sm:$0xff]  ;;  %v8764_v55 = vcombine.low %v311_v41, %v315_v42 }
  0x8c   : > { %v323_v51 = vld [vmem:[#allocation7 + $0x360] sm:$0xff]  ;;  %v8775_v58 = vcombine.high %v320_v52, %v324_v53  ;;  %v328_v62 = vld [vmem:[#allocation7 + $0x388] sm:$0xff]  ;;  %v8774_v2 = vcombine.low %v320_v52, %v324_v53 }
  0x8d   : > { %6488 = vmatpush1.bf16.msra.mxu0 %v8716_v3  ;;  %6816 = vmatpush1.bf16.msra.mxu1 %v8718_v5  ;;  %v8773_v57 = vcombine.high %v319_v50, %v323_v51  ;;  %v327_v59 = vld [vmem:[#allocation7 + $0x380] sm:$0xff]  ;;  %v332_v63 = vld [vmem:[#allocation7 + $0x3a8] sm:$0xff]  ;;  %v8772_v1 = vcombine.low %v319_v50, %v323_v51 }
  0x8e   : > { %6489 = vmatprep.subr.bf16.mxu0 %v8725_v6  ;;  %6817 = vmatprep.subr.bf16.mxu1 %v8727_v7  ;;  %v331_v61 = vld [vmem:[#allocation7 + $0x3a0] sm:$0xff]  ;;  %v8783_v4 = vcombine.high %v328_v62, %v332_v63  ;;  %v336_v7 = vld [vmem:[#allocation7 + $0x3c8] sm:$0xff]  ;;  %v8782_v11 = vcombine.low %v328_v62, %v332_v63 }
  0x8f   : > { %v8781_v3 = vcombine.high %v327_v59, %v331_v61  ;;  %v335_v5 = vld [vmem:[#allocation7 + $0x3c0] sm:$0xff]  ;;  %v340_v8 = vld [vmem:[#allocation7 + $0x3e8] sm:$0xff]  ;;  %v8780_v9 = vcombine.low %v327_v59, %v331_v61 }
  0x90   : > { %v339_v6 = vld [vmem:[#allocation7 + $0x3e0] sm:$0xff]  ;;  %v348_v17 = vld [vmem:[#allocation7 + $0x428] sm:$0xff]  ;;  %v8790_v19 = vcombine.low %v336_v7, %v340_v8 }
  0x91   : > { %6490 = vmatpush1.bf16.msra.mxu0 %v8724_v13  ;;  %6818 = vmatpush1.bf16.msra.mxu1 %v8726_v14  ;;  %v8789_v12 = vcombine.high %v335_v5, %v339_v6  ;;  %v8791_v13 = vcombine.high %v336_v7, %v340_v8  ;;  %v343_v14 = vld [vmem:[#allocation7 + $0x400] sm:$0xff]  ;;  %v8788_v18 = vcombine.low %v335_v5, %v339_v6  ;;  %v352_v25 = vld [vmem:[#allocation7 + $0x448] sm:$0xff] }
  0x92   : > { %6491 = vmatprep.subr.bf16.mxu0 %v8733_v15  ;;  %6819 = vmatprep.subr.bf16.mxu1 %v8735_v16  ;;  %v347_v15 = vld [vmem:[#allocation7 + $0x420] sm:$0xff]  ;;  %v344_v16 = vld [vmem:[#allocation7 + $0x408] sm:$0xff] }
  0x93   : > { %v8797_v20 = vcombine.high %v343_v14, %v347_v15  ;;  %v356_v26 = vld [vmem:[#allocation7 + $0x468] sm:$0xff]  ;;  %v8796_v27 = vcombine.low %v343_v14, %v347_v15  ;;  %v8798_v28 = vcombine.low %v344_v16, %v348_v17 }
  0x94   : > { %v8807_v33 = vcombine.high %v352_v25, %v356_v26  ;;  %v364_v34 = vld [vmem:[#allocation7 + $0x4a8] sm:$0xff]  ;;  %v8806_v36 = vcombine.low %v352_v25, %v356_v26 }
  0x95   : > { %6492 = vmatpush1.bf16.msra.mxu0 %v8732_v21  ;;  %6820 = vmatpush1.bf16.msra.mxu1 %v8734_v22  ;;  %v8799_v21 = vcombine.high %v344_v16, %v348_v17  ;;  %v351_v22 = vld [vmem:[#allocation7 + $0x440] sm:$0xff]  ;;  %v372_v42 = vld [vmem:[#allocation7 + $0x4e8] sm:$0xff] }
  0x96   : > { %6493 = vmatprep.subr.bf16.mxu0 %v8741_v23  ;;  %6821 = vmatprep.subr.bf16.mxu1 %v8743_v24  ;;  %v355_v23 = vld [vmem:[#allocation7 + $0x460] sm:$0xff]  ;;  %v10474_v24 = vrot.slane %v10463_v0, %v10455_v54  ;;  %v380_v51 = vld [vmem:[#allocation7 + $0x528] sm:$0xff] }
  0x97   : > { %v8804_v0 = vcombine.low %v351_v22, %v355_v23  ;;  %v388_v61 = vld [vmem:[#allocation7 + $0x568] sm:$0xff] }
  0x98   : > { %v396_v6 = vld [vmem:[#allocation7 + $0x5a8] sm:$0xff] }
  0x99   : > { %6494 = vmatpush1.bf16.msra.mxu0 %v8740_v29  ;;  %6822 = vmatpush1.bf16.msra.mxu1 %v8742_v30  ;;  %v8805_v29 = vcombine.high %v351_v22, %v355_v23  ;;  %v359_v30 = vld [vmem:[#allocation7 + $0x480] sm:$0xff]  ;;  %v404_v15 = vld [vmem:[#allocation7 + $0x5e8] sm:$0xff] }
  0x9a   : > { %6495 = vmatprep.subr.bf16.mxu0 %v8749_v31  ;;  %6823 = vmatprep.subr.bf16.mxu1 %v8751_v32  ;;  %v363_v31 = vld [vmem:[#allocation7 + $0x4a0] sm:$0xff]  ;;  %v360_v32 = vld [vmem:[#allocation7 + $0x488] sm:$0xff] }
  0x9b   : > { %v8815_v41 = vcombine.high %v360_v32, %v364_v34  ;;  %v8812_v43 = vcombine.low %v359_v30, %v363_v31  ;;  %v8814_v44 = vcombine.low %v360_v32, %v364_v34  ;;  %v412_v23 = vld [vmem:[#allocation7 + $0x628] sm:$0xff] }
  0x9c   : > { %v420_v32 = vld [vmem:[#allocation7 + $0x668] sm:$0xff] }
  0x9d   : > { %6496 = vmatpush1.bf16.msra.mxu0 %v8748_v37  ;;  %6824 = vmatpush1.bf16.msra.mxu1 %v8750_v38  ;;  %v8813_v37 = vcombine.high %v359_v30, %v363_v31  ;;  %v367_v38 = vld [vmem:[#allocation7 + $0x4c0] sm:$0xff]  ;;  %v416_v30 = vld [vmem:[#allocation7 + $0x648] sm:$0xff] }
  0x9e   : > { %6497 = vmatprep.subr.bf16.mxu0 %v8757_v39  ;;  %6825 = vmatprep.subr.bf16.mxu1 %v8759_v40  ;;  %v371_v39 = vld [vmem:[#allocation7 + $0x4e0] sm:$0xff]  ;;  %v368_v40 = vld [vmem:[#allocation7 + $0x4c8] sm:$0xff] }
  0x9f   : > { %v8823_v50 = vcombine.high %v368_v40, %v372_v42  ;;  %v8820_v52 = vcombine.low %v367_v38, %v371_v39  ;;  %v8822_v53 = vcombine.low %v368_v40, %v372_v42  ;;  %v428_v40 = vld [vmem:[#allocation7 + $0x6a8] sm:$0xff]  ;;  %v8870_v42 = vcombine.low %v416_v30, %v420_v32 }
  0xa1   : > { %6498 = vmatpush1.bf16.msra.mxu0 %v8756_v46  ;;  %6826 = vmatpush1.bf16.msra.mxu1 %v8758_v47  ;;  %v8821_v46 = vcombine.high %v367_v38, %v371_v39  ;;  %v375_v47 = vld [vmem:[#allocation7 + $0x500] sm:$0xff]  ;;  %v424_v38 = vld [vmem:[#allocation7 + $0x688] sm:$0xff]  ;;  %v8871_v39 = vcombine.high %v416_v30, %v420_v32 }
  0xa2   : > { %6499 = vmatprep.subr.bf16.mxu0 %v8765_v48  ;;  %6827 = vmatprep.subr.bf16.mxu1 %v8767_v49  ;;  %v379_v48 = vld [vmem:[#allocation7 + $0x520] sm:$0xff]  ;;  %v376_v49 = vld [vmem:[#allocation7 + $0x508] sm:$0xff] }
  0xa3   : > { %v8831_v59 = vcombine.high %v376_v49, %v380_v51  ;;  %v8828_v62 = vcombine.low %v375_v47, %v379_v48  ;;  %v8830_v63 = vcombine.low %v376_v49, %v380_v51  ;;  %v436_v49 = vld [vmem:[#allocation7 + $0x6e8] sm:$0xff]  ;;  %v8878_v51 = vcombine.low %v424_v38, %v428_v40 }
  0xa5   : > { %6500 = vmatpush1.bf16.msra.mxu0 %v8764_v55  ;;  %6828 = vmatpush1.bf16.msra.mxu1 %v8766_v56  ;;  %v8829_v55 = vcombine.high %v375_v47, %v379_v48  ;;  %v383_v56 = vld [vmem:[#allocation7 + $0x540] sm:$0xff]  ;;  %v432_v47 = vld [vmem:[#allocation7 + $0x6c8] sm:$0xff]  ;;  %v8879_v48 = vcombine.high %v424_v38, %v428_v40 }
  0xa6   : > { %6501 = vmatprep.subr.bf16.mxu0 %v8773_v57  ;;  %6829 = vmatprep.subr.bf16.mxu1 %v8775_v58  ;;  %v387_v57 = vld [vmem:[#allocation7 + $0x560] sm:$0xff]  ;;  %v384_v58 = vld [vmem:[#allocation7 + $0x548] sm:$0xff] }
  0xa7   : > { %v8839_v5 = vcombine.high %v384_v58, %v388_v61  ;;  %v8836_v7 = vcombine.low %v383_v56, %v387_v57  ;;  %v8838_v8 = vcombine.low %v384_v58, %v388_v61  ;;  %v444_v58 = vld [vmem:[#allocation7 + $0x728] sm:$0xff]  ;;  %v8886_v61 = vcombine.low %v432_v47, %v436_v49 }
  0xa9   : > { %6502 = vmatpush1.bf16.msra.mxu0 %v8772_v1  ;;  %6830 = vmatpush1.bf16.msra.mxu1 %v8774_v2  ;;  %v8837_v1 = vcombine.high %v383_v56, %v387_v57  ;;  %v391_v2 = vld [vmem:[#allocation7 + $0x580] sm:$0xff]  ;;  %v440_v56 = vld [vmem:[#allocation7 + $0x708] sm:$0xff]  ;;  %v8887_v57 = vcombine.high %v432_v47, %v436_v49 }
  0xaa   : > { %6503 = vmatprep.subr.bf16.mxu0 %v8781_v3  ;;  %6831 = vmatprep.subr.bf16.mxu1 %v8783_v4  ;;  %v395_v3 = vld [vmem:[#allocation7 + $0x5a0] sm:$0xff]  ;;  %v392_v4 = vld [vmem:[#allocation7 + $0x588] sm:$0xff] }
  0xab   : > { %v8847_v14 = vcombine.high %v392_v4, %v396_v6  ;;  %v8844_v16 = vcombine.low %v391_v2, %v395_v3  ;;  %v8846_v17 = vcombine.low %v392_v4, %v396_v6  ;;  %v452_v4 = vld [vmem:[#allocation7 + $0x768] sm:$0xff]  ;;  %v8894_v6 = vcombine.low %v440_v56, %v444_v58  ;;  %v487_v47 = vld [vmem:[#allocation7 + $0x880] sm:$0xff] }
  0xad   : > { %6504 = vmatpush1.bf16.msra.mxu0 %v8780_v9  ;;  %6832 = vmatpush1.bf16.msra.mxu1 %v8782_v11  ;;  %v8845_v9 = vcombine.high %v391_v2, %v395_v3  ;;  %v399_v11 = vld [vmem:[#allocation7 + $0x5c0] sm:$0xff]  ;;  %v448_v2 = vld [vmem:[#allocation7 + $0x748] sm:$0xff]  ;;  %v8895_v3 = vcombine.high %v440_v56, %v444_v58 }
  0xae   : > { %6505 = vmatprep.subr.bf16.mxu0 %v8789_v12  ;;  %6833 = vmatprep.subr.bf16.mxu1 %v8791_v13  ;;  %v403_v12 = vld [vmem:[#allocation7 + $0x5e0] sm:$0xff]  ;;  %v400_v13 = vld [vmem:[#allocation7 + $0x5c8] sm:$0xff] }
  0xaf   : > { %v8855_v22 = vcombine.high %v400_v13, %v404_v15  ;;  %v8852_v25 = vcombine.low %v399_v11, %v403_v12  ;;  %v8854_v26 = vcombine.low %v400_v13, %v404_v15  ;;  %v460_v13 = vld [vmem:[#allocation7 + $0x7a8] sm:$0xff]  ;;  %v8902_v15 = vcombine.low %v448_v2, %v452_v4  ;;  %v499_v58 = vld [vmem:[#allocation7 + $0x8e0] sm:$0xff] }
  0xb1   : > { %6506 = vmatpush1.bf16.msra.mxu0 %v8788_v18  ;;  %6834 = vmatpush1.bf16.msra.mxu1 %v8790_v19  ;;  %v8853_v18 = vcombine.high %v399_v11, %v403_v12  ;;  %v407_v19 = vld [vmem:[#allocation7 + $0x600] sm:$0xff]  ;;  %v456_v11 = vld [vmem:[#allocation7 + $0x788] sm:$0xff]  ;;  %v8903_v12 = vcombine.high %v448_v2, %v452_v4 }
  0xb2   : > { %6516 = vmatprep.subr.bf16.mxu0 %v8797_v20  ;;  %6844 = vmatprep.subr.bf16.mxu1 %v8799_v21  ;;  %v411_v20 = vld [vmem:[#allocation7 + $0x620] sm:$0xff]  ;;  %v408_v21 = vld [vmem:[#allocation7 + $0x608] sm:$0xff] }
  0xb3   : > { %v8863_v31 = vcombine.high %v408_v21, %v412_v23  ;;  %v8862_v34 = vcombine.low %v408_v21, %v412_v23  ;;  %v468_v21 = vld [vmem:[#allocation7 + $0x7e8] sm:$0xff]  ;;  %v507_v4 = vld [vmem:[#allocation7 + $0x920] sm:$0xff] }
  0xb4   : > { %6508 = vmatmul.mubr.bf16.vlgmr.msra.gmra.mrb[0].mxu0 %v10474_v24  ;;  %6836 = vmatmul.mubr.bf16.vlgmr.msra.gmra.mrb[0].mxu1 %v10474_v24 }
  0xb5   : > { %6517 = vmatpush1.bf16.msra.mxu0 %v8796_v27  ;;  %6845 = vmatpush1.bf16.msra.mxu1 %v8798_v28  ;;  %v8861_v27 = vcombine.high %v407_v19, %v411_v20  ;;  %v415_v28 = vld [vmem:[#allocation7 + $0x640] sm:$0xff] }
  0xb6   : > { %6518 = vmatprep.subr.bf16.mxu0 %v8805_v29  ;;  %6846 = vmatprep.subr.bf16.mxu1 %v8807_v33  ;;  %v419_v29 = vld [vmem:[#allocation7 + $0x660] sm:$0xff]  ;;  %v8860_v33 = vcombine.low %v407_v19, %v411_v20  ;;  %v464_v19 = vld [vmem:[#allocation7 + $0x7c8] sm:$0xff]  ;;  %v8911_v20 = vcombine.high %v456_v11, %v460_v13 }
  0xb7   : > { %6548 = vmatprep.mubr.bf16.mxu0 %v10478_v35  ;;  %6876 = vmatprep.mubr.bf16.mxu1 %v10478_v35  ;;  %v8919_v30 = vcombine.high %v464_v19, %v468_v21 }
  0xb9   : > { %6519 = vmatpush1.bf16.msra.mxu0 %v8804_v0  ;;  %6847 = vmatpush1.bf16.msra.mxu1 %v8806_v36  ;;  %v8869_v0 = vcombine.high %v415_v28, %v419_v29  ;;  %v423_v36 = vld [vmem:[#allocation7 + $0x680] sm:$0xff] }
  0xba   : > { %6520 = vmatprep.subr.bf16.mxu0 %v8813_v37  ;;  %6848 = vmatprep.subr.bf16.mxu1 %v8815_v41  ;;  %v427_v37 = vld [vmem:[#allocation7 + $0x6a0] sm:$0xff]  ;;  %v8868_v41 = vcombine.low %v415_v28, %v419_v29  ;;  %v472_v29 = vld [vmem:[#allocation7 + $0x808] sm:$0xff] }
  0xbb   : > { %v475_v28 = vld [vmem:[#allocation7 + $0x820] sm:$0xff] }
  0xbd   : > { %6521 = vmatpush1.bf16.msra.mxu0 %v8812_v43  ;;  %6849 = vmatpush1.bf16.msra.mxu1 %v8814_v44  ;;  %v8877_v43 = vcombine.high %v423_v36, %v427_v37  ;;  %v431_v44 = vld [vmem:[#allocation7 + $0x6c0] sm:$0xff] }
  0xbe   : > { %6522 = vmatprep.subr.bf16.mxu0 %v8821_v46  ;;  %6850 = vmatprep.subr.bf16.mxu1 %v8823_v50  ;;  %v435_v46 = vld [vmem:[#allocation7 + $0x6e0] sm:$0xff]  ;;  %v8876_v50 = vcombine.low %v423_v36, %v427_v37  ;;  %v480_v37 = vld [vmem:[#allocation7 + $0x848] sm:$0xff] }
  0xbf   : > { %v483_v36 = vld [vmem:[#allocation7 + $0x860] sm:$0xff] }
  0xc1   : > { %6523 = vmatpush1.bf16.msra.mxu0 %v8820_v52  ;;  %6851 = vmatpush1.bf16.msra.mxu1 %v8822_v53  ;;  %v8885_v52 = vcombine.high %v431_v44, %v435_v46  ;;  %v439_v53 = vld [vmem:[#allocation7 + $0x700] sm:$0xff] }
  0xc2   : > { %6524 = vmatprep.subr.bf16.mxu0 %v8829_v55  ;;  %6852 = vmatprep.subr.bf16.mxu1 %v8831_v59  ;;  %v443_v55 = vld [vmem:[#allocation7 + $0x720] sm:$0xff]  ;;  %v8884_v59 = vcombine.low %v431_v44, %v435_v46 }
  0xc5   : > { %6525 = vmatpush1.bf16.msra.mxu0 %v8828_v62  ;;  %6853 = vmatpush1.bf16.msra.mxu1 %v8830_v63  ;;  %v8893_v62 = vcombine.high %v439_v53, %v443_v55  ;;  %v447_v63 = vld [vmem:[#allocation7 + $0x740] sm:$0xff] }
  0xc6   : > { %6526 = vmatprep.subr.bf16.mxu0 %v8837_v1  ;;  %6854 = vmatprep.subr.bf16.mxu1 %v8839_v5  ;;  %v451_v1 = vld [vmem:[#allocation7 + $0x760] sm:$0xff]  ;;  %v8892_v5 = vcombine.low %v439_v53, %v443_v55 }
  0xc9   : > { %6527 = vmatpush1.bf16.msra.mxu0 %v8836_v7  ;;  %6855 = vmatpush1.bf16.msra.mxu1 %v8838_v8  ;;  %v8901_v7 = vcombine.high %v447_v63, %v451_v1  ;;  %v455_v8 = vld [vmem:[#allocation7 + $0x780] sm:$0xff] }
  0xca   : > { %6528 = vmatprep.subr.bf16.mxu0 %v8845_v9  ;;  %6856 = vmatprep.subr.bf16.mxu1 %v8847_v14  ;;  %v459_v9 = vld [vmem:[#allocation7 + $0x7a0] sm:$0xff]  ;;  %v8900_v14 = vcombine.low %v447_v63, %v451_v1 }
  0xcb   : > { %v8908_v23 = vcombine.low %v455_v8, %v459_v9 }
  0xcd   : > { %6529 = vmatpush1.bf16.msra.mxu0 %v8844_v16  ;;  %6857 = vmatpush1.bf16.msra.mxu1 %v8846_v17  ;;  %v8909_v16 = vcombine.high %v455_v8, %v459_v9  ;;  %v463_v17 = vld [vmem:[#allocation7 + $0x7c0] sm:$0xff] }
  0xce   : > { %6530 = vmatprep.subr.bf16.mxu0 %v8853_v18  ;;  %6858 = vmatprep.subr.bf16.mxu1 %v8855_v22  ;;  %v467_v18 = vld [vmem:[#allocation7 + $0x7e0] sm:$0xff]  ;;  %v1241_v22 = vcombine.high %v10459_v60, %v10459_v60  ;;  %v8918_v60 = vcombine.low %v464_v19, %v468_v21 }
  0xcf   : > { %v523_v21 = vld [vmem:[#allocation7 + $0x9a0] sm:$0xff] }
  0xd0   : > { %v10487_v32 = vrot.slane %v1241_v22, %v10455_v54  ;;  %v520_v22 = vld [vmem:[#allocation7 + $0x988] sm:$0xff] }
  0xd1   : > { %6531 = vmatpush1.bf16.msra.mxu0 %v8852_v25  ;;  %6859 = vmatpush1.bf16.msra.mxu1 %v8854_v26  ;;  %v8910_v25 = vcombine.low %v456_v11, %v460_v13  ;;  %v8917_v26 = vcombine.high %v463_v17, %v467_v18  ;;  %v515_v13 = vld [vmem:[#allocation7 + $0x960] sm:$0xff] }
  0xd2   : > { %6532 = vmatprep.subr.bf16.mxu0 %v8861_v27  ;;  %6860 = vmatprep.subr.bf16.mxu1 %v8863_v31  ;;  %v471_v27 = vld [vmem:[#allocation7 + $0x800] sm:$0xff]  ;;  %v476_v31 = vld [vmem:[#allocation7 + $0x828] sm:$0xff]  ;;  %v1257_v40 = vcombine.high %v10487_v32, %v10487_v32 }
  0xd3   : > { %v8927_v38 = vcombine.high %v472_v29, %v476_v31 }
  0xd4   : > { %v10496_v49 = vrot.slane %v1257_v40, %v10455_v54  ;;  %v540_v40 = vld [vmem:[#allocation7 + $0xa28] sm:$0xff] }
  0xd5   : > { %6533 = vmatpush1.bf16.msra.mxu0 %v8860_v33  ;;  %6861 = vmatpush1.bf16.msra.mxu1 %v8862_v34  ;;  %v8916_v33 = vcombine.low %v463_v17, %v467_v18  ;;  %v8925_v34 = vcombine.high %v471_v27, %v475_v28 }
  0xd6   : > { %6534 = vmatprep.subr.bf16.mxu0 %v8869_v0  ;;  %6862 = vmatprep.subr.bf16.mxu1 %v8871_v39  ;;  %v479_v0 = vld [vmem:[#allocation7 + $0x840] sm:$0xff]  ;;  %v484_v39 = vld [vmem:[#allocation7 + $0x868] sm:$0xff] }
  0xd7   : > { %v8933_v44 = vcombine.high %v479_v0, %v483_v36  ;;  %v8935_v46 = vcombine.high %v480_v37, %v484_v39  ;;  %v8934_v53 = vcombine.low %v480_v37, %v484_v39  ;;  %v535_v37 = vld [vmem:[#allocation7 + $0xa00] sm:$0xff]  ;;  %v536_v39 = vld [vmem:[#allocation7 + $0xa08] sm:$0xff] }
  0xd9   : > { %6535 = vmatpush1.bf16.msra.mxu0 %v8868_v41  ;;  %6863 = vmatpush1.bf16.msra.mxu1 %v8870_v42  ;;  %v10493_v41 = vcombine.high %v10474_v24, %v10474_v24  ;;  %v8924_v42 = vcombine.low %v471_v27, %v475_v28 }
  0xda   : > { %6536 = vmatprep.subr.bf16.mxu0 %v8877_v43  ;;  %6864 = vmatprep.subr.bf16.mxu1 %v8879_v48  ;;  %v8926_v43 = vcombine.low %v472_v29, %v476_v31  ;;  %v491_v48 = vld [vmem:[#allocation7 + $0x8a0] sm:$0xff]  ;;  %v528_v31 = vld [vmem:[#allocation7 + $0x9c8] sm:$0xff] }
  0xdb   : > { %v8941_v55 = vcombine.high %v487_v47, %v491_v48  ;;  %v527_v29 = vld [vmem:[#allocation7 + $0x9c0] sm:$0xff] }
  0xdd   : > { %6537 = vmatpush1.bf16.msra.mxu0 %v8876_v50  ;;  %6865 = vmatpush1.bf16.msra.mxu1 %v8878_v51  ;;  %v488_v50 = vld [vmem:[#allocation7 + $0x888] sm:$0xff] }
  0xde   : > { %6538 = vmatprep.subr.bf16.mxu0 %v8885_v52  ;;  %6866 = vmatprep.subr.bf16.mxu1 %v8887_v57  ;;  %v492_v51 = vld [vmem:[#allocation7 + $0x8a8] sm:$0xff]  ;;  %v8932_v52 = vcombine.low %v479_v0, %v483_v36  ;;  %v495_v57 = vld [vmem:[#allocation7 + $0x8c0] sm:$0xff] }
  0xdf   : > { %v8943_v56 = vcombine.high %v488_v50, %v492_v51  ;;  %v8942_v63 = vcombine.low %v488_v50, %v492_v51  ;;  %v8949_v1 = vcombine.high %v495_v57, %v499_v58  ;;  %v544_v50 = vld [vmem:[#allocation7 + $0xa48] sm:$0xff] }
  0xe0   : > { %v548_v51 = vld [vmem:[#allocation7 + $0xa68] sm:$0xff] }
  0xe1   : > { %6539 = vmatpush1.bf16.msra.mxu0 %v8884_v59  ;;  %6867 = vmatpush1.bf16.msra.mxu1 %v8886_v61  ;;  %v496_v59 = vld [vmem:[#allocation7 + $0x8c8] sm:$0xff] }
  0xe2   : > { %6540 = vmatprep.subr.bf16.mxu0 %v8893_v62  ;;  %6868 = vmatprep.subr.bf16.mxu1 %v8895_v3  ;;  %v500_v61 = vld [vmem:[#allocation7 + $0x8e8] sm:$0xff]  ;;  %v8940_v62 = vcombine.low %v487_v47, %v491_v48  ;;  %v503_v3 = vld [vmem:[#allocation7 + $0x900] sm:$0xff] }
  0xe3   : > { %v8951_v2 = vcombine.high %v496_v59, %v500_v61  ;;  %v8950_v8 = vcombine.low %v496_v59, %v500_v61  ;;  %v8957_v9 = vcombine.high %v503_v3, %v507_v4  ;;  %v543_v47 = vld [vmem:[#allocation7 + $0xa40] sm:$0xff]  ;;  %v552_v59 = vld [vmem:[#allocation7 + $0xa88] sm:$0xff] }
  0xe4   : > { %v547_v48 = vld [vmem:[#allocation7 + $0xa60] sm:$0xff]  ;;  %v556_v61 = vld [vmem:[#allocation7 + $0xaa8] sm:$0xff] }
  0xe5   : > { %6541 = vmatpush1.bf16.msra.mxu0 %v8892_v5  ;;  %6869 = vmatpush1.bf16.msra.mxu1 %v8894_v6  ;;  %v504_v5 = vld [vmem:[#allocation7 + $0x908] sm:$0xff] }
  0xe6   : > { %6542 = vmatprep.subr.bf16.mxu0 %v8901_v7  ;;  %6870 = vmatprep.subr.bf16.mxu1 %v8903_v12  ;;  %v508_v6 = vld [vmem:[#allocation7 + $0x928] sm:$0xff]  ;;  %v8948_v7 = vcombine.low %v495_v57, %v499_v58  ;;  %v511_v12 = vld [vmem:[#allocation7 + $0x940] sm:$0xff] }
  0xe7   : > { %v8959_v11 = vcombine.high %v504_v5, %v508_v6  ;;  %v8958_v17 = vcombine.low %v504_v5, %v508_v6  ;;  %v8965_v18 = vcombine.high %v511_v12, %v515_v13  ;;  %v551_v57 = vld [vmem:[#allocation7 + $0xa80] sm:$0xff]  ;;  %v560_v5 = vld [vmem:[#allocation7 + $0xac8] sm:$0xff] }
  0xe8   : > { %v555_v58 = vld [vmem:[#allocation7 + $0xaa0] sm:$0xff]  ;;  %v564_v6 = vld [vmem:[#allocation7 + $0xae8] sm:$0xff] }
  0xe9   : > { %6543 = vmatpush1.bf16.msra.mxu0 %v8900_v14  ;;  %6871 = vmatpush1.bf16.msra.mxu1 %v8902_v15  ;;  %v512_v14 = vld [vmem:[#allocation7 + $0x948] sm:$0xff] }
  0xea   : > { %6544 = vmatprep.subr.bf16.mxu0 %v8909_v16  ;;  %6872 = vmatprep.subr.bf16.mxu1 %v8911_v20  ;;  %v516_v15 = vld [vmem:[#allocation7 + $0x968] sm:$0xff]  ;;  %v8956_v16 = vcombine.low %v503_v3, %v507_v4  ;;  %v519_v20 = vld [vmem:[#allocation7 + $0x980] sm:$0xff] }
  0xeb   : > { %v8967_v19 = vcombine.high %v512_v14, %v516_v15  ;;  %v8973_v27 = vcombine.high %v519_v20, %v523_v21  ;;  %v559_v3 = vld [vmem:[#allocation7 + $0xac0] sm:$0xff] }
  0xec   : > { %v563_v4 = vld [vmem:[#allocation7 + $0xae0] sm:$0xff] }
  0xed   : > { %6545 = vmatpush1.bf16.msra.mxu0 %v8908_v23  ;;  %6873 = vmatpush1.bf16.msra.mxu1 %v8910_v25  ;;  %v524_v23 = vld [vmem:[#allocation7 + $0x9a8] sm:$0xff]  ;;  %v8964_v25 = vcombine.low %v511_v12, %v515_v13  ;;  %v567_v12 = vld [vmem:[#allocation7 + $0xb00] sm:$0xff] }
  0xee   : > { %6546 = vmatprep.subr.bf16.mxu0 %v8917_v26  ;;  %6874 = vmatprep.subr.bf16.mxu1 %v8919_v30  ;;  %v8966_v26 = vcombine.low %v512_v14, %v516_v15  ;;  %v8975_v28 = vcombine.high %v520_v22, %v524_v23  ;;  %v531_v30 = vld [vmem:[#allocation7 + $0x9e0] sm:$0xff]  ;;  %v568_v14 = vld [vmem:[#allocation7 + $0xb08] sm:$0xff] }
  0xef   : > { %v8981_v0 = vcombine.high %v527_v29, %v531_v30  ;;  %v571_v13 = vld [vmem:[#allocation7 + $0xb20] sm:$0xff]  ;;  %v572_v15 = vld [vmem:[#allocation7 + $0xb28] sm:$0xff] }
  0xf1   : > { %6547 = vmatpush1.bf16.msra.mxu0 %v8916_v33  ;;  %6875 = vmatpush1.bf16.msra.mxu1 %v8918_v60  ;;  %v532_v33 = vld [vmem:[#allocation7 + $0x9e8] sm:$0xff]  ;;  %v8972_v60 = vcombine.low %v519_v20, %v523_v21  ;;  %v575_v20 = vld [vmem:[#allocation7 + $0xb40] sm:$0xff] }
  0xf2   : > { %6557 = vmatprep.subr.bf16.mxu0 %v8925_v34  ;;  %6885 = vmatprep.subr.bf16.mxu1 %v8927_v38  ;;  %v8974_v34 = vcombine.low %v520_v22, %v524_v23  ;;  %v8983_v36 = vcombine.high %v528_v31, %v532_v33  ;;  %v539_v38 = vld [vmem:[#allocation7 + $0xa20] sm:$0xff]  ;;  %v576_v22 = vld [vmem:[#allocation7 + $0xb48] sm:$0xff] }
  0xf3   : > { %v579_v21 = vld [vmem:[#allocation7 + $0xb60] sm:$0xff]  ;;  %v580_v23 = vld [vmem:[#allocation7 + $0xb68] sm:$0xff] }
  0xf4   : > { %6549 = vmatmul.mubr.bf16.vlgmr.msra.gmra.mrb[0].mxu0 %v10493_v41  ;;  %6877 = vmatmul.mubr.bf16.vlgmr.msra.gmra.mrb[0].mxu1 %v10493_v41 }
  0xf5   : > { %6558 = vmatpush1.bf16.msra.mxu0 %v8924_v42  ;;  %6886 = vmatpush1.bf16.msra.mxu1 %v8926_v43  ;;  %v8980_v42 = vcombine.low %v527_v29, %v531_v30  ;;  %v8982_v43 = vcombine.low %v528_v31, %v532_v33  ;;  %v583_v29 = vld [vmem:[#allocation7 + $0xb80] sm:$0xff]  ;;  %v584_v31 = vld [vmem:[#allocation7 + $0xb88] sm:$0xff] }
  0xf6   : > { %6559 = vmatprep.subr.bf16.mxu0 %v8933_v44  ;;  %6887 = vmatprep.subr.bf16.mxu1 %v8935_v46  ;;  %v8989_v44 = vcombine.high %v535_v37, %v539_v38  ;;  %v8991_v46 = vcombine.high %v536_v39, %v540_v40  ;;  %v587_v30 = vld [vmem:[#allocation7 + $0xba0] sm:$0xff]  ;;  %v588_v33 = vld [vmem:[#allocation7 + $0xba8] sm:$0xff] }
  0xf7   : > { %6589 = vmatprep.mubr.bf16.mxu0 %v10496_v49  ;;  %6917 = vmatprep.mubr.bf16.mxu1 %v10496_v49 }
  0xf9   : > { %6560 = vmatpush1.bf16.msra.mxu0 %v8932_v52  ;;  %6888 = vmatpush1.bf16.msra.mxu1 %v8934_v53  ;;  %v8988_v52 = vcombine.low %v535_v37, %v539_v38  ;;  %v8990_v53 = vcombine.low %v536_v39, %v540_v40  ;;  %v591_v37 = vld [vmem:[#allocation7 + $0xbc0] sm:$0xff]  ;;  %v592_v39 = vld [vmem:[#allocation7 + $0xbc8] sm:$0xff] }
  0xfa   : > { %6561 = vmatprep.subr.bf16.mxu0 %v8941_v55  ;;  %6889 = vmatprep.subr.bf16.mxu1 %v8943_v56  ;;  %v8997_v55 = vcombine.high %v543_v47, %v547_v48  ;;  %v8999_v56 = vcombine.high %v544_v50, %v548_v51  ;;  %v595_v38 = vld [vmem:[#allocation7 + $0xbe0] sm:$0xff]  ;;  %v596_v40 = vld [vmem:[#allocation7 + $0xbe8] sm:$0xff] }
  0xfd   : > { %6562 = vmatpush1.bf16.msra.mxu0 %v8940_v62  ;;  %6890 = vmatpush1.bf16.msra.mxu1 %v8942_v63  ;;  %v8996_v62 = vcombine.low %v543_v47, %v547_v48  ;;  %v8998_v63 = vcombine.low %v544_v50, %v548_v51  ;;  %v599_v47 = vld [vmem:[#allocation7 + $0xc00] sm:$0xff]  ;;  %v600_v50 = vld [vmem:[#allocation7 + $0xc08] sm:$0xff] }
  0xfe   : > { %6563 = vmatprep.subr.bf16.mxu0 %v8949_v1  ;;  %6891 = vmatprep.subr.bf16.mxu1 %v8951_v2  ;;  %v9005_v1 = vcombine.high %v551_v57, %v555_v58  ;;  %v9007_v2 = vcombine.high %v552_v59, %v556_v61  ;;  %v603_v48 = vld [vmem:[#allocation7 + $0xc20] sm:$0xff]  ;;  %v604_v51 = vld [vmem:[#allocation7 + $0xc28] sm:$0xff] }
 0x101   : > { %6564 = vmatpush1.bf16.msra.mxu0 %v8948_v7  ;;  %6892 = vmatpush1.bf16.msra.mxu1 %v8950_v8  ;;  %v9004_v7 = vcombine.low %v551_v57, %v555_v58  ;;  %v9006_v8 = vcombine.low %v552_v59, %v556_v61  ;;  %v607_v57 = vld [vmem:[#allocation7 + $0xc40] sm:$0xff]  ;;  %v10504_v59 = vrot.slane %v10487_v32, %v10455_v54  ;;  %v608_v61 = vld [vmem:[#allocation7 + $0xc48] sm:$0xff] }
 0x102   : > { %6565 = vmatprep.subr.bf16.mxu0 %v8957_v9  ;;  %6893 = vmatprep.subr.bf16.mxu1 %v8959_v11  ;;  %v9013_v9 = vcombine.high %v559_v3, %v563_v4  ;;  %v9015_v11 = vcombine.high %v560_v5, %v564_v6  ;;  %v611_v58 = vld [vmem:[#allocation7 + $0xc60] sm:$0xff]  ;;  %v616_v32 = vld [vmem:[#allocation7 + $0xc88] sm:$0xff] }
 0x105   : > { %6566 = vmatpush1.bf16.msra.mxu0 %v8956_v16  ;;  %6894 = vmatpush1.bf16.msra.mxu1 %v8958_v17  ;;  %v9012_v16 = vcombine.low %v559_v3, %v563_v4  ;;  %v9014_v17 = vcombine.low %v560_v5, %v564_v6  ;;  %v615_v4 = vld [vmem:[#allocation7 + $0xc80] sm:$0xff]  ;;  %v10508_v6 = vcombine.high %v10496_v49, %v10496_v49 }
 0x106   : > { %6567 = vmatprep.subr.bf16.mxu0 %v8965_v18  ;;  %6895 = vmatprep.subr.bf16.mxu1 %v8967_v19  ;;  %v9021_v18 = vcombine.high %v567_v12, %v571_v13  ;;  %v9023_v19 = vcombine.high %v568_v14, %v572_v15  ;;  %v619_v5 = vld [vmem:[#allocation7 + $0xca0] sm:$0xff] }
 0x109   : > { %6568 = vmatpush1.bf16.msra.mxu0 %v8964_v25  ;;  %6896 = vmatpush1.bf16.msra.mxu1 %v8966_v26  ;;  %v9020_v25 = vcombine.low %v567_v12, %v571_v13  ;;  %v9022_v26 = vcombine.low %v568_v14, %v572_v15  ;;  %v623_v13 = vld [vmem:[#allocation7 + $0xcc0] sm:$0xff]  ;;  %v624_v15 = vld [vmem:[#allocation7 + $0xcc8] sm:$0xff] }
 0x10a   : > { %6569 = vmatprep.subr.bf16.mxu0 %v8973_v27  ;;  %6897 = vmatprep.subr.bf16.mxu1 %v8975_v28  ;;  %v9029_v27 = vcombine.high %v575_v20, %v579_v21  ;;  %v9031_v28 = vcombine.high %v576_v22, %v580_v23  ;;  %v627_v14 = vld [vmem:[#allocation7 + $0xce0] sm:$0xff] }
 0x10d   : > { %6570 = vmatpush1.bf16.msra.mxu0 %v8972_v60  ;;  %6898 = vmatpush1.bf16.msra.mxu1 %v8974_v34  ;;  %v9028_v60 = vcombine.low %v575_v20, %v579_v21  ;;  %v9030_v34 = vcombine.low %v576_v22, %v580_v23  ;;  %v631_v21 = vld [vmem:[#allocation7 + $0xd00] sm:$0xff]  ;;  %v632_v23 = vld [vmem:[#allocation7 + $0xd08] sm:$0xff] }
 0x10e   : > { %6571 = vmatprep.subr.bf16.mxu0 %v8981_v0  ;;  %6899 = vmatprep.subr.bf16.mxu1 %v8983_v36  ;;  %v9037_v0 = vcombine.high %v583_v29, %v587_v30  ;;  %v9039_v36 = vcombine.high %v584_v31, %v588_v33  ;;  %v635_v22 = vld [vmem:[#allocation7 + $0xd20] sm:$0xff] }
 0x111   : > { %6572 = vmatpush1.bf16.msra.mxu0 %v8980_v42  ;;  %6900 = vmatpush1.bf16.msra.mxu1 %v8982_v43  ;;  %v9036_v42 = vcombine.low %v583_v29, %v587_v30  ;;  %v9038_v43 = vcombine.low %v584_v31, %v588_v33  ;;  %v639_v30 = vld [vmem:[#allocation7 + $0xd40] sm:$0xff]  ;;  %v640_v33 = vld [vmem:[#allocation7 + $0xd48] sm:$0xff] }
 0x112   : > { %6573 = vmatprep.subr.bf16.mxu0 %v8989_v44  ;;  %6901 = vmatprep.subr.bf16.mxu1 %v8991_v46  ;;  %v9045_v44 = vcombine.high %v591_v37, %v595_v38  ;;  %v9047_v46 = vcombine.high %v592_v39, %v596_v40  ;;  %v643_v31 = vld [vmem:[#allocation7 + $0xd60] sm:$0xff] }
 0x115   : > { %6574 = vmatpush1.bf16.msra.mxu0 %v8988_v52  ;;  %6902 = vmatpush1.bf16.msra.mxu1 %v8990_v53  ;;  %v9044_v52 = vcombine.low %v591_v37, %v595_v38  ;;  %v9046_v53 = vcombine.low %v592_v39, %v596_v40  ;;  %v647_v38 = vld [vmem:[#allocation7 + $0xd80] sm:$0xff]  ;;  %v648_v40 = vld [vmem:[#allocation7 + $0xd88] sm:$0xff] }
 0x116   : > { %6575 = vmatprep.subr.bf16.mxu0 %v8997_v55  ;;  %6903 = vmatprep.subr.bf16.mxu1 %v8999_v56  ;;  %v9053_v55 = vcombine.high %v599_v47, %v603_v48  ;;  %v9055_v56 = vcombine.high %v600_v50, %v604_v51  ;;  %v651_v39 = vld [vmem:[#allocation7 + $0xda0] sm:$0xff] }
 0x119   : > { %6576 = vmatpush1.bf16.msra.mxu0 %v8996_v62  ;;  %6904 = vmatpush1.bf16.msra.mxu1 %v8998_v63  ;;  %v612_v62 = vld [vmem:[#allocation7 + $0xc68] sm:$0xff]  ;;  %v9052_v63 = vcombine.low %v599_v47, %v603_v48  ;;  %v655_v48 = vld [vmem:[#allocation7 + $0xdc0] sm:$0xff] }
 0x11a   : > { %6577 = vmatprep.subr.bf16.mxu0 %v9005_v1  ;;  %6905 = vmatprep.subr.bf16.mxu1 %v9007_v2  ;;  %v9054_v1 = vcombine.low %v600_v50, %v604_v51  ;;  %v9061_v2 = vcombine.high %v607_v57, %v611_v58  ;;  %v9063_v3 = vcombine.high %v608_v61, %v612_v62  ;;  %v659_v50 = vld [vmem:[#allocation7 + $0xde0] sm:$0xff]  ;;  %v656_v51 = vld [vmem:[#allocation7 + $0xdc8] sm:$0xff] }
 0x11d   : > { %6578 = vmatpush1.bf16.msra.mxu0 %v9004_v7  ;;  %6906 = vmatpush1.bf16.msra.mxu1 %v9006_v8  ;;  %v620_v7 = vld [vmem:[#allocation7 + $0xca8] sm:$0xff]  ;;  %v9060_v8 = vcombine.low %v607_v57, %v611_v58  ;;  %v663_v58 = vld [vmem:[#allocation7 + $0xe00] sm:$0xff] }
 0x11e   : > { %6579 = vmatprep.subr.bf16.mxu0 %v9013_v9  ;;  %6907 = vmatprep.subr.bf16.mxu1 %v9015_v11  ;;  %v9062_v9 = vcombine.low %v608_v61, %v612_v62  ;;  %v9069_v11 = vcombine.high %v615_v4, %v619_v5  ;;  %v9071_v12 = vcombine.high %v616_v32, %v620_v7  ;;  %v667_v61 = vld [vmem:[#allocation7 + $0xe20] sm:$0xff]  ;;  %v664_v62 = vld [vmem:[#allocation7 + $0xe08] sm:$0xff] }
 0x121   : > { %6580 = vmatpush1.bf16.msra.mxu0 %v9012_v16  ;;  %6908 = vmatpush1.bf16.msra.mxu1 %v9014_v17  ;;  %v628_v16 = vld [vmem:[#allocation7 + $0xce8] sm:$0xff]  ;;  %v9068_v17 = vcombine.low %v615_v4, %v619_v5  ;;  %v671_v5 = vld [vmem:[#allocation7 + $0xe40] sm:$0xff] }
 0x122   : > { %6581 = vmatprep.subr.bf16.mxu0 %v9021_v18  ;;  %6909 = vmatprep.subr.bf16.mxu1 %v9023_v19  ;;  %v9070_v18 = vcombine.low %v616_v32, %v620_v7  ;;  %v9077_v19 = vcombine.high %v623_v13, %v627_v14  ;;  %v9079_v20 = vcombine.high %v624_v15, %v628_v16  ;;  %v675_v32 = vld [vmem:[#allocation7 + $0xe60] sm:$0xff]  ;;  %v672_v7 = vld [vmem:[#allocation7 + $0xe48] sm:$0xff] }
 0x125   : > { %6582 = vmatpush1.bf16.msra.mxu0 %v9020_v25  ;;  %6910 = vmatpush1.bf16.msra.mxu1 %v9022_v26  ;;  %v636_v25 = vld [vmem:[#allocation7 + $0xd28] sm:$0xff]  ;;  %v9076_v26 = vcombine.low %v623_v13, %v627_v14  ;;  %v679_v14 = vld [vmem:[#allocation7 + $0xe80] sm:$0xff] }
 0x126   : > { %6583 = vmatprep.subr.bf16.mxu0 %v9029_v27  ;;  %6911 = vmatprep.subr.bf16.mxu1 %v9031_v28  ;;  %v9078_v27 = vcombine.low %v624_v15, %v628_v16  ;;  %v9085_v28 = vcombine.high %v631_v21, %v635_v22  ;;  %v9087_v29 = vcombine.high %v632_v23, %v636_v25  ;;  %v683_v15 = vld [vmem:[#allocation7 + $0xea0] sm:$0xff]  ;;  %v680_v16 = vld [vmem:[#allocation7 + $0xe88] sm:$0xff] }
 0x129   : > { %6584 = vmatpush1.bf16.msra.mxu0 %v9028_v60  ;;  %6912 = vmatpush1.bf16.msra.mxu1 %v9030_v34  ;;  %v644_v60 = vld [vmem:[#allocation7 + $0xd68] sm:$0xff]  ;;  %v9084_v34 = vcombine.low %v631_v21, %v635_v22  ;;  %v687_v22 = vld [vmem:[#allocation7 + $0xec0] sm:$0xff] }
 0x12a   : > { %6585 = vmatprep.subr.bf16.mxu0 %v9037_v0  ;;  %6913 = vmatprep.subr.bf16.mxu1 %v9039_v36  ;;  %v9086_v0 = vcombine.low %v632_v23, %v636_v25  ;;  %v9093_v36 = vcombine.high %v639_v30, %v643_v31  ;;  %v9095_v37 = vcombine.high %v640_v33, %v644_v60  ;;  %v691_v23 = vld [vmem:[#allocation7 + $0xee0] sm:$0xff]  ;;  %v688_v25 = vld [vmem:[#allocation7 + $0xec8] sm:$0xff] }
 0x12d   : > { %6586 = vmatpush1.bf16.msra.mxu0 %v9036_v42  ;;  %6914 = vmatpush1.bf16.msra.mxu1 %v9038_v43  ;;  %v652_v42 = vld [vmem:[#allocation7 + $0xda8] sm:$0xff]  ;;  %v9092_v43 = vcombine.low %v639_v30, %v643_v31  ;;  %v695_v31 = vld [vmem:[#allocation7 + $0xf00] sm:$0xff] }
 0x12e   : > { %6587 = vmatprep.subr.bf16.mxu0 %v9045_v44  ;;  %6915 = vmatprep.subr.bf16.mxu1 %v9047_v46  ;;  %v9094_v44 = vcombine.low %v640_v33, %v644_v60  ;;  %v9101_v46 = vcombine.high %v647_v38, %v651_v39  ;;  %v9103_v47 = vcombine.high %v648_v40, %v652_v42  ;;  %v699_v33 = vld [vmem:[#allocation7 + $0xf20] sm:$0xff]  ;;  %v696_v60 = vld [vmem:[#allocation7 + $0xf08] sm:$0xff] }
 0x131   : > { %6588 = vmatpush1.bf16.msra.mxu0 %v9044_v52  ;;  %6916 = vmatpush1.bf16.msra.mxu1 %v9046_v53  ;;  %v660_v52 = vld [vmem:[#allocation7 + $0xde8] sm:$0xff]  ;;  %v9100_v53 = vcombine.low %v647_v38, %v651_v39  ;;  %v703_v39 = vld [vmem:[#allocation7 + $0xf40] sm:$0xff] }
 0x132   : > { %6598 = vmatprep.subr.bf16.mxu0 %v9053_v55  ;;  %6926 = vmatprep.subr.bf16.mxu1 %v9055_v56  ;;  %v9102_v55 = vcombine.low %v648_v40, %v652_v42  ;;  %v9109_v56 = vcombine.high %v655_v48, %v659_v50  ;;  %v9111_v57 = vcombine.high %v656_v51, %v660_v52  ;;  %v707_v40 = vld [vmem:[#allocation7 + $0xf60] sm:$0xff]  ;;  %v704_v42 = vld [vmem:[#allocation7 + $0xf48] sm:$0xff] }
 0x134   : > { %6590 = vmatmul.mubr.bf16.vlgmr.msra.gmra.mrb[0].mxu0 %v10504_v59  ;;  %6918 = vmatmul.mubr.bf16.vlgmr.msra.gmra.mrb[0].mxu1 %v10504_v59 }
 0x135   : > { %6599 = vmatpush1.bf16.msra.mxu0 %v9052_v63  ;;  %6927 = vmatpush1.bf16.msra.mxu1 %v9054_v1  ;;  %v668_v63 = vld [vmem:[#allocation7 + $0xe28] sm:$0xff]  ;;  %v9108_v1 = vcombine.low %v655_v48, %v659_v50  ;;  %v711_v50 = vld [vmem:[#allocation7 + $0xf80] sm:$0xff] }
 0x136   : > { %6600 = vmatprep.subr.bf16.mxu0 %v9061_v2  ;;  %6928 = vmatprep.subr.bf16.mxu1 %v9063_v3  ;;  %v9110_v2 = vcombine.low %v656_v51, %v660_v52  ;;  %v9117_v3 = vcombine.high %v663_v58, %v667_v61  ;;  %v9119_v4 = vcombine.high %v664_v62, %v668_v63  ;;  %v715_v51 = vld [vmem:[#allocation7 + $0xfa0] sm:$0xff]  ;;  %v712_v52 = vld [vmem:[#allocation7 + $0xf88] sm:$0xff] }
 0x137   : > { %6630 = vmatprep.mubr.bf16.mxu0 %v10508_v6  ;;  %6958 = vmatprep.mubr.bf16.mxu1 %v10508_v6 }
 0x139   : > { %6601 = vmatpush1.bf16.msra.mxu0 %v9060_v8  ;;  %6929 = vmatpush1.bf16.msra.mxu1 %v9062_v9  ;;  %v676_v8 = vld [vmem:[#allocation7 + $0xe68] sm:$0xff]  ;;  %v9116_v9 = vcombine.low %v663_v58, %v667_v61  ;;  %v719_v61 = vld [vmem:[#allocation7 + $0xfc0] sm:$0xff] }
 0x13a   : > { %6602 = vmatprep.subr.bf16.mxu0 %v9069_v11  ;;  %6930 = vmatprep.subr.bf16.mxu1 %v9071_v12  ;;  %v9118_v11 = vcombine.low %v664_v62, %v668_v63  ;;  %v9125_v12 = vcombine.high %v671_v5, %v675_v32  ;;  %v9127_v13 = vcombine.high %v672_v7, %v676_v8  ;;  %v723_v62 = vld [vmem:[#allocation7 + $0xfe0] sm:$0xff]  ;;  %v720_v63 = vld [vmem:[#allocation7 + $0xfc8] sm:$0xff] }
 0x13d   : > { %6603 = vmatpush1.bf16.msra.mxu0 %v9068_v17  ;;  %6931 = vmatpush1.bf16.msra.mxu1 %v9070_v18  ;;  %v684_v17 = vld [vmem:[#allocation7 + $0xea8] sm:$0xff]  ;;  %v9124_v18 = vcombine.low %v671_v5, %v675_v32  ;;  %v9173_v5 = vcombine.high %v719_v61, %v723_v62 }
 0x13e   : > { %6604 = vmatprep.subr.bf16.mxu0 %v9077_v19  ;;  %6932 = vmatprep.subr.bf16.mxu1 %v9079_v20  ;;  %v9126_v19 = vcombine.low %v672_v7, %v676_v8  ;;  %v9133_v20 = vcombine.high %v679_v14, %v683_v15  ;;  %v9135_v21 = vcombine.high %v680_v16, %v684_v17  ;;  %v727_v7 = vld [vmem:[#allocation7 + $0x1000] sm:$0xff] }
 0x13f   : > { %v731_v8 = vld [vmem:[#allocation7 + $0x1020] sm:$0xff] }
 0x141   : > { %6605 = vmatpush1.bf16.msra.mxu0 %v9076_v26  ;;  %6933 = vmatpush1.bf16.msra.mxu1 %v9078_v27  ;;  %v692_v26 = vld [vmem:[#allocation7 + $0xee8] sm:$0xff]  ;;  %v9132_v27 = vcombine.low %v679_v14, %v683_v15  ;;  %v9181_v15 = vcombine.high %v727_v7, %v731_v8 }
 0x142   : > { %6606 = vmatprep.subr.bf16.mxu0 %v9085_v28  ;;  %6934 = vmatprep.subr.bf16.mxu1 %v9087_v29  ;;  %v9134_v28 = vcombine.low %v680_v16, %v684_v17  ;;  %v9141_v29 = vcombine.high %v687_v22, %v691_v23  ;;  %v9143_v30 = vcombine.high %v688_v25, %v692_v26  ;;  %v735_v17 = vld [vmem:[#allocation7 + $0x1040] sm:$0xff] }
 0x145   : > { %6607 = vmatpush1.bf16.msra.mxu0 %v9084_v34  ;;  %6935 = vmatpush1.bf16.msra.mxu1 %v9086_v0  ;;  %v700_v34 = vld [vmem:[#allocation7 + $0xf28] sm:$0xff]  ;;  %v9140_v0 = vcombine.low %v687_v22, %v691_v23  ;;  %v9180_v23 = vcombine.low %v727_v7, %v731_v8 }
 0x146   : > { %6608 = vmatprep.subr.bf16.mxu0 %v9093_v36  ;;  %6936 = vmatprep.subr.bf16.mxu1 %v9095_v37  ;;  %v9142_v36 = vcombine.low %v688_v25, %v692_v26  ;;  %v9149_v37 = vcombine.high %v695_v31, %v699_v33  ;;  %v9151_v38 = vcombine.high %v696_v60, %v700_v34  ;;  %v740_v22 = vld [vmem:[#allocation7 + $0x1068] sm:$0xff] }
 0x147   : > { %v776_v7 = vld [vmem:[#allocation7 + $0x1188] sm:$0xff] }
 0x148   : > { %v780_v8 = vld [vmem:[#allocation7 + $0x11a8] sm:$0xff] }
 0x149   : > { %6609 = vmatpush1.bf16.msra.mxu0 %v9092_v43  ;;  %6937 = vmatpush1.bf16.msra.mxu1 %v9094_v44  ;;  %v708_v43 = vld [vmem:[#allocation7 + $0xf68] sm:$0xff]  ;;  %v9148_v44 = vcombine.low %v695_v31, %v699_v33 }
 0x14a   : > { %6610 = vmatprep.subr.bf16.mxu0 %v9101_v46  ;;  %6938 = vmatprep.subr.bf16.mxu1 %v9103_v47  ;;  %v9150_v46 = vcombine.low %v696_v60, %v700_v34  ;;  %v9157_v47 = vcombine.high %v703_v39, %v707_v40  ;;  %v9159_v48 = vcombine.high %v704_v42, %v708_v43  ;;  %v744_v31 = vld [vmem:[#allocation7 + $0x1088] sm:$0xff] }
 0x14b   : > { %v748_v33 = vld [vmem:[#allocation7 + $0x10a8] sm:$0xff] }
 0x14d   : > { %6611 = vmatpush1.bf16.msra.mxu0 %v9100_v53  ;;  %6939 = vmatpush1.bf16.msra.mxu1 %v9102_v55  ;;  %v716_v53 = vld [vmem:[#allocation7 + $0xfa8] sm:$0xff]  ;;  %v9156_v55 = vcombine.low %v703_v39, %v707_v40 }
 0x14e   : > { %6612 = vmatprep.subr.bf16.mxu0 %v9109_v56  ;;  %6940 = vmatprep.subr.bf16.mxu1 %v9111_v57  ;;  %v9158_v56 = vcombine.low %v704_v42, %v708_v43  ;;  %v9165_v57 = vcombine.high %v711_v50, %v715_v51  ;;  %v9167_v58 = vcombine.high %v712_v52, %v716_v53  ;;  %v752_v39 = vld [vmem:[#allocation7 + $0x10c8] sm:$0xff] }
 0x14f   : > { %v756_v40 = vld [vmem:[#allocation7 + $0x10e8] sm:$0xff]  ;;  %v9198_v43 = vcombine.low %v744_v31, %v748_v33 }
 0x151   : > { %6613 = vmatpush1.bf16.msra.mxu0 %v9108_v1  ;;  %6941 = vmatpush1.bf16.msra.mxu1 %v9110_v2  ;;  %v724_v1 = vld [vmem:[#allocation7 + $0xfe8] sm:$0xff] }
 0x152   : > { %6614 = vmatprep.subr.bf16.mxu0 %v9117_v3  ;;  %6942 = vmatprep.subr.bf16.mxu1 %v9119_v4  ;;  %v10516_v2 = vld [vmem:[%s178_s21 + $0x8] sm:$0xff]  ;;  %v9164_v3 = vcombine.low %v711_v50, %v715_v51  ;;  %v9166_v4 = vcombine.low %v712_v52, %v716_v53  ;;  %v9175_v32 = vcombine.high %v720_v63, %v724_v1 }
 0x153   : > { %v9174_v14 = vcombine.low %v720_v63, %v724_v1  ;;  %v760_v50 = vld [vmem:[#allocation7 + $0x1108] sm:$0xff]  ;;  %v9206_v53 = vcombine.low %v752_v39, %v756_v40 }
 0x154   : > { %v764_v51 = vld [vmem:[#allocation7 + $0x1128] sm:$0xff] }
 0x155   : > { %6615 = vmatpush1.bf16.msra.mxu0 %v9116_v9  ;;  %6943 = vmatpush1.bf16.msra.mxu1 %v9118_v11  ;;  %v10520_v9 = vrot.slane %v10516_v2, %v10455_v54  ;;  %v728_v11 = vld [vmem:[#allocation7 + $0x1008] sm:$0xff]  ;;  %v9214_v1 = vcombine.low %v760_v50, %v764_v51 }
 0x156   : > { %6616 = vmatprep.subr.bf16.mxu0 %v9125_v12  ;;  %6944 = vmatprep.subr.bf16.mxu1 %v9127_v13  ;;  %v732_v12 = vld [vmem:[#allocation7 + $0x1028] sm:$0xff]  ;;  %v9172_v13 = vcombine.low %v719_v61, %v723_v62 }
 0x157   : > { %v9183_v16 = vcombine.high %v728_v11, %v732_v12  ;;  %v9182_v25 = vcombine.low %v728_v11, %v732_v12  ;;  %v768_v61 = vld [vmem:[#allocation7 + $0x1148] sm:$0xff] }
 0x158   : > { %v772_v62 = vld [vmem:[#allocation7 + $0x1168] sm:$0xff] }
 0x159   : > { %6617 = vmatpush1.bf16.msra.mxu0 %v9124_v18  ;;  %6945 = vmatpush1.bf16.msra.mxu1 %v9126_v19  ;;  %v739_v18 = vld [vmem:[#allocation7 + $0x1060] sm:$0xff]  ;;  %v1305_v19 = vcombine.high %v10520_v9, %v10520_v9  ;;  %v9222_v12 = vcombine.low %v768_v61, %v772_v62 }
 0x15a   : > { %6618 = vmatprep.subr.bf16.mxu0 %v9133_v20  ;;  %6946 = vmatprep.subr.bf16.mxu1 %v9135_v21  ;;  %v10526_v20 = vcombine.high %v10504_v59, %v10504_v59  ;;  %v736_v21 = vld [vmem:[#allocation7 + $0x1048] sm:$0xff]  ;;  %v9189_v26 = vcombine.high %v735_v17, %v739_v18  ;;  %v9188_v60 = vcombine.low %v735_v17, %v739_v18 }
 0x15b   : > { %v9190_v34 = vcombine.low %v736_v21, %v740_v22  ;;  %v784_v17 = vld [vmem:[#allocation7 + $0x11c8] sm:$0xff] }
 0x15c   : > { %v788_v18 = vld [vmem:[#allocation7 + $0x11e8] sm:$0xff] }
 0x15d   : > { %6619 = vmatpush1.bf16.msra.mxu0 %v9132_v27  ;;  %6947 = vmatpush1.bf16.msra.mxu1 %v9134_v28  ;;  %v9191_v27 = vcombine.high %v736_v21, %v740_v22  ;;  %v743_v28 = vld [vmem:[#allocation7 + $0x1080] sm:$0xff]  ;;  %v9230_v21 = vcombine.low %v776_v7, %v780_v8 }
 0x15e   : > { %6620 = vmatprep.subr.bf16.mxu0 %v9141_v29  ;;  %6948 = vmatprep.subr.bf16.mxu1 %v9143_v30  ;;  %v747_v29 = vld [vmem:[#allocation7 + $0x10a0] sm:$0xff]  ;;  %v10529_v30 = vrot.slane %v1305_v19, %v10455_v54 }
 0x15f   : > { %v9196_v42 = vcombine.low %v743_v28, %v747_v29 }
 0x161   : > { %6621 = vmatpush1.bf16.msra.mxu0 %v9140_v0  ;;  %6949 = vmatpush1.bf16.msra.mxu1 %v9142_v36  ;;  %v9197_v0 = vcombine.high %v743_v28, %v747_v29  ;;  %v9199_v36 = vcombine.high %v744_v31, %v748_v33  ;;  %v796_v28 = vld [vmem:[#allocation7 + $0x1228] sm:$0xff]  ;;  %v9238_v31 = vcombine.low %v784_v17, %v788_v18 }
 0x162   : > { %6622 = vmatprep.subr.bf16.mxu0 %v9149_v37  ;;  %6950 = vmatprep.subr.bf16.mxu1 %v9151_v38  ;;  %v751_v37 = vld [vmem:[#allocation7 + $0x10c0] sm:$0xff] }
 0x163   : > { %v755_v38 = vld [vmem:[#allocation7 + $0x10e0] sm:$0xff] }
 0x164   : > { %v9204_v52 = vcombine.low %v751_v37, %v755_v38 }
 0x165   : > { %6623 = vmatpush1.bf16.msra.mxu0 %v9148_v44  ;;  %6951 = vmatpush1.bf16.msra.mxu1 %v9150_v46  ;;  %v9205_v44 = vcombine.high %v751_v37, %v755_v38  ;;  %v9207_v46 = vcombine.high %v752_v39, %v756_v40  ;;  %v804_v37 = vld [vmem:[#allocation7 + $0x1268] sm:$0xff] }
 0x166   : > { %6624 = vmatprep.subr.bf16.mxu0 %v9157_v47  ;;  %6952 = vmatprep.subr.bf16.mxu1 %v9159_v48  ;;  %v759_v47 = vld [vmem:[#allocation7 + $0x1100] sm:$0xff] }
 0x167   : > { %v763_v48 = vld [vmem:[#allocation7 + $0x1120] sm:$0xff] }
 0x168   : > { %v9212_v63 = vcombine.low %v759_v47, %v763_v48 }
 0x169   : > { %6625 = vmatpush1.bf16.msra.mxu0 %v9156_v55  ;;  %6953 = vmatpush1.bf16.msra.mxu1 %v9158_v56  ;;  %v9213_v55 = vcombine.high %v759_v47, %v763_v48  ;;  %v9215_v56 = vcombine.high %v760_v50, %v764_v51  ;;  %v812_v47 = vld [vmem:[#allocation7 + $0x12a8] sm:$0xff] }
 0x16a   : > { %6626 = vmatprep.subr.bf16.mxu0 %v9165_v57  ;;  %6954 = vmatprep.subr.bf16.mxu1 %v9167_v58  ;;  %v767_v57 = vld [vmem:[#allocation7 + $0x1140] sm:$0xff] }
 0x16b   : > { %v771_v58 = vld [vmem:[#allocation7 + $0x1160] sm:$0xff] }
 0x16c   : > { %v9220_v11 = vcombine.low %v767_v57, %v771_v58 }
 0x16d   : > { %6627 = vmatpush1.bf16.msra.mxu0 %v9164_v3  ;;  %6955 = vmatpush1.bf16.msra.mxu1 %v9166_v4  ;;  %v9221_v3 = vcombine.high %v767_v57, %v771_v58  ;;  %v9223_v4 = vcombine.high %v768_v61, %v772_v62  ;;  %v820_v57 = vld [vmem:[#allocation7 + $0x12e8] sm:$0xff] }
 0x16e   : > { %6628 = vmatprep.subr.bf16.mxu0 %v9173_v5  ;;  %6956 = vmatprep.subr.bf16.mxu1 %v9175_v32  ;;  %v775_v5 = vld [vmem:[#allocation7 + $0x1180] sm:$0xff] }
 0x16f   : > { %v779_v32 = vld [vmem:[#allocation7 + $0x11a0] sm:$0xff] }
 0x170   : > { %v9228_v19 = vcombine.low %v775_v5, %v779_v32 }
 0x171   : > { %6629 = vmatpush1.bf16.msra.mxu0 %v9172_v13  ;;  %6957 = vmatpush1.bf16.msra.mxu1 %v9174_v14  ;;  %v9229_v13 = vcombine.high %v775_v5, %v779_v32  ;;  %v9231_v14 = vcombine.high %v776_v7, %v780_v8  ;;  %v828_v5 = vld [vmem:[#allocation7 + $0x1328] sm:$0xff] }
 0x172   : > { %6639 = vmatprep.subr.bf16.mxu0 %v9181_v15  ;;  %6967 = vmatprep.subr.bf16.mxu1 %v9183_v16  ;;  %v783_v15 = vld [vmem:[#allocation7 + $0x11c0] sm:$0xff] }
 0x173   : > { %v787_v16 = vld [vmem:[#allocation7 + $0x11e0] sm:$0xff] }
 0x174   : > { %6631 = vmatmul.mubr.bf16.vlgmr.msra.gmra.mrb[0].mxu0 %v10526_v20  ;;  %6959 = vmatmul.mubr.bf16.vlgmr.msra.gmra.mrb[0].mxu1 %v10526_v20  ;;  %v9237_v22 = vcombine.high %v783_v15, %v787_v16  ;;  %v9236_v29 = vcombine.low %v783_v15, %v787_v16  ;;  %v836_v15 = vld [vmem:[#allocation7 + $0x1368] sm:$0xff] }
 0x175   : > { %6640 = vmatpush1.bf16.msra.mxu0 %v9180_v23  ;;  %6968 = vmatpush1.bf16.msra.mxu1 %v9182_v25  ;;  %v9239_v23 = vcombine.high %v784_v17, %v788_v18  ;;  %v791_v25 = vld [vmem:[#allocation7 + $0x1200] sm:$0xff] }
 0x176   : > { %6641 = vmatprep.subr.bf16.mxu0 %v9189_v26  ;;  %6969 = vmatprep.subr.bf16.mxu1 %v9191_v27  ;;  %v795_v26 = vld [vmem:[#allocation7 + $0x1220] sm:$0xff]  ;;  %v792_v27 = vld [vmem:[#allocation7 + $0x1208] sm:$0xff] }
 0x177   : > { %6671 = vmatprep.mubr.bf16.mxu0 %v10529_v30  ;;  %6999 = vmatprep.mubr.bf16.mxu1 %v10529_v30  ;;  %v9245_v33 = vcombine.high %v791_v25, %v795_v26  ;;  %v9244_v38 = vcombine.low %v791_v25, %v795_v26  ;;  %v9246_v39 = vcombine.low %v792_v27, %v796_v28  ;;  %v844_v25 = vld [vmem:[#allocation7 + $0x13a8] sm:$0xff] }
 0x179   : > { %6642 = vmatpush1.bf16.msra.mxu0 %v9188_v60  ;;  %6970 = vmatpush1.bf16.msra.mxu1 %v9190_v34  ;;  %v9247_v60 = vcombine.high %v792_v27, %v796_v28  ;;  %v799_v34 = vld [vmem:[#allocation7 + $0x1240] sm:$0xff] }
 0x17a   : > { %6643 = vmatprep.subr.bf16.mxu0 %v9197_v0  ;;  %6971 = vmatprep.subr.bf16.mxu1 %v9199_v36  ;;  %v803_v0 = vld [vmem:[#allocation7 + $0x1260] sm:$0xff]  ;;  %v800_v36 = vld [vmem:[#allocation7 + $0x1248] sm:$0xff] }
 0x17b   : > { %v9253_v40 = vcombine.high %v799_v34, %v803_v0  ;;  %v9252_v48 = vcombine.low %v799_v34, %v803_v0  ;;  %v9254_v50 = vcombine.low %v800_v36, %v804_v37  ;;  %v852_v34 = vld [vmem:[#allocation7 + $0x13e8] sm:$0xff] }
 0x17d   : > { %6644 = vmatpush1.bf16.msra.mxu0 %v9196_v42  ;;  %6972 = vmatpush1.bf16.msra.mxu1 %v9198_v43  ;;  %v9255_v42 = vcombine.high %v800_v36, %v804_v37  ;;  %v807_v43 = vld [vmem:[#allocation7 + $0x1280] sm:$0xff] }
 0x17e   : > { %6645 = vmatprep.subr.bf16.mxu0 %v9205_v44  ;;  %6973 = vmatprep.subr.bf16.mxu1 %v9207_v46  ;;  %v811_v44 = vld [vmem:[#allocation7 + $0x12a0] sm:$0xff]  ;;  %v808_v46 = vld [vmem:[#allocation7 + $0x1288] sm:$0xff] }
 0x17f   : > { %v9261_v51 = vcombine.high %v807_v43, %v811_v44  ;;  %v9260_v58 = vcombine.low %v807_v43, %v811_v44  ;;  %v9262_v61 = vcombine.low %v808_v46, %v812_v47  ;;  %v860_v43 = vld [vmem:[#allocation7 + $0x1428] sm:$0xff] }
 0x181   : > { %6646 = vmatpush1.bf16.msra.mxu0 %v9204_v52  ;;  %6974 = vmatpush1.bf16.msra.mxu1 %v9206_v53  ;;  %v9263_v52 = vcombine.high %v808_v46, %v812_v47  ;;  %v815_v53 = vld [vmem:[#allocation7 + $0x12c0] sm:$0xff] }
 0x182   : > { %6647 = vmatprep.subr.bf16.mxu0 %v9213_v55  ;;  %6975 = vmatprep.subr.bf16.mxu1 %v9215_v56  ;;  %v819_v55 = vld [vmem:[#allocation7 + $0x12e0] sm:$0xff]  ;;  %v816_v56 = vld [vmem:[#allocation7 + $0x12c8] sm:$0xff] }
 0x183   : > { %v9269_v62 = vcombine.high %v815_v53, %v819_v55  ;;  %v9268_v32 = vcombine.low %v815_v53, %v819_v55  ;;  %v9270_v7 = vcombine.low %v816_v56, %v820_v57  ;;  %v864_v53 = vld [vmem:[#allocation7 + $0x1448] sm:$0xff] }
 0x184   : > { %v868_v55 = vld [vmem:[#allocation7 + $0x1468] sm:$0xff] }
 0x185   : > { %6648 = vmatpush1.bf16.msra.mxu0 %v9212_v63  ;;  %6976 = vmatpush1.bf16.msra.mxu1 %v9214_v1  ;;  %v9271_v63 = vcombine.high %v816_v56, %v820_v57  ;;  %v823_v1 = vld [vmem:[#allocation7 + $0x1300] sm:$0xff] }
 0x186   : > { %6649 = vmatprep.subr.bf16.mxu0 %v9221_v3  ;;  %6977 = vmatprep.subr.bf16.mxu1 %v9223_v4  ;;  %v827_v3 = vld [vmem:[#allocation7 + $0x1320] sm:$0xff]  ;;  %v824_v4 = vld [vmem:[#allocation7 + $0x1308] sm:$0xff] }
 0x187   : > { %v9277_v8 = vcombine.high %v823_v1, %v827_v3  ;;  %v9276_v16 = vcombine.low %v823_v1, %v827_v3  ;;  %v9278_v17 = vcombine.low %v824_v4, %v828_v5  ;;  %v10541_v1 = vcombine.high %v10529_v30, %v10529_v30  ;;  %v876_v3 = vld [vmem:[#allocation7 + $0x14a8] sm:$0xff] }
 0x189   : > { %6650 = vmatpush1.bf16.msra.mxu0 %v9220_v11  ;;  %6978 = vmatpush1.bf16.msra.mxu1 %v9222_v12  ;;  %v9279_v11 = vcombine.high %v824_v4, %v828_v5  ;;  %v831_v12 = vld [vmem:[#allocation7 + $0x1340] sm:$0xff]  ;;  %v9318_v5 = vcombine.low %v864_v53, %v868_v55 }
 0x18a   : > { %6651 = vmatprep.subr.bf16.mxu0 %v9229_v13  ;;  %6979 = vmatprep.subr.bf16.mxu1 %v9231_v14  ;;  %v835_v13 = vld [vmem:[#allocation7 + $0x1360] sm:$0xff]  ;;  %v832_v14 = vld [vmem:[#allocation7 + $0x1348] sm:$0xff] }
 0x18b   : > { %v9285_v18 = vcombine.high %v831_v12, %v835_v13  ;;  %v9284_v26 = vcombine.low %v831_v12, %v835_v13  ;;  %v9286_v27 = vcombine.low %v832_v14, %v836_v15  ;;  %v880_v12 = vld [vmem:[#allocation7 + $0x14c8] sm:$0xff] }
 0x18c   : > { %v884_v13 = vld [vmem:[#allocation7 + $0x14e8] sm:$0xff] }
 0x18d   : > { %6652 = vmatpush1.bf16.msra.mxu0 %v9228_v19  ;;  %6980 = vmatpush1.bf16.msra.mxu1 %v9230_v21  ;;  %v9287_v19 = vcombine.high %v832_v14, %v836_v15  ;;  %v839_v21 = vld [vmem:[#allocation7 + $0x1380] sm:$0xff] }
 0x18e   : > { %6653 = vmatprep.subr.bf16.mxu0 %v9237_v22  ;;  %6981 = vmatprep.subr.bf16.mxu1 %v9239_v23  ;;  %v843_v22 = vld [vmem:[#allocation7 + $0x13a0] sm:$0xff]  ;;  %v840_v23 = vld [vmem:[#allocation7 + $0x1388] sm:$0xff] }
 0x18f   : > { %v9293_v28 = vcombine.high %v839_v21, %v843_v22  ;;  %v9292_v0 = vcombine.low %v839_v21, %v843_v22  ;;  %v9294_v36 = vcombine.low %v840_v23, %v844_v25  ;;  %v888_v21 = vld [vmem:[#allocation7 + $0x1508] sm:$0xff] }
 0x190   : > { %v892_v22 = vld [vmem:[#allocation7 + $0x1528] sm:$0xff] }
 0x191   : > { %6654 = vmatpush1.bf16.msra.mxu0 %v9236_v29  ;;  %6982 = vmatpush1.bf16.msra.mxu1 %v9238_v31  ;;  %v9295_v29 = vcombine.high %v840_v23, %v844_v25  ;;  %v847_v31 = vld [vmem:[#allocation7 + $0x13c0] sm:$0xff]  ;;  %v9334_v25 = vcombine.low %v880_v12, %v884_v13 }
 0x192   : > { %6655 = vmatprep.subr.bf16.mxu0 %v9245_v33  ;;  %6983 = vmatprep.subr.bf16.mxu1 %v9247_v60  ;;  %v851_v33 = vld [vmem:[#allocation7 + $0x13e0] sm:$0xff]  ;;  %v848_v60 = vld [vmem:[#allocation7 + $0x13c8] sm:$0xff] }
 0x193   : > { %v9301_v37 = vcombine.high %v847_v31, %v851_v33  ;;  %v9300_v44 = vcombine.low %v847_v31, %v851_v33  ;;  %v9302_v46 = vcombine.low %v848_v60, %v852_v34  ;;  %v896_v31 = vld [vmem:[#allocation7 + $0x1548] sm:$0xff] }
 0x194   : > { %v900_v33 = vld [vmem:[#allocation7 + $0x1568] sm:$0xff] }
 0x195   : > { %6656 = vmatpush1.bf16.msra.mxu0 %v9244_v38  ;;  %6984 = vmatpush1.bf16.msra.mxu1 %v9246_v39  ;;  %v9303_v38 = vcombine.high %v848_v60, %v852_v34  ;;  %v855_v39 = vld [vmem:[#allocation7 + $0x1400] sm:$0xff]  ;;  %v9342_v34 = vcombine.low %v888_v21, %v892_v22 }
 0x196   : > { %6657 = vmatprep.subr.bf16.mxu0 %v9253_v40  ;;  %6985 = vmatprep.subr.bf16.mxu1 %v9255_v42  ;;  %v859_v40 = vld [vmem:[#allocation7 + $0x1420] sm:$0xff]  ;;  %v856_v42 = vld [vmem:[#allocation7 + $0x1408] sm:$0xff] }
 0x197   : > { %v9309_v47 = vcombine.high %v855_v39, %v859_v40  ;;  %v9308_v56 = vcombine.low %v855_v39, %v859_v40  ;;  %v9310_v57 = vcombine.low %v856_v42, %v860_v43  ;;  %v904_v39 = vld [vmem:[#allocation7 + $0x1588] sm:$0xff] }
 0x198   : > { %v908_v40 = vld [vmem:[#allocation7 + $0x15a8] sm:$0xff] }
 0x199   : > { %6658 = vmatpush1.bf16.msra.mxu0 %v9252_v48  ;;  %6986 = vmatpush1.bf16.msra.mxu1 %v9254_v50  ;;  %v9311_v48 = vcombine.high %v856_v42, %v860_v43  ;;  %v863_v50 = vld [vmem:[#allocation7 + $0x1440] sm:$0xff]  ;;  %v9350_v43 = vcombine.low %v896_v31, %v900_v33 }
 0x19a   : > { %6659 = vmatprep.subr.bf16.mxu0 %v9261_v51  ;;  %6987 = vmatprep.subr.bf16.mxu1 %v9263_v52  ;;  %v867_v51 = vld [vmem:[#allocation7 + $0x1460] sm:$0xff]  ;;  %v10537_v52 = vrot.slane %v10520_v9, %v10455_v54  ;;  %v872_v9 = vld [vmem:[#allocation7 + $0x1488] sm:$0xff] }
 0x19b   : > { %v9316_v4 = vcombine.low %v863_v50, %v867_v51  ;;  %v9326_v15 = vcombine.low %v872_v9, %v876_v3 }
 0x19d   : > { %6660 = vmatpush1.bf16.msra.mxu0 %v9260_v58  ;;  %6988 = vmatpush1.bf16.msra.mxu1 %v9262_v61  ;;  %v9317_v58 = vcombine.high %v863_v50, %v867_v51  ;;  %v9319_v61 = vcombine.high %v864_v53, %v868_v55  ;;  %v912_v50 = vld [vmem:[#allocation7 + $0x15c8] sm:$0xff]  ;;  %v9358_v55 = vcombine.low %v904_v39, %v908_v40 }
 0x19e   : > { %6661 = vmatprep.subr.bf16.mxu0 %v9269_v62  ;;  %6989 = vmatprep.subr.bf16.mxu1 %v9271_v63  ;;  %v871_v62 = vld [vmem:[#allocation7 + $0x1480] sm:$0xff]  ;;  %v916_v51 = vld [vmem:[#allocation7 + $0x15e8] sm:$0xff] }
 0x19f   : > { %v875_v63 = vld [vmem:[#allocation7 + $0x14a0] sm:$0xff] }
 0x1a0   : > { %v9324_v14 = vcombine.low %v871_v62, %v875_v63 }
 0x1a1   : > { %6662 = vmatpush1.bf16.msra.mxu0 %v9268_v32  ;;  %6990 = vmatpush1.bf16.msra.mxu1 %v9270_v7  ;;  %v9325_v32 = vcombine.high %v871_v62, %v875_v63  ;;  %v9327_v7 = vcombine.high %v872_v9, %v876_v3  ;;  %v920_v62 = vld [vmem:[#allocation7 + $0x1608] sm:$0xff]  ;;  %v9366_v3 = vcombine.low %v912_v50, %v916_v51 }
 0x1a2   : > { %6663 = vmatprep.subr.bf16.mxu0 %v9277_v8  ;;  %6991 = vmatprep.subr.bf16.mxu1 %v9279_v11  ;;  %v879_v8 = vld [vmem:[#allocation7 + $0x14c0] sm:$0xff]  ;;  %v924_v63 = vld [vmem:[#allocation7 + $0x1628] sm:$0xff] }
 0x1a3   : > { %v883_v11 = vld [vmem:[#allocation7 + $0x14e0] sm:$0xff] }
 0x1a4   : > { %v9332_v23 = vcombine.low %v879_v8, %v883_v11 }
 0x1a5   : > { %6664 = vmatpush1.bf16.msra.mxu0 %v9276_v16  ;;  %6992 = vmatpush1.bf16.msra.mxu1 %v9278_v17  ;;  %v9333_v16 = vcombine.high %v879_v8, %v883_v11  ;;  %v9335_v17 = vcombine.high %v880_v12, %v884_v13  ;;  %v928_v8 = vld [vmem:[#allocation7 + $0x1648] sm:$0xff]  ;;  %v9374_v13 = vcombine.low %v920_v62, %v924_v63 }
 0x1a6   : > { %6665 = vmatprep.subr.bf16.mxu0 %v9285_v18  ;;  %6993 = vmatprep.subr.bf16.mxu1 %v9287_v19  ;;  %v887_v18 = vld [vmem:[#allocation7 + $0x1500] sm:$0xff]  ;;  %v932_v11 = vld [vmem:[#allocation7 + $0x1668] sm:$0xff] }
 0x1a7   : > { %v891_v19 = vld [vmem:[#allocation7 + $0x1520] sm:$0xff] }
 0x1a8   : > { %v9340_v60 = vcombine.low %v887_v18, %v891_v19 }
 0x1a9   : > { %6666 = vmatpush1.bf16.msra.mxu0 %v9284_v26  ;;  %6994 = vmatpush1.bf16.msra.mxu1 %v9286_v27  ;;  %v9341_v26 = vcombine.high %v887_v18, %v891_v19  ;;  %v9343_v27 = vcombine.high %v888_v21, %v892_v22  ;;  %v936_v18 = vld [vmem:[#allocation7 + $0x1688] sm:$0xff]  ;;  %v9382_v22 = vcombine.low %v928_v8, %v932_v11 }
 0x1aa   : > { %6667 = vmatprep.subr.bf16.mxu0 %v9293_v28  ;;  %6995 = vmatprep.subr.bf16.mxu1 %v9295_v29  ;;  %v895_v28 = vld [vmem:[#allocation7 + $0x1540] sm:$0xff]  ;;  %v940_v19 = vld [vmem:[#allocation7 + $0x16a8] sm:$0xff] }
 0x1ab   : > { %v899_v29 = vld [vmem:[#allocation7 + $0x1560] sm:$0xff] }
 0x1ac   : > { %v9348_v42 = vcombine.low %v895_v28, %v899_v29 }
 0x1ad   : > { %6668 = vmatpush1.bf16.msra.mxu0 %v9292_v0  ;;  %6996 = vmatpush1.bf16.msra.mxu1 %v9294_v36  ;;  %v9349_v0 = vcombine.high %v895_v28, %v899_v29  ;;  %v9351_v36 = vcombine.high %v896_v31, %v900_v33  ;;  %v944_v28 = vld [vmem:[#allocation7 + $0x16c8] sm:$0xff]  ;;  %v9390_v33 = vcombine.low %v936_v18, %v940_v19 }
 0x1ae   : > { %6669 = vmatprep.subr.bf16.mxu0 %v9301_v37  ;;  %6997 = vmatprep.subr.bf16.mxu1 %v9303_v38  ;;  %v903_v37 = vld [vmem:[#allocation7 + $0x1580] sm:$0xff]  ;;  %v948_v29 = vld [vmem:[#allocation7 + $0x16e8] sm:$0xff] }
 0x1af   : > { %v907_v38 = vld [vmem:[#allocation7 + $0x15a0] sm:$0xff] }
 0x1b0   : > { %v9356_v53 = vcombine.low %v903_v37, %v907_v38 }
 0x1b1   : > { %6670 = vmatpush1.bf16.msra.mxu0 %v9300_v44  ;;  %6998 = vmatpush1.bf16.msra.mxu1 %v9302_v46  ;;  %v9357_v44 = vcombine.high %v903_v37, %v907_v38  ;;  %v9359_v46 = vcombine.high %v904_v39, %v908_v40  ;;  %v952_v37 = vld [vmem:[#allocation7 + $0x1708] sm:$0xff]  ;;  %v9398_v40 = vcombine.low %v944_v28, %v948_v29 }
 0x1b2   : > { %6680 = vmatprep.subr.bf16.mxu0 %v9309_v47  ;;  %7008 = vmatprep.subr.bf16.mxu1 %v9311_v48  ;;  %v911_v47 = vld [vmem:[#allocation7 + $0x15c0] sm:$0xff]  ;;  %v956_v38 = vld [vmem:[#allocation7 + $0x1728] sm:$0xff] }
 0x1b3   : > { %v915_v48 = vld [vmem:[#allocation7 + $0x15e0] sm:$0xff] }
 0x1b4   : > { %6672 = vmatmul.mubr.bf16.vlgmr.msra.gmra.mrb[0].mxu0 %v10537_v52  ;;  %7000 = vmatmul.mubr.bf16.vlgmr.msra.gmra.mrb[0].mxu1 %v10537_v52  ;;  %v9364_v9 = vcombine.low %v911_v47, %v915_v48 }
 0x1b5   : > { %6681 = vmatpush1.bf16.msra.mxu0 %v9308_v56  ;;  %7009 = vmatpush1.bf16.msra.mxu1 %v9310_v57  ;;  %v9365_v56 = vcombine.high %v911_v47, %v915_v48  ;;  %v9367_v57 = vcombine.high %v912_v50, %v916_v51  ;;  %v960_v47 = vld [vmem:[#allocation7 + $0x1748] sm:$0xff]  ;;  %v9406_v51 = vcombine.low %v952_v37, %v956_v38 }
 0x1b6   : > { %6682 = vmatprep.subr.bf16.mxu0 %v9317_v58  ;;  %7010 = vmatprep.subr.bf16.mxu1 %v9319_v61  ;;  %v919_v58 = vld [vmem:[#allocation7 + $0x1600] sm:$0xff]  ;;  %v964_v48 = vld [vmem:[#allocation7 + $0x1768] sm:$0xff] }
 0x1b7   : > { %6712 = vmatprep.mubr.bf16.mxu0 %v10541_v1  ;;  %7040 = vmatprep.mubr.bf16.mxu1 %v10541_v1  ;;  %v923_v61 = vld [vmem:[#allocation7 + $0x1620] sm:$0xff] }
 0x1b8   : > { %v9372_v12 = vcombine.low %v919_v58, %v923_v61 }
 0x1b9   : > { %6683 = vmatpush1.bf16.msra.mxu0 %v9316_v4  ;;  %7011 = vmatpush1.bf16.msra.mxu1 %v9318_v5  ;;  %v9373_v4 = vcombine.high %v919_v58, %v923_v61  ;;  %v9375_v5 = vcombine.high %v920_v62, %v924_v63  ;;  %v968_v58 = vld [vmem:[#allocation7 + $0x1788] sm:$0xff]  ;;  %v9414_v63 = vcombine.low %v960_v47, %v964_v48 }
 0x1ba   : > { %6684 = vmatprep.subr.bf16.mxu0 %v9325_v32  ;;  %7012 = vmatprep.subr.bf16.mxu1 %v9327_v7  ;;  %v927_v32 = vld [vmem:[#allocation7 + $0x1640] sm:$0xff]  ;;  %v972_v61 = vld [vmem:[#allocation7 + $0x17a8] sm:$0xff] }
 0x1bb   : > { %v931_v7 = vld [vmem:[#allocation7 + $0x1660] sm:$0xff] }
 0x1bc   : > { %v9380_v21 = vcombine.low %v927_v32, %v931_v7 }
 0x1bd   : > { %6685 = vmatpush1.bf16.msra.mxu0 %v9324_v14  ;;  %7013 = vmatpush1.bf16.msra.mxu1 %v9326_v15  ;;  %v9381_v14 = vcombine.high %v927_v32, %v931_v7  ;;  %v9383_v15 = vcombine.high %v928_v8, %v932_v11  ;;  %v1290_v32 = vcombine.high %v10516_v2, %v10516_v2  ;;  %v976_v7 = vld [vmem:[#allocation7 + $0x17c8] sm:$0xff] }
 0x1be   : > { %6686 = vmatprep.subr.bf16.mxu0 %v9333_v16  ;;  %7014 = vmatprep.subr.bf16.mxu1 %v9335_v17  ;;  %v935_v16 = vld [vmem:[#allocation7 + $0x1680] sm:$0xff]  ;;  %v980_v8 = vld [vmem:[#allocation7 + $0x17e8] sm:$0xff] }
 0x1bf   : > { %v939_v17 = vld [vmem:[#allocation7 + $0x16a0] sm:$0xff]  ;;  %v9430_v2 = vcombine.low %v976_v7, %v980_v8 }
 0x1c0   : > { %v9388_v31 = vcombine.low %v935_v16, %v939_v17 }
 0x1c1   : > { %6687 = vmatpush1.bf16.msra.mxu0 %v9332_v23  ;;  %7015 = vmatpush1.bf16.msra.mxu1 %v9334_v25  ;;  %v9389_v23 = vcombine.high %v935_v16, %v939_v17  ;;  %v9391_v25 = vcombine.high %v936_v18, %v940_v19  ;;  %v987_v16 = vld [vmem:[#allocation7 + $0x1820] sm:$0xff]  ;;  %v10550_v17 = vrot.slane %v1290_v32, %v10455_v54  ;;  %v984_v18 = vld [vmem:[#allocation7 + $0x1808] sm:$0xff] }
 0x1c2   : > { %6688 = vmatprep.subr.bf16.mxu0 %v9341_v26  ;;  %7016 = vmatprep.subr.bf16.mxu1 %v9343_v27  ;;  %v943_v26 = vld [vmem:[#allocation7 + $0x16c0] sm:$0xff]  ;;  %v988_v19 = vld [vmem:[#allocation7 + $0x1828] sm:$0xff] }
 0x1c3   : > { %v947_v27 = vld [vmem:[#allocation7 + $0x16e0] sm:$0xff] }
 0x1c4   : > { %v9396_v39 = vcombine.low %v943_v26, %v947_v27  ;;  %v1023_v32 = vld [vmem:[#allocation7 + $0x1940] sm:$0xff] }
 0x1c5   : > { %6689 = vmatpush1.bf16.msra.mxu0 %v9340_v60  ;;  %7017 = vmatpush1.bf16.msra.mxu1 %v9342_v34  ;;  %v9397_v60 = vcombine.high %v943_v26, %v947_v27  ;;  %v9399_v34 = vcombine.high %v944_v28, %v948_v29  ;;  %v995_v26 = vld [vmem:[#allocation7 + $0x1860] sm:$0xff]  ;;  %v1306_v27 = vcombine.high %v10550_v17, %v10550_v17  ;;  %v992_v29 = vld [vmem:[#allocation7 + $0x1848] sm:$0xff] }
 0x1c6   : > { %6690 = vmatprep.subr.bf16.mxu0 %v9349_v0  ;;  %7018 = vmatprep.subr.bf16.mxu1 %v9351_v36  ;;  %v951_v0 = vld [vmem:[#allocation7 + $0x1700] sm:$0xff]  ;;  %v10556_v28 = vcombine.high %v10537_v52, %v10537_v52 }
 0x1c7   : > { %v955_v36 = vld [vmem:[#allocation7 + $0x1720] sm:$0xff] }
 0x1c8   : > { %v9404_v50 = vcombine.low %v951_v0, %v955_v36 }
 0x1c9   : > { %6691 = vmatpush1.bf16.msra.mxu0 %v9348_v42  ;;  %7019 = vmatpush1.bf16.msra.mxu1 %v9350_v43  ;;  %v9405_v42 = vcombine.high %v951_v0, %v955_v36  ;;  %v9407_v43 = vcombine.high %v952_v37, %v956_v38  ;;  %v999_v36 = vld [vmem:[#allocation7 + $0x1880] sm:$0xff]  ;;  %v10559_v38 = vrot.slane %v1306_v27, %v10455_v54 }
 0x1ca   : > { %6692 = vmatprep.subr.bf16.mxu0 %v9357_v44  ;;  %7020 = vmatprep.subr.bf16.mxu1 %v9359_v46  ;;  %v959_v44 = vld [vmem:[#allocation7 + $0x1740] sm:$0xff] }
 0x1cb   : > { %v963_v46 = vld [vmem:[#allocation7 + $0x1760] sm:$0xff] }
 0x1cc   : > { %v9412_v62 = vcombine.low %v959_v44, %v963_v46  ;;  %v1003_v37 = vld [vmem:[#allocation7 + $0x18a0] sm:$0xff] }
 0x1cd   : > { %6693 = vmatpush1.bf16.msra.mxu0 %v9356_v53  ;;  %7021 = vmatpush1.bf16.msra.mxu1 %v9358_v55  ;;  %v9413_v53 = vcombine.high %v959_v44, %v963_v46  ;;  %v9415_v55 = vcombine.high %v960_v47, %v964_v48  ;;  %v9453_v44 = vcombine.high %v999_v36, %v1003_v37  ;;  %v1007_v47 = vld [vmem:[#allocation7 + $0x18c0] sm:$0xff] }
 0x1ce   : > { %6694 = vmatprep.subr.bf16.mxu0 %v9365_v56  ;;  %7022 = vmatprep.subr.bf16.mxu1 %v9367_v57  ;;  %v967_v56 = vld [vmem:[#allocation7 + $0x1780] sm:$0xff] }
 0x1cf   : > { %v971_v57 = vld [vmem:[#allocation7 + $0x17a0] sm:$0xff] }
 0x1d0   : > { %v9420_v11 = vcombine.low %v967_v56, %v971_v57  ;;  %v1011_v48 = vld [vmem:[#allocation7 + $0x18e0] sm:$0xff] }
 0x1d1   : > { %6695 = vmatpush1.bf16.msra.mxu0 %v9364_v9  ;;  %7023 = vmatpush1.bf16.msra.mxu1 %v9366_v3  ;;  %v9421_v9 = vcombine.high %v967_v56, %v971_v57  ;;  %v9423_v3 = vcombine.high %v968_v58, %v972_v61  ;;  %v9461_v56 = vcombine.high %v1007_v47, %v1011_v48  ;;  %v1043_v27 = vld [vmem:[#allocation7 + $0x19e0] sm:$0xff] }
 0x1d2   : > { %6696 = vmatprep.subr.bf16.mxu0 %v9373_v4  ;;  %7024 = vmatprep.subr.bf16.mxu1 %v9375_v5  ;;  %v975_v4 = vld [vmem:[#allocation7 + $0x17c0] sm:$0xff] }
 0x1d3   : > { %v979_v5 = vld [vmem:[#allocation7 + $0x17e0] sm:$0xff] }
 0x1d5   : > { %6697 = vmatpush1.bf16.msra.mxu0 %v9372_v12  ;;  %7025 = vmatpush1.bf16.msra.mxu1 %v9374_v13  ;;  %v9422_v12 = vcombine.low %v968_v58, %v972_v61  ;;  %v9429_v13 = vcombine.high %v975_v4, %v979_v5  ;;  %v1015_v58 = vld [vmem:[#allocation7 + $0x1900] sm:$0xff] }
 0x1d6   : > { %6698 = vmatprep.subr.bf16.mxu0 %v9381_v14  ;;  %7026 = vmatprep.subr.bf16.mxu1 %v9383_v15  ;;  %v9431_v14 = vcombine.high %v976_v7, %v980_v8  ;;  %v983_v15 = vld [vmem:[#allocation7 + $0x1800] sm:$0xff]  ;;  %v1024_v8 = vld [vmem:[#allocation7 + $0x1948] sm:$0xff] }
 0x1d7   : > { %v1019_v61 = vld [vmem:[#allocation7 + $0x1920] sm:$0xff] }
 0x1d8   : > { %v1027_v7 = vld [vmem:[#allocation7 + $0x1960] sm:$0xff] }
 0x1d9   : > { %6699 = vmatpush1.bf16.msra.mxu0 %v9380_v21  ;;  %7027 = vmatpush1.bf16.msra.mxu1 %v9382_v22  ;;  %v9428_v21 = vcombine.low %v975_v4, %v979_v5  ;;  %v9437_v22 = vcombine.high %v983_v15, %v987_v16  ;;  %v9469_v4 = vcombine.high %v1015_v58, %v1019_v61 }
 0x1da   : > { %6700 = vmatprep.subr.bf16.mxu0 %v9389_v23  ;;  %7028 = vmatprep.subr.bf16.mxu1 %v9391_v25  ;;  %v9439_v23 = vcombine.high %v984_v18, %v988_v19  ;;  %v991_v25 = vld [vmem:[#allocation7 + $0x1840] sm:$0xff] }
 0x1dd   : > { %6701 = vmatpush1.bf16.msra.mxu0 %v9388_v31  ;;  %7029 = vmatpush1.bf16.msra.mxu1 %v9390_v33  ;;  %v996_v31 = vld [vmem:[#allocation7 + $0x1868] sm:$0xff]  ;;  %v9436_v33 = vcombine.low %v983_v15, %v987_v16  ;;  %v1031_v16 = vld [vmem:[#allocation7 + $0x1980] sm:$0xff] }
 0x1de   : > { %6702 = vmatprep.subr.bf16.mxu0 %v9397_v60  ;;  %7030 = vmatprep.subr.bf16.mxu1 %v9399_v34  ;;  %v9438_v60 = vcombine.low %v984_v18, %v988_v19  ;;  %v9445_v34 = vcombine.high %v991_v25, %v995_v26  ;;  %v9447_v0 = vcombine.high %v992_v29, %v996_v31  ;;  %v1035_v18 = vld [vmem:[#allocation7 + $0x19a0] sm:$0xff]  ;;  %v1032_v19 = vld [vmem:[#allocation7 + $0x1988] sm:$0xff] }
 0x1e1   : > { %6703 = vmatpush1.bf16.msra.mxu0 %v9396_v39  ;;  %7031 = vmatpush1.bf16.msra.mxu1 %v9398_v40  ;;  %v1000_v39 = vld [vmem:[#allocation7 + $0x1888] sm:$0xff] }
 0x1e2   : > { %6704 = vmatprep.subr.bf16.mxu0 %v9405_v42  ;;  %7032 = vmatprep.subr.bf16.mxu1 %v9407_v43  ;;  %v1004_v40 = vld [vmem:[#allocation7 + $0x18a8] sm:$0xff]  ;;  %v9444_v42 = vcombine.low %v991_v25, %v995_v26  ;;  %v9446_v43 = vcombine.low %v992_v29, %v996_v31  ;;  %v1039_v26 = vld [vmem:[#allocation7 + $0x19c0] sm:$0xff] }
 0x1e3   : > { %v9455_v46 = vcombine.high %v1000_v39, %v1004_v40  ;;  %v1040_v29 = vld [vmem:[#allocation7 + $0x19c8] sm:$0xff] }
 0x1e4   : > { %v1044_v31 = vld [vmem:[#allocation7 + $0x19e8] sm:$0xff] }
 0x1e5   : > { %6705 = vmatpush1.bf16.msra.mxu0 %v9404_v50  ;;  %7033 = vmatpush1.bf16.msra.mxu1 %v9406_v51  ;;  %v1008_v50 = vld [vmem:[#allocation7 + $0x18c8] sm:$0xff] }
 0x1e6   : > { %6706 = vmatprep.subr.bf16.mxu0 %v9413_v53  ;;  %7034 = vmatprep.subr.bf16.mxu1 %v9415_v55  ;;  %v1012_v51 = vld [vmem:[#allocation7 + $0x18e8] sm:$0xff]  ;;  %v9452_v53 = vcombine.low %v999_v36, %v1003_v37  ;;  %v9454_v55 = vcombine.low %v1000_v39, %v1004_v40  ;;  %v1047_v36 = vld [vmem:[#allocation7 + $0x1a00] sm:$0xff] }
 0x1e7   : > { %v9463_v57 = vcombine.high %v1008_v50, %v1012_v51  ;;  %v1051_v37 = vld [vmem:[#allocation7 + $0x1a20] sm:$0xff]  ;;  %v1048_v39 = vld [vmem:[#allocation7 + $0x1a08] sm:$0xff] }
 0x1e8   : > { %v1052_v40 = vld [vmem:[#allocation7 + $0x1a28] sm:$0xff] }
 0x1e9   : > { %6707 = vmatpush1.bf16.msra.mxu0 %v9412_v62  ;;  %7035 = vmatpush1.bf16.msra.mxu1 %v9414_v63  ;;  %v1016_v62 = vld [vmem:[#allocation7 + $0x1908] sm:$0xff] }
 0x1ea   : > { %6708 = vmatprep.subr.bf16.mxu0 %v9421_v9  ;;  %7036 = vmatprep.subr.bf16.mxu1 %v9423_v3  ;;  %v1020_v63 = vld [vmem:[#allocation7 + $0x1928] sm:$0xff]  ;;  %v9460_v9 = vcombine.low %v1007_v47, %v1011_v48  ;;  %v9462_v3 = vcombine.low %v1008_v50, %v1012_v51  ;;  %v1055_v47 = vld [vmem:[#allocation7 + $0x1a40] sm:$0xff] }
 0x1eb   : > { %v9471_v5 = vcombine.high %v1016_v62, %v1020_v63  ;;  %v1059_v48 = vld [vmem:[#allocation7 + $0x1a60] sm:$0xff]  ;;  %v1056_v50 = vld [vmem:[#allocation7 + $0x1a48] sm:$0xff] }
 0x1ec   : > { %v1060_v51 = vld [vmem:[#allocation7 + $0x1a68] sm:$0xff] }
 0x1ed   : > { %6709 = vmatpush1.bf16.msra.mxu0 %v9420_v11  ;;  %7037 = vmatpush1.bf16.msra.mxu1 %v9422_v12  ;;  %v1028_v11 = vld [vmem:[#allocation7 + $0x1968] sm:$0xff]  ;;  %v9468_v12 = vcombine.low %v1015_v58, %v1019_v61  ;;  %v1063_v58 = vld [vmem:[#allocation7 + $0x1a80] sm:$0xff] }
 0x1ee   : > { %6710 = vmatprep.subr.bf16.mxu0 %v9429_v13  ;;  %7038 = vmatprep.subr.bf16.mxu1 %v9431_v14  ;;  %v9470_v13 = vcombine.low %v1016_v62, %v1020_v63  ;;  %v9477_v14 = vcombine.high %v1023_v32, %v1027_v7  ;;  %v9479_v15 = vcombine.high %v1024_v8, %v1028_v11  ;;  %v1067_v61 = vld [vmem:[#allocation7 + $0x1aa0] sm:$0xff]  ;;  %v1064_v62 = vld [vmem:[#allocation7 + $0x1a88] sm:$0xff] }
 0x1ef   : > { %v1068_v63 = vld [vmem:[#allocation7 + $0x1aa8] sm:$0xff] }
 0x1f1   : > { %6711 = vmatpush1.bf16.msra.mxu0 %v9428_v21  ;;  %7039 = vmatpush1.bf16.msra.mxu1 %v9430_v2  ;;  %v1036_v21 = vld [vmem:[#allocation7 + $0x19a8] sm:$0xff]  ;;  %v9476_v2 = vcombine.low %v1023_v32, %v1027_v7  ;;  %v1071_v32 = vld [vmem:[#allocation7 + $0x1ac0] sm:$0xff] }
 0x1f2   : > { %6721 = vmatprep.subr.bf16.mxu0 %v9437_v22  ;;  %7049 = vmatprep.subr.bf16.mxu1 %v9439_v23  ;;  %v9478_v22 = vcombine.low %v1024_v8, %v1028_v11  ;;  %v9485_v23 = vcombine.high %v1031_v16, %v1035_v18  ;;  %v9487_v25 = vcombine.high %v1032_v19, %v1036_v21  ;;  %v1075_v7 = vld [vmem:[#allocation7 + $0x1ae0] sm:$0xff]  ;;  %v1072_v8 = vld [vmem:[#allocation7 + $0x1ac8] sm:$0xff] }
 0x1f3   : > { %v1076_v11 = vld [vmem:[#allocation7 + $0x1ae8] sm:$0xff] }
 0x1f4   : > { %6713 = vmatmul.mubr.bf16.vlgmr.msra.gmra.mrb[0].mxu0 %v10556_v28  ;;  %7041 = vmatmul.mubr.bf16.vlgmr.msra.gmra.mrb[0].mxu1 %v10556_v28 }
 0x1f5   : > { %6722 = vmatpush1.bf16.msra.mxu0 %v9436_v33  ;;  %7050 = vmatpush1.bf16.msra.mxu1 %v9438_v60  ;;  %v9484_v33 = vcombine.low %v1031_v16, %v1035_v18  ;;  %v9486_v60 = vcombine.low %v1032_v19, %v1036_v21  ;;  %v1079_v16 = vld [vmem:[#allocation7 + $0x1b00] sm:$0xff]  ;;  %v1080_v19 = vld [vmem:[#allocation7 + $0x1b08] sm:$0xff] }
 0x1f6   : > { %6723 = vmatprep.subr.bf16.mxu0 %v9445_v34  ;;  %7051 = vmatprep.subr.bf16.mxu1 %v9447_v0  ;;  %v9493_v34 = vcombine.high %v1039_v26, %v1043_v27  ;;  %v9495_v0 = vcombine.high %v1040_v29, %v1044_v31  ;;  %v1083_v18 = vld [vmem:[#allocation7 + $0x1b20] sm:$0xff]  ;;  %v1084_v21 = vld [vmem:[#allocation7 + $0x1b28] sm:$0xff] }
 0x1f7   : > { %6753 = vmatprep.mubr.bf16.mxu0 %v10559_v38  ;;  %7081 = vmatprep.mubr.bf16.mxu1 %v10559_v38 }
 0x1f9   : > { %6724 = vmatpush1.bf16.msra.mxu0 %v9444_v42  ;;  %7052 = vmatpush1.bf16.msra.mxu1 %v9446_v43  ;;  %v9492_v42 = vcombine.low %v1039_v26, %v1043_v27  ;;  %v9494_v43 = vcombine.low %v1040_v29, %v1044_v31  ;;  %v1087_v26 = vld [vmem:[#allocation7 + $0x1b40] sm:$0xff]  ;;  %v1088_v29 = vld [vmem:[#allocation7 + $0x1b48] sm:$0xff] }
 0x1fa   : > { %6725 = vmatprep.subr.bf16.mxu0 %v9453_v44  ;;  %7053 = vmatprep.subr.bf16.mxu1 %v9455_v46  ;;  %v9501_v44 = vcombine.high %v1047_v36, %v1051_v37  ;;  %v9503_v46 = vcombine.high %v1048_v39, %v1052_v40  ;;  %v1091_v27 = vld [vmem:[#allocation7 + $0x1b60] sm:$0xff]  ;;  %v1092_v31 = vld [vmem:[#allocation7 + $0x1b68] sm:$0xff] }
 0x1fd   : > { %6726 = vmatpush1.bf16.msra.mxu0 %v9452_v53  ;;  %7054 = vmatpush1.bf16.msra.mxu1 %v9454_v55  ;;  %v9500_v53 = vcombine.low %v1047_v36, %v1051_v37  ;;  %v9502_v55 = vcombine.low %v1048_v39, %v1052_v40  ;;  %v1095_v36 = vld [vmem:[#allocation7 + $0x1b80] sm:$0xff]  ;;  %v1096_v39 = vld [vmem:[#allocation7 + $0x1b88] sm:$0xff] }
 0x1fe   : > { %6727 = vmatprep.subr.bf16.mxu0 %v9461_v56  ;;  %7055 = vmatprep.subr.bf16.mxu1 %v9463_v57  ;;  %v9509_v56 = vcombine.high %v1055_v47, %v1059_v48  ;;  %v9511_v57 = vcombine.high %v1056_v50, %v1060_v51  ;;  %v1099_v37 = vld [vmem:[#allocation7 + $0x1ba0] sm:$0xff]  ;;  %v1100_v40 = vld [vmem:[#allocation7 + $0x1ba8] sm:$0xff] }
 0x201   : > { %6728 = vmatpush1.bf16.msra.mxu0 %v9460_v9  ;;  %7056 = vmatpush1.bf16.msra.mxu1 %v9462_v3  ;;  %v9508_v9 = vcombine.low %v1055_v47, %v1059_v48  ;;  %v9510_v3 = vcombine.low %v1056_v50, %v1060_v51  ;;  %v1103_v47 = vld [vmem:[#allocation7 + $0x1bc0] sm:$0xff]  ;;  %v1104_v50 = vld [vmem:[#allocation7 + $0x1bc8] sm:$0xff] }
 0x202   : > { %6729 = vmatprep.subr.bf16.mxu0 %v9469_v4  ;;  %7057 = vmatprep.subr.bf16.mxu1 %v9471_v5  ;;  %v9517_v4 = vcombine.high %v1063_v58, %v1067_v61  ;;  %v9519_v5 = vcombine.high %v1064_v62, %v1068_v63  ;;  %v1107_v48 = vld [vmem:[#allocation7 + $0x1be0] sm:$0xff]  ;;  %v1108_v51 = vld [vmem:[#allocation7 + $0x1be8] sm:$0xff] }
 0x205   : > { %6730 = vmatpush1.bf16.msra.mxu0 %v9468_v12  ;;  %7058 = vmatpush1.bf16.msra.mxu1 %v9470_v13  ;;  %v9516_v12 = vcombine.low %v1063_v58, %v1067_v61  ;;  %v9518_v13 = vcombine.low %v1064_v62, %v1068_v63  ;;  %v1111_v58 = vld [vmem:[#allocation7 + $0x1c00] sm:$0xff]  ;;  %v1112_v62 = vld [vmem:[#allocation7 + $0x1c08] sm:$0xff] }
 0x206   : > { %6731 = vmatprep.subr.bf16.mxu0 %v9477_v14  ;;  %7059 = vmatprep.subr.bf16.mxu1 %v9479_v15  ;;  %v9525_v14 = vcombine.high %v1071_v32, %v1075_v7  ;;  %v9527_v15 = vcombine.high %v1072_v8, %v1076_v11  ;;  %v1115_v61 = vld [vmem:[#allocation7 + $0x1c20] sm:$0xff]  ;;  %v1116_v63 = vld [vmem:[#allocation7 + $0x1c28] sm:$0xff] }
 0x209   : > { %6732 = vmatpush1.bf16.msra.mxu0 %v9476_v2  ;;  %7060 = vmatpush1.bf16.msra.mxu1 %v9478_v22  ;;  %v9524_v2 = vcombine.low %v1071_v32, %v1075_v7  ;;  %v9526_v22 = vcombine.low %v1072_v8, %v1076_v11  ;;  %v1119_v32 = vld [vmem:[#allocation7 + $0x1c40] sm:$0xff]  ;;  %v10567_v8 = vrot.slane %v10550_v17, %v10455_v54  ;;  %v1120_v11 = vld [vmem:[#allocation7 + $0x1c48] sm:$0xff] }
 0x20a   : > { %6733 = vmatprep.subr.bf16.mxu0 %v9485_v23  ;;  %7061 = vmatprep.subr.bf16.mxu1 %v9487_v25  ;;  %v9533_v23 = vcombine.high %v1079_v16, %v1083_v18  ;;  %v9535_v25 = vcombine.high %v1080_v19, %v1084_v21  ;;  %v1123_v7 = vld [vmem:[#allocation7 + $0x1c60] sm:$0xff]  ;;  %v1128_v54 = vld [vmem:[#allocation7 + $0x1c88] sm:$0xff] }
 0x20b   : > { %v1132_v17 = vld [vmem:[#allocation7 + $0x1ca8] sm:$0xff] }
 0x20d   : > { %6734 = vmatpush1.bf16.msra.mxu0 %v9484_v33  ;;  %7062 = vmatpush1.bf16.msra.mxu1 %v9486_v60  ;;  %v9532_v33 = vcombine.low %v1079_v16, %v1083_v18  ;;  %v9534_v60 = vcombine.low %v1080_v19, %v1084_v21  ;;  %v1127_v18 = vld [vmem:[#allocation7 + $0x1c80] sm:$0xff]  ;;  %v10571_v21 = vcombine.high %v10559_v38, %v10559_v38 }
 0x20e   : > { %6735 = vmatprep.subr.bf16.mxu0 %v9493_v34  ;;  %7063 = vmatprep.subr.bf16.mxu1 %v9495_v0  ;;  %v9541_v34 = vcombine.high %v1087_v26, %v1091_v27  ;;  %v9543_v0 = vcombine.high %v1088_v29, %v1092_v31  ;;  %v1131_v19 = vld [vmem:[#allocation7 + $0x1ca0] sm:$0xff] }
 0x211   : > { %6736 = vmatpush1.bf16.msra.mxu0 %v9492_v42  ;;  %7064 = vmatpush1.bf16.msra.mxu1 %v9494_v43  ;;  %v9540_v42 = vcombine.low %v1087_v26, %v1091_v27  ;;  %v9542_v43 = vcombine.low %v1088_v29, %v1092_v31  ;;  %v1135_v26 = vld [vmem:[#allocation7 + $0x1cc0] sm:$0xff]  ;;  %v1136_v29 = vld [vmem:[#allocation7 + $0x1cc8] sm:$0xff] }
 0x212   : > { %6737 = vmatprep.subr.bf16.mxu0 %v9501_v44  ;;  %7065 = vmatprep.subr.bf16.mxu1 %v9503_v46  ;;  %v9549_v44 = vcombine.high %v1095_v36, %v1099_v37  ;;  %v9551_v46 = vcombine.high %v1096_v39, %v1100_v40  ;;  %v1139_v27 = vld [vmem:[#allocation7 + $0x1ce0] sm:$0xff]  ;;  %v1140_v31 = vld [vmem:[#allocation7 + $0x1ce8] sm:$0xff] }
 0x215   : > { %6738 = vmatpush1.bf16.msra.mxu0 %v9500_v53  ;;  %7066 = vmatpush1.bf16.msra.mxu1 %v9502_v55  ;;  %v9548_v53 = vcombine.low %v1095_v36, %v1099_v37  ;;  %v9550_v55 = vcombine.low %v1096_v39, %v1100_v40  ;;  %v1143_v36 = vld [vmem:[#allocation7 + $0x1d00] sm:$0xff]  ;;  %v1144_v39 = vld [vmem:[#allocation7 + $0x1d08] sm:$0xff] }
 0x216   : > { %6739 = vmatprep.subr.bf16.mxu0 %v9509_v56  ;;  %7067 = vmatprep.subr.bf16.mxu1 %v9511_v57  ;;  %v9557_v56 = vcombine.high %v1103_v47, %v1107_v48  ;;  %v9559_v57 = vcombine.high %v1104_v50, %v1108_v51  ;;  %v1147_v37 = vld [vmem:[#allocation7 + $0x1d20] sm:$0xff]  ;;  %v1148_v40 = vld [vmem:[#allocation7 + $0x1d28] sm:$0xff] }
 0x219   : > { %6740 = vmatpush1.bf16.msra.mxu0 %v9508_v9  ;;  %7068 = vmatpush1.bf16.msra.mxu1 %v9510_v3  ;;  %v9556_v9 = vcombine.low %v1103_v47, %v1107_v48  ;;  %v9558_v3 = vcombine.low %v1104_v50, %v1108_v51  ;;  %v1151_v47 = vld [vmem:[#allocation7 + $0x1d40] sm:$0xff]  ;;  %v1152_v50 = vld [vmem:[#allocation7 + $0x1d48] sm:$0xff] }
 0x21a   : > { %6741 = vmatprep.subr.bf16.mxu0 %v9517_v4  ;;  %7069 = vmatprep.subr.bf16.mxu1 %v9519_v5  ;;  %v9565_v4 = vcombine.high %v1111_v58, %v1115_v61  ;;  %v9567_v5 = vcombine.high %v1112_v62, %v1116_v63  ;;  %v1155_v48 = vld [vmem:[#allocation7 + $0x1d60] sm:$0xff]  ;;  %v1156_v51 = vld [vmem:[#allocation7 + $0x1d68] sm:$0xff] }
 0x21d   : > { %6742 = vmatpush1.bf16.msra.mxu0 %v9516_v12  ;;  %7070 = vmatpush1.bf16.msra.mxu1 %v9518_v13  ;;  %v1124_v12 = vld [vmem:[#allocation7 + $0x1c68] sm:$0xff]  ;;  %v9564_v13 = vcombine.low %v1111_v58, %v1115_v61  ;;  %v1159_v58 = vld [vmem:[#allocation7 + $0x1d80] sm:$0xff] }
 0x21e   : > { %6743 = vmatprep.subr.bf16.mxu0 %v9525_v14  ;;  %7071 = vmatprep.subr.bf16.mxu1 %v9527_v15  ;;  %v9566_v14 = vcombine.low %v1112_v62, %v1116_v63  ;;  %v9573_v15 = vcombine.high %v1119_v32, %v1123_v7  ;;  %v9575_v16 = vcombine.high %v1120_v11, %v1124_v12  ;;  %v1163_v61 = vld [vmem:[#allocation7 + $0x1da0] sm:$0xff]  ;;  %v1160_v62 = vld [vmem:[#allocation7 + $0x1d88] sm:$0xff] }
 0x21f   : > { %v1164_v63 = vld [vmem:[#allocation7 + $0x1da8] sm:$0xff] }
 0x221   : > { %6744 = vmatpush1.bf16.msra.mxu0 %v9524_v2  ;;  %7072 = vmatpush1.bf16.msra.mxu1 %v9526_v22  ;;  %v9572_v2 = vcombine.low %v1119_v32, %v1123_v7  ;;  %v9574_v22 = vcombine.low %v1120_v11, %v1124_v12  ;;  %v1167_v32 = vld [vmem:[#allocation7 + $0x1dc0] sm:$0xff]  ;;  %v1168_v11 = vld [vmem:[#allocation7 + $0x1dc8] sm:$0xff] }
 0x222   : > { %6745 = vmatprep.subr.bf16.mxu0 %v9533_v23  ;;  %7073 = vmatprep.subr.bf16.mxu1 %v9535_v25  ;;  %v9581_v23 = vcombine.high %v1127_v18, %v1131_v19  ;;  %v9583_v25 = vcombine.high %v1128_v54, %v1132_v17  ;;  %v1171_v7 = vld [vmem:[#allocation7 + $0x1de0] sm:$0xff]  ;;  %v1172_v12 = vld [vmem:[#allocation7 + $0x1de8] sm:$0xff] }
 0x225   : > { %6746 = vmatpush1.bf16.msra.mxu0 %v9532_v33  ;;  %7074 = vmatpush1.bf16.msra.mxu1 %v9534_v60  ;;  %v9580_v33 = vcombine.low %v1127_v18, %v1131_v19  ;;  %v9582_v60 = vcombine.low %v1128_v54, %v1132_v17  ;;  %v1175_v18 = vld [vmem:[#allocation7 + $0x1e00] sm:$0xff]  ;;  %v1176_v54 = vld [vmem:[#allocation7 + $0x1e08] sm:$0xff] }
 0x226   : > { %6747 = vmatprep.subr.bf16.mxu0 %v9541_v34  ;;  %7075 = vmatprep.subr.bf16.mxu1 %v9543_v0  ;;  %v9589_v34 = vcombine.high %v1135_v26, %v1139_v27  ;;  %v9591_v0 = vcombine.high %v1136_v29, %v1140_v31  ;;  %v1179_v19 = vld [vmem:[#allocation7 + $0x1e20] sm:$0xff]  ;;  %v1180_v17 = vld [vmem:[#allocation7 + $0x1e28] sm:$0xff] }
 0x229   : > { %6748 = vmatpush1.bf16.msra.mxu0 %v9540_v42  ;;  %7076 = vmatpush1.bf16.msra.mxu1 %v9542_v43  ;;  %v9588_v42 = vcombine.low %v1135_v26, %v1139_v27  ;;  %v9590_v43 = vcombine.low %v1136_v29, %v1140_v31  ;;  %v1183_v26 = vld [vmem:[#allocation7 + $0x1e40] sm:$0xff]  ;;  %v1184_v29 = vld [vmem:[#allocation7 + $0x1e48] sm:$0xff] }
 0x22a   : > { %6749 = vmatprep.subr.bf16.mxu0 %v9549_v44  ;;  %7077 = vmatprep.subr.bf16.mxu1 %v9551_v46  ;;  %v9597_v44 = vcombine.high %v1143_v36, %v1147_v37  ;;  %v9599_v46 = vcombine.high %v1144_v39, %v1148_v40  ;;  %v1187_v27 = vld [vmem:[#allocation7 + $0x1e60] sm:$0xff]  ;;  %v1188_v31 = vld [vmem:[#allocation7 + $0x1e68] sm:$0xff] }
 0x22d   : > { %6750 = vmatpush1.bf16.msra.mxu0 %v9548_v53  ;;  %7078 = vmatpush1.bf16.msra.mxu1 %v9550_v55  ;;  %v9596_v53 = vcombine.low %v1143_v36, %v1147_v37  ;;  %v9598_v55 = vcombine.low %v1144_v39, %v1148_v40  ;;  %v1191_v36 = vld [vmem:[#allocation7 + $0x1e80] sm:$0xff]  ;;  %v1192_v39 = vld [vmem:[#allocation7 + $0x1e88] sm:$0xff] }
 0x22e   : > { %6751 = vmatprep.subr.bf16.mxu0 %v9557_v56  ;;  %7079 = vmatprep.subr.bf16.mxu1 %v9559_v57  ;;  %v9605_v56 = vcombine.high %v1151_v47, %v1155_v48  ;;  %v9607_v57 = vcombine.high %v1152_v50, %v1156_v51  ;;  %v1195_v37 = vld [vmem:[#allocation7 + $0x1ea0] sm:$0xff]  ;;  %v1196_v40 = vld [vmem:[#allocation7 + $0x1ea8] sm:$0xff] }
 0x231   : > { %6752 = vmatpush1.bf16.msra.mxu0 %v9556_v9  ;;  %7080 = vmatpush1.bf16.msra.mxu1 %v9558_v3  ;;  %v9604_v9 = vcombine.low %v1151_v47, %v1155_v48  ;;  %v9606_v3 = vcombine.low %v1152_v50, %v1156_v51  ;;  %v1199_v47 = vld [vmem:[#allocation7 + $0x1ec0] sm:$0xff]  ;;  %v1200_v50 = vld [vmem:[#allocation7 + $0x1ec8] sm:$0xff] }
 0x232   : > { %6762 = vmatprep.subr.bf16.mxu0 %v9565_v4  ;;  %7090 = vmatprep.subr.bf16.mxu1 %v9567_v5  ;;  %v9613_v4 = vcombine.high %v1159_v58, %v1163_v61  ;;  %v9615_v5 = vcombine.high %v1160_v62, %v1164_v63  ;;  %v1203_v48 = vld [vmem:[#allocation7 + $0x1ee0] sm:$0xff]  ;;  %v1204_v51 = vld [vmem:[#allocation7 + $0x1ee8] sm:$0xff] }
 0x234   : > { %6754 = vmatmul.mubr.bf16.vlgmr.msra.gmra.mrb[0].mxu0 %v10567_v8  ;;  %7082 = vmatmul.mubr.bf16.vlgmr.msra.gmra.mrb[0].mxu1 %v10567_v8 }
 0x235   : > { %6763 = vmatpush1.bf16.msra.mxu0 %v9564_v13  ;;  %7091 = vmatpush1.bf16.msra.mxu1 %v9566_v14  ;;  %v9612_v13 = vcombine.low %v1159_v58, %v1163_v61  ;;  %v9614_v14 = vcombine.low %v1160_v62, %v1164_v63  ;;  %v1207_v58 = vld [vmem:[#allocation7 + $0x1f00] sm:$0xff]  ;;  %v1208_v62 = vld [vmem:[#allocation7 + $0x1f08] sm:$0xff] }
 0x236   : > { %6764 = vmatprep.subr.bf16.mxu0 %v9573_v15  ;;  %7092 = vmatprep.subr.bf16.mxu1 %v9575_v16  ;;  %v9621_v15 = vcombine.high %v1167_v32, %v1171_v7  ;;  %v9623_v16 = vcombine.high %v1168_v11, %v1172_v12  ;;  %v1211_v61 = vld [vmem:[#allocation7 + $0x1f20] sm:$0xff]  ;;  %v1212_v63 = vld [vmem:[#allocation7 + $0x1f28] sm:$0xff] }
 0x237   : > { %6794 = vmatprep.mubr.bf16.mxu0 %v10571_v21  ;;  %7122 = vmatprep.mubr.bf16.mxu1 %v10571_v21 }
 0x239   : > { %6765 = vmatpush1.bf16.msra.mxu0 %v9572_v2  ;;  %7093 = vmatpush1.bf16.msra.mxu1 %v9574_v22  ;;  %v9620_v2 = vcombine.low %v1167_v32, %v1171_v7  ;;  %v9622_v22 = vcombine.low %v1168_v11, %v1172_v12  ;;  %v1215_v32 = vld [vmem:[#allocation7 + $0x1f40] sm:$0xff]  ;;  %v1216_v11 = vld [vmem:[#allocation7 + $0x1f48] sm:$0xff] }
 0x23a   : > { %6766 = vmatprep.subr.bf16.mxu0 %v9581_v23  ;;  %7094 = vmatprep.subr.bf16.mxu1 %v9583_v25  ;;  %v9629_v23 = vcombine.high %v1175_v18, %v1179_v19  ;;  %v9631_v25 = vcombine.high %v1176_v54, %v1180_v17  ;;  %v1219_v7 = vld [vmem:[#allocation7 + $0x1f60] sm:$0xff]  ;;  %v1220_v12 = vld [vmem:[#allocation7 + $0x1f68] sm:$0xff] }
 0x23d   : > { %6767 = vmatpush1.bf16.msra.mxu0 %v9580_v33  ;;  %7095 = vmatpush1.bf16.msra.mxu1 %v9582_v60  ;;  %v9628_v33 = vcombine.low %v1175_v18, %v1179_v19  ;;  %v9630_v60 = vcombine.low %v1176_v54, %v1180_v17  ;;  %v1223_v18 = vld [vmem:[#allocation7 + $0x1f80] sm:$0xff]  ;;  %v1224_v54 = vld [vmem:[#allocation7 + $0x1f88] sm:$0xff] }
 0x23e   : > { %6768 = vmatprep.subr.bf16.mxu0 %v9589_v34  ;;  %7096 = vmatprep.subr.bf16.mxu1 %v9591_v0  ;;  %v9637_v34 = vcombine.high %v1183_v26, %v1187_v27  ;;  %v9639_v0 = vcombine.high %v1184_v29, %v1188_v31  ;;  %v1227_v19 = vld [vmem:[#allocation7 + $0x1fa0] sm:$0xff]  ;;  %v1228_v17 = vld [vmem:[#allocation7 + $0x1fa8] sm:$0xff] }
 0x241   : > { %6769 = vmatpush1.bf16.msra.mxu0 %v9588_v42  ;;  %7097 = vmatpush1.bf16.msra.mxu1 %v9590_v43  ;;  %v9636_v42 = vcombine.low %v1183_v26, %v1187_v27  ;;  %v9638_v43 = vcombine.low %v1184_v29, %v1188_v31  ;;  %v1231_v26 = vld [vmem:[#allocation7 + $0x1fc0] sm:$0xff]  ;;  %v1232_v29 = vld [vmem:[#allocation7 + $0x1fc8] sm:$0xff] }
 0x242   : > { %6770 = vmatprep.subr.bf16.mxu0 %v9597_v44  ;;  %7098 = vmatprep.subr.bf16.mxu1 %v9599_v46  ;;  %v9645_v44 = vcombine.high %v1191_v36, %v1195_v37  ;;  %v9647_v46 = vcombine.high %v1192_v39, %v1196_v40  ;;  %v1235_v27 = vld [vmem:[#allocation7 + $0x1fe0] sm:$0xff]  ;;  %v1236_v31 = vld [vmem:[#allocation7 + $0x1fe8] sm:$0xff] }
 0x245   : > { %6771 = vmatpush1.bf16.msra.mxu0 %v9596_v53  ;;  %7099 = vmatpush1.bf16.msra.mxu1 %v9598_v55  ;;  %v9644_v53 = vcombine.low %v1191_v36, %v1195_v37  ;;  %v9646_v55 = vcombine.low %v1192_v39, %v1196_v40  ;;  %v217_v36 = vld [vmem:[#allocation7 + $0x10] sm:$0xff]  ;;  %v218_v39 = vld [vmem:[#allocation7 + $0x18] sm:$0xff] }
 0x246   : > { %6772 = vmatprep.subr.bf16.mxu0 %v9605_v56  ;;  %7100 = vmatprep.subr.bf16.mxu1 %v9607_v57  ;;  %v9653_v56 = vcombine.high %v1199_v47, %v1203_v48  ;;  %v9655_v57 = vcombine.high %v1200_v50, %v1204_v51  ;;  %v221_v37 = vld [vmem:[#allocation7 + $0x30] sm:$0xff]  ;;  %v222_v40 = vld [vmem:[#allocation7 + $0x38] sm:$0xff] }
 0x249   : > { %6773 = vmatpush1.bf16.msra.mxu0 %v9604_v9  ;;  %7101 = vmatpush1.bf16.msra.mxu1 %v9606_v3  ;;  %v9652_v9 = vcombine.low %v1199_v47, %v1203_v48  ;;  %v9654_v3 = vcombine.low %v1200_v50, %v1204_v51  ;;  %v225_v47 = vld [vmem:[#allocation7 + $0x50] sm:$0xff]  ;;  %v10579_v50 = vcombine.high %v10567_v8, %v10567_v8  ;;  %v226_v51 = vld [vmem:[#allocation7 + $0x58] sm:$0xff] }
 0x24a   : > { %6774 = vmatprep.subr.bf16.mxu0 %v9613_v4  ;;  %7102 = vmatprep.subr.bf16.mxu1 %v9615_v5  ;;  %v9661_v4 = vcombine.high %v1207_v58, %v1211_v61  ;;  %v9663_v5 = vcombine.high %v1208_v62, %v1212_v63  ;;  %v229_v48 = vld [vmem:[#allocation7 + $0x70] sm:$0xff] }
 0x24d   : > { %6775 = vmatpush1.bf16.msra.mxu0 %v9612_v13  ;;  %7103 = vmatpush1.bf16.msra.mxu1 %v9614_v14  ;;  %v9660_v13 = vcombine.low %v1207_v58, %v1211_v61  ;;  %v9662_v14 = vcombine.low %v1208_v62, %v1212_v63  ;;  %v233_v61 = vld [vmem:[#allocation7 + $0x90] sm:$0xff]  ;;  %v234_v63 = vld [vmem:[#allocation7 + $0x98] sm:$0xff] }
 0x24e   : > { %6776 = vmatprep.subr.bf16.mxu0 %v9621_v15  ;;  %7104 = vmatprep.subr.bf16.mxu1 %v9623_v16  ;;  %v9669_v15 = vcombine.high %v1215_v32, %v1219_v7  ;;  %v9671_v16 = vcombine.high %v1216_v11, %v1220_v12  ;;  %v237_v62 = vld [vmem:[#allocation7 + $0xb0] sm:$0xff] }
 0x251   : > { %6777 = vmatpush1.bf16.msra.mxu0 %v9620_v2  ;;  %7105 = vmatpush1.bf16.msra.mxu1 %v9622_v22  ;;  %v9668_v2 = vcombine.low %v1215_v32, %v1219_v7  ;;  %v9670_v22 = vcombine.low %v1216_v11, %v1220_v12  ;;  %v241_v7 = vld [vmem:[#allocation7 + $0xd0] sm:$0xff]  ;;  %v242_v12 = vld [vmem:[#allocation7 + $0xd8] sm:$0xff] }
 0x252   : > { %6778 = vmatprep.subr.bf16.mxu0 %v9629_v23  ;;  %7106 = vmatprep.subr.bf16.mxu1 %v9631_v25  ;;  %v9677_v23 = vcombine.high %v1223_v18, %v1227_v19  ;;  %v9679_v25 = vcombine.high %v1224_v54, %v1228_v17  ;;  %v245_v11 = vld [vmem:[#allocation7 + $0xf0] sm:$0xff] }
 0x255   : > { %6779 = vmatpush1.bf16.msra.mxu0 %v9628_v33  ;;  %7107 = vmatpush1.bf16.msra.mxu1 %v9630_v60  ;;  %v9676_v33 = vcombine.low %v1223_v18, %v1227_v19  ;;  %v9678_v60 = vcombine.low %v1224_v54, %v1228_v17  ;;  %v249_v19 = vld [vmem:[#allocation7 + $0x110] sm:$0xff]  ;;  %v250_v17 = vld [vmem:[#allocation7 + $0x118] sm:$0xff] }
 0x256   : > { %6780 = vmatprep.subr.bf16.mxu0 %v9637_v34  ;;  %7108 = vmatprep.subr.bf16.mxu1 %v9639_v0  ;;  %v9685_v34 = vcombine.high %v1231_v26, %v1235_v27  ;;  %v9687_v0 = vcombine.high %v1232_v29, %v1236_v31  ;;  %v253_v54 = vld [vmem:[#allocation7 + $0x130] sm:$0xff] }
 0x259   : > { %6781 = vmatpush1.bf16.msra.mxu0 %v9636_v42  ;;  %7109 = vmatpush1.bf16.msra.mxu1 %v9638_v43  ;;  %v9684_v42 = vcombine.low %v1231_v26, %v1235_v27  ;;  %v9686_v43 = vcombine.low %v1232_v29, %v1236_v31  ;;  %v257_v26 = vld [vmem:[#allocation7 + $0x150] sm:$0xff]  ;;  %v258_v29 = vld [vmem:[#allocation7 + $0x158] sm:$0xff] }
 0x25a   : > { %6782 = vmatprep.subr.bf16.mxu0 %v9645_v44  ;;  %7110 = vmatprep.subr.bf16.mxu1 %v9647_v46  ;;  %v8673_v44 = vcombine.high %v217_v36, %v221_v37  ;;  %v8675_v46 = vcombine.high %v218_v39, %v222_v40  ;;  %v261_v27 = vld [vmem:[#allocation7 + $0x170] sm:$0xff]  ;;  %v262_v31 = vld [vmem:[#allocation7 + $0x178] sm:$0xff] }
 0x25d   : > { %6783 = vmatpush1.bf16.msra.mxu0 %v9644_v53  ;;  %7111 = vmatpush1.bf16.msra.mxu1 %v9646_v55  ;;  %v230_v53 = vld [vmem:[#allocation7 + $0x78] sm:$0xff]  ;;  %v8672_v55 = vcombine.low %v217_v36, %v221_v37  ;;  %v265_v36 = vld [vmem:[#allocation7 + $0x190] sm:$0xff] }
 0x25e   : > { %6784 = vmatprep.subr.bf16.mxu0 %v9653_v56  ;;  %7112 = vmatprep.subr.bf16.mxu1 %v9655_v57  ;;  %v8674_v56 = vcombine.low %v218_v39, %v222_v40  ;;  %v8681_v57 = vcombine.high %v225_v47, %v229_v48  ;;  %v8683_v58 = vcombine.high %v226_v51, %v230_v53  ;;  %v269_v37 = vld [vmem:[#allocation7 + $0x1b0] sm:$0xff]  ;;  %v266_v39 = vld [vmem:[#allocation7 + $0x198] sm:$0xff] }
 0x25f   : > { %v270_v40 = vld [vmem:[#allocation7 + $0x1b8] sm:$0xff] }
 0x261   : > { %6785 = vmatpush1.bf16.msra.mxu0 %v9652_v9  ;;  %7113 = vmatpush1.bf16.msra.mxu1 %v9654_v3  ;;  %v238_v9 = vld [vmem:[#allocation7 + $0xb8] sm:$0xff]  ;;  %v8680_v3 = vcombine.low %v225_v47, %v229_v48  ;;  %v273_v47 = vld [vmem:[#allocation7 + $0x1d0] sm:$0xff] }
 0x262   : > { %6786 = vmatprep.subr.bf16.mxu0 %v9661_v4  ;;  %7114 = vmatprep.subr.bf16.mxu1 %v9663_v5  ;;  %v8682_v4 = vcombine.low %v226_v51, %v230_v53  ;;  %v8689_v5 = vcombine.high %v233_v61, %v237_v62  ;;  %v8691_v32 = vcombine.high %v234_v63, %v238_v9  ;;  %v277_v48 = vld [vmem:[#allocation7 + $0x1f0] sm:$0xff]  ;;  %v274_v51 = vld [vmem:[#allocation7 + $0x1d8] sm:$0xff] }
 0x263   : > { %v278_v53 = vld [vmem:[#allocation7 + $0x1f8] sm:$0xff] }
 0x265   : > { %6787 = vmatpush1.bf16.msra.mxu0 %v9660_v13  ;;  %7115 = vmatpush1.bf16.msra.mxu1 %v9662_v14  ;;  %v246_v13 = vld [vmem:[#allocation7 + $0xf8] sm:$0xff]  ;;  %v8688_v14 = vcombine.low %v233_v61, %v237_v62  ;;  %v281_v61 = vld [vmem:[#allocation7 + $0x210] sm:$0xff] }
 0x266   : > { %6788 = vmatprep.subr.bf16.mxu0 %v9669_v15  ;;  %7116 = vmatprep.subr.bf16.mxu1 %v9671_v16  ;;  %v8690_v15 = vcombine.low %v234_v63, %v238_v9  ;;  %v8697_v16 = vcombine.high %v241_v7, %v245_v11  ;;  %v8699_v18 = vcombine.high %v242_v12, %v246_v13  ;;  %v285_v62 = vld [vmem:[#allocation7 + $0x230] sm:$0xff]  ;;  %v282_v63 = vld [vmem:[#allocation7 + $0x218] sm:$0xff] }
 0x267   : > { %v286_v9 = vld [vmem:[#allocation7 + $0x238] sm:$0xff] }
 0x269   : > { %6789 = vmatpush1.bf16.msra.mxu0 %v9668_v2  ;;  %7117 = vmatpush1.bf16.msra.mxu1 %v9670_v22  ;;  %v254_v2 = vld [vmem:[#allocation7 + $0x138] sm:$0xff]  ;;  %v8696_v22 = vcombine.low %v241_v7, %v245_v11  ;;  %v289_v7 = vld [vmem:[#allocation7 + $0x250] sm:$0xff] }
 0x26a   : > { %6790 = vmatprep.subr.bf16.mxu0 %v9677_v23  ;;  %7118 = vmatprep.subr.bf16.mxu1 %v9679_v25  ;;  %v8698_v23 = vcombine.low %v242_v12, %v246_v13  ;;  %v8705_v25 = vcombine.high %v249_v19, %v253_v54  ;;  %v293_v11 = vld [vmem:[#allocation7 + $0x270] sm:$0xff]  ;;  %v290_v12 = vld [vmem:[#allocation7 + $0x258] sm:$0xff] }
 0x26b   : > { %v294_v13 = vld [vmem:[#allocation7 + $0x278] sm:$0xff] }
 0x26d   : > { %6791 = vmatpush1.bf16.msra.mxu0 %v9676_v33  ;;  %7119 = vmatpush1.bf16.msra.mxu1 %v9678_v60  ;;  %v8704_v33 = vcombine.low %v249_v19, %v253_v54  ;;  %v8706_v60 = vcombine.low %v250_v17, %v254_v2  ;;  %v297_v19 = vld [vmem:[#allocation7 + $0x290] sm:$0xff] }
 0x26e   : > { %6792 = vmatprep.subr.bf16.mxu0 %v9685_v34  ;;  %7120 = vmatprep.subr.bf16.mxu1 %v9687_v0  ;;  %v8713_v34 = vcombine.high %v257_v26, %v261_v27  ;;  %v8715_v0 = vcombine.high %v258_v29, %v262_v31  ;;  %v301_v54 = vld [vmem:[#allocation7 + $0x2b0] sm:$0xff] }
 0x271   : > { %6793 = vmatpush1.bf16.msra.mxu0 %v9684_v42  ;;  %7121 = vmatpush1.bf16.msra.mxu1 %v9686_v43  ;;  %v8712_v42 = vcombine.low %v257_v26, %v261_v27  ;;  %v8714_v43 = vcombine.low %v258_v29, %v262_v31  ;;  %v305_v26 = vld [vmem:[#allocation7 + $0x2d0] sm:$0xff]  ;;  %v306_v29 = vld [vmem:[#allocation7 + $0x2d8] sm:$0xff] }
 0x272   : > { %7131 = vmatprep.subr.bf16.mxu0 %v8673_v44  ;;  %7459 = vmatprep.subr.bf16.mxu1 %v8675_v46  ;;  %v8721_v44 = vcombine.high %v265_v36, %v269_v37  ;;  %v8723_v46 = vcombine.high %v266_v39, %v270_v40  ;;  %v309_v27 = vld [vmem:[#allocation7 + $0x2f0] sm:$0xff]  ;;  %v310_v31 = vld [vmem:[#allocation7 + $0x2f8] sm:$0xff] }
 0x274   : > { %6795 = vmatmul.mubr.bf16.vlgmr.msra.gmra.mrb[0].mxu0 %v10579_v50  ;;  %7123 = vmatmul.mubr.bf16.vlgmr.msra.gmra.mrb[0].mxu1 %v10579_v50 }
 0x275   : > { %7132 = vmatpush1.bf16.msra.mxu0 %v8672_v55  ;;  %7460 = vmatpush1.bf16.msra.mxu1 %v8674_v56  ;;  %v8720_v55 = vcombine.low %v265_v36, %v269_v37  ;;  %v8722_v56 = vcombine.low %v266_v39, %v270_v40  ;;  %v313_v36 = vld [vmem:[#allocation7 + $0x310] sm:$0xff]  ;;  %v314_v39 = vld [vmem:[#allocation7 + $0x318] sm:$0xff] }
 0x276   : > { %7133 = vmatprep.subr.bf16.mxu0 %v8681_v57  ;;  %7461 = vmatprep.subr.bf16.mxu1 %v8683_v58  ;;  %v8729_v57 = vcombine.high %v273_v47, %v277_v48  ;;  %v8731_v58 = vcombine.high %v274_v51, %v278_v53  ;;  %v317_v37 = vld [vmem:[#allocation7 + $0x330] sm:$0xff]  ;;  %v318_v40 = vld [vmem:[#allocation7 + $0x338] sm:$0xff] }
 0x277   : > { %7163 = vmatprep.mubr.bf16.mxu0 %v10468_v10  ;;  %7491 = vmatprep.mubr.bf16.mxu1 %v10468_v10  ;;  %v8707_v10 = vcombine.high %v250_v17, %v254_v2  ;;  %v298_v17 = vld [vmem:[#allocation7 + $0x298] sm:$0xff] }
 0x278   : > { %v302_v2 = vld [vmem:[#allocation7 + $0x2b8] sm:$0xff] }
 0x279   : > { %7134 = vmatpush1.bf16.msra.mxu0 %v8680_v3  ;;  %7462 = vmatpush1.bf16.msra.mxu1 %v8682_v4  ;;  %v8728_v3 = vcombine.low %v273_v47, %v277_v48  ;;  %v8730_v4 = vcombine.low %v274_v51, %v278_v53  ;;  %v321_v47 = vld [vmem:[#allocation7 + $0x350] sm:$0xff]  ;;  %v322_v51 = vld [vmem:[#allocation7 + $0x358] sm:$0xff] }
 0x27a   : > { %7135 = vmatprep.subr.bf16.mxu0 %v8689_v5  ;;  %7463 = vmatprep.subr.bf16.mxu1 %v8691_v32  ;;  %v8737_v5 = vcombine.high %v281_v61, %v285_v62  ;;  %v8739_v32 = vcombine.high %v282_v63, %v286_v9  ;;  %v325_v48 = vld [vmem:[#allocation7 + $0x370] sm:$0xff]  ;;  %v326_v53 = vld [vmem:[#allocation7 + $0x378] sm:$0xff] }
 0x27d   : > { %7136 = vmatpush1.bf16.msra.mxu0 %v8688_v14  ;;  %7464 = vmatpush1.bf16.msra.mxu1 %v8690_v15  ;;  %v8736_v14 = vcombine.low %v281_v61, %v285_v62  ;;  %v8738_v15 = vcombine.low %v282_v63, %v286_v9  ;;  %v329_v61 = vld [vmem:[#allocation7 + $0x390] sm:$0xff]  ;;  %v330_v63 = vld [vmem:[#allocation7 + $0x398] sm:$0xff] }
 0x27e   : > { %7137 = vmatprep.subr.bf16.mxu0 %v8697_v16  ;;  %7465 = vmatprep.subr.bf16.mxu1 %v8699_v18  ;;  %v8745_v16 = vcombine.high %v289_v7, %v293_v11  ;;  %v8747_v18 = vcombine.high %v290_v12, %v294_v13  ;;  %v333_v62 = vld [vmem:[#allocation7 + $0x3b0] sm:$0xff]  ;;  %v334_v9 = vld [vmem:[#allocation7 + $0x3b8] sm:$0xff] }
 0x281   : > { %7138 = vmatpush1.bf16.msra.mxu0 %v8696_v22  ;;  %7466 = vmatpush1.bf16.msra.mxu1 %v8698_v23  ;;  %v8744_v22 = vcombine.low %v289_v7, %v293_v11  ;;  %v8746_v23 = vcombine.low %v290_v12, %v294_v13  ;;  %v337_v7 = vld [vmem:[#allocation7 + $0x3d0] sm:$0xff]  ;;  %v338_v12 = vld [vmem:[#allocation7 + $0x3d8] sm:$0xff] }
 0x282   : > { %7139 = vmatprep.subr.bf16.mxu0 %v8705_v25  ;;  %7467 = vmatprep.subr.bf16.mxu1 %v8707_v10  ;;  %v8753_v25 = vcombine.high %v297_v19, %v301_v54  ;;  %v8755_v10 = vcombine.high %v298_v17, %v302_v2  ;;  %v341_v11 = vld [vmem:[#allocation7 + $0x3f0] sm:$0xff]  ;;  %v342_v13 = vld [vmem:[#allocation7 + $0x3f8] sm:$0xff] }
 0x285   : > { %7140 = vmatpush1.bf16.msra.mxu0 %v8704_v33  ;;  %7468 = vmatpush1.bf16.msra.mxu1 %v8706_v60  ;;  %v8752_v33 = vcombine.low %v297_v19, %v301_v54  ;;  %v8754_v60 = vcombine.low %v298_v17, %v302_v2  ;;  %v345_v19 = vld [vmem:[#allocation7 + $0x410] sm:$0xff]  ;;  %v346_v17 = vld [vmem:[#allocation7 + $0x418] sm:$0xff] }
 0x286   : > { %7141 = vmatprep.subr.bf16.mxu0 %v8713_v34  ;;  %7469 = vmatprep.subr.bf16.mxu1 %v8715_v0  ;;  %v8761_v34 = vcombine.high %v305_v26, %v309_v27  ;;  %v8763_v0 = vcombine.high %v306_v29, %v310_v31  ;;  %v349_v54 = vld [vmem:[#allocation7 + $0x430] sm:$0xff]  ;;  %v350_v2 = vld [vmem:[#allocation7 + $0x438] sm:$0xff] }
 0x289   : > { %7142 = vmatpush1.bf16.msra.mxu0 %v8712_v42  ;;  %7470 = vmatpush1.bf16.msra.mxu1 %v8714_v43  ;;  %v8760_v42 = vcombine.low %v305_v26, %v309_v27  ;;  %v8762_v43 = vcombine.low %v306_v29, %v310_v31  ;;  %v353_v26 = vld [vmem:[#allocation7 + $0x450] sm:$0xff]  ;;  %v354_v29 = vld [vmem:[#allocation7 + $0x458] sm:$0xff] }
 0x28a   : > { %7143 = vmatprep.subr.bf16.mxu0 %v8721_v44  ;;  %7471 = vmatprep.subr.bf16.mxu1 %v8723_v46  ;;  %v8769_v44 = vcombine.high %v313_v36, %v317_v37  ;;  %v8771_v46 = vcombine.high %v314_v39, %v318_v40  ;;  %v357_v27 = vld [vmem:[#allocation7 + $0x470] sm:$0xff]  ;;  %v358_v31 = vld [vmem:[#allocation7 + $0x478] sm:$0xff] }
 0x28d   : > { %7144 = vmatpush1.bf16.msra.mxu0 %v8720_v55  ;;  %7472 = vmatpush1.bf16.msra.mxu1 %v8722_v56  ;;  %v8768_v55 = vcombine.low %v313_v36, %v317_v37  ;;  %v8770_v56 = vcombine.low %v314_v39, %v318_v40  ;;  %v361_v36 = vld [vmem:[#allocation7 + $0x490] sm:$0xff]  ;;  %v362_v39 = vld [vmem:[#allocation7 + $0x498] sm:$0xff] }
 0x28e   : > { %7145 = vmatprep.subr.bf16.mxu0 %v8729_v57  ;;  %7473 = vmatprep.subr.bf16.mxu1 %v8731_v58  ;;  %v8777_v57 = vcombine.high %v321_v47, %v325_v48  ;;  %v8779_v58 = vcombine.high %v322_v51, %v326_v53  ;;  %v365_v37 = vld [vmem:[#allocation7 + $0x4b0] sm:$0xff]  ;;  %v366_v40 = vld [vmem:[#allocation7 + $0x4b8] sm:$0xff] }
 0x291   : > { %7146 = vmatpush1.bf16.msra.mxu0 %v8728_v3  ;;  %7474 = vmatpush1.bf16.msra.mxu1 %v8730_v4  ;;  %v8776_v3 = vcombine.low %v321_v47, %v325_v48  ;;  %v8778_v4 = vcombine.low %v322_v51, %v326_v53  ;;  %v369_v47 = vld [vmem:[#allocation7 + $0x4d0] sm:$0xff]  ;;  %v370_v51 = vld [vmem:[#allocation7 + $0x4d8] sm:$0xff] }
 0x292   : > { %7147 = vmatprep.subr.bf16.mxu0 %v8737_v5  ;;  %7475 = vmatprep.subr.bf16.mxu1 %v8739_v32  ;;  %v8785_v5 = vcombine.high %v329_v61, %v333_v62  ;;  %v8787_v32 = vcombine.high %v330_v63, %v334_v9  ;;  %v373_v48 = vld [vmem:[#allocation7 + $0x4f0] sm:$0xff]  ;;  %v374_v53 = vld [vmem:[#allocation7 + $0x4f8] sm:$0xff] }
 0x295   : > { %7148 = vmatpush1.bf16.msra.mxu0 %v8736_v14  ;;  %7476 = vmatpush1.bf16.msra.mxu1 %v8738_v15  ;;  %v8784_v14 = vcombine.low %v329_v61, %v333_v62  ;;  %v8786_v15 = vcombine.low %v330_v63, %v334_v9  ;;  %v381_v61 = vld [vmem:[#allocation7 + $0x530] sm:$0xff]  ;;  %v378_v62 = vld [vmem:[#allocation7 + $0x518] sm:$0xff]  ;;  %v8824_v9 = vcombine.low %v369_v47, %v373_v48 }
 0x296   : > { %7149 = vmatprep.subr.bf16.mxu0 %v8745_v16  ;;  %7477 = vmatprep.subr.bf16.mxu1 %v8747_v18  ;;  %v8793_v16 = vcombine.high %v337_v7, %v341_v11  ;;  %v8795_v18 = vcombine.high %v338_v12, %v342_v13  ;;  %v382_v63 = vld [vmem:[#allocation7 + $0x538] sm:$0xff] }
 0x299   : > { %7150 = vmatpush1.bf16.msra.mxu0 %v8744_v22  ;;  %7478 = vmatpush1.bf16.msra.mxu1 %v8746_v23  ;;  %v8792_v22 = vcombine.low %v337_v7, %v341_v11  ;;  %v8794_v23 = vcombine.low %v338_v12, %v342_v13  ;;  %v386_v7 = vld [vmem:[#allocation7 + $0x558] sm:$0xff]  ;;  %v8834_v13 = vcombine.low %v378_v62, %v382_v63 }
 0x29a   : > { %7151 = vmatprep.subr.bf16.mxu0 %v8753_v25  ;;  %7479 = vmatprep.subr.bf16.mxu1 %v8755_v10  ;;  %v8801_v25 = vcombine.high %v345_v19, %v349_v54  ;;  %v8803_v10 = vcombine.high %v346_v17, %v350_v2  ;;  %v390_v11 = vld [vmem:[#allocation7 + $0x578] sm:$0xff] }
 0x29d   : > { %7152 = vmatpush1.bf16.msra.mxu0 %v8752_v33  ;;  %7480 = vmatpush1.bf16.msra.mxu1 %v8754_v60  ;;  %v8800_v33 = vcombine.low %v345_v19, %v349_v54  ;;  %v8802_v60 = vcombine.low %v346_v17, %v350_v2  ;;  %v394_v19 = vld [vmem:[#allocation7 + $0x598] sm:$0xff]  ;;  %v8842_v2 = vcombine.low %v386_v7, %v390_v11 }
 0x29e   : > { %7153 = vmatprep.subr.bf16.mxu0 %v8761_v34  ;;  %7481 = vmatprep.subr.bf16.mxu1 %v8763_v0  ;;  %v8809_v34 = vcombine.high %v353_v26, %v357_v27  ;;  %v8811_v0 = vcombine.high %v354_v29, %v358_v31  ;;  %v398_v54 = vld [vmem:[#allocation7 + $0x5b8] sm:$0xff] }
 0x2a1   : > { %7154 = vmatpush1.bf16.msra.mxu0 %v8760_v42  ;;  %7482 = vmatpush1.bf16.msra.mxu1 %v8762_v43  ;;  %v8808_v42 = vcombine.low %v353_v26, %v357_v27  ;;  %v8810_v43 = vcombine.low %v354_v29, %v358_v31  ;;  %v402_v26 = vld [vmem:[#allocation7 + $0x5d8] sm:$0xff]  ;;  %v8850_v31 = vcombine.low %v394_v19, %v398_v54 }
 0x2a2   : > { %7155 = vmatprep.subr.bf16.mxu0 %v8769_v44  ;;  %7483 = vmatprep.subr.bf16.mxu1 %v8771_v46  ;;  %v8817_v44 = vcombine.high %v361_v36, %v365_v37  ;;  %v8819_v46 = vcombine.high %v362_v39, %v366_v40  ;;  %v406_v27 = vld [vmem:[#allocation7 + $0x5f8] sm:$0xff] }
 0x2a5   : > { %7156 = vmatpush1.bf16.msra.mxu0 %v8768_v55  ;;  %7484 = vmatpush1.bf16.msra.mxu1 %v8770_v56  ;;  %v8816_v55 = vcombine.low %v361_v36, %v365_v37  ;;  %v8825_v56 = vcombine.high %v369_v47, %v373_v48  ;;  %v410_v36 = vld [vmem:[#allocation7 + $0x618] sm:$0xff] }
 0x2a6   : > { %7157 = vmatprep.subr.bf16.mxu0 %v8777_v57  ;;  %7485 = vmatprep.subr.bf16.mxu1 %v8779_v58  ;;  %v8827_v57 = vcombine.high %v370_v51, %v374_v53  ;;  %v377_v58 = vld [vmem:[#allocation7 + $0x510] sm:$0xff]  ;;  %v414_v37 = vld [vmem:[#allocation7 + $0x638] sm:$0xff] }
 0x2a7   : > { %v8832_v12 = vcombine.low %v377_v58, %v381_v61  ;;  %v418_v47 = vld [vmem:[#allocation7 + $0x658] sm:$0xff] }
 0x2a8   : > { %v422_v48 = vld [vmem:[#allocation7 + $0x678] sm:$0xff] }
 0x2a9   : > { %7158 = vmatpush1.bf16.msra.mxu0 %v8776_v3  ;;  %7486 = vmatpush1.bf16.msra.mxu1 %v8778_v4  ;;  %v8826_v3 = vcombine.low %v370_v51, %v374_v53  ;;  %v8833_v4 = vcombine.high %v377_v58, %v381_v61  ;;  %v8866_v53 = vcombine.low %v410_v36, %v414_v37  ;;  %v426_v58 = vld [vmem:[#allocation7 + $0x698] sm:$0xff] }
 0x2aa   : > { %7159 = vmatprep.subr.bf16.mxu0 %v8785_v5  ;;  %7487 = vmatprep.subr.bf16.mxu1 %v8787_v32  ;;  %v385_v5 = vld [vmem:[#allocation7 + $0x550] sm:$0xff]  ;;  %v430_v61 = vld [vmem:[#allocation7 + $0x6b8] sm:$0xff] }
 0x2ab   : > { %v389_v32 = vld [vmem:[#allocation7 + $0x570] sm:$0xff] }
 0x2ac   : > { %v8840_v17 = vcombine.low %v385_v5, %v389_v32 }
 0x2ad   : > { %7160 = vmatpush1.bf16.msra.mxu0 %v8784_v14  ;;  %7488 = vmatpush1.bf16.msra.mxu1 %v8786_v15  ;;  %v8841_v14 = vcombine.high %v385_v5, %v389_v32  ;;  %v8843_v15 = vcombine.high %v386_v7, %v390_v11  ;;  %v434_v5 = vld [vmem:[#allocation7 + $0x6d8] sm:$0xff]  ;;  %v8882_v11 = vcombine.low %v426_v58, %v430_v61 }
 0x2ae   : > { %7161 = vmatprep.subr.bf16.mxu0 %v8793_v16  ;;  %7489 = vmatprep.subr.bf16.mxu1 %v8795_v18  ;;  %v393_v16 = vld [vmem:[#allocation7 + $0x590] sm:$0xff]  ;;  %v438_v32 = vld [vmem:[#allocation7 + $0x6f8] sm:$0xff] }
 0x2af   : > { %v397_v18 = vld [vmem:[#allocation7 + $0x5b0] sm:$0xff] }
 0x2b0   : > { %v8848_v29 = vcombine.low %v393_v16, %v397_v18 }
 0x2b1   : > { %7162 = vmatpush1.bf16.msra.mxu0 %v8792_v22  ;;  %7490 = vmatpush1.bf16.msra.mxu1 %v8794_v23  ;;  %v8849_v22 = vcombine.high %v393_v16, %v397_v18  ;;  %v8851_v23 = vcombine.high %v394_v19, %v398_v54  ;;  %v442_v16 = vld [vmem:[#allocation7 + $0x718] sm:$0xff]  ;;  %v8890_v54 = vcombine.low %v434_v5, %v438_v32 }
 0x2b2   : > { %7172 = vmatprep.subr.bf16.mxu0 %v8801_v25  ;;  %7500 = vmatprep.subr.bf16.mxu1 %v8803_v10  ;;  %v401_v25 = vld [vmem:[#allocation7 + $0x5d0] sm:$0xff]  ;;  %v446_v18 = vld [vmem:[#allocation7 + $0x738] sm:$0xff] }
 0x2b3   : > { %v405_v10 = vld [vmem:[#allocation7 + $0x5f0] sm:$0xff] }
 0x2b4   : > { %7164 = vmatmul.mubr.bf16.vlgmr.msra.gmra.mrb[4].mxu0 %v10474_v24  ;;  %7492 = vmatmul.mubr.bf16.vlgmr.msra.gmra.mrb[4].mxu1 %v10474_v24  ;;  %v8818_v24 = vcombine.low %v362_v39, %v366_v40  ;;  %v8856_v39 = vcombine.low %v401_v25, %v405_v10  ;;  %v8858_v40 = vcombine.low %v402_v26, %v406_v27 }
 0x2b5   : > { %7173 = vmatpush1.bf16.msra.mxu0 %v8800_v33  ;;  %7501 = vmatpush1.bf16.msra.mxu1 %v8802_v60  ;;  %v8857_v33 = vcombine.high %v401_v25, %v405_v10  ;;  %v8859_v60 = vcombine.high %v402_v26, %v406_v27  ;;  %v450_v25 = vld [vmem:[#allocation7 + $0x758] sm:$0xff]  ;;  %v8898_v27 = vcombine.low %v442_v16, %v446_v18 }
 0x2b6   : > { %7174 = vmatprep.subr.bf16.mxu0 %v8809_v34  ;;  %7502 = vmatprep.subr.bf16.mxu1 %v8811_v0  ;;  %v409_v34 = vld [vmem:[#allocation7 + $0x610] sm:$0xff]  ;;  %v454_v10 = vld [vmem:[#allocation7 + $0x778] sm:$0xff] }
 0x2b7   : > { %7204 = vmatprep.mubr.bf16.mxu0 %v10478_v35  ;;  %7532 = vmatprep.mubr.bf16.mxu1 %v10478_v35  ;;  %v8835_v35 = vcombine.high %v378_v62, %v382_v63  ;;  %v413_v0 = vld [vmem:[#allocation7 + $0x630] sm:$0xff]  ;;  %v8874_v63 = vcombine.low %v418_v47, %v422_v48 }
 0x2b8   : > { %v8864_v51 = vcombine.low %v409_v34, %v413_v0 }
 0x2b9   : > { %7175 = vmatpush1.bf16.msra.mxu0 %v8808_v42  ;;  %7503 = vmatpush1.bf16.msra.mxu1 %v8810_v43  ;;  %v8865_v42 = vcombine.high %v409_v34, %v413_v0  ;;  %v8867_v43 = vcombine.high %v410_v36, %v414_v37  ;;  %v458_v34 = vld [vmem:[#allocation7 + $0x798] sm:$0xff]  ;;  %v8906_v37 = vcombine.low %v450_v25, %v454_v10 }
 0x2ba   : > { %7176 = vmatprep.subr.bf16.mxu0 %v8817_v44  ;;  %7504 = vmatprep.subr.bf16.mxu1 %v8819_v46  ;;  %v417_v44 = vld [vmem:[#allocation7 + $0x650] sm:$0xff]  ;;  %v462_v0 = vld [vmem:[#allocation7 + $0x7b8] sm:$0xff] }
 0x2bb   : > { %v421_v46 = vld [vmem:[#allocation7 + $0x670] sm:$0xff] }
 0x2bc   : > { %v8872_v62 = vcombine.low %v417_v44, %v421_v46 }
 0x2bd   : > { %7177 = vmatpush1.bf16.msra.mxu0 %v8816_v55  ;;  %7505 = vmatpush1.bf16.msra.mxu1 %v8818_v24  ;;  %v8873_v55 = vcombine.high %v417_v44, %v421_v46  ;;  %v8875_v24 = vcombine.high %v418_v47, %v422_v48  ;;  %v466_v44 = vld [vmem:[#allocation7 + $0x7d8] sm:$0xff]  ;;  %v8914_v48 = vcombine.low %v458_v34, %v462_v0 }
 0x2be   : > { %7178 = vmatprep.subr.bf16.mxu0 %v8825_v56  ;;  %7506 = vmatprep.subr.bf16.mxu1 %v8827_v57  ;;  %v425_v56 = vld [vmem:[#allocation7 + $0x690] sm:$0xff]  ;;  %v470_v46 = vld [vmem:[#allocation7 + $0x7f8] sm:$0xff] }
 0x2bf   : > { %v429_v57 = vld [vmem:[#allocation7 + $0x6b0] sm:$0xff] }
 0x2c0   : > { %v8880_v7 = vcombine.low %v425_v56, %v429_v57 }
 0x2c1   : > { %7179 = vmatpush1.bf16.msra.mxu0 %v8824_v9  ;;  %7507 = vmatpush1.bf16.msra.mxu1 %v8826_v3  ;;  %v8881_v9 = vcombine.high %v425_v56, %v429_v57  ;;  %v8883_v3 = vcombine.high %v426_v58, %v430_v61  ;;  %v474_v56 = vld [vmem:[#allocation7 + $0x818] sm:$0xff]  ;;  %v8922_v61 = vcombine.low %v466_v44, %v470_v46 }
 0x2c2   : > { %7180 = vmatprep.subr.bf16.mxu0 %v8833_v4  ;;  %7508 = vmatprep.subr.bf16.mxu1 %v8835_v35  ;;  %v433_v4 = vld [vmem:[#allocation7 + $0x6d0] sm:$0xff]  ;;  %v478_v57 = vld [vmem:[#allocation7 + $0x838] sm:$0xff] }
 0x2c3   : > { %v437_v35 = vld [vmem:[#allocation7 + $0x6f0] sm:$0xff] }
 0x2c4   : > { %v8888_v19 = vcombine.low %v433_v4, %v437_v35 }
 0x2c5   : > { %7181 = vmatpush1.bf16.msra.mxu0 %v8832_v12  ;;  %7509 = vmatpush1.bf16.msra.mxu1 %v8834_v13  ;;  %v8889_v12 = vcombine.high %v433_v4, %v437_v35  ;;  %v8891_v13 = vcombine.high %v434_v5, %v438_v32  ;;  %v482_v4 = vld [vmem:[#allocation7 + $0x858] sm:$0xff]  ;;  %v8930_v32 = vcombine.low %v474_v56, %v478_v57 }
 0x2c6   : > { %7182 = vmatprep.subr.bf16.mxu0 %v8841_v14  ;;  %7510 = vmatprep.subr.bf16.mxu1 %v8843_v15  ;;  %v441_v14 = vld [vmem:[#allocation7 + $0x710] sm:$0xff]  ;;  %v486_v35 = vld [vmem:[#allocation7 + $0x878] sm:$0xff] }
 0x2c7   : > { %v445_v15 = vld [vmem:[#allocation7 + $0x730] sm:$0xff] }
 0x2c8   : > { %v8896_v26 = vcombine.low %v441_v14, %v445_v15 }
 0x2c9   : > { %7183 = vmatpush1.bf16.msra.mxu0 %v8840_v17  ;;  %7511 = vmatpush1.bf16.msra.mxu1 %v8842_v2  ;;  %v8897_v17 = vcombine.high %v441_v14, %v445_v15  ;;  %v8899_v2 = vcombine.high %v442_v16, %v446_v18  ;;  %v490_v14 = vld [vmem:[#allocation7 + $0x898] sm:$0xff]  ;;  %v8938_v18 = vcombine.low %v482_v4, %v486_v35 }
 0x2ca   : > { %7184 = vmatprep.subr.bf16.mxu0 %v8849_v22  ;;  %7512 = vmatprep.subr.bf16.mxu1 %v8851_v23  ;;  %v449_v22 = vld [vmem:[#allocation7 + $0x750] sm:$0xff]  ;;  %v494_v15 = vld [vmem:[#allocation7 + $0x8b8] sm:$0xff] }
 0x2cb   : > { %v453_v23 = vld [vmem:[#allocation7 + $0x770] sm:$0xff] }
 0x2cc   : > { %v8904_v36 = vcombine.low %v449_v22, %v453_v23 }
 0x2cd   : > { %7185 = vmatpush1.bf16.msra.mxu0 %v8848_v29  ;;  %7513 = vmatpush1.bf16.msra.mxu1 %v8850_v31  ;;  %v8905_v29 = vcombine.high %v449_v22, %v453_v23  ;;  %v8907_v31 = vcombine.high %v450_v25, %v454_v10  ;;  %v498_v22 = vld [vmem:[#allocation7 + $0x8d8] sm:$0xff] }
 0x2ce   : > { %7186 = vmatprep.subr.bf16.mxu0 %v8857_v33  ;;  %7514 = vmatprep.subr.bf16.mxu1 %v8859_v60  ;;  %v457_v33 = vld [vmem:[#allocation7 + $0x790] sm:$0xff]  ;;  %v502_v23 = vld [vmem:[#allocation7 + $0x8f8] sm:$0xff] }
 0x2cf   : > { %v461_v60 = vld [vmem:[#allocation7 + $0x7b0] sm:$0xff] }
 0x2d0   : > { %v8912_v47 = vcombine.low %v457_v33, %v461_v60 }
 0x2d1   : > { %7187 = vmatpush1.bf16.msra.mxu0 %v8856_v39  ;;  %7515 = vmatpush1.bf16.msra.mxu1 %v8858_v40  ;;  %v8913_v39 = vcombine.high %v457_v33, %v461_v60  ;;  %v8915_v40 = vcombine.high %v458_v34, %v462_v0  ;;  %v510_v33 = vld [vmem:[#allocation7 + $0x938] sm:$0xff]  ;;  %v8954_v34 = vcombine.low %v498_v22, %v502_v23 }
 0x2d2   : > { %7188 = vmatprep.subr.bf16.mxu0 %v8865_v42  ;;  %7516 = vmatprep.subr.bf16.mxu1 %v8867_v43  ;;  %v465_v42 = vld [vmem:[#allocation7 + $0x7d0] sm:$0xff] }
 0x2d3   : > { %v469_v43 = vld [vmem:[#allocation7 + $0x7f0] sm:$0xff] }
 0x2d4   : > { %v8920_v58 = vcombine.low %v465_v42, %v469_v43 }
 0x2d5   : > { %7189 = vmatpush1.bf16.msra.mxu0 %v8864_v51  ;;  %7517 = vmatpush1.bf16.msra.mxu1 %v8866_v53  ;;  %v8921_v51 = vcombine.high %v465_v42, %v469_v43  ;;  %v8923_v53 = vcombine.high %v466_v44, %v470_v46 }
 0x2d6   : > { %7190 = vmatprep.subr.bf16.mxu0 %v8873_v55  ;;  %7518 = vmatprep.subr.bf16.mxu1 %v8875_v24  ;;  %v473_v55 = vld [vmem:[#allocation7 + $0x810] sm:$0xff] }
 0x2d7   : > { %v477_v24 = vld [vmem:[#allocation7 + $0x830] sm:$0xff] }
 0x2d8   : > { %v8928_v5 = vcombine.low %v473_v55, %v477_v24 }
 0x2d9   : > { %7191 = vmatpush1.bf16.msra.mxu0 %v8872_v62  ;;  %7519 = vmatpush1.bf16.msra.mxu1 %v8874_v63  ;;  %v8929_v62 = vcombine.high %v473_v55, %v477_v24  ;;  %v8931_v63 = vcombine.high %v474_v56, %v478_v57 }
 0x2da   : > { %7192 = vmatprep.subr.bf16.mxu0 %v8881_v9  ;;  %7520 = vmatprep.subr.bf16.mxu1 %v8883_v3  ;;  %v481_v9 = vld [vmem:[#allocation7 + $0x850] sm:$0xff] }
 0x2db   : > { %v485_v3 = vld [vmem:[#allocation7 + $0x870] sm:$0xff] }
 0x2dc   : > { %v8936_v16 = vcombine.low %v481_v9, %v485_v3 }
 0x2dd   : > { %7193 = vmatpush1.bf16.msra.mxu0 %v8880_v7  ;;  %7521 = vmatpush1.bf16.msra.mxu1 %v8882_v11  ;;  %v8937_v7 = vcombine.high %v481_v9, %v485_v3  ;;  %v8939_v11 = vcombine.high %v482_v4, %v486_v35 }
 0x2de   : > { %7194 = vmatprep.subr.bf16.mxu0 %v8889_v12  ;;  %7522 = vmatprep.subr.bf16.mxu1 %v8891_v13  ;;  %v489_v12 = vld [vmem:[#allocation7 + $0x890] sm:$0xff] }
 0x2df   : > { %v493_v13 = vld [vmem:[#allocation7 + $0x8b0] sm:$0xff] }
 0x2e0   : > { %v8944_v25 = vcombine.low %v489_v12, %v493_v13 }
 0x2e1   : > { %7195 = vmatpush1.bf16.msra.mxu0 %v8888_v19  ;;  %7523 = vmatpush1.bf16.msra.mxu1 %v8890_v54  ;;  %v8945_v19 = vcombine.high %v489_v12, %v493_v13  ;;  %v8947_v54 = vcombine.high %v490_v14, %v494_v15 }
 0x2e2   : > { %7196 = vmatprep.subr.bf16.mxu0 %v8897_v17  ;;  %7524 = vmatprep.subr.bf16.mxu1 %v8899_v2  ;;  %v497_v17 = vld [vmem:[#allocation7 + $0x8d0] sm:$0xff] }
 0x2e3   : > { %v501_v2 = vld [vmem:[#allocation7 + $0x8f0] sm:$0xff] }
 0x2e4   : > { %v8953_v10 = vcombine.high %v497_v17, %v501_v2  ;;  %v8952_v60 = vcombine.low %v497_v17, %v501_v2 }
 0x2e5   : > { %7197 = vmatpush1.bf16.msra.mxu0 %v8896_v26  ;;  %7525 = vmatpush1.bf16.msra.mxu1 %v8898_v27  ;;  %v8955_v26 = vcombine.high %v498_v22, %v502_v23  ;;  %v505_v27 = vld [vmem:[#allocation7 + $0x910] sm:$0xff] }
 0x2e6   : > { %7198 = vmatprep.subr.bf16.mxu0 %v8905_v29  ;;  %7526 = vmatprep.subr.bf16.mxu1 %v8907_v31  ;;  %v509_v29 = vld [vmem:[#allocation7 + $0x930] sm:$0xff]  ;;  %v506_v31 = vld [vmem:[#allocation7 + $0x918] sm:$0xff] }
 0x2e7   : > { %v8961_v0 = vcombine.high %v505_v27, %v509_v29  ;;  %v8960_v42 = vcombine.low %v505_v27, %v509_v29  ;;  %v8962_v43 = vcombine.low %v506_v31, %v510_v33 }
 0x2e9   : > { %7199 = vmatpush1.bf16.msra.mxu0 %v8904_v36  ;;  %7527 = vmatpush1.bf16.msra.mxu1 %v8906_v37  ;;  %v513_v36 = vld [vmem:[#allocation7 + $0x950] sm:$0xff] }
 0x2ea   : > { %7200 = vmatprep.subr.bf16.mxu0 %v8913_v39  ;;  %7528 = vmatprep.subr.bf16.mxu1 %v8915_v40  ;;  %v517_v37 = vld [vmem:[#allocation7 + $0x970] sm:$0xff]  ;;  %v514_v39 = vld [vmem:[#allocation7 + $0x958] sm:$0xff] }
 0x2eb   : > { %v518_v40 = vld [vmem:[#allocation7 + $0x978] sm:$0xff]  ;;  %v8969_v44 = vcombine.high %v513_v36, %v517_v37  ;;  %v8968_v55 = vcombine.low %v513_v36, %v517_v37 }
 0x2ec   : > { %v8971_v46 = vcombine.high %v514_v39, %v518_v40  ;;  %v8970_v24 = vcombine.low %v514_v39, %v518_v40 }
 0x2ed   : > { %7201 = vmatpush1.bf16.msra.mxu0 %v8912_v47  ;;  %7529 = vmatpush1.bf16.msra.mxu1 %v8914_v48  ;;  %v521_v47 = vld [vmem:[#allocation7 + $0x990] sm:$0xff] }
 0x2ee   : > { %7202 = vmatprep.subr.bf16.mxu0 %v8921_v51  ;;  %7530 = vmatprep.subr.bf16.mxu1 %v8923_v53  ;;  %v525_v48 = vld [vmem:[#allocation7 + $0x9b0] sm:$0xff]  ;;  %v522_v51 = vld [vmem:[#allocation7 + $0x998] sm:$0xff] }
 0x2ef   : > { %v526_v53 = vld [vmem:[#allocation7 + $0x9b8] sm:$0xff]  ;;  %v8977_v56 = vcombine.high %v521_v47, %v525_v48  ;;  %v8976_v9 = vcombine.low %v521_v47, %v525_v48 }
 0x2f0   : > { %v8979_v57 = vcombine.high %v522_v51, %v526_v53  ;;  %v8978_v3 = vcombine.low %v522_v51, %v526_v53 }
 0x2f1   : > { %7203 = vmatpush1.bf16.msra.mxu0 %v8920_v58  ;;  %7531 = vmatpush1.bf16.msra.mxu1 %v8922_v61  ;;  %v529_v58 = vld [vmem:[#allocation7 + $0x9d0] sm:$0xff] }
 0x2f2   : > { %7213 = vmatprep.subr.bf16.mxu0 %v8929_v62  ;;  %7541 = vmatprep.subr.bf16.mxu1 %v8931_v63  ;;  %v533_v61 = vld [vmem:[#allocation7 + $0x9f0] sm:$0xff]  ;;  %v530_v62 = vld [vmem:[#allocation7 + $0x9d8] sm:$0xff] }
 0x2f3   : > { %v534_v63 = vld [vmem:[#allocation7 + $0x9f8] sm:$0xff]  ;;  %v8985_v4 = vcombine.high %v529_v58, %v533_v61  ;;  %v8984_v12 = vcombine.low %v529_v58, %v533_v61 }
 0x2f4   : > { %7205 = vmatmul.mubr.bf16.vlgmr.msra.gmra.mrb[4].mxu0 %v10493_v41  ;;  %7533 = vmatmul.mubr.bf16.vlgmr.msra.gmra.mrb[4].mxu1 %v10493_v41  ;;  %v8946_v41 = vcombine.low %v490_v14, %v494_v15  ;;  %v8987_v35 = vcombine.high %v530_v62, %v534_v63  ;;  %v8986_v13 = vcombine.low %v530_v62, %v534_v63 }
 0x2f5   : > { %7214 = vmatpush1.bf16.msra.mxu0 %v8928_v5  ;;  %7542 = vmatpush1.bf16.msra.mxu1 %v8930_v32  ;;  %v537_v5 = vld [vmem:[#allocation7 + $0xa10] sm:$0xff] }
 0x2f6   : > { %7215 = vmatprep.subr.bf16.mxu0 %v8937_v7  ;;  %7543 = vmatprep.subr.bf16.mxu1 %v8939_v11  ;;  %v541_v32 = vld [vmem:[#allocation7 + $0xa30] sm:$0xff]  ;;  %v538_v7 = vld [vmem:[#allocation7 + $0xa18] sm:$0xff] }
 0x2f7   : > { %7245 = vmatprep.mubr.bf16.mxu0 %v10496_v49  ;;  %7573 = vmatprep.mubr.bf16.mxu1 %v10496_v49  ;;  %v8963_v49 = vcombine.high %v506_v31, %v510_v33  ;;  %v542_v11 = vld [vmem:[#allocation7 + $0xa38] sm:$0xff]  ;;  %v8993_v14 = vcombine.high %v537_v5, %v541_v32  ;;  %v8992_v17 = vcombine.low %v537_v5, %v541_v32 }
 0x2f8   : > { %v8995_v15 = vcombine.high %v538_v7, %v542_v11  ;;  %v8994_v2 = vcombine.low %v538_v7, %v542_v11 }
 0x2f9   : > { %7216 = vmatpush1.bf16.msra.mxu0 %v8936_v16  ;;  %7544 = vmatpush1.bf16.msra.mxu1 %v8938_v18  ;;  %v545_v16 = vld [vmem:[#allocation7 + $0xa50] sm:$0xff] }
 0x2fa   : > { %7217 = vmatprep.subr.bf16.mxu0 %v8945_v19  ;;  %7545 = vmatprep.subr.bf16.mxu1 %v8947_v54  ;;  %v549_v18 = vld [vmem:[#allocation7 + $0xa70] sm:$0xff]  ;;  %v546_v19 = vld [vmem:[#allocation7 + $0xa58] sm:$0xff] }
 0x2fb   : > { %v550_v54 = vld [vmem:[#allocation7 + $0xa78] sm:$0xff]  ;;  %v9001_v22 = vcombine.high %v545_v16, %v549_v18  ;;  %v9000_v27 = vcombine.low %v545_v16, %v549_v18 }
 0x2fc   : > { %v9003_v23 = vcombine.high %v546_v19, %v550_v54  ;;  %v9002_v29 = vcombine.low %v546_v19, %v550_v54 }
 0x2fd   : > { %7218 = vmatpush1.bf16.msra.mxu0 %v8944_v25  ;;  %7546 = vmatpush1.bf16.msra.mxu1 %v8946_v41  ;;  %v553_v25 = vld [vmem:[#allocation7 + $0xa90] sm:$0xff] }
 0x2fe   : > { %7219 = vmatprep.subr.bf16.mxu0 %v8953_v10  ;;  %7547 = vmatprep.subr.bf16.mxu1 %v8955_v26  ;;  %v557_v41 = vld [vmem:[#allocation7 + $0xab0] sm:$0xff]  ;;  %v554_v10 = vld [vmem:[#allocation7 + $0xa98] sm:$0xff] }
 0x2ff   : > { %v558_v26 = vld [vmem:[#allocation7 + $0xab8] sm:$0xff]  ;;  %v9009_v31 = vcombine.high %v553_v25, %v557_v41  ;;  %v9008_v36 = vcombine.low %v553_v25, %v557_v41 }
 0x300   : > { %v9011_v33 = vcombine.high %v554_v10, %v558_v26  ;;  %v9010_v37 = vcombine.low %v554_v10, %v558_v26 }
 0x301   : > { %7220 = vmatpush1.bf16.msra.mxu0 %v8952_v60  ;;  %7548 = vmatpush1.bf16.msra.mxu1 %v8954_v34  ;;  %v561_v60 = vld [vmem:[#allocation7 + $0xad0] sm:$0xff] }
 0x302   : > { %7221 = vmatprep.subr.bf16.mxu0 %v8961_v0  ;;  %7549 = vmatprep.subr.bf16.mxu1 %v8963_v49  ;;  %v565_v34 = vld [vmem:[#allocation7 + $0xaf0] sm:$0xff]  ;;  %v562_v0 = vld [vmem:[#allocation7 + $0xad8] sm:$0xff] }
 0x303   : > { %v566_v49 = vld [vmem:[#allocation7 + $0xaf8] sm:$0xff]  ;;  %v9017_v39 = vcombine.high %v561_v60, %v565_v34  ;;  %v9016_v47 = vcombine.low %v561_v60, %v565_v34 }
 0x304   : > { %v9019_v40 = vcombine.high %v562_v0, %v566_v49  ;;  %v9018_v48 = vcombine.low %v562_v0, %v566_v49 }
 0x305   : > { %7222 = vmatpush1.bf16.msra.mxu0 %v8960_v42  ;;  %7550 = vmatpush1.bf16.msra.mxu1 %v8962_v43  ;;  %v569_v42 = vld [vmem:[#allocation7 + $0xb10] sm:$0xff] }
 0x306   : > { %7223 = vmatprep.subr.bf16.mxu0 %v8969_v44  ;;  %7551 = vmatprep.subr.bf16.mxu1 %v8971_v46  ;;  %v573_v43 = vld [vmem:[#allocation7 + $0xb30] sm:$0xff]  ;;  %v570_v44 = vld [vmem:[#allocation7 + $0xb18] sm:$0xff] }
 0x307   : > { %v574_v46 = vld [vmem:[#allocation7 + $0xb38] sm:$0xff]  ;;  %v9025_v51 = vcombine.high %v569_v42, %v573_v43  ;;  %v9024_v58 = vcombine.low %v569_v42, %v573_v43 }
 0x308   : > { %v9027_v53 = vcombine.high %v570_v44, %v574_v46  ;;  %v9026_v61 = vcombine.low %v570_v44, %v574_v46 }
 0x309   : > { %7224 = vmatpush1.bf16.msra.mxu0 %v8968_v55  ;;  %7552 = vmatpush1.bf16.msra.mxu1 %v8970_v24  ;;  %v577_v55 = vld [vmem:[#allocation7 + $0xb50] sm:$0xff] }
 0x30a   : > { %7225 = vmatprep.subr.bf16.mxu0 %v8977_v56  ;;  %7553 = vmatprep.subr.bf16.mxu1 %v8979_v57  ;;  %v581_v24 = vld [vmem:[#allocation7 + $0xb70] sm:$0xff]  ;;  %v578_v56 = vld [vmem:[#allocation7 + $0xb58] sm:$0xff] }
 0x30b   : > { %v582_v57 = vld [vmem:[#allocation7 + $0xb78] sm:$0xff]  ;;  %v9033_v62 = vcombine.high %v577_v55, %v581_v24  ;;  %v9032_v5 = vcombine.low %v577_v55, %v581_v24 }
 0x30c   : > { %v9035_v63 = vcombine.high %v578_v56, %v582_v57  ;;  %v9034_v32 = vcombine.low %v578_v56, %v582_v57  ;;  %v633_v57 = vld [vmem:[#allocation7 + $0xd10] sm:$0xff] }
 0x30d   : > { %7226 = vmatpush1.bf16.msra.mxu0 %v8976_v9  ;;  %7554 = vmatpush1.bf16.msra.mxu1 %v8978_v3  ;;  %v585_v9 = vld [vmem:[#allocation7 + $0xb90] sm:$0xff] }
 0x30e   : > { %7227 = vmatprep.subr.bf16.mxu0 %v8985_v4  ;;  %7555 = vmatprep.subr.bf16.mxu1 %v8987_v35  ;;  %v589_v3 = vld [vmem:[#allocation7 + $0xbb0] sm:$0xff]  ;;  %v586_v4 = vld [vmem:[#allocation7 + $0xb98] sm:$0xff] }
 0x30f   : > { %v590_v35 = vld [vmem:[#allocation7 + $0xbb8] sm:$0xff]  ;;  %v9041_v7 = vcombine.high %v585_v9, %v589_v3  ;;  %v9040_v16 = vcombine.low %v585_v9, %v589_v3 }
 0x310   : > { %v9043_v11 = vcombine.high %v586_v4, %v590_v35  ;;  %v9042_v18 = vcombine.low %v586_v4, %v590_v35  ;;  %v10269_v4 = vmov 1983009808  }
 0x311   : > { %7228 = vmatpush1.bf16.msra.mxu0 %v8984_v12  ;;  %7556 = vmatpush1.bf16.msra.mxu1 %v8986_v13  ;;  %v593_v12 = vld [vmem:[#allocation7 + $0xbd0] sm:$0xff]  ;;  %v7802_v35 = vunpack.c.l.s4 %v10269_v4  ;;  %v678_v4 = vld [vmem:[#allocation7 + $0xe78] sm:$0xff] }
 0x312   : > { %7229 = vmatprep.subr.bf16.mxu0 %v8993_v14  ;;  %7557 = vmatprep.subr.bf16.mxu1 %v8995_v15  ;;  %v597_v13 = vld [vmem:[#allocation7 + $0xbf0] sm:$0xff]  ;;  %v594_v14 = vld [vmem:[#allocation7 + $0xbd8] sm:$0xff] }
 0x313   : > { %v598_v15 = vld [vmem:[#allocation7 + $0xbf8] sm:$0xff]  ;;  %v9049_v19 = vcombine.high %v593_v12, %v597_v13  ;;  %v9048_v25 = vcombine.low %v593_v12, %v597_v13 }
 0x314   : > { %v9051_v54 = vcombine.high %v594_v14, %v598_v15  ;;  %v9050_v41 = vcombine.low %v594_v14, %v598_v15  ;;  %v7803_v15 = vunpack.c.0.s8 %v7802_v35 }
 0x315   : > { %7230 = vmatpush1.bf16.msra.mxu0 %v8992_v17  ;;  %7558 = vmatpush1.bf16.msra.mxu1 %v8994_v2  ;;  %v601_v17 = vld [vmem:[#allocation7 + $0xc10] sm:$0xff] }
 0x316   : > { %7231 = vmatprep.subr.bf16.mxu0 %v9001_v22  ;;  %7559 = vmatprep.subr.bf16.mxu1 %v9003_v23  ;;  %v605_v2 = vld [vmem:[#allocation7 + $0xc30] sm:$0xff]  ;;  %v602_v22 = vld [vmem:[#allocation7 + $0xc18] sm:$0xff] }
 0x317   : > { %v606_v23 = vld [vmem:[#allocation7 + $0xc38] sm:$0xff]  ;;  %v9057_v10 = vcombine.high %v601_v17, %v605_v2  ;;  %v9056_v60 = vcombine.low %v601_v17, %v605_v2 }
 0x318   : > { %v9059_v26 = vcombine.high %v602_v22, %v606_v23  ;;  %v9058_v34 = vcombine.low %v602_v22, %v606_v23  ;;  %v654_v17 = vld [vmem:[#allocation7 + $0xdb8] sm:$0xff] }
 0x319   : > { %7232 = vmatpush1.bf16.msra.mxu0 %v9000_v27  ;;  %7560 = vmatpush1.bf16.msra.mxu1 %v9002_v29  ;;  %v609_v27 = vld [vmem:[#allocation7 + $0xc50] sm:$0xff] }
 0x31a   : > { %7233 = vmatprep.subr.bf16.mxu0 %v9009_v31  ;;  %7561 = vmatprep.subr.bf16.mxu1 %v9011_v33  ;;  %v613_v29 = vld [vmem:[#allocation7 + $0xc70] sm:$0xff]  ;;  %v610_v31 = vld [vmem:[#allocation7 + $0xc58] sm:$0xff] }
 0x31b   : > { %v614_v33 = vld [vmem:[#allocation7 + $0xc78] sm:$0xff]  ;;  %v9065_v0 = vcombine.high %v609_v27, %v613_v29  ;;  %v9064_v42 = vcombine.low %v609_v27, %v613_v29  ;;  %v661_v27 = vld [vmem:[#allocation7 + $0xdf0] sm:$0xff] }
 0x31c   : > { %v9067_v49 = vcombine.high %v610_v31, %v614_v33  ;;  %v9066_v43 = vcombine.low %v610_v31, %v614_v33  ;;  %v658_v33 = vld [vmem:[#allocation7 + $0xdd8] sm:$0xff] }
 0x31d   : > { %7234 = vmatpush1.bf16.msra.mxu0 %v9008_v36  ;;  %7562 = vmatpush1.bf16.msra.mxu1 %v9010_v37  ;;  %v617_v36 = vld [vmem:[#allocation7 + $0xc90] sm:$0xff] }
 0x31e   : > { %7235 = vmatprep.subr.bf16.mxu0 %v9017_v39  ;;  %7563 = vmatprep.subr.bf16.mxu1 %v9019_v40  ;;  %v621_v37 = vld [vmem:[#allocation7 + $0xcb0] sm:$0xff]  ;;  %v618_v39 = vld [vmem:[#allocation7 + $0xc98] sm:$0xff] }
 0x31f   : > { %v622_v40 = vld [vmem:[#allocation7 + $0xcb8] sm:$0xff]  ;;  %v9073_v44 = vcombine.high %v617_v36, %v621_v37  ;;  %v9072_v55 = vcombine.low %v617_v36, %v621_v37 }
 0x320   : > { %v9075_v46 = vcombine.high %v618_v39, %v622_v40 }
 0x321   : > { %7236 = vmatpush1.bf16.msra.mxu0 %v9016_v47  ;;  %7564 = vmatpush1.bf16.msra.mxu1 %v9018_v48  ;;  %v625_v47 = vld [vmem:[#allocation7 + $0xcd0] sm:$0xff] }
 0x322   : > { %7237 = vmatprep.subr.bf16.mxu0 %v9025_v51  ;;  %7565 = vmatprep.subr.bf16.mxu1 %v9027_v53  ;;  %v629_v48 = vld [vmem:[#allocation7 + $0xcf0] sm:$0xff]  ;;  %v626_v51 = vld [vmem:[#allocation7 + $0xcd8] sm:$0xff] }
 0x323   : > { %v630_v53 = vld [vmem:[#allocation7 + $0xcf8] sm:$0xff]  ;;  %v9081_v24 = vcombine.high %v625_v47, %v629_v48 }
 0x324   : > { %v9083_v56 = vcombine.high %v626_v51, %v630_v53  ;;  %v9082_v9 = vcombine.low %v626_v51, %v630_v53  ;;  %v669_v51 = vld [vmem:[#allocation7 + $0xe30] sm:$0xff] }
 0x325   : > { %7238 = vmatpush1.bf16.msra.mxu0 %v9024_v58  ;;  %7566 = vmatpush1.bf16.msra.mxu1 %v9026_v61  ;;  %v637_v58 = vld [vmem:[#allocation7 + $0xd30] sm:$0xff]  ;;  %v634_v61 = vld [vmem:[#allocation7 + $0xd18] sm:$0xff] }
 0x326   : > { %7239 = vmatprep.subr.bf16.mxu0 %v9033_v62  ;;  %7567 = vmatprep.subr.bf16.mxu1 %v9035_v63  ;;  %v638_v62 = vld [vmem:[#allocation7 + $0xd38] sm:$0xff]  ;;  %v9080_v63 = vcombine.low %v625_v47, %v629_v48  ;;  %v9089_v3 = vcombine.high %v633_v57, %v637_v58  ;;  %v9088_v12 = vcombine.low %v633_v57, %v637_v58  ;;  %v665_v48 = vld [vmem:[#allocation7 + $0xe10] sm:$0xff] }
 0x327   : > { %v9090_v13 = vcombine.low %v634_v61, %v638_v62  ;;  %v9120_v35 = vcombine.low %v665_v48, %v669_v51 }
 0x329   : > { %7240 = vmatpush1.bf16.msra.mxu0 %v9032_v5  ;;  %7568 = vmatpush1.bf16.msra.mxu1 %v9034_v32  ;;  %v641_v5 = vld [vmem:[#allocation7 + $0xd50] sm:$0xff] }
 0x32a   : > { %7241 = vmatprep.subr.bf16.mxu0 %v9041_v7  ;;  %7569 = vmatprep.subr.bf16.mxu1 %v9043_v11  ;;  %v645_v32 = vld [vmem:[#allocation7 + $0xd70] sm:$0xff]  ;;  %v642_v7 = vld [vmem:[#allocation7 + $0xd58] sm:$0xff] }
 0x32b   : > { %v646_v11 = vld [vmem:[#allocation7 + $0xd78] sm:$0xff]  ;;  %v9097_v14 = vcombine.high %v641_v5, %v645_v32  ;;  %v9096_v2 = vcombine.low %v641_v5, %v645_v32 }
 0x32c   : > { %v9098_v22 = vcombine.low %v642_v7, %v646_v11 }
 0x32d   : > { %7242 = vmatpush1.bf16.msra.mxu0 %v9040_v16  ;;  %7570 = vmatpush1.bf16.msra.mxu1 %v9042_v18  ;;  %v9099_v16 = vcombine.high %v642_v7, %v646_v11  ;;  %v649_v18 = vld [vmem:[#allocation7 + $0xd90] sm:$0xff]  ;;  %v10270_v7 = vmov 0.0  }
 0x32e   : > { %7243 = vmatprep.subr.bf16.mxu0 %v9049_v19  ;;  %7571 = vmatprep.subr.bf16.mxu1 %v9051_v54  ;;  %v653_v19 = vld [vmem:[#allocation7 + $0xdb0] sm:$0xff]  ;;  %v650_v54 = vld [vmem:[#allocation7 + $0xd98] sm:$0xff] }
 0x32f   : > { %v9105_v23 = vcombine.high %v649_v18, %v653_v19  ;;  %v9104_v37 = vcombine.low %v649_v18, %v653_v19  ;;  %v686_v18 = vld [vmem:[#allocation7 + $0xeb8] sm:$0xff] }
 0x331   : > { %7244 = vmatpush1.bf16.msra.mxu0 %v9048_v25  ;;  %7572 = vmatpush1.bf16.msra.mxu1 %v9050_v41  ;;  %v10598_v41 = vsub.s32 %v7803_v15, %v10452_v45  ;;  %v9106_v45 = vcombine.low %v650_v54, %v654_v17 }
 0x332   : > { %7254 = vmatprep.subr.bf16.mxu0 %v9057_v10  ;;  %7582 = vmatprep.subr.bf16.mxu1 %v9059_v26  ;;  %v9107_v10 = vcombine.high %v650_v54, %v654_v17  ;;  %v657_v26 = vld [vmem:[#allocation7 + $0xdd0] sm:$0xff] }
 0x334   : > { %7246 = vmatmul.mubr.bf16.vlgmr.msra.gmra.mrb[4].mxu0 %v10504_v59  ;;  %7574 = vmatmul.mubr.bf16.vlgmr.msra.gmra.mrb[4].mxu1 %v10504_v59  ;;  %v9074_v59 = vcombine.low %v618_v39, %v622_v40 }
 0x335   : > { %7255 = vmatpush1.bf16.msra.mxu0 %v9056_v60  ;;  %7583 = vmatpush1.bf16.msra.mxu1 %v9058_v34  ;;  %v662_v60 = vld [vmem:[#allocation7 + $0xdf8] sm:$0xff] }
 0x336   : > { %7256 = vmatprep.subr.bf16.mxu0 %v9065_v0  ;;  %7584 = vmatprep.subr.bf16.mxu1 %v9067_v49  ;;  %v7787_v49 = vld [vmem:[#allocation2] sm:$0xff]  ;;  %v9115_v47 = vcombine.high %v658_v33, %v662_v60  ;;  %v9114_v58 = vcombine.low %v658_v33, %v662_v60 }
 0x337   : > { %7286 = vmatprep.mubr.bf16.mxu0 %v10508_v6  ;;  %7614 = vmatprep.mubr.bf16.mxu1 %v10508_v6  ;;  %v9091_v6 = vcombine.high %v634_v61, %v638_v62  ;;  %v7789_v53 = vmul.f32 0.95, %v7787_v49  ;;  %v9121_v61 = vcombine.high %v665_v48, %v669_v51  ;;  %v697_v33 = vld [vmem:[#allocation7 + $0xf10] sm:$0xff] }
 0x338   : > { %v701_v60 = vld [vmem:[#allocation7 + $0xf30] sm:$0xff] }
 0x339   : > { %7257 = vmatpush1.bf16.msra.mxu0 %v9064_v42  ;;  %7585 = vmatpush1.bf16.msra.mxu1 %v9066_v43  ;;  %v9113_v43 = vcombine.high %v657_v26, %v661_v27  ;;  %v713_v51 = vld [vmem:[#allocation7 + $0xf90] sm:$0xff] }
 0x33a   : > { %7258 = vmatprep.subr.bf16.mxu0 %v9073_v44  ;;  %7586 = vmatprep.subr.bf16.mxu1 %v9075_v46 }
 0x33d   : > { %7259 = vmatpush1.bf16.msra.mxu0 %v9072_v55  ;;  %7587 = vmatpush1.bf16.msra.mxu1 %v9074_v59  ;;  %v666_v59 = vld [vmem:[#allocation7 + $0xe18] sm:$0xff] }
 0x33e   : > { %7260 = vmatprep.subr.bf16.mxu0 %v9081_v24  ;;  %7588 = vmatprep.subr.bf16.mxu1 %v9083_v56  ;;  %v670_v24 = vld [vmem:[#allocation7 + $0xe38] sm:$0xff]  ;;  %v9112_v56 = vcombine.low %v657_v26, %v661_v27 }
 0x33f   : > { %v9123_v62 = vcombine.high %v666_v59, %v670_v24  ;;  %v9122_v5 = vcombine.low %v666_v59, %v670_v24  ;;  %v718_v59 = vld [vmem:[#allocation7 + $0xfb8] sm:$0xff] }
 0x341   : > { %7261 = vmatpush1.bf16.msra.mxu0 %v9080_v63  ;;  %7589 = vmatpush1.bf16.msra.mxu1 %v9082_v9  ;;  %v673_v63 = vld [vmem:[#allocation7 + $0xe50] sm:$0xff] }
 0x342   : > { %7262 = vmatprep.subr.bf16.mxu0 %v9089_v3  ;;  %7590 = vmatprep.subr.bf16.mxu1 %v9091_v6  ;;  %v677_v9 = vld [vmem:[#allocation7 + $0xe70] sm:$0xff]  ;;  %v674_v6 = vld [vmem:[#allocation7 + $0xe58] sm:$0xff] }
 0x343   : > { %v9129_v32 = vcombine.high %v673_v63, %v677_v9  ;;  %v9128_v19 = vcombine.low %v673_v63, %v677_v9  ;;  %v9130_v54 = vcombine.low %v674_v6, %v678_v4  ;;  %v722_v63 = vld [vmem:[#allocation7 + $0xfd8] sm:$0xff] }
 0x344   : > { %v726_v9 = vld [vmem:[#allocation7 + $0xff8] sm:$0xff] }
 0x345   : > { %7263 = vmatpush1.bf16.msra.mxu0 %v9088_v12  ;;  %7591 = vmatpush1.bf16.msra.mxu1 %v9090_v13  ;;  %v9131_v12 = vcombine.high %v674_v6, %v678_v4  ;;  %v681_v13 = vld [vmem:[#allocation7 + $0xe90] sm:$0xff] }
 0x346   : > { %7264 = vmatprep.subr.bf16.mxu0 %v9097_v14  ;;  %7592 = vmatprep.subr.bf16.mxu1 %v9099_v16  ;;  %v685_v14 = vld [vmem:[#allocation7 + $0xeb0] sm:$0xff]  ;;  %v682_v16 = vld [vmem:[#allocation7 + $0xe98] sm:$0xff] }
 0x347   : > { %v6796_v25 = vpop.f32.mrb[0].mxu0  ;;  %v7124_v29 = vpop.f32.mrb[0].mxu1  ;;  %v9137_v17 = vcombine.high %v681_v13, %v685_v14  ;;  %v9136_v26 = vcombine.low %v681_v13, %v685_v14  ;;  %v9138_v27 = vcombine.low %v682_v16, %v686_v18  ;;  %v734_v13 = vld [vmem:[#allocation7 + $0x1038] sm:$0xff] }
 0x348   : > { %v6798_v31 = vpop.f32.mrb[1].mxu0  ;;  %v7126_v0 = vpop.f32.mrb[1].mxu1 }
 0x349   : > { %v7799_v34 = vcombine.low %v6796_v25, %v6798_v31  ;;  %v6800_v36 = vpop.f32.mrb[2].mxu0  ;;  %7265 = vmatpush1.bf16.msra.mxu0 %v9096_v2  ;;  %v7800_v39 = vcombine.low %v7124_v29, %v7126_v0  ;;  %v7128_v40 = vpop.f32.mrb[2].mxu1  ;;  %7593 = vmatpush1.bf16.msra.mxu1 %v9098_v22  ;;  %v9139_v2 = vcombine.high %v682_v16, %v686_v18  ;;  %v689_v22 = vld [vmem:[#allocation7 + $0xed0] sm:$0xff]  ;;  %v690_v25 = vld [vmem:[#allocation7 + $0xed8] sm:$0xff] }
 0x34a   : > { %v6801_v42 = vpop.f32.mrb[3].mxu0  ;;  %7266 = vmatprep.subr.bf16.mxu0 %v9105_v23  ;;  %v7129_v46 = vpop.f32.mrb[3].mxu1  ;;  %7594 = vmatprep.subr.bf16.mxu1 %v9107_v10  ;;  %v693_v23 = vld [vmem:[#allocation7 + $0xef0] sm:$0xff]  ;;  %v694_v10 = vld [vmem:[#allocation7 + $0xef8] sm:$0xff] }
 0x34b   : > { %v7807_v44 = vrot.slane %v7799_v34, %v10598_v41  ;;  %v7814_v55 = vrot.slane %v7800_v39, %v10598_v41  ;;  %v9145_v29 = vcombine.high %v689_v22, %v693_v23  ;;  %v9147_v31 = vcombine.high %v690_v25, %v694_v10  ;;  %v698_v34 = vld [vmem:[#allocation7 + $0xf18] sm:$0xff]  ;;  %v705_v40 = vld [vmem:[#allocation7 + $0xf50] sm:$0xff] }
 0x34c   : > { %v702_v0 = vld [vmem:[#allocation7 + $0xf38] sm:$0xff]  ;;  %v9144_v49 = vcombine.low %v689_v22, %v693_v23  ;;  %v9146_v36 = vcombine.low %v690_v25, %v694_v10  ;;  %v709_v42 = vld [vmem:[#allocation7 + $0xf70] sm:$0xff] }
 0x34d   : > { %7267 = vmatpush1.bf16.msra.mxu0 %v9104_v37  ;;  %v7815_v57 = vcombine.low %v7807_v44, %v7814_v55  ;;  %7595 = vmatpush1.bf16.msra.mxu1 %v9106_v45  ;;  %v9153_v37 = vcombine.high %v697_v33, %v701_v60  ;;  %v9155_v39 = vcombine.high %v698_v34, %v702_v0  ;;  %v706_v45 = vld [vmem:[#allocation7 + $0xf58] sm:$0xff] }
 0x34e   : > { %7268 = vmatprep.subr.bf16.mxu0 %v9113_v43  ;;  %7596 = vmatprep.subr.bf16.mxu1 %v9115_v47  ;;  %v710_v43 = vld [vmem:[#allocation7 + $0xf78] sm:$0xff]  ;;  %v9152_v44 = vcombine.low %v697_v33, %v701_v60  ;;  %v9154_v46 = vcombine.low %v698_v34, %v702_v0  ;;  %v9161_v47 = vcombine.high %v705_v40, %v709_v42 }
 0x34f   : > { %v7835_v3 = vadd.f32 %v7815_v57, %v7789_v53  ;;  %v9163_v48 = vcombine.high %v706_v45, %v710_v43  ;;  %v717_v53 = vld [vmem:[#allocation7 + $0xfb0] sm:$0xff]  ;;  %v714_v55 = vld [vmem:[#allocation7 + $0xf98] sm:$0xff]  ;;  %v9160_v24 = vcombine.low %v705_v40, %v709_v42 }
 0x350   : > { %v9169_v57 = vcombine.high %v713_v51, %v717_v53  ;;  %v9170_v6 = vcombine.low %v714_v55, %v718_v59 }
 0x351   : > { %7269 = vmatpush1.bf16.msra.mxu0 %v9112_v56  ;;  %vm7837_vm1 = vcmp.gt.f32.partialorder %v7835_v3, 1.0  ;;  %7597 = vmatpush1.bf16.msra.mxu1 %v9114_v58  ;;  %v9162_v56 = vcombine.low %v706_v45, %v710_v43  ;;  %v9171_v58 = vcombine.high %v714_v55, %v718_v59  ;;  %v761_v43 = vld [vmem:[#allocation7 + $0x1110] sm:$0xff] }
 0x352   : > { %7270 = vmatprep.subr.bf16.mxu0 %v9121_v61  ;;  %v10603_v11 = vsel %vm7837_vm1, 1.0, %v10270_v7  ;;  %7598 = vmatprep.subr.bf16.mxu1 %v9123_v62  ;;  %v721_v61 = vld [vmem:[#allocation7 + $0xfd0] sm:$0xff] }
 0x353   : > { %v7843_v15 = vsub.f32 %v7835_v3, %v10603_v11  ;;  %v725_v62 = vld [vmem:[#allocation7 + $0xff0] sm:$0xff]  ;;  %v9168_v3 = vcombine.low %v713_v51, %v717_v53 }
 0x354   : > { %v9177_v4 = vcombine.high %v721_v61, %v725_v62  ;;  %v9176_v14 = vcombine.low %v721_v61, %v725_v62  ;;  %v769_v55 = vld [vmem:[#allocation7 + $0x1150] sm:$0xff] }
 0x355   : > { %7271 = vmatpush1.bf16.msra.mxu0 %v9120_v35  ;;  %7845 = vst [vmem:[#allocation2] sm:$0xff] %v7843_v15  ;;  %7599 = vmatpush1.bf16.msra.mxu1 %v9122_v5  ;;  %v9179_v35 = vcombine.high %v722_v63, %v726_v9  ;;  %v729_v5 = vld [vmem:[#allocation7 + $0x1010] sm:$0xff]  ;;  %v9178_v15 = vcombine.low %v722_v63, %v726_v9 }
 0x356   : > { %7272 = vmatprep.subr.bf16.mxu0 %v9129_v32  ;;  %7600 = vmatprep.subr.bf16.mxu1 %v9131_v12  ;;  %v733_v32 = vld [vmem:[#allocation7 + $0x1030] sm:$0xff]  ;;  %v730_v12 = vld [vmem:[#allocation7 + $0x1018] sm:$0xff] }
 0x357   : > { %v9185_v16 = vcombine.high %v729_v5, %v733_v32  ;;  %v9187_v18 = vcombine.high %v730_v12, %v734_v13  ;;  %v9184_v22 = vcombine.low %v729_v5, %v733_v32  ;;  %v9186_v23 = vcombine.low %v730_v12, %v734_v13  ;;  %v773_v59 = vld [vmem:[#allocation7 + $0x1170] sm:$0xff] }
 0x358   : > { %v9225_v61 = vcombine.high %v769_v55, %v773_v59  ;;  %v777_v63 = vld [vmem:[#allocation7 + $0x1190] sm:$0xff] }
 0x359   : > { %7273 = vmatpush1.bf16.msra.mxu0 %v9128_v19  ;;  %7601 = vmatpush1.bf16.msra.mxu1 %v9130_v54  ;;  %v737_v19 = vld [vmem:[#allocation7 + $0x1050] sm:$0xff] }
 0x35a   : > { %7274 = vmatprep.subr.bf16.mxu0 %v9137_v17  ;;  %7602 = vmatprep.subr.bf16.mxu1 %v9139_v2  ;;  %v741_v54 = vld [vmem:[#allocation7 + $0x1070] sm:$0xff]  ;;  %v738_v17 = vld [vmem:[#allocation7 + $0x1058] sm:$0xff] }
 0x35b   : > { %v742_v2 = vld [vmem:[#allocation7 + $0x1078] sm:$0xff]  ;;  %v9193_v25 = vcombine.high %v737_v19, %v741_v54  ;;  %v9192_v33 = vcombine.low %v737_v19, %v741_v54  ;;  %v781_v9 = vld [vmem:[#allocation7 + $0x11b0] sm:$0xff] }
 0x35c   : > { %v9195_v10 = vcombine.high %v738_v17, %v742_v2  ;;  %v9194_v60 = vcombine.low %v738_v17, %v742_v2  ;;  %v9233_v5 = vcombine.high %v777_v63, %v781_v9  ;;  %v785_v12 = vld [vmem:[#allocation7 + $0x11d0] sm:$0xff] }
 0x35d   : > { %7275 = vmatpush1.bf16.msra.mxu0 %v9136_v26  ;;  %7603 = vmatpush1.bf16.msra.mxu1 %v9138_v27  ;;  %v745_v26 = vld [vmem:[#allocation7 + $0x1090] sm:$0xff] }
 0x35e   : > { %7276 = vmatprep.subr.bf16.mxu0 %v9145_v29  ;;  %7604 = vmatprep.subr.bf16.mxu1 %v9147_v31  ;;  %v749_v27 = vld [vmem:[#allocation7 + $0x10b0] sm:$0xff]  ;;  %v746_v29 = vld [vmem:[#allocation7 + $0x1098] sm:$0xff] }
 0x35f   : > { %v750_v31 = vld [vmem:[#allocation7 + $0x10b8] sm:$0xff]  ;;  %v9201_v34 = vcombine.high %v745_v26, %v749_v27  ;;  %v9200_v40 = vcombine.low %v745_v26, %v749_v27  ;;  %v789_v13 = vld [vmem:[#allocation7 + $0x11f0] sm:$0xff] }
 0x360   : > { %v9203_v0 = vcombine.high %v746_v29, %v750_v31  ;;  %v9241_v19 = vcombine.high %v785_v12, %v789_v13  ;;  %v793_v17 = vld [vmem:[#allocation7 + $0x1210] sm:$0xff] }
 0x361   : > { %7277 = vmatpush1.bf16.msra.mxu0 %v9144_v49  ;;  %7605 = vmatpush1.bf16.msra.mxu1 %v9146_v36  ;;  %v753_v49 = vld [vmem:[#allocation7 + $0x10d0] sm:$0xff] }
 0x362   : > { %7278 = vmatprep.subr.bf16.mxu0 %v9153_v37  ;;  %7606 = vmatprep.subr.bf16.mxu1 %v9155_v39  ;;  %v757_v36 = vld [vmem:[#allocation7 + $0x10f0] sm:$0xff]  ;;  %v754_v37 = vld [vmem:[#allocation7 + $0x10d8] sm:$0xff] }
 0x363   : > { %v758_v39 = vld [vmem:[#allocation7 + $0x10f8] sm:$0xff]  ;;  %v9209_v42 = vcombine.high %v753_v49, %v757_v36  ;;  %v797_v2 = vld [vmem:[#allocation7 + $0x1230] sm:$0xff] }
 0x364   : > { %v9211_v45 = vcombine.high %v754_v37, %v758_v39  ;;  %v9210_v51 = vcombine.low %v754_v37, %v758_v39  ;;  %v9249_v26 = vcombine.high %v793_v17, %v797_v2  ;;  %v809_v37 = vld [vmem:[#allocation7 + $0x1290] sm:$0xff] }
 0x365   : > { %7279 = vmatpush1.bf16.msra.mxu0 %v9152_v44  ;;  %7607 = vmatpush1.bf16.msra.mxu1 %v9154_v46  ;;  %v765_v44 = vld [vmem:[#allocation7 + $0x1130] sm:$0xff]  ;;  %v762_v46 = vld [vmem:[#allocation7 + $0x1118] sm:$0xff] }
 0x366   : > { %7280 = vmatprep.subr.bf16.mxu0 %v9161_v47  ;;  %7608 = vmatprep.subr.bf16.mxu1 %v9163_v48  ;;  %v766_v47 = vld [vmem:[#allocation7 + $0x1138] sm:$0xff]  ;;  %v9208_v48 = vcombine.low %v753_v49, %v757_v36  ;;  %v9217_v53 = vcombine.high %v761_v43, %v765_v44  ;;  %v813_v39 = vld [vmem:[#allocation7 + $0x12b0] sm:$0xff] }
 0x369   : > { %7281 = vmatpush1.bf16.msra.mxu0 %v9160_v24  ;;  %7609 = vmatpush1.bf16.msra.mxu1 %v9162_v56  ;;  %v770_v24 = vld [vmem:[#allocation7 + $0x1158] sm:$0xff] }
 0x36a   : > { %7282 = vmatprep.subr.bf16.mxu0 %v9169_v57  ;;  %7610 = vmatprep.subr.bf16.mxu1 %v9171_v58  ;;  %v774_v56 = vld [vmem:[#allocation7 + $0x1178] sm:$0xff]  ;;  %v9216_v57 = vcombine.low %v761_v43, %v765_v44  ;;  %v9218_v58 = vcombine.low %v762_v46, %v766_v47  ;;  %v9265_v43 = vcombine.high %v809_v37, %v813_v39 }
 0x36b   : > { %v9227_v62 = vcombine.high %v770_v24, %v774_v56 }
 0x36d   : > { %7283 = vmatpush1.bf16.msra.mxu0 %v9168_v3  ;;  %7611 = vmatpush1.bf16.msra.mxu1 %v9170_v6  ;;  %v778_v3 = vld [vmem:[#allocation7 + $0x1198] sm:$0xff] }
 0x36e   : > { %7284 = vmatprep.subr.bf16.mxu0 %v9177_v4  ;;  %7612 = vmatprep.subr.bf16.mxu1 %v9179_v35  ;;  %v782_v6 = vld [vmem:[#allocation7 + $0x11b8] sm:$0xff]  ;;  %v9224_v4 = vcombine.low %v769_v55, %v773_v59  ;;  %v9226_v35 = vcombine.low %v770_v24, %v774_v56  ;;  %v825_v24 = vld [vmem:[#allocation7 + $0x1310] sm:$0xff] }
 0x36f   : > { %v9235_v32 = vcombine.high %v778_v3, %v782_v6  ;;  %v829_v56 = vld [vmem:[#allocation7 + $0x1330] sm:$0xff] }
 0x371   : > { %7285 = vmatpush1.bf16.msra.mxu0 %v9176_v14  ;;  %7613 = vmatpush1.bf16.msra.mxu1 %v9178_v15  ;;  %v786_v14 = vld [vmem:[#allocation7 + $0x11d8] sm:$0xff] }
 0x372   : > { %7295 = vmatprep.subr.bf16.mxu0 %v9185_v16  ;;  %7623 = vmatprep.subr.bf16.mxu1 %v9187_v18  ;;  %v790_v15 = vld [vmem:[#allocation7 + $0x11f8] sm:$0xff]  ;;  %v9232_v16 = vcombine.low %v777_v63, %v781_v9  ;;  %v9234_v18 = vcombine.low %v778_v3, %v782_v6  ;;  %v9281_v63 = vcombine.high %v825_v24, %v829_v56  ;;  %v833_v3 = vld [vmem:[#allocation7 + $0x1350] sm:$0xff] }
 0x373   : > { %v9243_v54 = vcombine.high %v786_v14, %v790_v15  ;;  %v837_v6 = vld [vmem:[#allocation7 + $0x1370] sm:$0xff] }
 0x374   : > { %7287 = vmatmul.mubr.bf16.vlgmr.msra.gmra.mrb[4].mxu0 %v10526_v20  ;;  %7615 = vmatmul.mubr.bf16.vlgmr.msra.gmra.mrb[4].mxu1 %v10526_v20  ;;  %v9202_v20 = vcombine.low %v746_v29, %v750_v31  ;;  %v801_v29 = vld [vmem:[#allocation7 + $0x1250] sm:$0xff] }
 0x375   : > { %7296 = vmatpush1.bf16.msra.mxu0 %v9184_v22  ;;  %7624 = vmatpush1.bf16.msra.mxu1 %v9186_v23  ;;  %v794_v22 = vld [vmem:[#allocation7 + $0x1218] sm:$0xff]  ;;  %v805_v31 = vld [vmem:[#allocation7 + $0x1270] sm:$0xff] }
 0x376   : > { %7297 = vmatprep.subr.bf16.mxu0 %v9193_v25  ;;  %7625 = vmatprep.subr.bf16.mxu1 %v9195_v10  ;;  %v798_v23 = vld [vmem:[#allocation7 + $0x1238] sm:$0xff]  ;;  %v9240_v25 = vcombine.low %v785_v12, %v789_v13  ;;  %v9242_v10 = vcombine.low %v786_v14, %v790_v15  ;;  %v9257_v49 = vcombine.high %v801_v29, %v805_v31  ;;  %v841_v14 = vld [vmem:[#allocation7 + $0x1390] sm:$0xff] }
 0x377   : > { %7327 = vmatprep.mubr.bf16.mxu0 %v10529_v30  ;;  %7655 = vmatprep.mubr.bf16.mxu1 %v10529_v30  ;;  %v9219_v30 = vcombine.high %v762_v46, %v766_v47  ;;  %v9251_v27 = vcombine.high %v794_v22, %v798_v23  ;;  %v817_v46 = vld [vmem:[#allocation7 + $0x12d0] sm:$0xff]  ;;  %v9289_v12 = vcombine.high %v833_v3, %v837_v6 }
 0x378   : > { %v821_v47 = vld [vmem:[#allocation7 + $0x12f0] sm:$0xff] }
 0x379   : > { %7298 = vmatpush1.bf16.msra.mxu0 %v9192_v33  ;;  %7626 = vmatpush1.bf16.msra.mxu1 %v9194_v60  ;;  %v802_v33 = vld [vmem:[#allocation7 + $0x1258] sm:$0xff]  ;;  %v9273_v55 = vcombine.high %v817_v46, %v821_v47  ;;  %v845_v15 = vld [vmem:[#allocation7 + $0x13b0] sm:$0xff] }
 0x37a   : > { %7299 = vmatprep.subr.bf16.mxu0 %v9201_v34  ;;  %7627 = vmatprep.subr.bf16.mxu1 %v9203_v0  ;;  %v806_v60 = vld [vmem:[#allocation7 + $0x1278] sm:$0xff]  ;;  %v9248_v34 = vcombine.low %v793_v17, %v797_v2  ;;  %v9250_v0 = vcombine.low %v794_v22, %v798_v23  ;;  %v9297_v17 = vcombine.high %v841_v14, %v845_v15  ;;  %v849_v22 = vld [vmem:[#allocation7 + $0x13d0] sm:$0xff] }
 0x37b   : > { %v9259_v36 = vcombine.high %v802_v33, %v806_v60  ;;  %v853_v23 = vld [vmem:[#allocation7 + $0x13f0] sm:$0xff] }
 0x37d   : > { %7300 = vmatpush1.bf16.msra.mxu0 %v9200_v40  ;;  %7628 = vmatpush1.bf16.msra.mxu1 %v9202_v20  ;;  %v810_v40 = vld [vmem:[#allocation7 + $0x1298] sm:$0xff] }
 0x37e   : > { %7301 = vmatprep.subr.bf16.mxu0 %v9209_v42  ;;  %7629 = vmatprep.subr.bf16.mxu1 %v9211_v45  ;;  %v814_v20 = vld [vmem:[#allocation7 + $0x12b8] sm:$0xff]  ;;  %v9256_v42 = vcombine.low %v801_v29, %v805_v31  ;;  %v9258_v45 = vcombine.low %v802_v33, %v806_v60  ;;  %v9305_v29 = vcombine.high %v849_v22, %v853_v23  ;;  %v857_v33 = vld [vmem:[#allocation7 + $0x1410] sm:$0xff] }
 0x37f   : > { %v9267_v44 = vcombine.high %v810_v40, %v814_v20  ;;  %v861_v60 = vld [vmem:[#allocation7 + $0x1430] sm:$0xff] }
 0x381   : > { %7302 = vmatpush1.bf16.msra.mxu0 %v9208_v48  ;;  %7630 = vmatpush1.bf16.msra.mxu1 %v9210_v51  ;;  %v818_v48 = vld [vmem:[#allocation7 + $0x12d8] sm:$0xff] }
 0x382   : > { %7303 = vmatprep.subr.bf16.mxu0 %v9217_v53  ;;  %7631 = vmatprep.subr.bf16.mxu1 %v9219_v30  ;;  %v822_v51 = vld [vmem:[#allocation7 + $0x12f8] sm:$0xff]  ;;  %v9264_v53 = vcombine.low %v809_v37, %v813_v39  ;;  %v9266_v30 = vcombine.low %v810_v40, %v814_v20  ;;  %v9313_v37 = vcombine.high %v857_v33, %v861_v60  ;;  %v865_v40 = vld [vmem:[#allocation7 + $0x1450] sm:$0xff] }
 0x383   : > { %v9275_v59 = vcombine.high %v818_v48, %v822_v51  ;;  %v869_v20 = vld [vmem:[#allocation7 + $0x1470] sm:$0xff] }
 0x385   : > { %7304 = vmatpush1.bf16.msra.mxu0 %v9216_v57  ;;  %7632 = vmatpush1.bf16.msra.mxu1 %v9218_v58  ;;  %v826_v57 = vld [vmem:[#allocation7 + $0x1318] sm:$0xff] }
 0x386   : > { %7305 = vmatprep.subr.bf16.mxu0 %v9225_v61  ;;  %7633 = vmatprep.subr.bf16.mxu1 %v9227_v62  ;;  %v830_v58 = vld [vmem:[#allocation7 + $0x1338] sm:$0xff]  ;;  %v9272_v61 = vcombine.low %v817_v46, %v821_v47  ;;  %v9274_v62 = vcombine.low %v818_v48, %v822_v51  ;;  %v9321_v46 = vcombine.high %v865_v40, %v869_v20  ;;  %v873_v48 = vld [vmem:[#allocation7 + $0x1490] sm:$0xff] }
 0x387   : > { %v9283_v9 = vcombine.high %v826_v57, %v830_v58  ;;  %v877_v51 = vld [vmem:[#allocation7 + $0x14b0] sm:$0xff] }
 0x389   : > { %7306 = vmatpush1.bf16.msra.mxu0 %v9224_v4  ;;  %7634 = vmatpush1.bf16.msra.mxu1 %v9226_v35  ;;  %v834_v4 = vld [vmem:[#allocation7 + $0x1358] sm:$0xff] }
 0x38a   : > { %7307 = vmatprep.subr.bf16.mxu0 %v9233_v5  ;;  %7635 = vmatprep.subr.bf16.mxu1 %v9235_v32  ;;  %v838_v35 = vld [vmem:[#allocation7 + $0x1378] sm:$0xff]  ;;  %v9280_v5 = vcombine.low %v825_v24, %v829_v56  ;;  %v9282_v32 = vcombine.low %v826_v57, %v830_v58  ;;  %v9329_v24 = vcombine.high %v873_v48, %v877_v51  ;;  %v881_v57 = vld [vmem:[#allocation7 + $0x14d0] sm:$0xff] }
 0x38b   : > { %v9291_v13 = vcombine.high %v834_v4, %v838_v35  ;;  %v885_v58 = vld [vmem:[#allocation7 + $0x14f0] sm:$0xff] }
 0x38d   : > { %7308 = vmatpush1.bf16.msra.mxu0 %v9232_v16  ;;  %7636 = vmatpush1.bf16.msra.mxu1 %v9234_v18  ;;  %v842_v16 = vld [vmem:[#allocation7 + $0x1398] sm:$0xff] }
 0x38e   : > { %7309 = vmatprep.subr.bf16.mxu0 %v9241_v19  ;;  %7637 = vmatprep.subr.bf16.mxu1 %v9243_v54  ;;  %v846_v18 = vld [vmem:[#allocation7 + $0x13b8] sm:$0xff]  ;;  %v9288_v19 = vcombine.low %v833_v3, %v837_v6  ;;  %v9290_v54 = vcombine.low %v834_v4, %v838_v35  ;;  %v889_v6 = vld [vmem:[#allocation7 + $0x1510] sm:$0xff] }
 0x38f   : > { %v9299_v2 = vcombine.high %v842_v16, %v846_v18  ;;  %v893_v4 = vld [vmem:[#allocation7 + $0x1530] sm:$0xff]  ;;  %v890_v35 = vld [vmem:[#allocation7 + $0x1518] sm:$0xff] }
 0x391   : > { %7310 = vmatpush1.bf16.msra.mxu0 %v9240_v25  ;;  %7638 = vmatpush1.bf16.msra.mxu1 %v9242_v10  ;;  %v850_v25 = vld [vmem:[#allocation7 + $0x13d8] sm:$0xff] }
 0x392   : > { %7311 = vmatprep.subr.bf16.mxu0 %v9249_v26  ;;  %7639 = vmatprep.subr.bf16.mxu1 %v9251_v27  ;;  %v854_v10 = vld [vmem:[#allocation7 + $0x13f8] sm:$0xff]  ;;  %v9296_v26 = vcombine.low %v841_v14, %v845_v15  ;;  %v9298_v27 = vcombine.low %v842_v16, %v846_v18  ;;  %v897_v14 = vld [vmem:[#allocation7 + $0x1550] sm:$0xff] }
 0x393   : > { %v9307_v31 = vcombine.high %v850_v25, %v854_v10  ;;  %v901_v15 = vld [vmem:[#allocation7 + $0x1570] sm:$0xff]  ;;  %v898_v16 = vld [vmem:[#allocation7 + $0x1558] sm:$0xff] }
 0x394   : > { %v902_v18 = vld [vmem:[#allocation7 + $0x1578] sm:$0xff] }
 0x395   : > { %7312 = vmatpush1.bf16.msra.mxu0 %v9248_v34  ;;  %7640 = vmatpush1.bf16.msra.mxu1 %v9250_v0  ;;  %v858_v34 = vld [vmem:[#allocation7 + $0x1418] sm:$0xff] }
 0x396   : > { %7313 = vmatprep.subr.bf16.mxu0 %v9257_v49  ;;  %7641 = vmatprep.subr.bf16.mxu1 %v9259_v36  ;;  %v862_v0 = vld [vmem:[#allocation7 + $0x1438] sm:$0xff]  ;;  %v9304_v49 = vcombine.low %v849_v22, %v853_v23  ;;  %v9306_v36 = vcombine.low %v850_v25, %v854_v10  ;;  %v905_v22 = vld [vmem:[#allocation7 + $0x1590] sm:$0xff] }
 0x397   : > { %v9315_v39 = vcombine.high %v858_v34, %v862_v0  ;;  %v909_v23 = vld [vmem:[#allocation7 + $0x15b0] sm:$0xff]  ;;  %v906_v25 = vld [vmem:[#allocation7 + $0x1598] sm:$0xff] }
 0x398   : > { %v910_v10 = vld [vmem:[#allocation7 + $0x15b8] sm:$0xff] }
 0x399   : > { %7314 = vmatpush1.bf16.msra.mxu0 %v9256_v42  ;;  %7642 = vmatpush1.bf16.msra.mxu1 %v9258_v45  ;;  %v866_v42 = vld [vmem:[#allocation7 + $0x1458] sm:$0xff] }
 0x39a   : > { %7315 = vmatprep.subr.bf16.mxu0 %v9265_v43  ;;  %7643 = vmatprep.subr.bf16.mxu1 %v9267_v44  ;;  %v870_v45 = vld [vmem:[#allocation7 + $0x1478] sm:$0xff]  ;;  %v9312_v43 = vcombine.low %v857_v33, %v861_v60  ;;  %v9314_v44 = vcombine.low %v858_v34, %v862_v0  ;;  %v913_v33 = vld [vmem:[#allocation7 + $0x15d0] sm:$0xff] }
 0x39b   : > { %v9323_v47 = vcombine.high %v866_v42, %v870_v45  ;;  %v917_v60 = vld [vmem:[#allocation7 + $0x15f0] sm:$0xff]  ;;  %v914_v34 = vld [vmem:[#allocation7 + $0x15d8] sm:$0xff] }
 0x39c   : > { %v918_v0 = vld [vmem:[#allocation7 + $0x15f8] sm:$0xff] }
 0x39d   : > { %7316 = vmatpush1.bf16.msra.mxu0 %v9264_v53  ;;  %7644 = vmatpush1.bf16.msra.mxu1 %v9266_v30  ;;  %v874_v53 = vld [vmem:[#allocation7 + $0x1498] sm:$0xff] }
 0x39e   : > { %7317 = vmatprep.subr.bf16.mxu0 %v9273_v55  ;;  %7645 = vmatprep.subr.bf16.mxu1 %v9275_v59  ;;  %v878_v30 = vld [vmem:[#allocation7 + $0x14b8] sm:$0xff]  ;;  %v9320_v55 = vcombine.low %v865_v40, %v869_v20  ;;  %v9322_v59 = vcombine.low %v866_v42, %v870_v45  ;;  %v921_v40 = vld [vmem:[#allocation7 + $0x1610] sm:$0xff] }
 0x39f   : > { %v9331_v56 = vcombine.high %v874_v53, %v878_v30  ;;  %v925_v20 = vld [vmem:[#allocation7 + $0x1630] sm:$0xff]  ;;  %v922_v42 = vld [vmem:[#allocation7 + $0x1618] sm:$0xff] }
 0x3a0   : > { %v926_v45 = vld [vmem:[#allocation7 + $0x1638] sm:$0xff] }
 0x3a1   : > { %7318 = vmatpush1.bf16.msra.mxu0 %v9272_v61  ;;  %7646 = vmatpush1.bf16.msra.mxu1 %v9274_v62  ;;  %v882_v61 = vld [vmem:[#allocation7 + $0x14d8] sm:$0xff] }
 0x3a2   : > { %7319 = vmatprep.subr.bf16.mxu0 %v9281_v63  ;;  %7647 = vmatprep.subr.bf16.mxu1 %v9283_v9  ;;  %v886_v62 = vld [vmem:[#allocation7 + $0x14f8] sm:$0xff]  ;;  %v9328_v63 = vcombine.low %v873_v48, %v877_v51  ;;  %v9337_v9 = vcombine.high %v881_v57, %v885_v58  ;;  %v929_v48 = vld [vmem:[#allocation7 + $0x1650] sm:$0xff] }
 0x3a3   : > { %v9339_v3 = vcombine.high %v882_v61, %v886_v62  ;;  %v933_v51 = vld [vmem:[#allocation7 + $0x1670] sm:$0xff] }
 0x3a5   : > { %7320 = vmatpush1.bf16.msra.mxu0 %v9280_v5  ;;  %7648 = vmatpush1.bf16.msra.mxu1 %v9282_v32  ;;  %v894_v5 = vld [vmem:[#allocation7 + $0x1538] sm:$0xff]  ;;  %v9336_v32 = vcombine.low %v881_v57, %v885_v58  ;;  %v937_v57 = vld [vmem:[#allocation7 + $0x1690] sm:$0xff] }
 0x3a6   : > { %7321 = vmatprep.subr.bf16.mxu0 %v9289_v12  ;;  %7649 = vmatprep.subr.bf16.mxu1 %v9291_v13  ;;  %v9338_v12 = vcombine.low %v882_v61, %v886_v62  ;;  %v9345_v13 = vcombine.high %v889_v6, %v893_v4  ;;  %v941_v58 = vld [vmem:[#allocation7 + $0x16b0] sm:$0xff]  ;;  %v938_v61 = vld [vmem:[#allocation7 + $0x1698] sm:$0xff] }
 0x3a7   : > { %v942_v62 = vld [vmem:[#allocation7 + $0x16b8] sm:$0xff] }
 0x3a9   : > { %7322 = vmatpush1.bf16.msra.mxu0 %v9288_v19  ;;  %7650 = vmatpush1.bf16.msra.mxu1 %v9290_v54  ;;  %v9344_v19 = vcombine.low %v889_v6, %v893_v4  ;;  %v9346_v54 = vcombine.low %v890_v35, %v894_v5  ;;  %v945_v6 = vld [vmem:[#allocation7 + $0x16d0] sm:$0xff] }
 0x3aa   : > { %7323 = vmatprep.subr.bf16.mxu0 %v9297_v17  ;;  %7651 = vmatprep.subr.bf16.mxu1 %v9299_v2  ;;  %v9353_v17 = vcombine.high %v897_v14, %v901_v15  ;;  %v9355_v2 = vcombine.high %v898_v16, %v902_v18  ;;  %v949_v4 = vld [vmem:[#allocation7 + $0x16f0] sm:$0xff] }
 0x3ad   : > { %7324 = vmatpush1.bf16.msra.mxu0 %v9296_v26  ;;  %7652 = vmatpush1.bf16.msra.mxu1 %v9298_v27  ;;  %v9352_v26 = vcombine.low %v897_v14, %v901_v15  ;;  %v9354_v27 = vcombine.low %v898_v16, %v902_v18  ;;  %v953_v14 = vld [vmem:[#allocation7 + $0x1710] sm:$0xff]  ;;  %v954_v16 = vld [vmem:[#allocation7 + $0x1718] sm:$0xff] }
 0x3ae   : > { %7325 = vmatprep.subr.bf16.mxu0 %v9305_v29  ;;  %7653 = vmatprep.subr.bf16.mxu1 %v9307_v31  ;;  %v9361_v29 = vcombine.high %v905_v22, %v909_v23  ;;  %v9363_v31 = vcombine.high %v906_v25, %v910_v10  ;;  %v957_v15 = vld [vmem:[#allocation7 + $0x1730] sm:$0xff]  ;;  %v958_v18 = vld [vmem:[#allocation7 + $0x1738] sm:$0xff] }
 0x3b1   : > { %7326 = vmatpush1.bf16.msra.mxu0 %v9304_v49  ;;  %7654 = vmatpush1.bf16.msra.mxu1 %v9306_v36  ;;  %v9360_v49 = vcombine.low %v905_v22, %v909_v23  ;;  %v9362_v36 = vcombine.low %v906_v25, %v910_v10  ;;  %v961_v22 = vld [vmem:[#allocation7 + $0x1750] sm:$0xff]  ;;  %v962_v25 = vld [vmem:[#allocation7 + $0x1758] sm:$0xff] }
 0x3b2   : > { %7336 = vmatprep.subr.bf16.mxu0 %v9313_v37  ;;  %7664 = vmatprep.subr.bf16.mxu1 %v9315_v39  ;;  %v9369_v37 = vcombine.high %v913_v33, %v917_v60  ;;  %v9371_v39 = vcombine.high %v914_v34, %v918_v0  ;;  %v965_v23 = vld [vmem:[#allocation7 + $0x1770] sm:$0xff]  ;;  %v966_v10 = vld [vmem:[#allocation7 + $0x1778] sm:$0xff] }
 0x3b4   : > { %7328 = vmatmul.mubr.bf16.vlgmr.msra.gmra.mrb[4].mxu0 %v10537_v52  ;;  %7656 = vmatmul.mubr.bf16.vlgmr.msra.gmra.mrb[4].mxu1 %v10537_v52  ;;  %v9330_v52 = vcombine.low %v874_v53, %v878_v30  ;;  %v930_v53 = vld [vmem:[#allocation7 + $0x1658] sm:$0xff] }
 0x3b5   : > { %7337 = vmatpush1.bf16.msra.mxu0 %v9312_v43  ;;  %7665 = vmatpush1.bf16.msra.mxu1 %v9314_v44  ;;  %v9368_v43 = vcombine.low %v913_v33, %v917_v60  ;;  %v9370_v44 = vcombine.low %v914_v34, %v918_v0  ;;  %v934_v30 = vld [vmem:[#allocation7 + $0x1678] sm:$0xff]  ;;  %v969_v33 = vld [vmem:[#allocation7 + $0x1790] sm:$0xff] }
 0x3b6   : > { %7338 = vmatprep.subr.bf16.mxu0 %v9321_v46  ;;  %7666 = vmatprep.subr.bf16.mxu1 %v9323_v47  ;;  %v9377_v46 = vcombine.high %v921_v40, %v925_v20  ;;  %v9379_v47 = vcombine.high %v922_v42, %v926_v45  ;;  %v973_v60 = vld [vmem:[#allocation7 + $0x17b0] sm:$0xff]  ;;  %v970_v34 = vld [vmem:[#allocation7 + $0x1798] sm:$0xff] }
 0x3b7   : > { %7368 = vmatprep.mubr.bf16.mxu0 %v10541_v1  ;;  %7696 = vmatprep.mubr.bf16.mxu1 %v10541_v1  ;;  %v9347_v1 = vcombine.high %v890_v35, %v894_v5  ;;  %v946_v35 = vld [vmem:[#allocation7 + $0x16d8] sm:$0xff] }
 0x3b8   : > { %v950_v5 = vld [vmem:[#allocation7 + $0x16f8] sm:$0xff] }
 0x3b9   : > { %7339 = vmatpush1.bf16.msra.mxu0 %v9320_v55  ;;  %7667 = vmatpush1.bf16.msra.mxu1 %v9322_v59  ;;  %v9376_v55 = vcombine.low %v921_v40, %v925_v20  ;;  %v9378_v59 = vcombine.low %v922_v42, %v926_v45  ;;  %v974_v0 = vld [vmem:[#allocation7 + $0x17b8] sm:$0xff]  ;;  %v977_v40 = vld [vmem:[#allocation7 + $0x17d0] sm:$0xff] }
 0x3ba   : > { %7340 = vmatprep.subr.bf16.mxu0 %v9329_v24  ;;  %7668 = vmatprep.subr.bf16.mxu1 %v9331_v56  ;;  %v9385_v24 = vcombine.high %v929_v48, %v933_v51  ;;  %v9387_v56 = vcombine.high %v930_v53, %v934_v30  ;;  %v981_v20 = vld [vmem:[#allocation7 + $0x17f0] sm:$0xff]  ;;  %v978_v42 = vld [vmem:[#allocation7 + $0x17d8] sm:$0xff] }
 0x3bb   : > { %v982_v45 = vld [vmem:[#allocation7 + $0x17f8] sm:$0xff] }
 0x3bd   : > { %7341 = vmatpush1.bf16.msra.mxu0 %v9328_v63  ;;  %7669 = vmatpush1.bf16.msra.mxu1 %v9330_v52  ;;  %v9384_v63 = vcombine.low %v929_v48, %v933_v51  ;;  %v9386_v52 = vcombine.low %v930_v53, %v934_v30  ;;  %v985_v48 = vld [vmem:[#allocation7 + $0x1810] sm:$0xff]  ;;  %v986_v53 = vld [vmem:[#allocation7 + $0x1818] sm:$0xff] }
 0x3be   : > { %7342 = vmatprep.subr.bf16.mxu0 %v9337_v9  ;;  %7670 = vmatprep.subr.bf16.mxu1 %v9339_v3  ;;  %v9393_v9 = vcombine.high %v937_v57, %v941_v58  ;;  %v9395_v3 = vcombine.high %v938_v61, %v942_v62  ;;  %v989_v51 = vld [vmem:[#allocation7 + $0x1830] sm:$0xff]  ;;  %v990_v30 = vld [vmem:[#allocation7 + $0x1838] sm:$0xff] }
 0x3c1   : > { %7343 = vmatpush1.bf16.msra.mxu0 %v9336_v32  ;;  %7671 = vmatpush1.bf16.msra.mxu1 %v9338_v12  ;;  %v9392_v32 = vcombine.low %v937_v57, %v941_v58  ;;  %v9394_v12 = vcombine.low %v938_v61, %v942_v62  ;;  %v993_v57 = vld [vmem:[#allocation7 + $0x1850] sm:$0xff]  ;;  %v994_v61 = vld [vmem:[#allocation7 + $0x1858] sm:$0xff] }
 0x3c2   : > { %7344 = vmatprep.subr.bf16.mxu0 %v9345_v13  ;;  %7672 = vmatprep.subr.bf16.mxu1 %v9347_v1  ;;  %v9401_v13 = vcombine.high %v945_v6, %v949_v4  ;;  %v9403_v1 = vcombine.high %v946_v35, %v950_v5  ;;  %v997_v58 = vld [vmem:[#allocation7 + $0x1870] sm:$0xff]  ;;  %v998_v62 = vld [vmem:[#allocation7 + $0x1878] sm:$0xff] }
 0x3c5   : > { %7345 = vmatpush1.bf16.msra.mxu0 %v9344_v19  ;;  %7673 = vmatpush1.bf16.msra.mxu1 %v9346_v54  ;;  %v9400_v19 = vcombine.low %v945_v6, %v949_v4  ;;  %v9402_v54 = vcombine.low %v946_v35, %v950_v5  ;;  %v1001_v6 = vld [vmem:[#allocation7 + $0x1890] sm:$0xff]  ;;  %v1002_v35 = vld [vmem:[#allocation7 + $0x1898] sm:$0xff] }
 0x3c6   : > { %7346 = vmatprep.subr.bf16.mxu0 %v9353_v17  ;;  %7674 = vmatprep.subr.bf16.mxu1 %v9355_v2  ;;  %v9409_v17 = vcombine.high %v953_v14, %v957_v15  ;;  %v9411_v2 = vcombine.high %v954_v16, %v958_v18  ;;  %v1005_v4 = vld [vmem:[#allocation7 + $0x18b0] sm:$0xff]  ;;  %v1006_v5 = vld [vmem:[#allocation7 + $0x18b8] sm:$0xff] }
 0x3c9   : > { %7347 = vmatpush1.bf16.msra.mxu0 %v9352_v26  ;;  %7675 = vmatpush1.bf16.msra.mxu1 %v9354_v27  ;;  %v9408_v26 = vcombine.low %v953_v14, %v957_v15  ;;  %v9410_v27 = vcombine.low %v954_v16, %v958_v18  ;;  %v1009_v14 = vld [vmem:[#allocation7 + $0x18d0] sm:$0xff]  ;;  %v1010_v16 = vld [vmem:[#allocation7 + $0x18d8] sm:$0xff] }
 0x3ca   : > { %7348 = vmatprep.subr.bf16.mxu0 %v9361_v29  ;;  %7676 = vmatprep.subr.bf16.mxu1 %v9363_v31  ;;  %v9417_v29 = vcombine.high %v961_v22, %v965_v23  ;;  %v9419_v31 = vcombine.high %v962_v25, %v966_v10  ;;  %v1013_v15 = vld [vmem:[#allocation7 + $0x18f0] sm:$0xff]  ;;  %v1014_v18 = vld [vmem:[#allocation7 + $0x18f8] sm:$0xff] }
 0x3cd   : > { %7349 = vmatpush1.bf16.msra.mxu0 %v9360_v49  ;;  %7677 = vmatpush1.bf16.msra.mxu1 %v9362_v36  ;;  %v9416_v49 = vcombine.low %v961_v22, %v965_v23  ;;  %v9418_v36 = vcombine.low %v962_v25, %v966_v10  ;;  %v1021_v22 = vld [vmem:[#allocation7 + $0x1930] sm:$0xff]  ;;  %v1018_v23 = vld [vmem:[#allocation7 + $0x1918] sm:$0xff]  ;;  %v9464_v10 = vcombine.low %v1009_v14, %v1013_v15 }
 0x3ce   : > { %7350 = vmatprep.subr.bf16.mxu0 %v9369_v37  ;;  %7678 = vmatprep.subr.bf16.mxu1 %v9371_v39  ;;  %v9425_v37 = vcombine.high %v969_v33, %v973_v60  ;;  %v9427_v39 = vcombine.high %v970_v34, %v974_v0  ;;  %v1022_v25 = vld [vmem:[#allocation7 + $0x1938] sm:$0xff] }
 0x3d1   : > { %7351 = vmatpush1.bf16.msra.mxu0 %v9368_v43  ;;  %7679 = vmatpush1.bf16.msra.mxu1 %v9370_v44  ;;  %v9424_v43 = vcombine.low %v969_v33, %v973_v60  ;;  %v9426_v44 = vcombine.low %v970_v34, %v974_v0  ;;  %v1026_v33 = vld [vmem:[#allocation7 + $0x1958] sm:$0xff]  ;;  %v9474_v0 = vcombine.low %v1018_v23, %v1022_v25 }
 0x3d2   : > { %7352 = vmatprep.subr.bf16.mxu0 %v9377_v46  ;;  %7680 = vmatprep.subr.bf16.mxu1 %v9379_v47  ;;  %v9433_v46 = vcombine.high %v977_v40, %v981_v20  ;;  %v9435_v47 = vcombine.high %v978_v42, %v982_v45  ;;  %v1030_v60 = vld [vmem:[#allocation7 + $0x1978] sm:$0xff] }
 0x3d5   : > { %7353 = vmatpush1.bf16.msra.mxu0 %v9376_v55  ;;  %7681 = vmatpush1.bf16.msra.mxu1 %v9378_v59  ;;  %v9432_v55 = vcombine.low %v977_v40, %v981_v20  ;;  %v9434_v59 = vcombine.low %v978_v42, %v982_v45  ;;  %v1034_v40 = vld [vmem:[#allocation7 + $0x1998] sm:$0xff]  ;;  %v9482_v45 = vcombine.low %v1026_v33, %v1030_v60 }
 0x3d6   : > { %7354 = vmatprep.subr.bf16.mxu0 %v9385_v24  ;;  %7682 = vmatprep.subr.bf16.mxu1 %v9387_v56  ;;  %v9441_v24 = vcombine.high %v985_v48, %v989_v51  ;;  %v9443_v56 = vcombine.high %v986_v53, %v990_v30  ;;  %v1038_v20 = vld [vmem:[#allocation7 + $0x19b8] sm:$0xff] }
 0x3d9   : > { %7355 = vmatpush1.bf16.msra.mxu0 %v9384_v63  ;;  %7683 = vmatpush1.bf16.msra.mxu1 %v9386_v52  ;;  %v9440_v63 = vcombine.low %v985_v48, %v989_v51  ;;  %v9442_v52 = vcombine.low %v986_v53, %v990_v30  ;;  %v1042_v48 = vld [vmem:[#allocation7 + $0x19d8] sm:$0xff]  ;;  %v9490_v30 = vcombine.low %v1034_v40, %v1038_v20 }
 0x3da   : > { %7356 = vmatprep.subr.bf16.mxu0 %v9393_v9  ;;  %7684 = vmatprep.subr.bf16.mxu1 %v9395_v3  ;;  %v9449_v9 = vcombine.high %v993_v57, %v997_v58  ;;  %v9451_v3 = vcombine.high %v994_v61, %v998_v62  ;;  %v1046_v51 = vld [vmem:[#allocation7 + $0x19f8] sm:$0xff] }
 0x3dd   : > { %7357 = vmatpush1.bf16.msra.mxu0 %v9392_v32  ;;  %7685 = vmatpush1.bf16.msra.mxu1 %v9394_v12  ;;  %v9448_v32 = vcombine.low %v993_v57, %v997_v58  ;;  %v9450_v12 = vcombine.low %v994_v61, %v998_v62  ;;  %v1050_v57 = vld [vmem:[#allocation7 + $0x1a18] sm:$0xff]  ;;  %v9498_v62 = vcombine.low %v1042_v48, %v1046_v51 }
 0x3de   : > { %7358 = vmatprep.subr.bf16.mxu0 %v9401_v13  ;;  %7686 = vmatprep.subr.bf16.mxu1 %v9403_v1  ;;  %v9457_v13 = vcombine.high %v1001_v6, %v1005_v4  ;;  %v9459_v1 = vcombine.high %v1002_v35, %v1006_v5  ;;  %v1054_v58 = vld [vmem:[#allocation7 + $0x1a38] sm:$0xff] }
 0x3e1   : > { %7359 = vmatpush1.bf16.msra.mxu0 %v9400_v19  ;;  %7687 = vmatpush1.bf16.msra.mxu1 %v9402_v54  ;;  %v9456_v19 = vcombine.low %v1001_v6, %v1005_v4  ;;  %v9465_v54 = vcombine.high %v1009_v14, %v1013_v15  ;;  %v1058_v6 = vld [vmem:[#allocation7 + $0x1a58] sm:$0xff] }
 0x3e2   : > { %7360 = vmatprep.subr.bf16.mxu0 %v9409_v17  ;;  %7688 = vmatprep.subr.bf16.mxu1 %v9411_v2  ;;  %v9467_v17 = vcombine.high %v1010_v16, %v1014_v18  ;;  %v1017_v2 = vld [vmem:[#allocation7 + $0x1910] sm:$0xff]  ;;  %v1062_v4 = vld [vmem:[#allocation7 + $0x1a78] sm:$0xff] }
 0x3e3   : > { %v9472_v34 = vcombine.low %v1017_v2, %v1021_v22  ;;  %v1066_v14 = vld [vmem:[#allocation7 + $0x1a98] sm:$0xff] }
 0x3e4   : > { %v1070_v15 = vld [vmem:[#allocation7 + $0x1ab8] sm:$0xff] }
 0x3e5   : > { %7361 = vmatpush1.bf16.msra.mxu0 %v9408_v26  ;;  %7689 = vmatpush1.bf16.msra.mxu1 %v9410_v27  ;;  %v9466_v26 = vcombine.low %v1010_v16, %v1014_v18  ;;  %v9473_v27 = vcombine.high %v1017_v2, %v1021_v22  ;;  %v9514_v18 = vcombine.low %v1058_v6, %v1062_v4  ;;  %v1074_v2 = vld [vmem:[#allocation7 + $0x1ad8] sm:$0xff] }
 0x3e6   : > { %7362 = vmatprep.subr.bf16.mxu0 %v9417_v29  ;;  %7690 = vmatprep.subr.bf16.mxu1 %v9419_v31  ;;  %v1025_v29 = vld [vmem:[#allocation7 + $0x1950] sm:$0xff]  ;;  %v1078_v22 = vld [vmem:[#allocation7 + $0x1af8] sm:$0xff] }
 0x3e7   : > { %v1029_v31 = vld [vmem:[#allocation7 + $0x1970] sm:$0xff] }
 0x3e8   : > { %v9480_v42 = vcombine.low %v1025_v29, %v1029_v31 }
 0x3e9   : > { %7363 = vmatpush1.bf16.msra.mxu0 %v9416_v49  ;;  %7691 = vmatpush1.bf16.msra.mxu1 %v9418_v36  ;;  %v9481_v49 = vcombine.high %v1025_v29, %v1029_v31  ;;  %v9483_v36 = vcombine.high %v1026_v33, %v1030_v60  ;;  %v1082_v29 = vld [vmem:[#allocation7 + $0x1b18] sm:$0xff]  ;;  %v9530_v60 = vcombine.low %v1074_v2, %v1078_v22 }
 0x3ea   : > { %7364 = vmatprep.subr.bf16.mxu0 %v9425_v37  ;;  %7692 = vmatprep.subr.bf16.mxu1 %v9427_v39  ;;  %v1033_v37 = vld [vmem:[#allocation7 + $0x1990] sm:$0xff]  ;;  %v1086_v31 = vld [vmem:[#allocation7 + $0x1b38] sm:$0xff] }
 0x3eb   : > { %v1037_v39 = vld [vmem:[#allocation7 + $0x19b0] sm:$0xff] }
 0x3ec   : > { %v9488_v53 = vcombine.low %v1033_v37, %v1037_v39 }
 0x3ed   : > { %7365 = vmatpush1.bf16.msra.mxu0 %v9424_v43  ;;  %7693 = vmatpush1.bf16.msra.mxu1 %v9426_v44  ;;  %v9489_v43 = vcombine.high %v1033_v37, %v1037_v39  ;;  %v9491_v44 = vcombine.high %v1034_v40, %v1038_v20  ;;  %v1090_v37 = vld [vmem:[#allocation7 + $0x1b58] sm:$0xff]  ;;  %v9538_v20 = vcombine.low %v1082_v29, %v1086_v31 }
 0x3ee   : > { %7366 = vmatprep.subr.bf16.mxu0 %v9433_v46  ;;  %7694 = vmatprep.subr.bf16.mxu1 %v9435_v47  ;;  %v1041_v46 = vld [vmem:[#allocation7 + $0x19d0] sm:$0xff]  ;;  %v1094_v39 = vld [vmem:[#allocation7 + $0x1b78] sm:$0xff] }
 0x3ef   : > { %v1045_v47 = vld [vmem:[#allocation7 + $0x19f0] sm:$0xff] }
 0x3f0   : > { %v9496_v61 = vcombine.low %v1041_v46, %v1045_v47 }
 0x3f1   : > { %7367 = vmatpush1.bf16.msra.mxu0 %v9432_v55  ;;  %7695 = vmatpush1.bf16.msra.mxu1 %v9434_v59  ;;  %v9497_v55 = vcombine.high %v1041_v46, %v1045_v47  ;;  %v9499_v59 = vcombine.high %v1042_v48, %v1046_v51  ;;  %v1098_v46 = vld [vmem:[#allocation7 + $0x1b98] sm:$0xff]  ;;  %v9546_v51 = vcombine.low %v1090_v37, %v1094_v39 }
 0x3f2   : > { %7377 = vmatprep.subr.bf16.mxu0 %v9441_v24  ;;  %7705 = vmatprep.subr.bf16.mxu1 %v9443_v56  ;;  %v1049_v24 = vld [vmem:[#allocation7 + $0x1a10] sm:$0xff]  ;;  %v1102_v47 = vld [vmem:[#allocation7 + $0x1bb8] sm:$0xff] }
 0x3f3   : > { %v1053_v56 = vld [vmem:[#allocation7 + $0x1a30] sm:$0xff] }
 0x3f4   : > { %7369 = vmatmul.mubr.bf16.vlgmr.msra.gmra.mrb[4].mxu0 %v10556_v28  ;;  %7697 = vmatmul.mubr.bf16.vlgmr.msra.gmra.mrb[4].mxu1 %v10556_v28  ;;  %v9458_v28 = vcombine.low %v1002_v35, %v1006_v5  ;;  %v9504_v35 = vcombine.low %v1049_v24, %v1053_v56  ;;  %v9506_v5 = vcombine.low %v1050_v57, %v1054_v58 }
 0x3f5   : > { %7378 = vmatpush1.bf16.msra.mxu0 %v9440_v63  ;;  %7706 = vmatpush1.bf16.msra.mxu1 %v9442_v52  ;;  %v9505_v63 = vcombine.high %v1049_v24, %v1053_v56  ;;  %v9507_v52 = vcombine.high %v1050_v57, %v1054_v58  ;;  %v1106_v24 = vld [vmem:[#allocation7 + $0x1bd8] sm:$0xff]  ;;  %v9554_v58 = vcombine.low %v1098_v46, %v1102_v47 }
 0x3f6   : > { %7379 = vmatprep.subr.bf16.mxu0 %v9449_v9  ;;  %7707 = vmatprep.subr.bf16.mxu1 %v9451_v3  ;;  %v1057_v9 = vld [vmem:[#allocation7 + $0x1a50] sm:$0xff]  ;;  %v1110_v56 = vld [vmem:[#allocation7 + $0x1bf8] sm:$0xff] }
 0x3f7   : > { %7409 = vmatprep.mubr.bf16.mxu0 %v10559_v38  ;;  %7737 = vmatprep.mubr.bf16.mxu1 %v10559_v38  ;;  %v9475_v38 = vcombine.high %v1018_v23, %v1022_v25  ;;  %v1061_v3 = vld [vmem:[#allocation7 + $0x1a70] sm:$0xff]  ;;  %v9522_v25 = vcombine.low %v1066_v14, %v1070_v15 }
 0x3f8   : > { %v9512_v16 = vcombine.low %v1057_v9, %v1061_v3 }
 0x3f9   : > { %7380 = vmatpush1.bf16.msra.mxu0 %v9448_v32  ;;  %7708 = vmatpush1.bf16.msra.mxu1 %v9450_v12  ;;  %v9513_v32 = vcombine.high %v1057_v9, %v1061_v3  ;;  %v9515_v12 = vcombine.high %v1058_v6, %v1062_v4  ;;  %v1114_v9 = vld [vmem:[#allocation7 + $0x1c18] sm:$0xff]  ;;  %v9562_v4 = vcombine.low %v1106_v24, %v1110_v56 }
 0x3fa   : > { %7381 = vmatprep.subr.bf16.mxu0 %v9457_v13  ;;  %7709 = vmatprep.subr.bf16.mxu1 %v9459_v1  ;;  %v1065_v13 = vld [vmem:[#allocation7 + $0x1a90] sm:$0xff]  ;;  %v1118_v3 = vld [vmem:[#allocation7 + $0x1c38] sm:$0xff] }
 0x3fb   : > { %v1069_v1 = vld [vmem:[#allocation7 + $0x1ab0] sm:$0xff] }
 0x3fc   : > { %v9520_v23 = vcombine.low %v1065_v13, %v1069_v1 }
 0x3fd   : > { %7382 = vmatpush1.bf16.msra.mxu0 %v9456_v19  ;;  %7710 = vmatpush1.bf16.msra.mxu1 %v9458_v28  ;;  %v9521_v19 = vcombine.high %v1065_v13, %v1069_v1  ;;  %v9523_v28 = vcombine.high %v1066_v14, %v1070_v15  ;;  %v1122_v13 = vld [vmem:[#allocation7 + $0x1c58] sm:$0xff]  ;;  %v9570_v15 = vcombine.low %v1114_v9, %v1118_v3 }
 0x3fe   : > { %7383 = vmatprep.subr.bf16.mxu0 %v9465_v54  ;;  %7711 = vmatprep.subr.bf16.mxu1 %v9467_v17  ;;  %v1073_v54 = vld [vmem:[#allocation7 + $0x1ad0] sm:$0xff]  ;;  %v1126_v1 = vld [vmem:[#allocation7 + $0x1c78] sm:$0xff] }
 0x3ff   : > { %v1077_v17 = vld [vmem:[#allocation7 + $0x1af0] sm:$0xff] }
 0x400   : > { %v9528_v33 = vcombine.low %v1073_v54, %v1077_v17 }
 0x401   : > { %7384 = vmatpush1.bf16.msra.mxu0 %v9464_v10  ;;  %7712 = vmatpush1.bf16.msra.mxu1 %v9466_v26  ;;  %v9529_v10 = vcombine.high %v1073_v54, %v1077_v17  ;;  %v9531_v26 = vcombine.high %v1074_v2, %v1078_v22  ;;  %v1130_v54 = vld [vmem:[#allocation7 + $0x1c98] sm:$0xff]  ;;  %v9578_v22 = vcombine.low %v1122_v13, %v1126_v1 }
 0x402   : > { %7385 = vmatprep.subr.bf16.mxu0 %v9473_v27  ;;  %7713 = vmatprep.subr.bf16.mxu1 %v9475_v38  ;;  %v1081_v27 = vld [vmem:[#allocation7 + $0x1b10] sm:$0xff]  ;;  %v1134_v17 = vld [vmem:[#allocation7 + $0x1cb8] sm:$0xff] }
 0x403   : > { %v1085_v38 = vld [vmem:[#allocation7 + $0x1b30] sm:$0xff] }
 0x404   : > { %v9536_v40 = vcombine.low %v1081_v27, %v1085_v38 }
 0x405   : > { %7386 = vmatpush1.bf16.msra.mxu0 %v9472_v34  ;;  %7714 = vmatpush1.bf16.msra.mxu1 %v9474_v0  ;;  %v9537_v34 = vcombine.high %v1081_v27, %v1085_v38  ;;  %v9539_v0 = vcombine.high %v1082_v29, %v1086_v31  ;;  %v1138_v27 = vld [vmem:[#allocation7 + $0x1cd8] sm:$0xff] }
 0x406   : > { %7387 = vmatprep.subr.bf16.mxu0 %v9481_v49  ;;  %7715 = vmatprep.subr.bf16.mxu1 %v9483_v36  ;;  %v1089_v49 = vld [vmem:[#allocation7 + $0x1b50] sm:$0xff]  ;;  %v1142_v38 = vld [vmem:[#allocation7 + $0x1cf8] sm:$0xff] }
 0x407   : > { %v1093_v36 = vld [vmem:[#allocation7 + $0x1b70] sm:$0xff] }
 0x408   : > { %v9544_v48 = vcombine.low %v1089_v49, %v1093_v36 }
 0x409   : > { %7388 = vmatpush1.bf16.msra.mxu0 %v9480_v42  ;;  %7716 = vmatpush1.bf16.msra.mxu1 %v9482_v45  ;;  %v9545_v42 = vcombine.high %v1089_v49, %v1093_v36  ;;  %v9547_v45 = vcombine.high %v1090_v37, %v1094_v39  ;;  %v1150_v49 = vld [vmem:[#allocation7 + $0x1d38] sm:$0xff]  ;;  %v9594_v37 = vcombine.low %v1138_v27, %v1142_v38 }
 0x40a   : > { %7389 = vmatprep.subr.bf16.mxu0 %v9489_v43  ;;  %7717 = vmatprep.subr.bf16.mxu1 %v9491_v44  ;;  %v1097_v43 = vld [vmem:[#allocation7 + $0x1b90] sm:$0xff] }
 0x40b   : > { %v1101_v44 = vld [vmem:[#allocation7 + $0x1bb0] sm:$0xff] }
 0x40c   : > { %v9552_v57 = vcombine.low %v1097_v43, %v1101_v44 }
 0x40d   : > { %7390 = vmatpush1.bf16.msra.mxu0 %v9488_v53  ;;  %7718 = vmatpush1.bf16.msra.mxu1 %v9490_v30  ;;  %v9553_v53 = vcombine.high %v1097_v43, %v1101_v44  ;;  %v9555_v30 = vcombine.high %v1098_v46, %v1102_v47 }
 0x40e   : > { %7391 = vmatprep.subr.bf16.mxu0 %v9497_v55  ;;  %7719 = vmatprep.subr.bf16.mxu1 %v9499_v59  ;;  %v1105_v55 = vld [vmem:[#allocation7 + $0x1bd0] sm:$0xff] }
 0x40f   : > { %v1109_v59 = vld [vmem:[#allocation7 + $0x1bf0] sm:$0xff] }
 0x410   : > { %v9560_v6 = vcombine.low %v1105_v55, %v1109_v59 }
 0x411   : > { %7392 = vmatpush1.bf16.msra.mxu0 %v9496_v61  ;;  %7720 = vmatpush1.bf16.msra.mxu1 %v9498_v62  ;;  %v9561_v61 = vcombine.high %v1105_v55, %v1109_v59  ;;  %v9563_v62 = vcombine.high %v1106_v24, %v1110_v56 }
 0x412   : > { %7393 = vmatprep.subr.bf16.mxu0 %v9505_v63  ;;  %7721 = vmatprep.subr.bf16.mxu1 %v9507_v52  ;;  %v1113_v63 = vld [vmem:[#allocation7 + $0x1c10] sm:$0xff] }
 0x413   : > { %v1117_v52 = vld [vmem:[#allocation7 + $0x1c30] sm:$0xff] }
 0x414   : > { %v9568_v14 = vcombine.low %v1113_v63, %v1117_v52 }
 0x415   : > { %7394 = vmatpush1.bf16.msra.mxu0 %v9504_v35  ;;  %7722 = vmatpush1.bf16.msra.mxu1 %v9506_v5  ;;  %v9569_v35 = vcombine.high %v1113_v63, %v1117_v52  ;;  %v9571_v5 = vcombine.high %v1114_v9, %v1118_v3 }
 0x416   : > { %7395 = vmatprep.subr.bf16.mxu0 %v9513_v32  ;;  %7723 = vmatprep.subr.bf16.mxu1 %v9515_v12  ;;  %v1121_v32 = vld [vmem:[#allocation7 + $0x1c50] sm:$0xff] }
 0x417   : > { %v1125_v12 = vld [vmem:[#allocation7 + $0x1c70] sm:$0xff] }
 0x418   : > { %v9576_v2 = vcombine.low %v1121_v32, %v1125_v12 }
 0x419   : > { %7396 = vmatpush1.bf16.msra.mxu0 %v9512_v16  ;;  %7724 = vmatpush1.bf16.msra.mxu1 %v9514_v18  ;;  %v9577_v16 = vcombine.high %v1121_v32, %v1125_v12  ;;  %v9579_v18 = vcombine.high %v1122_v13, %v1126_v1 }
 0x41a   : > { %7397 = vmatprep.subr.bf16.mxu0 %v9521_v19  ;;  %7725 = vmatprep.subr.bf16.mxu1 %v9523_v28  ;;  %v1129_v19 = vld [vmem:[#allocation7 + $0x1c90] sm:$0xff] }
 0x41b   : > { %v1133_v28 = vld [vmem:[#allocation7 + $0x1cb0] sm:$0xff] }
 0x41c   : > { %v9584_v29 = vcombine.low %v1129_v19, %v1133_v28 }
 0x41d   : > { %7398 = vmatpush1.bf16.msra.mxu0 %v9520_v23  ;;  %7726 = vmatpush1.bf16.msra.mxu1 %v9522_v25  ;;  %v9585_v23 = vcombine.high %v1129_v19, %v1133_v28  ;;  %v9587_v25 = vcombine.high %v1130_v54, %v1134_v17 }
 0x41e   : > { %7399 = vmatprep.subr.bf16.mxu0 %v9529_v10  ;;  %7727 = vmatprep.subr.bf16.mxu1 %v9531_v26  ;;  %v1137_v10 = vld [vmem:[#allocation7 + $0x1cd0] sm:$0xff] }
 0x41f   : > { %v1141_v26 = vld [vmem:[#allocation7 + $0x1cf0] sm:$0xff] }
 0x420   : > { %v9593_v31 = vcombine.high %v1137_v10, %v1141_v26  ;;  %v9592_v36 = vcombine.low %v1137_v10, %v1141_v26 }
 0x421   : > { %7400 = vmatpush1.bf16.msra.mxu0 %v9528_v33  ;;  %7728 = vmatpush1.bf16.msra.mxu1 %v9530_v60  ;;  %v9595_v33 = vcombine.high %v1138_v27, %v1142_v38  ;;  %v1145_v60 = vld [vmem:[#allocation7 + $0x1d10] sm:$0xff] }
 0x422   : > { %7401 = vmatprep.subr.bf16.mxu0 %v9537_v34  ;;  %7729 = vmatprep.subr.bf16.mxu1 %v9539_v0  ;;  %v1149_v34 = vld [vmem:[#allocation7 + $0x1d30] sm:$0xff]  ;;  %v1146_v0 = vld [vmem:[#allocation7 + $0x1d18] sm:$0xff] }
 0x423   : > { %v9601_v39 = vcombine.high %v1145_v60, %v1149_v34  ;;  %v9600_v43 = vcombine.low %v1145_v60, %v1149_v34  ;;  %v9602_v44 = vcombine.low %v1146_v0, %v1150_v49 }
 0x425   : > { %7402 = vmatpush1.bf16.msra.mxu0 %v9536_v40  ;;  %7730 = vmatpush1.bf16.msra.mxu1 %v9538_v20  ;;  %v1153_v40 = vld [vmem:[#allocation7 + $0x1d50] sm:$0xff] }
 0x426   : > { %7403 = vmatprep.subr.bf16.mxu0 %v9545_v42  ;;  %7731 = vmatprep.subr.bf16.mxu1 %v9547_v45  ;;  %v1157_v20 = vld [vmem:[#allocation7 + $0x1d70] sm:$0xff]  ;;  %v1154_v42 = vld [vmem:[#allocation7 + $0x1d58] sm:$0xff] }
 0x427   : > { %v1158_v45 = vld [vmem:[#allocation7 + $0x1d78] sm:$0xff]  ;;  %v9609_v46 = vcombine.high %v1153_v40, %v1157_v20  ;;  %v9608_v55 = vcombine.low %v1153_v40, %v1157_v20 }
 0x428   : > { %v9611_v47 = vcombine.high %v1154_v42, %v1158_v45  ;;  %v9610_v59 = vcombine.low %v1154_v42, %v1158_v45 }
 0x429   : > { %7404 = vmatpush1.bf16.msra.mxu0 %v9544_v48  ;;  %7732 = vmatpush1.bf16.msra.mxu1 %v9546_v51  ;;  %v1161_v48 = vld [vmem:[#allocation7 + $0x1d90] sm:$0xff] }
 0x42a   : > { %7405 = vmatprep.subr.bf16.mxu0 %v9553_v53  ;;  %7733 = vmatprep.subr.bf16.mxu1 %v9555_v30  ;;  %v1165_v51 = vld [vmem:[#allocation7 + $0x1db0] sm:$0xff]  ;;  %v1162_v53 = vld [vmem:[#allocation7 + $0x1d98] sm:$0xff] }
 0x42b   : > { %v1166_v30 = vld [vmem:[#allocation7 + $0x1db8] sm:$0xff]  ;;  %v9617_v24 = vcombine.high %v1161_v48, %v1165_v51  ;;  %v9616_v63 = vcombine.low %v1161_v48, %v1165_v51 }
 0x42c   : > { %v9619_v56 = vcombine.high %v1162_v53, %v1166_v30  ;;  %v9618_v52 = vcombine.low %v1162_v53, %v1166_v30 }
 0x42d   : > { %7406 = vmatpush1.bf16.msra.mxu0 %v9552_v57  ;;  %7734 = vmatpush1.bf16.msra.mxu1 %v9554_v58  ;;  %v1169_v57 = vld [vmem:[#allocation7 + $0x1dd0] sm:$0xff] }
 0x42e   : > { %7407 = vmatprep.subr.bf16.mxu0 %v9561_v61  ;;  %7735 = vmatprep.subr.bf16.mxu1 %v9563_v62  ;;  %v1173_v58 = vld [vmem:[#allocation7 + $0x1df0] sm:$0xff]  ;;  %v1170_v61 = vld [vmem:[#allocation7 + $0x1dd8] sm:$0xff] }
 0x42f   : > { %v1174_v62 = vld [vmem:[#allocation7 + $0x1df8] sm:$0xff]  ;;  %v9625_v9 = vcombine.high %v1169_v57, %v1173_v58  ;;  %v9624_v32 = vcombine.low %v1169_v57, %v1173_v58 }
 0x430   : > { %v9627_v3 = vcombine.high %v1170_v61, %v1174_v62  ;;  %v9626_v12 = vcombine.low %v1170_v61, %v1174_v62 }
 0x431   : > { %7408 = vmatpush1.bf16.msra.mxu0 %v9560_v6  ;;  %7736 = vmatpush1.bf16.msra.mxu1 %v9562_v4  ;;  %v1177_v6 = vld [vmem:[#allocation7 + $0x1e10] sm:$0xff] }
 0x432   : > { %7418 = vmatprep.subr.bf16.mxu0 %v9569_v35  ;;  %7746 = vmatprep.subr.bf16.mxu1 %v9571_v5  ;;  %v1181_v4 = vld [vmem:[#allocation7 + $0x1e30] sm:$0xff]  ;;  %v1178_v35 = vld [vmem:[#allocation7 + $0x1e18] sm:$0xff] }
 0x433   : > { %v1182_v5 = vld [vmem:[#allocation7 + $0x1e38] sm:$0xff]  ;;  %v9633_v13 = vcombine.high %v1177_v6, %v1181_v4  ;;  %v9632_v19 = vcombine.low %v1177_v6, %v1181_v4  ;;  %v7850_v4 = vcombine.high %v10603_v11, %v10603_v11 }
 0x434   : > { %7410 = vmatmul.mubr.bf16.vlgmr.msra.gmra.mrb[4].mxu0 %v10567_v8  ;;  %7738 = vmatmul.mubr.bf16.vlgmr.msra.gmra.mrb[4].mxu1 %v10567_v8  ;;  %v9586_v8 = vcombine.low %v1130_v54, %v1134_v17  ;;  %v9635_v1 = vcombine.high %v1178_v35, %v1182_v5  ;;  %v9634_v28 = vcombine.low %v1178_v35, %v1182_v5 }
 0x435   : > { %7419 = vmatpush1.bf16.msra.mxu0 %v9568_v14  ;;  %7747 = vmatpush1.bf16.msra.mxu1 %v9570_v15  ;;  %v1185_v14 = vld [vmem:[#allocation7 + $0x1e50] sm:$0xff] }
 0x436   : > { %7420 = vmatprep.subr.bf16.mxu0 %v9577_v16  ;;  %7748 = vmatprep.subr.bf16.mxu1 %v9579_v18  ;;  %v1189_v15 = vld [vmem:[#allocation7 + $0x1e70] sm:$0xff]  ;;  %v1186_v16 = vld [vmem:[#allocation7 + $0x1e58] sm:$0xff] }
 0x437   : > { %7450 = vmatprep.mubr.bf16.mxu0 %v10571_v21  ;;  %7778 = vmatprep.mubr.bf16.mxu1 %v10571_v21  ;;  %v9603_v21 = vcombine.high %v1146_v0, %v1150_v49  ;;  %v1190_v18 = vld [vmem:[#allocation7 + $0x1e78] sm:$0xff]  ;;  %v9641_v54 = vcombine.high %v1185_v14, %v1189_v15  ;;  %v9640_v10 = vcombine.low %v1185_v14, %v1189_v15  ;;  %v10040_v15 = vld [vmem:[#allocation9 + $0x40] sm:$0xff]  }
 0x438   : > { %v9643_v17 = vcombine.high %v1186_v16, %v1190_v18  ;;  %v9642_v26 = vcombine.low %v1186_v16, %v1190_v18  ;;  %v10041_v16 = vld [vmem:[#allocation9 + $0xc0] sm:$0xff]  }
 0x439   : > { %7421 = vmatpush1.bf16.msra.mxu0 %v9576_v2  ;;  %7749 = vmatpush1.bf16.msra.mxu1 %v9578_v22  ;;  %v1193_v2 = vld [vmem:[#allocation7 + $0x1e90] sm:$0xff] }
 0x43a   : > { %7422 = vmatprep.subr.bf16.mxu0 %v9585_v23  ;;  %7750 = vmatprep.subr.bf16.mxu1 %v9587_v25  ;;  %v1197_v22 = vld [vmem:[#allocation7 + $0x1eb0] sm:$0xff]  ;;  %v1194_v23 = vld [vmem:[#allocation7 + $0x1e98] sm:$0xff] }
 0x43b   : > { %v1198_v25 = vld [vmem:[#allocation7 + $0x1eb8] sm:$0xff]  ;;  %v9649_v27 = vcombine.high %v1193_v2, %v1197_v22  ;;  %v9648_v60 = vcombine.low %v1193_v2, %v1197_v22  ;;  %v10045_v2 = vld [vmem:[#allocation9 + $0xc8] sm:$0xff]  }
 0x43c   : > { %v9651_v38 = vcombine.high %v1194_v23, %v1198_v25  ;;  %v9650_v34 = vcombine.low %v1194_v23, %v1198_v25  ;;  %v10046_v23 = vld [vmem:[#allocation9 + $0x8] sm:$0xff]  }
 0x43d   : > { %7423 = vmatpush1.bf16.msra.mxu0 %v9584_v29  ;;  %7751 = vmatpush1.bf16.msra.mxu1 %v9586_v8  ;;  %v1201_v29 = vld [vmem:[#allocation7 + $0x1ed0] sm:$0xff]  ;;  %v10047_v25 = vld [vmem:[#allocation9 + $0x88] sm:$0xff]  }
 0x43e   : > { %7424 = vmatprep.subr.bf16.mxu0 %v9593_v31  ;;  %7752 = vmatprep.subr.bf16.mxu1 %v9595_v33  ;;  %v1205_v8 = vld [vmem:[#allocation7 + $0x1ef0] sm:$0xff]  ;;  %v1202_v31 = vld [vmem:[#allocation7 + $0x1ed8] sm:$0xff] }
 0x43f   : > { %v1206_v33 = vld [vmem:[#allocation7 + $0x1ef8] sm:$0xff]  ;;  %v9657_v0 = vcombine.high %v1201_v29, %v1205_v8  ;;  %v9656_v40 = vcombine.low %v1201_v29, %v1205_v8 }
 0x440   : > { %v9659_v49 = vcombine.high %v1202_v31, %v1206_v33  ;;  %v9658_v20 = vcombine.low %v1202_v31, %v1206_v33  ;;  %v10052_v29 = vld [vmem:[#allocation9 + $0x58] sm:$0xff]   ;;  %v10056_v33 = vld [vmem:[#allocation9 + $0x60] sm:$0xff]  }
 0x441   : > { %7425 = vmatpush1.bf16.msra.mxu0 %v9592_v36  ;;  %7753 = vmatpush1.bf16.msra.mxu1 %v9594_v37  ;;  %v1209_v36 = vld [vmem:[#allocation7 + $0x1f10] sm:$0xff]  ;;  %v10053_v8 = vld [vmem:[#allocation9 + $0xd8] sm:$0xff]  }
 0x442   : > { %7426 = vmatprep.subr.bf16.mxu0 %v9601_v39  ;;  %7754 = vmatprep.subr.bf16.mxu1 %v9603_v21  ;;  %v1213_v37 = vld [vmem:[#allocation7 + $0x1f30] sm:$0xff]  ;;  %v1210_v39 = vld [vmem:[#allocation7 + $0x1f18] sm:$0xff] }
 0x443   : > { %v1214_v21 = vld [vmem:[#allocation7 + $0x1f38] sm:$0xff]  ;;  %v9665_v42 = vcombine.high %v1209_v36, %v1213_v37  ;;  %v9664_v48 = vcombine.low %v1209_v36, %v1213_v37  ;;  %v10061_v36 = vld [vmem:[#allocation9 + $0xe8] sm:$0xff]  }
 0x444   : > { %v9667_v45 = vcombine.high %v1210_v39, %v1214_v21  ;;  %v9666_v51 = vcombine.low %v1210_v39, %v1214_v21  ;;  %v10055_v31 = vld [vmem:[#allocation9 + $0x98] sm:$0xff]   ;;  %v10062_v37 = vld [vmem:[#allocation9 + $0x28] sm:$0xff]   ;;  %v10064_v21 = vld [vmem:[#allocation9 + $0x70] sm:$0xff]  }
 0x445   : > { %7427 = vmatpush1.bf16.msra.mxu0 %v9600_v43  ;;  %7755 = vmatpush1.bf16.msra.mxu1 %v9602_v44  ;;  %v1217_v43 = vld [vmem:[#allocation7 + $0x1f50] sm:$0xff]  ;;  %v10063_v39 = vld [vmem:[#allocation9 + $0xa8] sm:$0xff]  }
 0x446   : > { %7428 = vmatprep.subr.bf16.mxu0 %v9609_v46  ;;  %7756 = vmatprep.subr.bf16.mxu1 %v9611_v47  ;;  %v1221_v44 = vld [vmem:[#allocation7 + $0x1f70] sm:$0xff]  ;;  %v1218_v46 = vld [vmem:[#allocation7 + $0x1f58] sm:$0xff] }
 0x447   : > { %v1222_v47 = vld [vmem:[#allocation7 + $0x1f78] sm:$0xff]  ;;  %v9673_v53 = vcombine.high %v1217_v43, %v1221_v44  ;;  %v9672_v57 = vcombine.low %v1217_v43, %v1221_v44 }
 0x448   : > { %v9675_v30 = vcombine.high %v1218_v46, %v1222_v47  ;;  %v9674_v58 = vcombine.low %v1218_v46, %v1222_v47  ;;  %v10069_v43 = vld [vmem:[#allocation9 + $0xf8] sm:$0xff]   ;;  %v10072_v47 = vld [vmem:[#allocation9 + $0x140] sm:$0xff]  }
 0x449   : > { %7429 = vmatpush1.bf16.msra.mxu0 %v9608_v55  ;;  %7757 = vmatpush1.bf16.msra.mxu1 %v9610_v59  ;;  %v1225_v55 = vld [vmem:[#allocation7 + $0x1f90] sm:$0xff]  ;;  %v10070_v44 = vld [vmem:[#allocation9 + $0x38] sm:$0xff]  }
 0x44a   : > { %7430 = vmatprep.subr.bf16.mxu0 %v9617_v24  ;;  %7758 = vmatprep.subr.bf16.mxu1 %v9619_v56  ;;  %v1229_v59 = vld [vmem:[#allocation7 + $0x1fb0] sm:$0xff]  ;;  %v1226_v24 = vld [vmem:[#allocation7 + $0x1f98] sm:$0xff] }
 0x44b   : > { %v1230_v56 = vld [vmem:[#allocation7 + $0x1fb8] sm:$0xff]  ;;  %v9681_v61 = vcombine.high %v1225_v55, %v1229_v59  ;;  %v9680_v6 = vcombine.low %v1225_v55, %v1229_v59  ;;  %v10076_v55 = vld [vmem:[#allocation9 + $0x148] sm:$0xff]  }
 0x44c   : > { %v9683_v62 = vcombine.high %v1226_v24, %v1230_v56  ;;  %v9682_v35 = vcombine.low %v1226_v24, %v1230_v56  ;;  %v10071_v46 = vld [vmem:[#allocation9 + $0xb8] sm:$0xff]   ;;  %v10078_v24 = vld [vmem:[#allocation9 + $0x1c8] sm:$0xff]  }
 0x44d   : > { %7431 = vmatpush1.bf16.msra.mxu0 %v9616_v63  ;;  %7759 = vmatpush1.bf16.msra.mxu1 %v9618_v52  ;;  %v1233_v63 = vld [vmem:[#allocation7 + $0x1fd0] sm:$0xff]  ;;  %v10077_v56 = vld [vmem:[#allocation9 + $0x108] sm:$0xff]  }
 0x44e   : > { %7432 = vmatprep.subr.bf16.mxu0 %v9625_v9  ;;  %7760 = vmatprep.subr.bf16.mxu1 %v9627_v3  ;;  %v1237_v52 = vld [vmem:[#allocation7 + $0x1ff0] sm:$0xff]  ;;  %v1234_v9 = vld [vmem:[#allocation7 + $0x1fd8] sm:$0xff] }
 0x44f   : > { %v1238_v3 = vld [vmem:[#allocation7 + $0x1ff8] sm:$0xff]  ;;  %v9689_v5 = vcombine.high %v1233_v63, %v1237_v52 }
 0x450   : > { %v9690_v14 = vcombine.low %v1234_v9, %v1238_v3 }
 0x451   : > { %7433 = vmatpush1.bf16.msra.mxu0 %v9624_v32  ;;  %7761 = vmatpush1.bf16.msra.mxu1 %v9626_v12  ;;  %v9691_v32 = vcombine.high %v1234_v9, %v1238_v3  ;;  %v10626_v12 = vrot.slane %v10603_v11, %v10598_v41  ;;  %v10085_v9 = vld [vmem:[#allocation9 + $0x118] sm:$0xff]  }
 0x452   : > { %7434 = vmatprep.subr.bf16.mxu0 %v9633_v13  ;;  %7762 = vmatprep.subr.bf16.mxu1 %v9635_v1  ;;  %v9688_v13 = vcombine.low %v1233_v63, %v1237_v52  ;;  %v10629_v1 = vrot.slane %v7850_v4, %v10598_v41  ;;  %v10083_v63 = vld [vmem:[#allocation9 + $0x190] sm:$0xff]   ;;  %v10084_v52 = vld [vmem:[#allocation9 + $0x158] sm:$0xff]   ;;  %v10088_v4 = vld [vmem:[#allocation9 + $0x160] sm:$0xff]  }
 0x453   : > { %v7865_v18 = vcombine.high %v10626_v12, %v10626_v12  ;;  %v10086_v3 = vld [vmem:[#allocation9 + $0x1d8] sm:$0xff]  }
 0x454   : > { %v7866_v11 = vcombine.high %v10629_v1, %v10629_v1  ;;  %v7894_v59 = vpack.c.bf16 %v10629_v1, %v10629_v1  ;;  %v10094_v1 = vld [vmem:[#allocation9 + $0x1e8] sm:$0xff]  }
 0x455   : > { %7435 = vmatpush1.bf16.msra.mxu0 %v9632_v19  ;;  %7763 = vmatpush1.bf16.msra.mxu1 %v9634_v28  ;;  %v10042_v19 = vld [vmem:[#allocation9] sm:$0xff]  }
 0x456   : > { %7436 = vmatprep.subr.bf16.mxu0 %v9641_v54  ;;  %7764 = vmatprep.subr.bf16.mxu1 %v9643_v17  ;;  %v10043_v28 = vld [vmem:[#allocation9 + $0x80] sm:$0xff]   ;;  %v10044_v54 = vld [vmem:[#allocation9 + $0x48] sm:$0xff]   ;;  %v7893_v17 = vpack.c.bf16 %v7865_v18, %v7865_v18  ;;  %v7895_v22 = vpack.c.bf16 %v7866_v11, %v7866_v11  ;;  %v10098_v18 = vld [vmem:[#allocation9 + $0x1f0] sm:$0xff]  }
 0x457   : > { %v10100_v11 = vld [vmem:[#allocation9 + $0x178] sm:$0xff]  }
 0x459   : > { %7437 = vmatpush1.bf16.msra.mxu0 %v9640_v10  ;;  %7765 = vmatpush1.bf16.msra.mxu1 %v9642_v26  ;;  %v10048_v10 = vld [vmem:[#allocation9 + $0x50] sm:$0xff]  }
 0x45a   : > { %7438 = vmatprep.subr.bf16.mxu0 %v9649_v27  ;;  %7766 = vmatprep.subr.bf16.mxu1 %v9651_v38  ;;  %v10049_v26 = vld [vmem:[#allocation9 + $0xd0] sm:$0xff]  }
 0x45b   : > { %v10050_v27 = vld [vmem:[#allocation9 + $0x10] sm:$0xff]  }
 0x45c   : > { %v10051_v38 = vld [vmem:[#allocation9 + $0x90] sm:$0xff]  }
 0x45d   : > { %7439 = vmatpush1.bf16.msra.mxu0 %v9648_v60  ;;  %7767 = vmatpush1.bf16.msra.mxu1 %v9650_v34  ;;  %v10057_v60 = vld [vmem:[#allocation9 + $0xe0] sm:$0xff]  }
 0x45e   : > { %7440 = vmatprep.subr.bf16.mxu0 %v9657_v0  ;;  %7768 = vmatprep.subr.bf16.mxu1 %v9659_v49  ;;  %v10058_v34 = vld [vmem:[#allocation9 + $0x20] sm:$0xff]   ;;  %v10060_v49 = vld [vmem:[#allocation9 + $0x68] sm:$0xff]  }
 0x45f   : > { %v10059_v0 = vld [vmem:[#allocation9 + $0xa0] sm:$0xff]  }
 0x461   : > { %7441 = vmatpush1.bf16.msra.mxu0 %v9656_v40  ;;  %7769 = vmatpush1.bf16.msra.mxu1 %v9658_v20  ;;  %v10065_v40 = vld [vmem:[#allocation9 + $0xf0] sm:$0xff]  }
 0x462   : > { %7442 = vmatprep.subr.bf16.mxu0 %v9665_v42  ;;  %7770 = vmatprep.subr.bf16.mxu1 %v9667_v45  ;;  %v10066_v20 = vld [vmem:[#allocation9 + $0x30] sm:$0xff]   ;;  %v10068_v45 = vld [vmem:[#allocation9 + $0x78] sm:$0xff]  }
 0x463   : > { %v10067_v42 = vld [vmem:[#allocation9 + $0xb0] sm:$0xff]  }
 0x465   : > { %7443 = vmatpush1.bf16.msra.mxu0 %v9664_v48  ;;  %7771 = vmatpush1.bf16.msra.mxu1 %v9666_v51  ;;  %v10074_v48 = vld [vmem:[#allocation9 + $0x1c0] sm:$0xff]  }
 0x466   : > { %7444 = vmatprep.subr.bf16.mxu0 %v9673_v53  ;;  %7772 = vmatprep.subr.bf16.mxu1 %v9675_v30  ;;  %v10073_v51 = vld [vmem:[#allocation9 + $0x100] sm:$0xff]   ;;  %v7892_v53 = vpack.c.bf16 %v10626_v12, %v10626_v12  ;;  %v10092_v12 = vld [vmem:[#allocation9 + $0x168] sm:$0xff]  }
 0x467   : > { %v10075_v30 = vld [vmem:[#allocation9 + $0x180] sm:$0xff]  }
 0x469   : > { %7445 = vmatpush1.bf16.msra.mxu0 %v9672_v57  ;;  %7773 = vmatpush1.bf16.msra.mxu1 %v9674_v58  ;;  %v10079_v57 = vld [vmem:[#allocation9 + $0x188] sm:$0xff]   ;;  %v10080_v58 = vld [vmem:[#allocation9 + $0x150] sm:$0xff]  }
 0x46a   : > { %7446 = vmatprep.subr.bf16.mxu0 %v9681_v61  ;;  %7774 = vmatprep.subr.bf16.mxu1 %v9683_v62  ;;  %v10082_v61 = vld [vmem:[#allocation9 + $0x1d0] sm:$0xff]  }
 0x46b   : > { %v10081_v62 = vld [vmem:[#allocation9 + $0x110] sm:$0xff]  }
 0x46d   : > { %7447 = vmatpush1.bf16.msra.mxu0 %v9680_v6  ;;  %7775 = vmatpush1.bf16.msra.mxu1 %v9682_v35  ;;  %v10087_v6 = vld [vmem:[#allocation9 + $0x198] sm:$0xff]   ;;  %v10089_v35 = vld [vmem:[#allocation9 + $0x120] sm:$0xff]  }
 0x46e   : > { %7448 = vmatprep.subr.bf16.mxu0 %v9689_v5  ;;  %7776 = vmatprep.subr.bf16.mxu1 %v9691_v32  ;;  %v10090_v5 = vld [vmem:[#allocation9 + $0x1e0] sm:$0xff]  }
 0x46f   : > { %v10091_v32 = vld [vmem:[#allocation9 + $0x1a0] sm:$0xff]  }
 0x471   : > { %7449 = vmatpush1.bf16.msra.mxu0 %v9688_v13  ;;  %7777 = vmatpush1.bf16.msra.mxu1 %v9690_v14  ;;  %v10093_v13 = vld [vmem:[#allocation9 + $0x128] sm:$0xff]  }
 0x472   : > { %9763 = vmatprep.subr.bf16.mxu0 %v10040_v15  ;;  %9785 = vmatprep.subr.bf16.mxu1 %v10041_v16  ;;  %v10095_v14 = vld [vmem:[#allocation9 + $0x1a8] sm:$0xff]   ;;  %v10096_v15 = vld [vmem:[#allocation9 + $0x170] sm:$0xff]  }
 0x473   : > { %v10097_v16 = vld [vmem:[#allocation9 + $0x130] sm:$0xff]  }
 0x474   : > { %7451 = vmatmul.mubr.bf16.vlgmr.msra.gmra.mrb[4].mxu0 %v10579_v50  ;;  %7779 = vmatmul.mubr.bf16.vlgmr.msra.gmra.mrb[4].mxu1 %v10579_v50  ;;  %v10054_v50 = vld [vmem:[#allocation9 + $0x18] sm:$0xff]  }
 0x475   : > { %9764 = vmatpush3.bf16.msra.mxu0 %v10042_v19  ;;  %8444 = vmatprep.mubr.bf16.mxu0 %v7893_v17  ;;  %v10099_v19 = vld [vmem:[#allocation9 + $0x1b0] sm:$0xff]   ;;  %v10103_v17 = vld [vmem:[#allocation9 + $0x1b8] sm:$0xff]  }
 0x476   : > { %9786 = vmatpush3.bf16.msra.mxu1 %v10043_v28  ;;  %8484 = vmatprep.mubr.bf16.mxu1 %v7895_v22  ;;  %v10101_v28 = vld [vmem:[#allocation9 + $0x138] sm:$0xff]  }
 0x477   : > { %9765 = vmatprep.subr.bf16.mxu0 %v10044_v54  ;;  %9787 = vmatprep.subr.bf16.mxu1 %v10045_v2  ;;  %v10102_v54 = vld [vmem:[#allocation9 + $0x1f8] sm:$0xff]  }
 0x479   : > { %9766 = vmatpush3.bf16.msra.mxu0 %v10046_v23 }
 0x47a   : > { %9788 = vmatpush3.bf16.msra.mxu1 %v10047_v25  ;;  %9767 = vmatprep.subr.bf16.mxu0 %v10048_v10 }
 0x47b   : > { %9789 = vmatprep.subr.bf16.mxu1 %v10049_v26  ;;  %v7788_v26 = vld [vmem:[#allocation2 + $0x8] sm:$0xff] }
 0x47d   : > { %9768 = vmatpush3.bf16.msra.mxu0 %v10050_v27 }
 0x47e   : > { %9790 = vmatpush3.bf16.msra.mxu1 %v10051_v38  ;;  %9769 = vmatprep.subr.bf16.mxu0 %v10052_v29 }
 0x47f   : > { %9791 = vmatprep.subr.bf16.mxu1 %v10053_v8 }
 0x481   : > { %9770 = vmatpush3.bf16.msra.mxu0 %v10054_v50 }
 0x482   : > { %9792 = vmatpush3.bf16.msra.mxu1 %v10055_v31  ;;  %9771 = vmatprep.subr.bf16.mxu0 %v10056_v33  ;;  %v7790_v33 = vmul.f32 0.95, %v7788_v26 }
 0x483   : > { %9793 = vmatprep.subr.bf16.mxu1 %v10057_v60 }
 0x485   : > { %9772 = vmatpush3.bf16.msra.mxu0 %v10058_v34 }
 0x486   : > { %9794 = vmatpush3.bf16.msra.mxu1 %v10059_v0  ;;  %9773 = vmatprep.subr.bf16.mxu0 %v10060_v49 }
 0x487   : > { %9795 = vmatprep.subr.bf16.mxu1 %v10061_v36 }
 0x489   : > { %9774 = vmatpush3.bf16.msra.mxu0 %v10062_v37 }
 0x48a   : > { %9796 = vmatpush3.bf16.msra.mxu1 %v10063_v39  ;;  %9775 = vmatprep.subr.bf16.mxu0 %v10064_v21 }
 0x48b   : > { %9797 = vmatprep.subr.bf16.mxu1 %v10065_v40 }
 0x48d   : > { %9776 = vmatpush3.bf16.msra.mxu0 %v10066_v20 }
 0x48e   : > { %9798 = vmatpush3.bf16.msra.mxu1 %v10067_v42  ;;  %9777 = vmatprep.subr.bf16.mxu0 %v10068_v45 }
 0x48f   : > { %9799 = vmatprep.subr.bf16.mxu1 %v10069_v43 }
 0x491   : > { %9778 = vmatpush3.bf16.msra.mxu0 %v10070_v44 }
 0x492   : > { %9800 = vmatpush3.bf16.msra.mxu1 %v10071_v46  ;;  %9807 = vmatprep.subr.bf16.mxu0 %v10072_v47 }
 0x493   : > { %9829 = vmatprep.subr.bf16.mxu1 %v10074_v48 }
 0x494   : > { %8445 = vmatmul.mubr.bf16.vlgmr.msra.gmra.mrb[8].mxu0 %v7892_v53 }
 0x495   : > { %8485 = vmatmul.mubr.bf16.vlgmr.msra.gmra.mrb[8].mxu1 %v7894_v59  ;;  %9808 = vmatpush3.bf16.msra.mxu0 %v10073_v51 }
 0x496   : > { %9830 = vmatpush3.bf16.msra.mxu1 %v10075_v30  ;;  %9809 = vmatprep.subr.bf16.mxu0 %v10076_v55 }
 0x497   : > { %9831 = vmatprep.subr.bf16.mxu1 %v10078_v24 }
 0x499   : > { %9810 = vmatpush3.bf16.msra.mxu0 %v10077_v56 }
 0x49a   : > { %9832 = vmatpush3.bf16.msra.mxu1 %v10079_v57  ;;  %9811 = vmatprep.subr.bf16.mxu0 %v10080_v58 }
 0x49b   : > { %9833 = vmatprep.subr.bf16.mxu1 %v10082_v61 }
 0x49d   : > { %9812 = vmatpush3.bf16.msra.mxu0 %v10081_v62 }
 0x49e   : > { %9834 = vmatpush3.bf16.msra.mxu1 %v10083_v63  ;;  %9813 = vmatprep.subr.bf16.mxu0 %v10084_v52 }
 0x49f   : > { %9835 = vmatprep.subr.bf16.mxu1 %v10086_v3 }
 0x4a1   : > { %9814 = vmatpush3.bf16.msra.mxu0 %v10085_v9 }
 0x4a2   : > { %9836 = vmatpush3.bf16.msra.mxu1 %v10087_v6  ;;  %9815 = vmatprep.subr.bf16.mxu0 %v10088_v4  ;;  %v7847_v4 = vld [vmem:[#allocation3] sm:$0x3] }
 0x4a3   : > { %9837 = vmatprep.subr.bf16.mxu1 %v10090_v5 }
 0x4a5   : > { %9816 = vmatpush3.bf16.msra.mxu0 %v10089_v35 }
 0x4a6   : > { %9838 = vmatpush3.bf16.msra.mxu1 %v10091_v32  ;;  %9817 = vmatprep.subr.bf16.mxu0 %v10092_v12 }
 0x4a7   : > { %9839 = vmatprep.subr.bf16.mxu1 %v10094_v1 }
 0x4a9   : > { %9818 = vmatpush3.bf16.msra.mxu0 %v10093_v13 }
 0x4aa   : > { %9840 = vmatpush3.bf16.msra.mxu1 %v10095_v14  ;;  %9819 = vmatprep.subr.bf16.mxu0 %v10096_v15 }
 0x4ab   : > { %9841 = vmatprep.subr.bf16.mxu1 %v10098_v18 }
 0x4ad   : > { %9820 = vmatpush3.bf16.msra.mxu0 %v10097_v16 }
 0x4ae   : > { %9842 = vmatpush3.bf16.msra.mxu1 %v10099_v19  ;;  %9821 = vmatprep.subr.bf16.mxu0 %v10100_v11 }
 0x4af   : > { %9843 = vmatprep.subr.bf16.mxu1 %v10102_v54 }
 0x4b1   : > { %9822 = vmatpush3.bf16.msra.mxu0 %v10101_v28 }
 0x4b2   : > { %9844 = vmatpush3.bf16.msra.mxu1 %v10103_v17 }
 0x547   : > { %v7452_v2 = vpop.f32.mrb[4].mxu0  ;;  %v7780_v22 = vpop.f32.mrb[4].mxu1 }
 0x548   : > { %v7454_v23 = vpop.f32.mrb[5].mxu0  ;;  %v7782_v10 = vpop.f32.mrb[5].mxu1 }
 0x549   : > { %v7816_v25 = vcombine.low %v7452_v2, %v7454_v23  ;;  %v7456_v27 = vpop.f32.mrb[6].mxu0  ;;  %v7817_v38 = vcombine.low %v7780_v22, %v7782_v10  ;;  %v7784_v29 = vpop.f32.mrb[6].mxu1 }
 0x54a   : > { %v7457_v8 = vpop.f32.mrb[7].mxu0  ;;  %v7785_v31 = vpop.f32.mrb[7].mxu1 }
 0x54b   : > { %v7824_v50 = vrot.slane %v7816_v25, %v10598_v41  ;;  %v7831_v60 = vrot.slane %v7817_v38, %v10598_v41 }
 0x54d   : > { %v7832_v34 = vcombine.low %v7824_v50, %v7831_v60 }
 0x54f   : > { %v7836_v0 = vadd.f32 %v7832_v34, %v7790_v33 }
 0x551   : > { %vm7838_vm2 = vcmp.gt.f32.partialorder %v7836_v0, 1.0 }
 0x552   : > { %v9693_v49 = vsel %vm7838_vm2, 1.0, %v10270_v7 }
 0x553   : > { %v7844_v36 = vsub.f32 %v7836_v0, %v9693_v49  ;;  %v7874_v37 = vrot.slane %v9693_v49, %v10598_v41  ;;  %v7867_v39 = vcombine.high %v9693_v49, %v9693_v49 }
 0x555   : > { %7846 = vst [vmem:[#allocation2 + $0x8] sm:$0xff] %v7844_v36  ;;  %v7882_v21 = vcombine.high %v7874_v37, %v7874_v37  ;;  %v7881_v40 = vrot.slane %v7867_v39, %v10598_v41  ;;  %v7896_v45 = vpack.c.bf16 %v7874_v37, %v7874_v37 }
 0x557   : > { %v7897_v20 = vpack.c.bf16 %v7882_v21, %v7882_v21  ;;  %v7883_v42 = vcombine.high %v7881_v40, %v7881_v40  ;;  %v7898_v44 = vpack.c.bf16 %v7881_v40, %v7881_v40 }
 0x559   : > { %8524 = vmatprep.mubr.bf16.mxu0 %v7897_v20  ;;  %v7899_v43 = vpack.c.bf16 %v7883_v42, %v7883_v42 }
 0x55a   : > { %8525 = vmatmul.mubr.bf16.vlgmr.msra.gmra.mrb[12].mxu0 %v7896_v45 }
 0x55b   : > { %8564 = vmatprep.mubr.bf16.mxu1 %v7899_v43 }
 0x55c   : > { %8565 = vmatmul.mubr.bf16.vlgmr.msra.gmra.mrb[12].mxu1 %v7898_v44 }
 0x567   : > { %v9779_v46 = vpop.f32.mrb[8].mxu0 }
 0x568   : > { %v9801_v47 = vpop.f32.mrb[8].mxu1  ;;  %v9780_v7 = vpop.f32.mrb[9].mxu0 }
 0x569   : > { %v9781_v48 = vadd.f32 %v9780_v7, %v9779_v46  ;;  %v9802_v51 = vpop.f32.mrb[9].mxu1  ;;  %v9782_v53 = vpop.f32.mrb[10].mxu0 }
 0x56a   : > { %v9803_v30 = vadd.f32 %v9802_v51, %v9801_v47  ;;  %v9804_v55 = vpop.f32.mrb[10].mxu1  ;;  %v9783_v59 = vpop.f32.mrb[11].mxu0 }
 0x56b   : > { %v9805_v24 = vpop.f32.mrb[11].mxu1 }
 0x56c   : > { %v8487_v41 = vadd.f32 %v9803_v30, %v9781_v48 }
 0x62d   : > { %v9823_v56 = vpop.f32.mrb[12].mxu0 }
 0x62e   : > { %v9824_v57 = vpop.f32.mrb[13].mxu0 }
 0x62f   : > { %v9825_v58 = vadd.f32 %v9824_v57, %v9823_v56  ;;  %v9826_v61 = vpop.f32.mrb[14].mxu0  ;;  %v9845_v62 = vpop.f32.mrb[12].mxu1 }
 0x630   : > { %v9827_v63 = vpop.f32.mrb[15].mxu0  ;;  %v9846_v52 = vpop.f32.mrb[13].mxu1 }
 0x631   : > { %v8527_v9 = vadd.f32 %v9825_v58, %v8487_v41  ;;  %v9847_v3 = vadd.f32 %v9846_v52, %v9845_v62  ;;  %v9848_v6 = vpop.f32.mrb[14].mxu1 }
 0x632   : > { %v9849_v35 = vpop.f32.mrb[15].mxu1 }
 0x633   : > { %v8567_v5 = vadd.f32 %v9847_v3, %v8527_v9 }
 0x635   : > { %v8572_v32 = vadd.f32 %v8567_v5, %v7847_v4 }
 0x637   : > { %8574 = vst.msk [vmem:[#allocation3] sm:$0x3] %vm8573_vm3, %v8572_v32 }
 0x63e   : > { %v8575_v12 = vld [vmem:[#allocation3] sm:$0x3] }
 0x63f   : > { %v8577_v13 = vmul.f32 0.25, %v8575_v12 }
 0x641   : > { %8578 = vst.msk [vmem:[#allocation10] sm:$0x3] %vm8573_vm3, %v8577_v13 }
 0x642   : > { %10203 = shalt.err (!%p10200_p0)
}
 0x643   : > { %s10204_s11 = scalar_lea.hbm %s10685_s3, 32 }
 0x644   : > { %p10205_p2 = scmp.ne.s32.totalorder %s10685_s3, %s10204_s11  ;;  %p10210_p3 = scmp.lt.u32.totalorder %s10204_s11, %s10685_s3 }
 0x646   : > { %p10206_p13 = pnand %p10205_p2, %p9993_p10 }
 0x648   : > { %p10207_p11 = pneg %p10206_p13 }
 0x64a   : > { %p10212_p8 = pnand %p10210_p3, %p10207_p11 }
 0x64c   : > { %10215 = shalt.err (!%p10212_p8)
}
 0x64d   : > { %9974 = dma.vmem_to_hbm [thread:$0]  (%p9993_p10), %s8587_s18, 32, %s10685_s3, [#allocation6]  }
 0x64e   : > { %10241 = dma.done.wait (%p9993_p10), [#allocation6], 32  }
 0x64f   : > { %10243 = vsyncadd (%p9993_p10), [#allocation6], 4294967264 }
 0x650 PF: > { %p15_p7 = scmp.ge.s32.totalorder %s10386_s29, 6   ;;  %s10698_s12 = smov %s10250_s13 }
 0x651   : > { %s10699_s13 = smov %s10254_s14  ;;  %s10700_s14 = smov %s10395_s5 }
 0x652   : > { %s10701_s15 = smov %s10386_s29  ;;  %17 = sbr.rel (!%p15_p7) target bundleno = 5 (0x5), region = 81 }
 0x659   :  { %8599 = vsyncpa [#allocation5], 1 }
 0x65a   :  { %8601 = vsyncpa [#allocation5 + $0x1], 1 }
 0x65b   :  { %8602 = vsyncpa [#allocation8], 1 }
 0x65c   :  { %8603 = vsyncpa [#allocation6], 1 }
 0x65d   :  { %8605 = vsyncpa [#allocation6 + $0x1], 1 }

</bundles_post_ra>
